<compile_context>
chip_gen: v7x
topology: tpu7x:2x2x1
jax: 0.10.0
libtpu: 0.0.40
codegen_flags: <defaults>
</compile_context>

<pallas_src>
import math

import jax
import jax.numpy as jnp
from jax.experimental import pallas as pl
from jax.experimental.pallas import tpu as pltpu

# ----------------------------- model config ---------------------------------
STRIDES = (8, 16, 32)
BK_DIM_2D = (32, 64, 128)
BK_DIM_3D = 48
HEAD_DIM = 32
NUM_CLASSES = 1
NUM_HEAD_LAYERS = 2
CENTERED_CLIP = False
INIT_PROB = 0.01
CONF_BIAS = -math.log((1.0 - INIT_PROB) / INIT_PROB)

# packed-slab geometry
CMAX = max(BK_DIM_2D)                 # 128: per-branch 2D width, padded
C2 = 2 * CMAX                         # 256: [cls2D | reg2D]
C3P = 64                              # 3D width padded 48 -> 64
CIN = C2 + C3P                        # 320: fused backbone feature width
D2 = 2 * HEAD_DIM                     # 64:  [cls_feat | reg_feat]
KW = CIN + D2 * NUM_HEAD_LAYERS       # 448: rows of the matmul weight slab
POUT = 128                            # lane-dense prediction width
OUT_W = 1 + 4 + NUM_CLASSES           # real prediction columns [conf|reg4|cls]

ENC_HEAD_DTYPE = jnp.bfloat16         # MXU operands for encoder/head matmuls


# ------------------------------- utilities ----------------------------------
def _round_up(x, m):
    return ((x + m - 1) // m) * m


def _row_tiling(m_max, cap=1024):
    """Rows padded to mp, row tile tm (tm | mp, both multiples of 8)."""
    mp = _round_up(m_max, 8)
    if mp <= cap:
        return mp, mp                 # whole level in one block
    tm = cap
    return _round_up(mp, tm), tm


# -------------------------- the single fused kernel --------------------------
def _yowo_fused_kernel(x_ref, wf_ref, wm_ref, wp_ref, bm_ref, o_ref):
    x = x_ref[0]                       # (TM, 8)     f32  [x2d|x3u|1|0]
    wf = wf_ref[0]                     # (8, CIN)    f32  backbone surrogates
    wm = wm_ref[0]                     # (KW, D2)    bf16 encoder + head layers
    wp = wp_ref[0]                     # (D2, POUT)  f32  prediction weights
    bm = bm_ref[0]                     # (4, POUT)   f32  biases

    # fused 2D + 3D backbone surrogates (1x1 convs; bias via the ones column)
    feat_in = jnp.maximum(
        jnp.dot(x, wf, preferred_element_type=jnp.float32), 0.0)      # (TM, CIN)

    # fused cls/reg channel encoders (block-diagonal over [cls2D|reg2D|3D])
    feat = jnp.dot(feat_in.astype(wm.dtype), wm[:CIN, :],
                   preferred_element_type=jnp.float32) + bm[0:1, :D2]
    feat = jnp.maximum(feat, 0.0)                                      # (TM, 64)

    # decoupled head layers (block-diagonal [cls|reg] weights)
    for li in range(NUM_HEAD_LAYERS):
        r0 = CIN + D2 * li
        feat = jnp.dot(feat.astype(wm.dtype), wm[r0:r0 + D2, :],
                       preferred_element_type=jnp.float32) + bm[1 + li:2 + li, :D2]
        feat = jnp.maximum(feat, 0.0)

    # packed, lane-dense predictions: cols [conf | reg4 | cls | zero-pad]
    pred = jnp.dot(feat, wp, preferred_element_type=jnp.float32) + bm[3:4, :]
    o_ref[0] = pred.astype(o_ref.dtype)


def yowo_pallas(x_in, params, tm):
    """x_in: (L, Mp, 8) packed per-level rows. Returns (L, Mp, POUT) f32."""
    L, mp, _ = x_in.shape
    grid = (L, mp // tm)
    return pl.pallas_call(
        _yowo_fused_kernel,
        out_shape=jax.ShapeDtypeStruct((L, mp, POUT), jnp.float32),
        grid=grid,
        in_specs=[
            pl.BlockSpec((1, tm, 8), lambda l, r: (l, r, 0)),
            pl.BlockSpec((1, 8, CIN), lambda l, r: (l, 0, 0)),
            pl.BlockSpec((1, KW, D2), lambda l, r: (l, 0, 0)),
            pl.BlockSpec((1, D2, POUT), lambda l, r: (l, 0, 0)),
            pl.BlockSpec((1, 4, POUT), lambda l, r: (l, 0, 0)),
        ],
        out_specs=pl.BlockSpec((1, tm, POUT), lambda l, r: (l, r, 0)),
        compiler_params=pltpu.CompilerParams(
            dimension_semantics=("parallel", "parallel")),
    )(x_in, params["w_fma"], params["w_mm"], params["w_pred"], params["b_mm"])


# ------------------------------- glue (JAX) ----------------------------------
def avg_pool_nchw(x, s):
    b, c, h, w = x.shape
    return x.reshape(b, c, h // s, s, w // s, s).mean(axis=(3, 5))


def nearest_up_nchw(x, f):
    if f == 1:
        return x
    return jnp.repeat(jnp.repeat(x, f, axis=2), f, axis=3)


def generate_anchors(fmp_h, fmp_w, stride):
    ys, xs = jnp.meshgrid(jnp.arange(fmp_h), jnp.arange(fmp_w), indexing="ij")
    xy = jnp.stack([xs, ys], axis=-1).astype(jnp.float32).reshape(-1, 2) + 0.5
    return xy * stride                                      # [H*W, 2]


def decode_boxes(anchors, pred_reg, stride):
    ctr = anchors + pred_reg[..., :2] * stride
    wh = jnp.exp(pred_reg[..., 2:]) * stride
    return jnp.concatenate([ctr - 0.5 * wh, ctr + 0.5 * wh], axis=-1)


# ------------------------------ parameters -----------------------------------
def _init_linear(key, cin, cout, bias_fill=None):
    kw, kb = jax.random.split(key)
    w = jax.random.normal(kw, (cin, cout), jnp.float32) / math.sqrt(cin)
    if bias_fill is None:
        b = 0.01 * jax.random.normal(kb, (cout,), jnp.float32)
    else:
        b = jnp.full((cout,), bias_fill, jnp.float32)
    return w, b


def init_params(key):
    keys = iter(jax.random.split(key, 64))
    wb3, bb3 = _init_linear(next(keys), 3, BK_DIM_3D)       # shared 3D backbone

    w_fma, w_mm, w_pred, b_mm = [], [], [], []
    for lvl in range(len(STRIDES)):
        c2d = BK_DIM_2D[lvl]
        # 2D backbone surrogate (K=3 1x1 conv per branch)
        w2c, b2c = _init_linear(next(keys), 3, c2d)
        w2r, b2r = _init_linear(next(keys), 3, c2d)
        # channel encoders, split into 2D and 3D halves (== conv over concat)
        wec2d, bec = _init_linear(next(keys), c2d, HEAD_DIM)
        wec3d, _ = _init_linear(next(keys), BK_DIM_3D, HEAD_DIM)
        wer2d, ber = _init_linear(next(keys), c2d, HEAD_DIM)
        wer3d, _ = _init_linear(next(keys), BK_DIM_3D, HEAD_DIM)
        # decoupled head layers
        whc, bhc, whr, bhr = [], [], [], []
        for _ in range(NUM_HEAD_LAYERS):
            w, b = _init_linear(next(keys), HEAD_DIM, HEAD_DIM)
            whc.append(w); bhc.append(b)
            w, b = _init_linear(next(keys), HEAD_DIM, HEAD_DIM)
            whr.append(w); bhr.append(b)
        # prediction layers
        wconf, bconf = _init_linear(next(keys), HEAD_DIM, 1, CONF_BIAS)
        wcls, bcls = _init_linear(next(keys), HEAD_DIM, NUM_CLASSES, CONF_BIAS)
        wreg, breg = _init_linear(next(keys), HEAD_DIM, 4)

        # --- slab 1: fused backbone FMA/matmul weights (8, CIN), f32 --------
        # rows 0..2: x2d columns; rows 3..5: x3d_up columns; row 6: biases.
        wf = jnp.zeros((8, CIN), jnp.float32)
        wf = wf.at[0:3, 0:c2d].set(w2c)
        wf = wf.at[0:3, CMAX:CMAX + c2d].set(w2r)
        wf = wf.at[3:6, C2:C2 + BK_DIM_3D].set(wb3)
        wf = wf.at[6, 0:c2d].set(b2c)
        wf = wf.at[6, CMAX:CMAX + c2d].set(b2r)
        wf = wf.at[6, C2:C2 + BK_DIM_3D].set(bb3)
        w_fma.append(wf)

        # --- slab 2: encoder + head matmul weights (KW, D2), bf16 -----------
        wm = jnp.zeros((KW, D2), jnp.float32)
        wm = wm.at[0:c2d, 0:HEAD_DIM].set(wec2d)                    # cls2D -> cls
        wm = wm.at[CMAX:CMAX + c2d, HEAD_DIM:D2].set(wer2d)         # reg2D -> reg
        wm = wm.at[C2:C2 + BK_DIM_3D, 0:HEAD_DIM].set(wec3d)        # 3D -> cls
        wm = wm.at[C2:C2 + BK_DIM_3D, HEAD_DIM:D2].set(wer3d)       # 3D -> reg
        for li in range(NUM_HEAD_LAYERS):
            r0 = CIN + D2 * li
            wm = wm.at[r0:r0 + HEAD_DIM, 0:HEAD_DIM].set(whc[li])
            wm = wm.at[r0 + HEAD_DIM:r0 + D2, HEAD_DIM:D2].set(whr[li])
        w_mm.append(wm)

        # --- slab 3: prediction weights (D2, POUT), f32 ---------------------
        # output columns: [conf | reg4 | cls | zero-pad]
        wp = jnp.zeros((D2, POUT), jnp.float32)
        wp = wp.at[0:HEAD_DIM, 5:5 + NUM_CLASSES].set(wcls)         # cls_feat -> cls
        wp = wp.at[HEAD_DIM:D2, 0:1].set(wconf)                     # reg_feat -> conf
        wp = wp.at[HEAD_DIM:D2, 1:5].set(wreg)                      # reg_feat -> reg
        w_pred.append(wp)

        # --- slab 4: biases (4, POUT), f32 -----------------------------------
        bm = jnp.zeros((4, POUT), jnp.float32)
        bm = bm.at[0, 0:HEAD_DIM].set(bec).at[0, HEAD_DIM:D2].set(ber)
        for li in range(NUM_HEAD_LAYERS):
            bm = bm.at[1 + li, 0:HEAD_DIM].set(bhc[li])
            bm = bm.at[1 + li, HEAD_DIM:D2].set(bhr[li])
        bm = bm.at[3, 0:1].set(bconf).at[3, 1:5].set(breg)
        bm = bm.at[3, 5:5 + NUM_CLASSES].set(bcls)
        b_mm.append(bm)

    return {
        "w_fma": jnp.stack(w_fma),                            # (L, 8, CIN)  f32
        "w_mm": jnp.stack(w_mm).astype(ENC_HEAD_DTYPE),       # (L, KW, D2)  bf16
        "w_pred": jnp.stack(w_pred),                          # (L, D2, POUT) f32
        "b_mm": jnp.stack(b_mm),                              # (L, 4, POUT) f32
    }


# ------------------------------ forward pass ---------------------------------
def yowo_forward(params, video_clips, *, tm_cap=1024):
    """video_clips: [B, 3, T, H, W] (PyTorch layout). Returns inference_train dict."""
    B, _, T, H, W = video_clips.shape

    # key-frame select + temporal mean in the native NCHW layout (no full
    # video transpose: only tiny pooled tensors ever change layout).
    key_frame = video_clips[:, :, T // 2] if CENTERED_CLIP else video_clips[:, :, -1]
    mean_t = jnp.mean(video_clips, axis=2)                    # (B, 3, H, W)
    x3_32 = avg_pool_nchw(mean_t, STRIDES[-1])                # (B, 3, h32, w32)

    ms = [B * (H // s) * (W // s) for s in STRIDES]
    mp, tm = _row_tiling(max(ms), tm_cap)

    # Pack per-level kernel inputs: rows = pixels, cols = [x2d(3)|x3u(3)|1|0].
    x_levels = []
    for level, stride in enumerate(STRIDES):
        hs, ws = H // stride, W // stride
        f = 2 ** (len(STRIDES) - 1 - level)
        x2d = avg_pool_nchw(key_frame, stride)                # (B, 3, hs, ws)
        x3u = nearest_up_nchw(x3_32, f)                       # (B, 3, hs, ws)
        xin = jnp.concatenate([x2d, x3u], axis=1)             # (B, 6, hs, ws)
        xin = jnp.transpose(xin, (0, 2, 3, 1)).reshape(-1, 6)  # (M, 6)
        ones = jnp.ones((xin.shape[0], 1), jnp.float32)       # bias column
        zero = jnp.zeros((xin.shape[0], 1), jnp.float32)
        xin = jnp.concatenate([xin, ones, zero], axis=1)      # (M, 8)
        xin = jnp.pad(xin, ((0, mp - ms[level]), (0, 0)))     # (Mp, 8)
        x_levels.append(xin)
    x_in = jnp.stack(x_levels)                                # (L, Mp, 8)

    # ONE fused Pallas call for every level of the whole network.
    pred_all = yowo_pallas(x_in, params, tm)                  # (L, Mp, POUT)

    all_conf, all_cls, all_box, all_anchors = [], [], [], []
    for level, stride in enumerate(STRIDES):
        hs, ws = H // stride, W // stride
        m_l = ms[level]
        p = pred_all[level, :m_l, :OUT_W]                     # (M, 1+4+C)

        conf_pred = p[:, 0:1].reshape(B, hs * ws, 1)
        reg_pred = p[:, 1:5].reshape(B, hs * ws, 4)
        cls_pred = p[:, 5:5 + NUM_CLASSES].reshape(B, hs * ws, NUM_CLASSES)

        anchors = generate_anchors(hs, ws, stride)            # [hs*ws, 2]
        box_pred = decode_boxes(anchors, reg_pred, stride)    # [B, hs*ws, 4]

        all_conf.append(conf_pred)
        all_cls.append(cls_pred)
        all_box.append(box_pred)
        all_anchors.append(anchors)

    return {
        "pred_conf": all_conf,
        "pred_cls": all_cls,
        "pred_box": all_box,
        "anchors": all_anchors,
        "strides": list(STRIDES),
    }


# ---------------------------------- main --------------------------------------
if __name__ == "__main__":
    B, T, H, W = 2, 8, 64, 64
    video_clips = jax.random.normal(jax.random.PRNGKey(0), (B, 3, T, H, W),
                                    jnp.float32)
    params = init_params(jax.random.PRNGKey(42))

    fwd = jax.jit(yowo_forward)
    outputs = fwd(params, video_clips)
    jax.block_until_ready(outputs)

    # light sanity checks on shapes / finiteness
    for lvl, s in enumerate(STRIDES):
        m = (H // s) * (W // s)
        assert outputs["pred_conf"][lvl].shape == (B, m, 1)
        assert outputs["pred_cls"][lvl].shape == (B, m, NUM_CLASSES)
        assert outputs["pred_box"][lvl].shape == (B, m, 4)
        assert outputs["anchors"][lvl].shape == (m, 2)
        assert bool(jnp.isfinite(outputs["pred_box"][lvl]).all())

    print("KERNEL_OK")
</pallas_src>

<mosaic_0001>
module attributes {stable_mosaic.version = 11 : i64} {
  func.func @_yowo_fused_kernel(%arg0: i32, %arg1: i32, %arg2: memref<1x128x8xf32, #tpu.memory_space<vmem>>, %arg3: memref<1x8x320xf32, #tpu.memory_space<vmem>>, %arg4: memref<1x448x64xbf16, #tpu.memory_space<vmem>>, %arg5: memref<1x64x128xf32, #tpu.memory_space<vmem>>, %arg6: memref<1x4x128xf32, #tpu.memory_space<vmem>>, %arg7: memref<1x128x128xf32, #tpu.memory_space<vmem>>) attributes {dimension_semantics = [#tpu.dimension_semantics<parallel>, #tpu.dimension_semantics<parallel>], iteration_bounds = array<i64: 3, 1>, scalar_prefetch = 0 : i64, scratch_operands = 0 : i64, tpu.core_type = #tpu.core_type<tc>, window_params = [{transform_indices = @transform_0, window_bounds = array<i64: 1, 128, 8>}, {transform_indices = @transform_1, window_bounds = array<i64: 1, 8, 320>}, {transform_indices = @transform_2, window_bounds = array<i64: 1, 448, 64>}, {transform_indices = @transform_3, window_bounds = array<i64: 1, 64, 128>}, {transform_indices = @transform_4, window_bounds = array<i64: 1, 4, 128>}, {transform_indices = @transform_5, window_bounds = array<i64: 1, 128, 128>}]} {
    %c0 = arith.constant 0 : index
    %c0_0 = arith.constant 0 : index
    %c0_1 = arith.constant 0 : index
    %0 = vector.load %arg2[%c0, %c0_0, %c0_1] : memref<1x128x8xf32, #tpu.memory_space<vmem>>, vector<1x128x8xf32>
    %1 = vector.shape_cast %0 : vector<1x128x8xf32> to vector<128x8xf32>
    %c0_2 = arith.constant 0 : index
    %c0_3 = arith.constant 0 : index
    %c0_4 = arith.constant 0 : index
    %2 = vector.load %arg3[%c0_2, %c0_3, %c0_4] : memref<1x8x320xf32, #tpu.memory_space<vmem>>, vector<1x8x320xf32>
    %3 = vector.shape_cast %2 : vector<1x8x320xf32> to vector<8x320xf32>
    %c0_5 = arith.constant 0 : index
    %c0_6 = arith.constant 0 : index
    %c0_7 = arith.constant 0 : index
    %4 = vector.load %arg4[%c0_5, %c0_6, %c0_7] : memref<1x448x64xbf16, #tpu.memory_space<vmem>>, vector<1x448x64xbf16>
    %5 = vector.shape_cast %4 : vector<1x448x64xbf16> to vector<448x64xbf16>
    %c0_8 = arith.constant 0 : index
    %c0_9 = arith.constant 0 : index
    %c0_10 = arith.constant 0 : index
    %6 = vector.load %arg5[%c0_8, %c0_9, %c0_10] : memref<1x64x128xf32, #tpu.memory_space<vmem>>, vector<1x64x128xf32>
    %7 = vector.shape_cast %6 : vector<1x64x128xf32> to vector<64x128xf32>
    %c0_11 = arith.constant 0 : index
    %c0_12 = arith.constant 0 : index
    %c0_13 = arith.constant 0 : index
    %8 = vector.load %arg6[%c0_11, %c0_12, %c0_13] : memref<1x4x128xf32, #tpu.memory_space<vmem>>, vector<1x4x128xf32>
    %9 = vector.shape_cast %8 : vector<1x4x128xf32> to vector<4x128xf32>
    %cst = arith.constant dense<0.000000e+00> : vector<128x320xf32>
    %10 = tpu.matmul %1, %3, %cst {dimension_numbers = #tpu.dot_dimension_numbers<[1], [0], [0], [1], [0, 0, 1, 1], [], []>} : vector<128x8xf32>, vector<8x320xf32>, vector<128x320xf32> -> vector<128x320xf32>
    %cst_14 = arith.constant 0.000000e+00 : f32
    %11 = vector.broadcast %cst_14 : f32 to vector<128x320xf32>
    %12 = arith.maximumf %10, %11 : vector<128x320xf32>
    %13 = arith.truncf %12 : vector<128x320xf32> to vector<128x320xbf16>
    %14 = vector.extract_strided_slice %5 {offsets = [0, 0], sizes = [320, 64], strides = [1, 1]} : vector<448x64xbf16> to vector<320x64xbf16>
    %cst_15 = arith.constant dense<0.000000e+00> : vector<128x64xf32>
    %15 = tpu.matmul %13, %14, %cst_15 {dimension_numbers = #tpu.dot_dimension_numbers<[1], [0], [0], [1], [0, 0, 1, 1], [], []>} : vector<128x320xbf16>, vector<320x64xbf16>, vector<128x64xf32> -> vector<128x64xf32>
    %16 = vector.extract_strided_slice %9 {offsets = [0, 0], sizes = [1, 64], strides = [1, 1]} : vector<4x128xf32> to vector<1x64xf32>
    %17 = vector.broadcast %16 : vector<1x64xf32> to vector<128x64xf32>
    %18 = arith.addf %15, %17 : vector<128x64xf32>
    %cst_16 = arith.constant 0.000000e+00 : f32
    %19 = vector.broadcast %cst_16 : f32 to vector<128x64xf32>
    %20 = arith.maximumf %18, %19 : vector<128x64xf32>
    %21 = arith.truncf %20 : vector<128x64xf32> to vector<128x64xbf16>
    %22 = vector.extract_strided_slice %5 {offsets = [320, 0], sizes = [64, 64], strides = [1, 1]} : vector<448x64xbf16> to vector<64x64xbf16>
    %cst_17 = arith.constant dense<0.000000e+00> : vector<128x64xf32>
    %23 = tpu.matmul %21, %22, %cst_17 {dimension_numbers = #tpu.dot_dimension_numbers<[1], [0], [0], [1], [0, 0, 1, 1], [], []>} : vector<128x64xbf16>, vector<64x64xbf16>, vector<128x64xf32> -> vector<128x64xf32>
    %24 = vector.extract_strided_slice %9 {offsets = [1, 0], sizes = [1, 64], strides = [1, 1]} : vector<4x128xf32> to vector<1x64xf32>
    %25 = vector.broadcast %24 : vector<1x64xf32> to vector<128x64xf32>
    %26 = arith.addf %23, %25 : vector<128x64xf32>
    %cst_18 = arith.constant 0.000000e+00 : f32
    %27 = vector.broadcast %cst_18 : f32 to vector<128x64xf32>
    %28 = arith.maximumf %26, %27 : vector<128x64xf32>
    %29 = arith.truncf %28 : vector<128x64xf32> to vector<128x64xbf16>
    %30 = vector.extract_strided_slice %5 {offsets = [384, 0], sizes = [64, 64], strides = [1, 1]} : vector<448x64xbf16> to vector<64x64xbf16>
    %cst_19 = arith.constant dense<0.000000e+00> : vector<128x64xf32>
    %31 = tpu.matmul %29, %30, %cst_19 {dimension_numbers = #tpu.dot_dimension_numbers<[1], [0], [0], [1], [0, 0, 1, 1], [], []>} : vector<128x64xbf16>, vector<64x64xbf16>, vector<128x64xf32> -> vector<128x64xf32>
    %32 = vector.extract_strided_slice %9 {offsets = [2, 0], sizes = [1, 64], strides = [1, 1]} : vector<4x128xf32> to vector<1x64xf32>
    %33 = vector.broadcast %32 : vector<1x64xf32> to vector<128x64xf32>
    %34 = arith.addf %31, %33 : vector<128x64xf32>
    %cst_20 = arith.constant 0.000000e+00 : f32
    %35 = vector.broadcast %cst_20 : f32 to vector<128x64xf32>
    %36 = arith.maximumf %34, %35 : vector<128x64xf32>
    %cst_21 = arith.constant dense<0.000000e+00> : vector<128x128xf32>
    %37 = tpu.matmul %36, %7, %cst_21 {dimension_numbers = #tpu.dot_dimension_numbers<[1], [0], [0], [1], [0, 0, 1, 1], [], []>} : vector<128x64xf32>, vector<64x128xf32>, vector<128x128xf32> -> vector<128x128xf32>
    %38 = vector.extract_strided_slice %9 {offsets = [3, 0], sizes = [1, 128], strides = [1, 1]} : vector<4x128xf32> to vector<1x128xf32>
    %39 = vector.broadcast %38 : vector<1x128xf32> to vector<128x128xf32>
    %40 = arith.addf %37, %39 : vector<128x128xf32>
    %c0_22 = arith.constant 0 : index
    %c0_23 = arith.constant 0 : index
    %c0_24 = arith.constant 0 : index
    %41 = vector.load %arg7[%c0_22, %c0_23, %c0_24] : memref<1x128x128xf32, #tpu.memory_space<vmem>>, vector<1x128x128xf32>
    %42 = vector.shape_cast %41 : vector<1x128x128xf32> to vector<128x128xf32>
    %43 = vector.shape_cast %40 : vector<128x128xf32> to vector<1x128x128xf32>
    tpu.vector_store %arg7[%c0_22, %c0_23, %c0_24], %43 {strides = array<i32>} : memref<1x128x128xf32, #tpu.memory_space<vmem>>, vector<1x128x128xf32>,
    return
  }
  func.func @transform_0(%arg0: i32, %arg1: i32) -> (i32, i32, i32) {
    %c0_i32 = arith.constant 0 : i32
    %c0_i32_0 = arith.constant 0 : i32
    return %arg0, %arg1, %c0_i32 : i32, i32, i32
  }
  func.func @transform_1(%arg0: i32, %arg1: i32) -> (i32, i32, i32) {
    %c0_i32 = arith.constant 0 : i32
    %c0_i32_0 = arith.constant 0 : i32
    %c0_i32_1 = arith.constant 0 : i32
    return %arg0, %c0_i32, %c0_i32_0 : i32, i32, i32
  }
  func.func @transform_2(%arg0: i32, %arg1: i32) -> (i32, i32, i32) {
    %c0_i32 = arith.constant 0 : i32
    %c0_i32_0 = arith.constant 0 : i32
    %c0_i32_1 = arith.constant 0 : i32
    return %arg0, %c0_i32, %c0_i32_0 : i32, i32, i32
  }
  func.func @transform_3(%arg0: i32, %arg1: i32) -> (i32, i32, i32) {
    %c0_i32 = arith.constant 0 : i32
    %c0_i32_0 = arith.constant 0 : i32
    %c0_i32_1 = arith.constant 0 : i32
    return %arg0, %c0_i32, %c0_i32_0 : i32, i32, i32
  }
  func.func @transform_4(%arg0: i32, %arg1: i32) -> (i32, i32, i32) {
    %c0_i32 = arith.constant 0 : i32
    %c0_i32_0 = arith.constant 0 : i32
    %c0_i32_1 = arith.constant 0 : i32
    return %arg0, %c0_i32, %c0_i32_0 : i32, i32, i32
  }
  func.func @transform_5(%arg0: i32, %arg1: i32) -> (i32, i32, i32) {
    %c0_i32 = arith.constant 0 : i32
    %c0_i32_0 = arith.constant 0 : i32
    return %arg0, %arg1, %c0_i32 : i32, i32, i32
  }
}

</mosaic_0001>

<bundles_post_ra>
// kernel: squeeze.8
= control target key start
LH: loop header
LB: loop body
LE: loop exit
PB: predicated region body
PF: predicated region fallthrough
CT: control target
= control target key end

     0   :  { %vm3_vm0 = vcmask 261120   ;;  %s3929_s12 = smov 96   ;;  %s5557_s0 = inlined_call_operand.vmem [shape: f32[2,3,1,64,64], index: 0, kind: input, shape index: {}]   ;;  %s5558_s1 = inlined_call_operand.vmem [shape: f32[2,3,2,32,2,32], index: 1, kind: output, shape index: {}]  }
   0x1   :  { %v3499_v0 = vld [vmem:[%s5557_s0 + $0x10] sm:$0xff]   ;;  %v335_v1 = vld [vmem:[%s5557_s0] sm:$0xff]   ;;  %v3500_v2 = vld [vmem:[%s5557_s0 + $0x18] sm:$0xff]  }
   0x2   :  { %354 = vrot.lane.b32.xlu1 %v3499_v0, %s3929_s12  ;;  %336 = vrot.lane.b32.xlu0 %v335_v1, %s3929_s12  ;;  %v3498_v3 = vld [vmem:[%s5557_s0 + $0x8] sm:$0xff]   ;;  %17 = vst.msk [vmem:[#allocation0 + $0x80] ss:$8 sm:$0xf] %vm3_vm0, %v3499_v0   ;;  %v3501_v5 = vld [vmem:[%s5557_s0 + $0x20] sm:$0xff]  }
   0x3   :  { %v3502_v4 = vld [vmem:[%s5557_s0 + $0x28] sm:$0xff]   ;;  %19 = vst.msk [vmem:[#allocation0 + $0x80] ss:$8 sm:$0xf0] %vm3_vm0, %v3499_v0   ;;  %v3504_v6 = vld [vmem:[%s5557_s0 + $0x38] sm:$0xff]   ;;  %v3503_v7 = vld [vmem:[%s5557_s0 + $0x30] sm:$0xff]  }
   0x4   :  { %4 = vst.msk [vmem:[#allocation0] ss:$8 sm:$0xf] %vm3_vm0, %v335_v1   ;;  %5 = vst.msk [vmem:[#allocation0] ss:$8 sm:$0xf0] %vm3_vm0, %v335_v1  }
   0x5   :  { %24 = vst.msk [vmem:[#allocation0 + $0xc0] ss:$8 sm:$0xf] %vm3_vm0, %v3500_v2   ;;  %26 = vst.msk [vmem:[#allocation0 + $0xc0] ss:$8 sm:$0xf0] %vm3_vm0, %v3500_v2  }
   0x6   :  { %10 = vst.msk [vmem:[#allocation0 + $0x40] ss:$8 sm:$0xf] %vm3_vm0, %v3498_v3   ;;  %12 = vst.msk [vmem:[#allocation0 + $0x40] ss:$8 sm:$0xf0] %vm3_vm0, %v3498_v3   ;;  %363 = vrot.lane.b32.xlu1 %v3500_v2, %s3929_s12  ;;  %345 = vrot.lane.b32.xlu0 %v3498_v3, %s3929_s12 }
   0x7   :  { %38 = vst.msk [vmem:[#allocation0 + $0x140] ss:$8 sm:$0xf] %vm3_vm0, %v3502_v4   ;;  %40 = vst.msk [vmem:[#allocation0 + $0x140] ss:$8 sm:$0xf0] %vm3_vm0, %v3502_v4  }
   0x8   :  { %v3506_v8 = vld [vmem:[%s5557_s0 + $0x48] sm:$0xff]   ;;  %v3505_v9 = vld [vmem:[%s5557_s0 + $0x40] sm:$0xff]   ;;  %v3508_v10 = vld [vmem:[%s5557_s0 + $0x58] sm:$0xff]   ;;  %31 = vst.msk [vmem:[#allocation0 + $0x100] ss:$8 sm:$0xf] %vm3_vm0, %v3501_v5  }
   0x9   :  { %33 = vst.msk [vmem:[#allocation0 + $0x100] ss:$8 sm:$0xf0] %vm3_vm0, %v3501_v5   ;;  %52 = vst.msk [vmem:[#allocation0 + $0x1c0] ss:$8 sm:$0xf] %vm3_vm0, %v3504_v6  }
   0xa   :  { %54 = vst.msk [vmem:[#allocation0 + $0x1c0] ss:$8 sm:$0xf0] %vm3_vm0, %v3504_v6   ;;  %45 = vst.msk [vmem:[#allocation0 + $0x180] ss:$8 sm:$0xf] %vm3_vm0, %v3503_v7   ;;  %381 = vrot.lane.b32.xlu1 %v3502_v4, %s3929_s12  ;;  %372 = vrot.lane.b32.xlu0 %v3501_v5, %s3929_s12 }
   0xb   :  { %47 = vst.msk [vmem:[#allocation0 + $0x180] ss:$8 sm:$0xf0] %vm3_vm0, %v3503_v7   ;;  %v3507_v11 = vld [vmem:[%s5557_s0 + $0x50] sm:$0xff]   ;;  %v3510_v12 = vld [vmem:[%s5557_s0 + $0x68] sm:$0xff]   ;;  %v3509_v13 = vld [vmem:[%s5557_s0 + $0x60] sm:$0xff]  }
   0xc   :  { %66 = vst.msk [vmem:[#allocation0 + $0x240] ss:$8 sm:$0xf] %vm3_vm0, %v3506_v8   ;;  %68 = vst.msk [vmem:[#allocation0 + $0x240] ss:$8 sm:$0xf0] %vm3_vm0, %v3506_v8  }
   0xd   :  { %59 = vst.msk [vmem:[#allocation0 + $0x200] ss:$8 sm:$0xf] %vm3_vm0, %v3505_v9   ;;  %61 = vst.msk [vmem:[#allocation0 + $0x200] ss:$8 sm:$0xf0] %vm3_vm0, %v3505_v9  }
   0xe   :  { %80 = vst.msk [vmem:[#allocation0 + $0x2c0] ss:$8 sm:$0xf] %vm3_vm0, %v3508_v10   ;;  %82 = vst.msk [vmem:[#allocation0 + $0x2c0] ss:$8 sm:$0xf0] %vm3_vm0, %v3508_v10   ;;  %399 = vrot.lane.b32.xlu1 %v3504_v6, %s3929_s12  ;;  %390 = vrot.lane.b32.xlu0 %v3503_v7, %s3929_s12 }
   0xf   :  { %v3512_v14 = vld [vmem:[%s5557_s0 + $0x78] sm:$0xff]   ;;  %v3511_v15 = vld [vmem:[%s5557_s0 + $0x70] sm:$0xff]   ;;  %73 = vst.msk [vmem:[#allocation0 + $0x280] ss:$8 sm:$0xf] %vm3_vm0, %v3507_v11   ;;  %v3514_v16 = vld [vmem:[%s5557_s0 + $0x88] sm:$0xff]  }
  0x10   :  { %75 = vst.msk [vmem:[#allocation0 + $0x280] ss:$8 sm:$0xf0] %vm3_vm0, %v3507_v11   ;;  %94 = vst.msk [vmem:[#allocation0 + $0x340] ss:$8 sm:$0xf] %vm3_vm0, %v3510_v12  }
  0x11   :  { %96 = vst.msk [vmem:[#allocation0 + $0x340] ss:$8 sm:$0xf0] %vm3_vm0, %v3510_v12   ;;  %87 = vst.msk [vmem:[#allocation0 + $0x300] ss:$8 sm:$0xf] %vm3_vm0, %v3509_v13  }
  0x12   :  { %89 = vst.msk [vmem:[#allocation0 + $0x300] ss:$8 sm:$0xf0] %vm3_vm0, %v3509_v13   ;;  %v3513_v17 = vld [vmem:[%s5557_s0 + $0x80] sm:$0xff]   ;;  %v3516_v18 = vld [vmem:[%s5557_s0 + $0x98] sm:$0xff]   ;;  %v3515_v19 = vld [vmem:[%s5557_s0 + $0x90] sm:$0xff]   ;;  %417 = vrot.lane.b32.xlu1 %v3506_v8, %s3929_s12 }
  0x13   :  { %108 = vst.msk [vmem:[#allocation0 + $0x3c0] ss:$8 sm:$0xf] %vm3_vm0, %v3512_v14   ;;  %110 = vst.msk [vmem:[#allocation0 + $0x3c0] ss:$8 sm:$0xf0] %vm3_vm0, %v3512_v14   ;;  %408 = vrot.lane.b32.xlu0 %v3505_v9, %s3929_s12 }
  0x14   :  { %101 = vst.msk [vmem:[#allocation0 + $0x380] ss:$8 sm:$0xf] %vm3_vm0, %v3511_v15   ;;  %103 = vst.msk [vmem:[#allocation0 + $0x380] ss:$8 sm:$0xf0] %vm3_vm0, %v3511_v15  }
  0x15   :  { %v3518_v20 = vld [vmem:[%s5557_s0 + $0xa8] sm:$0xff]   ;;  %122 = vst.msk [vmem:[#allocation0 + $0x440] ss:$8 sm:$0xf] %vm3_vm0, %v3514_v16   ;;  %v3517_v21 = vld [vmem:[%s5557_s0 + $0xa0] sm:$0xff]   ;;  %v3520_v22 = vld [vmem:[%s5557_s0 + $0xb8] sm:$0xff]  }
  0x16   :  { %124 = vst.msk [vmem:[#allocation0 + $0x440] ss:$8 sm:$0xf0] %vm3_vm0, %v3514_v16   ;;  %115 = vst.msk [vmem:[#allocation0 + $0x400] ss:$8 sm:$0xf] %vm3_vm0, %v3513_v17   ;;  %435 = vrot.lane.b32.xlu1 %v3508_v10, %s3929_s12 }
  0x17   :  { %117 = vst.msk [vmem:[#allocation0 + $0x400] ss:$8 sm:$0xf0] %vm3_vm0, %v3513_v17   ;;  %136 = vst.msk [vmem:[#allocation0 + $0x4c0] ss:$8 sm:$0xf] %vm3_vm0, %v3516_v18   ;;  %426 = vrot.lane.b32.xlu0 %v3507_v11, %s3929_s12 }
  0x18   :  { %138 = vst.msk [vmem:[#allocation0 + $0x4c0] ss:$8 sm:$0xf0] %vm3_vm0, %v3516_v18   ;;  %129 = vst.msk [vmem:[#allocation0 + $0x480] ss:$8 sm:$0xf] %vm3_vm0, %v3515_v19  }
  0x19   :  { %131 = vst.msk [vmem:[#allocation0 + $0x480] ss:$8 sm:$0xf0] %vm3_vm0, %v3515_v19   ;;  %150 = vst.msk [vmem:[#allocation0 + $0x540] ss:$8 sm:$0xf] %vm3_vm0, %v3518_v20  }
  0x1a   :  { %152 = vst.msk [vmem:[#allocation0 + $0x540] ss:$8 sm:$0xf0] %vm3_vm0, %v3518_v20   ;;  %453 = vrot.lane.b32.xlu1 %v3510_v12, %s3929_s12  ;;  %v3519_v23 = vld [vmem:[%s5557_s0 + $0xb0] sm:$0xff]   ;;  %v3470_v24 = vld [vmem:[%s5557_s0 + $0xa0] sm:$0xff]   ;;  %v3522_v25 = vld [vmem:[%s5557_s0 + $0xc8] sm:$0xff]  }
  0x1b   :  { %444 = vrot.lane.b32.xlu0 %v3509_v13, %s3929_s12  ;;  %143 = vst.msk [vmem:[#allocation0 + $0x500] ss:$8 sm:$0xf] %vm3_vm0, %v3470_v24   ;;  %145 = vst.msk [vmem:[#allocation0 + $0x500] ss:$8 sm:$0xf0] %vm3_vm0, %v3470_v24  }
  0x1c   :  { %v3521_v26 = vld [vmem:[%s5557_s0 + $0xc0] sm:$0xff]   ;;  %v3473_v27 = vld [vmem:[%s5557_s0 + $0xb8] sm:$0xff]   ;;  %v3472_v28 = vld [vmem:[%s5557_s0 + $0xb0] sm:$0xff]  }
  0x1d   :  { %v3524_v29 = vld [vmem:[%s5557_s0 + $0xd8] sm:$0xff]   ;;  %v3523_v30 = vld [vmem:[%s5557_s0 + $0xd0] sm:$0xff]   ;;  %164 = vst.msk [vmem:[#allocation0 + $0x5c0] ss:$8 sm:$0xf] %vm3_vm0, %v3473_v27   ;;  %v3526_v31 = vld [vmem:[%s5557_s0 + $0xe8] sm:$0xff]  }
  0x1e   :  { %471 = vrot.lane.b32.xlu1 %v3512_v14, %s3929_s12  ;;  %166 = vst.msk [vmem:[#allocation0 + $0x5c0] ss:$8 sm:$0xf0] %vm3_vm0, %v3473_v27   ;;  %157 = vst.msk [vmem:[#allocation0 + $0x580] ss:$8 sm:$0xf] %vm3_vm0, %v3472_v28  }
  0x1f   :  { %462 = vrot.lane.b32.xlu0 %v3511_v15, %s3929_s12  ;;  %159 = vst.msk [vmem:[#allocation0 + $0x580] ss:$8 sm:$0xf0] %vm3_vm0, %v3472_v28   ;;  %v3525_v32 = vld [vmem:[%s5557_s0 + $0xe0] sm:$0xff]   ;;  %v3475_v33 = vld [vmem:[%s5557_s0 + $0xc8] sm:$0xff]   ;;  %v3528_v35 = vld [vmem:[%s5557_s0 + $0xf8] sm:$0xff]  }
  0x20   :  { %v3474_v34 = vld [vmem:[%s5557_s0 + $0xc0] sm:$0xff]   ;;  %178 = vst.msk [vmem:[#allocation0 + $0x640] ss:$8 sm:$0xf] %vm3_vm0, %v3475_v33   ;;  %v3527_v36 = vld [vmem:[%s5557_s0 + $0xf0] sm:$0xff]   ;;  %v3477_v37 = vld [vmem:[%s5557_s0 + $0xd8] sm:$0xff]  }
  0x21   :  { %180 = vst.msk [vmem:[#allocation0 + $0x640] ss:$8 sm:$0xf0] %vm3_vm0, %v3475_v33   ;;  %171 = vst.msk [vmem:[#allocation0 + $0x600] ss:$8 sm:$0xf] %vm3_vm0, %v3474_v34  }
  0x22   :  { %489 = vrot.lane.b32.xlu1 %v3514_v16, %s3929_s12  ;;  %173 = vst.msk [vmem:[#allocation0 + $0x600] ss:$8 sm:$0xf0] %vm3_vm0, %v3474_v34   ;;  %v3476_v38 = vld [vmem:[%s5557_s0 + $0xd0] sm:$0xff]   ;;  %v3530_v39 = vld [vmem:[%s5557_s0 + $0x108] sm:$0xff]   ;;  %v3529_v40 = vld [vmem:[%s5557_s0 + $0x100] sm:$0xff]  }
  0x23   :  { %480 = vrot.lane.b32.xlu0 %v3513_v17, %s3929_s12  ;;  %192 = vst.msk [vmem:[#allocation0 + $0x6c0] ss:$8 sm:$0xf] %vm3_vm0, %v3477_v37   ;;  %194 = vst.msk [vmem:[#allocation0 + $0x6c0] ss:$8 sm:$0xf0] %vm3_vm0, %v3477_v37  }
  0x24   :  { %185 = vst.msk [vmem:[#allocation0 + $0x680] ss:$8 sm:$0xf] %vm3_vm0, %v3476_v38   ;;  %187 = vst.msk [vmem:[#allocation0 + $0x680] ss:$8 sm:$0xf0] %vm3_vm0, %v3476_v38  }
  0x25   :  { %v3479_v41 = vld [vmem:[%s5557_s0 + $0xe8] sm:$0xff]   ;;  %v3478_v42 = vld [vmem:[%s5557_s0 + $0xe0] sm:$0xff]   ;;  %v3532_v43 = vld [vmem:[%s5557_s0 + $0x118] sm:$0xff]  }
  0x26   :  { %507 = vrot.lane.b32.xlu1 %v3516_v18, %s3929_s12  ;;  %v3531_v44 = vld [vmem:[%s5557_s0 + $0x110] sm:$0xff]   ;;  %206 = vst.msk [vmem:[#allocation0 + $0x740] ss:$8 sm:$0xf] %vm3_vm0, %v3479_v41   ;;  %v3534_v45 = vld [vmem:[%s5557_s0 + $0x128] sm:$0xff]   ;;  %v3533_v46 = vld [vmem:[%s5557_s0 + $0x120] sm:$0xff]  }
  0x27   :  { %498 = vrot.lane.b32.xlu0 %v3515_v19, %s3929_s12  ;;  %208 = vst.msk [vmem:[#allocation0 + $0x740] ss:$8 sm:$0xf0] %vm3_vm0, %v3479_v41   ;;  %199 = vst.msk [vmem:[#allocation0 + $0x700] ss:$8 sm:$0xf] %vm3_vm0, %v3478_v42  }
  0x28   :  { %201 = vst.msk [vmem:[#allocation0 + $0x700] ss:$8 sm:$0xf0] %vm3_vm0, %v3478_v42   ;;  %v3481_v47 = vld [vmem:[%s5557_s0 + $0xf8] sm:$0xff]   ;;  %v3480_v48 = vld [vmem:[%s5557_s0 + $0xf0] sm:$0xff]   ;;  %v3483_v51 = vld [vmem:[%s5557_s0 + $0x108] sm:$0xff]  }
  0x29   :  { %220 = vst.msk [vmem:[#allocation0 + $0x7c0] ss:$8 sm:$0xf] %vm3_vm0, %v3481_v47   ;;  %222 = vst.msk [vmem:[#allocation0 + $0x7c0] ss:$8 sm:$0xf0] %vm3_vm0, %v3481_v47  }
  0x2a   :  { %525 = vrot.lane.b32.xlu1 %v3518_v20, %s3929_s12  ;;  %213 = vst.msk [vmem:[#allocation0 + $0x780] ss:$8 sm:$0xf] %vm3_vm0, %v3480_v48   ;;  %215 = vst.msk [vmem:[#allocation0 + $0x780] ss:$8 sm:$0xf0] %vm3_vm0, %v3480_v48  }
  0x2b   :  { %516 = vrot.lane.b32.xlu0 %v3517_v21, %s3929_s12  ;;  %v3536_v49 = vld [vmem:[%s5557_s0 + $0x138] sm:$0xff]   ;;  %v3535_v50 = vld [vmem:[%s5557_s0 + $0x130] sm:$0xff]   ;;  %v3482_v52 = vld [vmem:[%s5557_s0 + $0x100] sm:$0xff]   ;;  %234 = vst.msk [vmem:[#allocation0 + $0x840] ss:$8 sm:$0xf] %vm3_vm0, %v3483_v51  }
  0x2c   :  { %236 = vst.msk [vmem:[#allocation0 + $0x840] ss:$8 sm:$0xf0] %vm3_vm0, %v3483_v51   ;;  %227 = vst.msk [vmem:[#allocation0 + $0x800] ss:$8 sm:$0xf] %vm3_vm0, %v3482_v52  }
  0x2d   :  { %229 = vst.msk [vmem:[#allocation0 + $0x800] ss:$8 sm:$0xf0] %vm3_vm0, %v3482_v52   ;;  %v3538_v53 = vld [vmem:[%s5557_s0 + $0x148] sm:$0xff]   ;;  %v3537_v54 = vld [vmem:[%s5557_s0 + $0x140] sm:$0xff]   ;;  %v3485_v55 = vld [vmem:[%s5557_s0 + $0x118] sm:$0xff]  }
  0x2e   :  { %543 = vrot.lane.b32.xlu1 %v3520_v22, %s3929_s12  ;;  %v3484_v56 = vld [vmem:[%s5557_s0 + $0x110] sm:$0xff]   ;;  %v3540_v57 = vld [vmem:[%s5557_s0 + $0x158] sm:$0xff]   ;;  %248 = vst.msk [vmem:[#allocation0 + $0x8c0] ss:$8 sm:$0xf] %vm3_vm0, %v3485_v55   ;;  %v3542_v59 = vld [vmem:[%s5557_s0 + $0x168] sm:$0xff]  }
  0x2f   :  { %534 = vrot.lane.b32.xlu0 %v3519_v23, %s3929_s12  ;;  %v3539_v58 = vld [vmem:[%s5557_s0 + $0x150] sm:$0xff]   ;;  %250 = vst.msk [vmem:[#allocation0 + $0x8c0] ss:$8 sm:$0xf0] %vm3_vm0, %v3485_v55   ;;  %v3541_v60 = vld [vmem:[%s5557_s0 + $0x160] sm:$0xff]   ;;  %v3487_v61 = vld [vmem:[%s5557_s0 + $0x128] sm:$0xff]  }
  0x30   :  { %241 = vst.msk [vmem:[#allocation0 + $0x880] ss:$8 sm:$0xf] %vm3_vm0, %v3484_v56   ;;  %243 = vst.msk [vmem:[#allocation0 + $0x880] ss:$8 sm:$0xf0] %vm3_vm0, %v3484_v56  }
  0x31   :  { %v3486_v62 = vld [vmem:[%s5557_s0 + $0x120] sm:$0xff]   ;;  %262 = vst.msk [vmem:[#allocation0 + $0x940] ss:$8 sm:$0xf] %vm3_vm0, %v3487_v61   ;;  %v3544_v63 = vld [vmem:[%s5557_s0 + $0x178] sm:$0xff]   ;;  %v3543_v0 = vld [vmem:[%s5557_s0 + $0x170] sm:$0xff]  }
  0x32   :  { %561 = vrot.lane.b32.xlu1 %v3522_v25, %s3929_s12  ;;  %264 = vst.msk [vmem:[#allocation0 + $0x940] ss:$8 sm:$0xf0] %vm3_vm0, %v3487_v61   ;;  %255 = vst.msk [vmem:[#allocation0 + $0x900] ss:$8 sm:$0xf] %vm3_vm0, %v3486_v62  }
  0x33   :  { %552 = vrot.lane.b32.xlu0 %v3521_v26, %s3929_s12  ;;  %257 = vst.msk [vmem:[#allocation0 + $0x900] ss:$8 sm:$0xf0] %vm3_vm0, %v3486_v62   ;;  %v3489_v1 = vld [vmem:[%s5557_s0 + $0x138] sm:$0xff]   ;;  %v3488_v2 = vld [vmem:[%s5557_s0 + $0x130] sm:$0xff]   ;;  %v3491_v3 = vld [vmem:[%s5557_s0 + $0x148] sm:$0xff]  }
  0x34   :  { %276 = vst.msk [vmem:[#allocation0 + $0x9c0] ss:$8 sm:$0xf] %vm3_vm0, %v3489_v1   ;;  %278 = vst.msk [vmem:[#allocation0 + $0x9c0] ss:$8 sm:$0xf0] %vm3_vm0, %v3489_v1  }
  0x35   :  { %269 = vst.msk [vmem:[#allocation0 + $0x980] ss:$8 sm:$0xf] %vm3_vm0, %v3488_v2   ;;  %271 = vst.msk [vmem:[#allocation0 + $0x980] ss:$8 sm:$0xf0] %vm3_vm0, %v3488_v2  }
  0x36   :  { %579 = vrot.lane.b32.xlu1 %v3524_v29, %s3929_s12  ;;  %v3490_v4 = vld [vmem:[%s5557_s0 + $0x140] sm:$0xff]   ;;  %290 = vst.msk [vmem:[#allocation0 + $0xa40] ss:$8 sm:$0xf] %vm3_vm0, %v3491_v3   ;;  %v3493_v5 = vld [vmem:[%s5557_s0 + $0x158] sm:$0xff]   ;;  %v3492_v6 = vld [vmem:[%s5557_s0 + $0x150] sm:$0xff]  }
  0x37   :  { %570 = vrot.lane.b32.xlu0 %v3523_v30, %s3929_s12  ;;  %292 = vst.msk [vmem:[#allocation0 + $0xa40] ss:$8 sm:$0xf0] %vm3_vm0, %v3491_v3   ;;  %283 = vst.msk [vmem:[#allocation0 + $0xa00] ss:$8 sm:$0xf] %vm3_vm0, %v3490_v4  }
  0x38   :  { %285 = vst.msk [vmem:[#allocation0 + $0xa00] ss:$8 sm:$0xf0] %vm3_vm0, %v3490_v4   ;;  %304 = vst.msk [vmem:[#allocation0 + $0xac0] ss:$8 sm:$0xf] %vm3_vm0, %v3493_v5  }
  0x39   :  { %306 = vst.msk [vmem:[#allocation0 + $0xac0] ss:$8 sm:$0xf0] %vm3_vm0, %v3493_v5   ;;  %297 = vst.msk [vmem:[#allocation0 + $0xa80] ss:$8 sm:$0xf] %vm3_vm0, %v3492_v6  }
  0x3a   :  { %597 = vrot.lane.b32.xlu1 %v3526_v31, %s3929_s12  ;;  %299 = vst.msk [vmem:[#allocation0 + $0xa80] ss:$8 sm:$0xf0] %vm3_vm0, %v3492_v6   ;;  %v3495_v7 = vld [vmem:[%s5557_s0 + $0x168] sm:$0xff]   ;;  %v3494_v8 = vld [vmem:[%s5557_s0 + $0x160] sm:$0xff]   ;;  %v3497_v9 = vld [vmem:[%s5557_s0 + $0x178] sm:$0xff]  }
  0x3b   :  { %588 = vrot.lane.b32.xlu0 %v3525_v32, %s3929_s12  ;;  %318 = vst.msk [vmem:[#allocation0 + $0xb40] ss:$8 sm:$0xf] %vm3_vm0, %v3495_v7   ;;  %320 = vst.msk [vmem:[#allocation0 + $0xb40] ss:$8 sm:$0xf0] %vm3_vm0, %v3495_v7  }
  0x3c   :  { %311 = vst.msk [vmem:[#allocation0 + $0xb00] ss:$8 sm:$0xf] %vm3_vm0, %v3494_v8   ;;  %313 = vst.msk [vmem:[#allocation0 + $0xb00] ss:$8 sm:$0xf0] %vm3_vm0, %v3494_v8  }
  0x3d   :  { %v3496_v10 = vld [vmem:[%s5557_s0 + $0x170] sm:$0xff]   ;;  %332 = vst.msk [vmem:[#allocation0 + $0xbc0] ss:$8 sm:$0xf] %vm3_vm0, %v3497_v9  }
  0x3e   :  { %615 = vrot.lane.b32.xlu1 %v3528_v35, %s3929_s12  ;;  %334 = vst.msk [vmem:[#allocation0 + $0xbc0] ss:$8 sm:$0xf0] %vm3_vm0, %v3497_v9   ;;  %325 = vst.msk [vmem:[#allocation0 + $0xb80] ss:$8 sm:$0xf] %vm3_vm0, %v3496_v10  }
  0x3f   :  { %606 = vrot.lane.b32.xlu0 %v3527_v36, %s3929_s12  ;;  %327 = vst.msk [vmem:[#allocation0 + $0xb80] ss:$8 sm:$0xf0] %vm3_vm0, %v3496_v10  }
  0x42   :  { %633 = vrot.lane.b32.xlu1 %v3530_v39, %s3929_s12 }
  0x43   :  { %624 = vrot.lane.b32.xlu0 %v3529_v40, %s3929_s12 }
  0x46   :  { %651 = vrot.lane.b32.xlu1 %v3532_v43, %s3929_s12 }
  0x47   :  { %642 = vrot.lane.b32.xlu0 %v3531_v44, %s3929_s12 }
  0x4a   :  { %669 = vrot.lane.b32.xlu1 %v3534_v45, %s3929_s12 }
  0x4b   :  { %660 = vrot.lane.b32.xlu0 %v3533_v46, %s3929_s12 }
  0x4e   :  { %687 = vrot.lane.b32.xlu1 %v3536_v49, %s3929_s12 }
  0x4f   :  { %678 = vrot.lane.b32.xlu0 %v3535_v50, %s3929_s12 }
  0x52   :  { %705 = vrot.lane.b32.xlu1 %v3538_v53, %s3929_s12 }
  0x53   :  { %696 = vrot.lane.b32.xlu0 %v3537_v54, %s3929_s12 }
  0x56   :  { %723 = vrot.lane.b32.xlu1 %v3540_v57, %s3929_s12 }
  0x57   :  { %714 = vrot.lane.b32.xlu0 %v3539_v58, %s3929_s12 }
  0x5a   :  { %741 = vrot.lane.b32.xlu1 %v3542_v59, %s3929_s12 }
  0x5b   :  { %732 = vrot.lane.b32.xlu0 %v3541_v60, %s3929_s12 }
  0x5e   :  { %759 = vrot.lane.b32.xlu1 %v3544_v63, %s3929_s12 }
  0x5f   :  { %750 = vrot.lane.b32.xlu0 %v3543_v0, %s3929_s12 }
  0x74   :  { %v355_v11 = vpop.permute.xlu1 %354   ;;  %v337_v12 = vpop.permute.xlu0 %336  }
  0x75   :  { %358 = vst.msk [vmem:[#allocation0 + $0x81] ss:$8 sm:$0xf] %vm3_vm0, %v355_v11   ;;  %360 = vst.msk [vmem:[#allocation0 + $0x81] ss:$8 sm:$0xf0] %vm3_vm0, %v355_v11  }
  0x76   :  { %340 = vst.msk [vmem:[#allocation0 + $0x1] ss:$8 sm:$0xf] %vm3_vm0, %v337_v12   ;;  %342 = vst.msk [vmem:[#allocation0 + $0x1] ss:$8 sm:$0xf0] %vm3_vm0, %v337_v12  }
  0x78   :  { %v364_v13 = vpop.permute.xlu1 %363   ;;  %v346_v14 = vpop.permute.xlu0 %345  }
  0x79   :  { %367 = vst.msk [vmem:[#allocation0 + $0xc1] ss:$8 sm:$0xf] %vm3_vm0, %v364_v13   ;;  %369 = vst.msk [vmem:[#allocation0 + $0xc1] ss:$8 sm:$0xf0] %vm3_vm0, %v364_v13  }
  0x7a   :  { %349 = vst.msk [vmem:[#allocation0 + $0x41] ss:$8 sm:$0xf] %vm3_vm0, %v346_v14   ;;  %351 = vst.msk [vmem:[#allocation0 + $0x41] ss:$8 sm:$0xf0] %vm3_vm0, %v346_v14  }
  0x7c   :  { %v862_v15 = vld [vmem:[#allocation0 + $0x80] sm:$0x3]  ;;  %v868_v16 = vld [vmem:[#allocation0 + $0x88] sm:$0x3]  ;;  %v874_v17 = vld [vmem:[#allocation0 + $0x90] sm:$0x3]  ;;  %v382_v18 = vpop.permute.xlu1 %381   ;;  %v373_v19 = vpop.permute.xlu0 %372  }
  0x7d   :  { %3560 = vst [vmem:[%s5558_s1 + $0x20] sm:$0x3] %v862_v15  ;;  %3561 = vst [vmem:[%s5558_s1 + $0x22] sm:$0x3] %v868_v16  ;;  %v880_v20 = vld [vmem:[#allocation0 + $0x98] sm:$0x3] }
  0x7e   :  { %3562 = vst [vmem:[%s5558_s1 + $0x24] sm:$0x3] %v874_v17  ;;  %v886_v21 = vld [vmem:[#allocation0 + $0xa0] sm:$0x3]  ;;  %v892_v22 = vld [vmem:[#allocation0 + $0xa8] sm:$0x3] }
  0x7f   :  { %385 = vst.msk [vmem:[#allocation0 + $0x141] ss:$8 sm:$0xf] %vm3_vm0, %v382_v18   ;;  %387 = vst.msk [vmem:[#allocation0 + $0x141] ss:$8 sm:$0xf0] %vm3_vm0, %v382_v18  }
  0x80   :  { %376 = vst.msk [vmem:[#allocation0 + $0x101] ss:$8 sm:$0xf] %vm3_vm0, %v373_v19   ;;  %378 = vst.msk [vmem:[#allocation0 + $0x101] ss:$8 sm:$0xf0] %vm3_vm0, %v373_v19   ;;  %v400_v32 = vpop.permute.xlu1 %399   ;;  %v391_v33 = vpop.permute.xlu0 %390  }
  0x81   :  { %3563 = vst [vmem:[%s5558_s1 + $0x26] sm:$0x3] %v880_v20  ;;  %3564 = vst [vmem:[%s5558_s1 + $0x28] sm:$0x3] %v886_v21  ;;  %v898_v23 = vld [vmem:[#allocation0 + $0xb0] sm:$0x3] }
  0x82   :  { %3565 = vst [vmem:[%s5558_s1 + $0x2a] sm:$0x3] %v892_v22  ;;  %v904_v24 = vld [vmem:[#allocation0 + $0xb8] sm:$0x3]  ;;  %v769_v25 = vld [vmem:[#allocation0] sm:$0x3] }
  0x83   :  { %3566 = vst [vmem:[%s5558_s1 + $0x2c] sm:$0x3] %v898_v23  ;;  %3567 = vst [vmem:[%s5558_s1 + $0x2e] sm:$0x3] %v904_v24  ;;  %v773_v26 = vld [vmem:[#allocation0 + $0x8] sm:$0x3] }
  0x84   :  { %771 = vst [vmem:[%s5558_s1] sm:$0x3] %v769_v25  ;;  %v778_v27 = vld [vmem:[#allocation0 + $0x10] sm:$0x3]  ;;  %v784_v28 = vld [vmem:[#allocation0 + $0x18] sm:$0x3]  ;;  %v418_v46 = vpop.permute.xlu1 %417  }
  0x85   :  { %3545 = vst [vmem:[%s5558_s1 + $0x2] sm:$0x3] %v773_v26  ;;  %3546 = vst [vmem:[%s5558_s1 + $0x4] sm:$0x3] %v778_v27  ;;  %v790_v29 = vld [vmem:[#allocation0 + $0x20] sm:$0x3]  ;;  %v409_v47 = vpop.permute.xlu0 %408  }
  0x86   :  { %3547 = vst [vmem:[%s5558_s1 + $0x6] sm:$0x3] %v784_v28  ;;  %v796_v30 = vld [vmem:[#allocation0 + $0x28] sm:$0x3]  ;;  %v802_v31 = vld [vmem:[#allocation0 + $0x30] sm:$0x3] }
  0x87   :  { %3548 = vst [vmem:[%s5558_s1 + $0x8] sm:$0x3] %v790_v29  ;;  %3549 = vst [vmem:[%s5558_s1 + $0xa] sm:$0x3] %v796_v30  ;;  %v808_v34 = vld [vmem:[#allocation0 + $0x38] sm:$0x3] }
  0x88   :  { %3550 = vst [vmem:[%s5558_s1 + $0xc] sm:$0x3] %v802_v31  ;;  %v910_v35 = vld [vmem:[#allocation0 + $0xc0] sm:$0x3]  ;;  %v916_v36 = vld [vmem:[#allocation0 + $0xc8] sm:$0x3]  ;;  %v436_v60 = vpop.permute.xlu1 %435  }
  0x89   :  { %403 = vst.msk [vmem:[#allocation0 + $0x1c1] ss:$8 sm:$0xf] %vm3_vm0, %v400_v32   ;;  %405 = vst.msk [vmem:[#allocation0 + $0x1c1] ss:$8 sm:$0xf0] %vm3_vm0, %v400_v32   ;;  %v427_v61 = vpop.permute.xlu0 %426  }
  0x8a   :  { %394 = vst.msk [vmem:[#allocation0 + $0x181] ss:$8 sm:$0xf] %vm3_vm0, %v391_v33   ;;  %396 = vst.msk [vmem:[#allocation0 + $0x181] ss:$8 sm:$0xf0] %vm3_vm0, %v391_v33  }
  0x8b   :  { %3551 = vst [vmem:[%s5558_s1 + $0xe] sm:$0x3] %v808_v34  ;;  %3568 = vst [vmem:[%s5558_s1 + $0x30] sm:$0x3] %v910_v35  ;;  %v922_v37 = vld [vmem:[#allocation0 + $0xd0] sm:$0x3] }
  0x8c   :  { %3569 = vst [vmem:[%s5558_s1 + $0x32] sm:$0x3] %v916_v36  ;;  %v928_v38 = vld [vmem:[#allocation0 + $0xd8] sm:$0x3]  ;;  %v934_v39 = vld [vmem:[#allocation0 + $0xe0] sm:$0x3]  ;;  %v454_v10 = vpop.permute.xlu1 %453  }
  0x8d   :  { %3570 = vst [vmem:[%s5558_s1 + $0x34] sm:$0x3] %v922_v37  ;;  %3571 = vst [vmem:[%s5558_s1 + $0x36] sm:$0x3] %v928_v38  ;;  %v940_v40 = vld [vmem:[#allocation0 + $0xe8] sm:$0x3]  ;;  %v445_v11 = vpop.permute.xlu0 %444  }
  0x8e   :  { %3572 = vst [vmem:[%s5558_s1 + $0x38] sm:$0x3] %v934_v39  ;;  %v946_v41 = vld [vmem:[#allocation0 + $0xf0] sm:$0x3]  ;;  %v952_v42 = vld [vmem:[#allocation0 + $0xf8] sm:$0x3] }
  0x8f   :  { %3573 = vst [vmem:[%s5558_s1 + $0x3a] sm:$0x3] %v940_v40  ;;  %3574 = vst [vmem:[%s5558_s1 + $0x3c] sm:$0x3] %v946_v41  ;;  %v814_v43 = vld [vmem:[#allocation0 + $0x40] sm:$0x3] }
  0x90   :  { %3575 = vst [vmem:[%s5558_s1 + $0x3e] sm:$0x3] %v952_v42  ;;  %v820_v44 = vld [vmem:[#allocation0 + $0x48] sm:$0x3]  ;;  %v826_v45 = vld [vmem:[#allocation0 + $0x50] sm:$0x3]  ;;  %v472_v24 = vpop.permute.xlu1 %471  }
  0x91   :  { %3552 = vst [vmem:[%s5558_s1 + $0x10] sm:$0x3] %v814_v43  ;;  %3553 = vst [vmem:[%s5558_s1 + $0x12] sm:$0x3] %v820_v44  ;;  %v832_v48 = vld [vmem:[#allocation0 + $0x58] sm:$0x3]  ;;  %v463_v25 = vpop.permute.xlu0 %462  }
  0x92   :  { %3554 = vst [vmem:[%s5558_s1 + $0x14] sm:$0x3] %v826_v45  ;;  %v838_v49 = vld [vmem:[#allocation0 + $0x60] sm:$0x3]  ;;  %v844_v50 = vld [vmem:[#allocation0 + $0x68] sm:$0x3] }
  0x93   :  { %421 = vst.msk [vmem:[#allocation0 + $0x241] ss:$8 sm:$0xf] %vm3_vm0, %v418_v46   ;;  %423 = vst.msk [vmem:[#allocation0 + $0x241] ss:$8 sm:$0xf0] %vm3_vm0, %v418_v46  }
  0x94   :  { %412 = vst.msk [vmem:[#allocation0 + $0x201] ss:$8 sm:$0xf] %vm3_vm0, %v409_v47   ;;  %414 = vst.msk [vmem:[#allocation0 + $0x201] ss:$8 sm:$0xf0] %vm3_vm0, %v409_v47   ;;  %v490_v38 = vpop.permute.xlu1 %489  }
  0x95   :  { %3555 = vst [vmem:[%s5558_s1 + $0x16] sm:$0x3] %v832_v48  ;;  %3556 = vst [vmem:[%s5558_s1 + $0x18] sm:$0x3] %v838_v49  ;;  %v850_v51 = vld [vmem:[#allocation0 + $0x70] sm:$0x3]  ;;  %v481_v39 = vpop.permute.xlu0 %480  }
  0x96   :  { %3557 = vst [vmem:[%s5558_s1 + $0x1a] sm:$0x3] %v844_v50  ;;  %v856_v52 = vld [vmem:[#allocation0 + $0x78] sm:$0x3]  ;;  %v1006_v53 = vld [vmem:[#allocation0 + $0x140] sm:$0x3] }
  0x97   :  { %3558 = vst [vmem:[%s5558_s1 + $0x1c] sm:$0x3] %v850_v51  ;;  %3559 = vst [vmem:[%s5558_s1 + $0x1e] sm:$0x3] %v856_v52  ;;  %v1012_v54 = vld [vmem:[#allocation0 + $0x148] sm:$0x3] }
  0x98   :  { %3584 = vst [vmem:[%s5558_s1 + $0x50] sm:$0x3] %v1006_v53  ;;  %v1018_v55 = vld [vmem:[#allocation0 + $0x150] sm:$0x3]  ;;  %v1024_v56 = vld [vmem:[#allocation0 + $0x158] sm:$0x3]  ;;  %v508_v52 = vpop.permute.xlu1 %507  }
  0x99   :  { %3585 = vst [vmem:[%s5558_s1 + $0x52] sm:$0x3] %v1012_v54  ;;  %3586 = vst [vmem:[%s5558_s1 + $0x54] sm:$0x3] %v1018_v55  ;;  %v1030_v57 = vld [vmem:[#allocation0 + $0x160] sm:$0x3]  ;;  %v499_v53 = vpop.permute.xlu0 %498  }
  0x9a   :  { %3587 = vst [vmem:[%s5558_s1 + $0x56] sm:$0x3] %v1024_v56  ;;  %v1036_v58 = vld [vmem:[#allocation0 + $0x168] sm:$0x3]  ;;  %v1042_v59 = vld [vmem:[#allocation0 + $0x170] sm:$0x3] }
  0x9b   :  { %3588 = vst [vmem:[%s5558_s1 + $0x58] sm:$0x3] %v1030_v57  ;;  %3589 = vst [vmem:[%s5558_s1 + $0x5a] sm:$0x3] %v1036_v58  ;;  %v1048_v62 = vld [vmem:[#allocation0 + $0x178] sm:$0x3] }
  0x9c   :  { %3590 = vst [vmem:[%s5558_s1 + $0x5c] sm:$0x3] %v1042_v59  ;;  %v958_v63 = vld [vmem:[#allocation0 + $0x100] sm:$0x3]  ;;  %v964_v0 = vld [vmem:[#allocation0 + $0x108] sm:$0x3] }
  0x9d   :  { %439 = vst.msk [vmem:[#allocation0 + $0x2c1] ss:$8 sm:$0xf] %vm3_vm0, %v436_v60   ;;  %441 = vst.msk [vmem:[#allocation0 + $0x2c1] ss:$8 sm:$0xf0] %vm3_vm0, %v436_v60  }
  0x9e   :  { %430 = vst.msk [vmem:[#allocation0 + $0x281] ss:$8 sm:$0xf] %vm3_vm0, %v427_v61   ;;  %432 = vst.msk [vmem:[#allocation0 + $0x281] ss:$8 sm:$0xf0] %vm3_vm0, %v427_v61  }
  0x9f   :  { %3591 = vst [vmem:[%s5558_s1 + $0x5e] sm:$0x3] %v1048_v62  ;;  %3576 = vst [vmem:[%s5558_s1 + $0x40] sm:$0x3] %v958_v63  ;;  %v970_v1 = vld [vmem:[#allocation0 + $0x110] sm:$0x3] }
  0xa0   :  { %3577 = vst [vmem:[%s5558_s1 + $0x42] sm:$0x3] %v964_v0  ;;  %v976_v2 = vld [vmem:[#allocation0 + $0x118] sm:$0x3]  ;;  %v982_v3 = vld [vmem:[#allocation0 + $0x120] sm:$0x3] }
  0xa1   :  { %3578 = vst [vmem:[%s5558_s1 + $0x44] sm:$0x3] %v970_v1  ;;  %3579 = vst [vmem:[%s5558_s1 + $0x46] sm:$0x3] %v976_v2  ;;  %v988_v4 = vld [vmem:[#allocation0 + $0x128] sm:$0x3]  ;;  %v526_v2 = vpop.permute.xlu1 %525  }
  0xa2   :  { %3580 = vst [vmem:[%s5558_s1 + $0x48] sm:$0x3] %v982_v3  ;;  %v994_v5 = vld [vmem:[#allocation0 + $0x130] sm:$0x3]  ;;  %v1000_v6 = vld [vmem:[#allocation0 + $0x138] sm:$0x3]  ;;  %v517_v3 = vpop.permute.xlu0 %516  }
  0xa3   :  { %3581 = vst [vmem:[%s5558_s1 + $0x4a] sm:$0x3] %v988_v4  ;;  %3582 = vst [vmem:[%s5558_s1 + $0x4c] sm:$0x3] %v994_v5  ;;  %v1102_v7 = vld [vmem:[#allocation0 + $0x1c0] sm:$0x3] }
  0xa4   :  { %3583 = vst [vmem:[%s5558_s1 + $0x4e] sm:$0x3] %v1000_v6  ;;  %v1108_v8 = vld [vmem:[#allocation0 + $0x1c8] sm:$0x3]  ;;  %v1114_v9 = vld [vmem:[#allocation0 + $0x1d0] sm:$0x3] }
  0xa5   :  { %3600 = vst [vmem:[%s5558_s1 + $0x70] sm:$0x3] %v1102_v7  ;;  %3601 = vst [vmem:[%s5558_s1 + $0x72] sm:$0x3] %v1108_v8  ;;  %v1120_v12 = vld [vmem:[#allocation0 + $0x1d8] sm:$0x3] }
  0xa6   :  { %3602 = vst [vmem:[%s5558_s1 + $0x74] sm:$0x3] %v1114_v9  ;;  %v1126_v13 = vld [vmem:[#allocation0 + $0x1e0] sm:$0x3]  ;;  %v1132_v14 = vld [vmem:[#allocation0 + $0x1e8] sm:$0x3] }
  0xa7   :  { %457 = vst.msk [vmem:[#allocation0 + $0x341] ss:$8 sm:$0xf] %vm3_vm0, %v454_v10   ;;  %459 = vst.msk [vmem:[#allocation0 + $0x341] ss:$8 sm:$0xf0] %vm3_vm0, %v454_v10  }
  0xa8   :  { %448 = vst.msk [vmem:[#allocation0 + $0x301] ss:$8 sm:$0xf] %vm3_vm0, %v445_v11   ;;  %450 = vst.msk [vmem:[#allocation0 + $0x301] ss:$8 sm:$0xf0] %vm3_vm0, %v445_v11  }
  0xa9   :  { %3603 = vst [vmem:[%s5558_s1 + $0x76] sm:$0x3] %v1120_v12  ;;  %3604 = vst [vmem:[%s5558_s1 + $0x78] sm:$0x3] %v1126_v13  ;;  %v1138_v15 = vld [vmem:[#allocation0 + $0x1f0] sm:$0x3] }
  0xaa   :  { %3605 = vst [vmem:[%s5558_s1 + $0x7a] sm:$0x3] %v1132_v14  ;;  %v1144_v16 = vld [vmem:[#allocation0 + $0x1f8] sm:$0x3]  ;;  %v1054_v17 = vld [vmem:[#allocation0 + $0x180] sm:$0x3] }
  0xab   :  { %3606 = vst [vmem:[%s5558_s1 + $0x7c] sm:$0x3] %v1138_v15  ;;  %3607 = vst [vmem:[%s5558_s1 + $0x7e] sm:$0x3] %v1144_v16  ;;  %v1060_v18 = vld [vmem:[#allocation0 + $0x188] sm:$0x3]  ;;  %v544_v16 = vpop.permute.xlu1 %543  }
  0xac   :  { %3592 = vst [vmem:[%s5558_s1 + $0x60] sm:$0x3] %v1054_v17  ;;  %v1066_v19 = vld [vmem:[#allocation0 + $0x190] sm:$0x3]  ;;  %v1072_v20 = vld [vmem:[#allocation0 + $0x198] sm:$0x3]  ;;  %v535_v17 = vpop.permute.xlu0 %534  }
  0xad   :  { %3593 = vst [vmem:[%s5558_s1 + $0x62] sm:$0x3] %v1060_v18  ;;  %3594 = vst [vmem:[%s5558_s1 + $0x64] sm:$0x3] %v1066_v19  ;;  %v1078_v21 = vld [vmem:[#allocation0 + $0x1a0] sm:$0x3] }
  0xae   :  { %3595 = vst [vmem:[%s5558_s1 + $0x66] sm:$0x3] %v1072_v20  ;;  %v1084_v22 = vld [vmem:[#allocation0 + $0x1a8] sm:$0x3]  ;;  %v1090_v23 = vld [vmem:[#allocation0 + $0x1b0] sm:$0x3] }
  0xaf   :  { %3596 = vst [vmem:[%s5558_s1 + $0x68] sm:$0x3] %v1078_v21  ;;  %3597 = vst [vmem:[%s5558_s1 + $0x6a] sm:$0x3] %v1084_v22  ;;  %v1096_v26 = vld [vmem:[#allocation0 + $0x1b8] sm:$0x3] }
  0xb0   :  { %3598 = vst [vmem:[%s5558_s1 + $0x6c] sm:$0x3] %v1090_v23  ;;  %v1198_v27 = vld [vmem:[#allocation0 + $0x240] sm:$0x3]  ;;  %v1204_v28 = vld [vmem:[#allocation0 + $0x248] sm:$0x3] }
  0xb1   :  { %475 = vst.msk [vmem:[#allocation0 + $0x3c1] ss:$8 sm:$0xf] %vm3_vm0, %v472_v24   ;;  %477 = vst.msk [vmem:[#allocation0 + $0x3c1] ss:$8 sm:$0xf0] %vm3_vm0, %v472_v24  }
  0xb2   :  { %466 = vst.msk [vmem:[#allocation0 + $0x381] ss:$8 sm:$0xf] %vm3_vm0, %v463_v25   ;;  %468 = vst.msk [vmem:[#allocation0 + $0x381] ss:$8 sm:$0xf0] %vm3_vm0, %v463_v25  }
  0xb3   :  { %3599 = vst [vmem:[%s5558_s1 + $0x6e] sm:$0x3] %v1096_v26  ;;  %3616 = vst [vmem:[%s5558_s1 + $0x90] sm:$0x3] %v1198_v27  ;;  %v1210_v29 = vld [vmem:[#allocation0 + $0x250] sm:$0x3] }
  0xb4   :  { %3617 = vst [vmem:[%s5558_s1 + $0x92] sm:$0x3] %v1204_v28  ;;  %v1216_v30 = vld [vmem:[#allocation0 + $0x258] sm:$0x3]  ;;  %v1222_v31 = vld [vmem:[#allocation0 + $0x260] sm:$0x3] }
  0xb5   :  { %3618 = vst [vmem:[%s5558_s1 + $0x94] sm:$0x3] %v1210_v29  ;;  %3619 = vst [vmem:[%s5558_s1 + $0x96] sm:$0x3] %v1216_v30  ;;  %v1228_v32 = vld [vmem:[#allocation0 + $0x268] sm:$0x3]  ;;  %v562_v30 = vpop.permute.xlu1 %561  }
  0xb6   :  { %3620 = vst [vmem:[%s5558_s1 + $0x98] sm:$0x3] %v1222_v31  ;;  %v1234_v33 = vld [vmem:[#allocation0 + $0x270] sm:$0x3]  ;;  %v1240_v34 = vld [vmem:[#allocation0 + $0x278] sm:$0x3]  ;;  %v553_v31 = vpop.permute.xlu0 %552  }
  0xb7   :  { %3621 = vst [vmem:[%s5558_s1 + $0x9a] sm:$0x3] %v1228_v32  ;;  %3622 = vst [vmem:[%s5558_s1 + $0x9c] sm:$0x3] %v1234_v33  ;;  %v1150_v35 = vld [vmem:[#allocation0 + $0x200] sm:$0x3] }
  0xb8   :  { %3623 = vst [vmem:[%s5558_s1 + $0x9e] sm:$0x3] %v1240_v34  ;;  %v1156_v36 = vld [vmem:[#allocation0 + $0x208] sm:$0x3]  ;;  %v1162_v37 = vld [vmem:[#allocation0 + $0x210] sm:$0x3] }
  0xb9   :  { %3608 = vst [vmem:[%s5558_s1 + $0x80] sm:$0x3] %v1150_v35  ;;  %3609 = vst [vmem:[%s5558_s1 + $0x82] sm:$0x3] %v1156_v36  ;;  %v1168_v40 = vld [vmem:[#allocation0 + $0x218] sm:$0x3] }
  0xba   :  { %3610 = vst [vmem:[%s5558_s1 + $0x84] sm:$0x3] %v1162_v37  ;;  %v1174_v41 = vld [vmem:[#allocation0 + $0x220] sm:$0x3]  ;;  %v1180_v42 = vld [vmem:[#allocation0 + $0x228] sm:$0x3] }
  0xbb   :  { %493 = vst.msk [vmem:[#allocation0 + $0x441] ss:$8 sm:$0xf] %vm3_vm0, %v490_v38   ;;  %495 = vst.msk [vmem:[#allocation0 + $0x441] ss:$8 sm:$0xf0] %vm3_vm0, %v490_v38  }
  0xbc   :  { %484 = vst.msk [vmem:[#allocation0 + $0x401] ss:$8 sm:$0xf] %vm3_vm0, %v481_v39   ;;  %486 = vst.msk [vmem:[#allocation0 + $0x401] ss:$8 sm:$0xf0] %vm3_vm0, %v481_v39  }
  0xbd   :  { %3611 = vst [vmem:[%s5558_s1 + $0x86] sm:$0x3] %v1168_v40  ;;  %3612 = vst [vmem:[%s5558_s1 + $0x88] sm:$0x3] %v1174_v41  ;;  %v1186_v43 = vld [vmem:[#allocation0 + $0x230] sm:$0x3] }
  0xbe   :  { %3613 = vst [vmem:[%s5558_s1 + $0x8a] sm:$0x3] %v1180_v42  ;;  %v1192_v44 = vld [vmem:[#allocation0 + $0x238] sm:$0x3]  ;;  %v1294_v45 = vld [vmem:[#allocation0 + $0x2c0] sm:$0x3] }
  0xbf   :  { %3614 = vst [vmem:[%s5558_s1 + $0x8c] sm:$0x3] %v1186_v43  ;;  %3615 = vst [vmem:[%s5558_s1 + $0x8e] sm:$0x3] %v1192_v44  ;;  %v1300_v46 = vld [vmem:[#allocation0 + $0x2c8] sm:$0x3]  ;;  %v580_v44 = vpop.permute.xlu1 %579  }
  0xc0   :  { %3632 = vst [vmem:[%s5558_s1 + $0xb0] sm:$0x3] %v1294_v45  ;;  %v1306_v47 = vld [vmem:[#allocation0 + $0x2d0] sm:$0x3]  ;;  %v1312_v48 = vld [vmem:[#allocation0 + $0x2d8] sm:$0x3]  ;;  %v571_v45 = vpop.permute.xlu0 %570  }
  0xc1   :  { %3633 = vst [vmem:[%s5558_s1 + $0xb2] sm:$0x3] %v1300_v46  ;;  %3634 = vst [vmem:[%s5558_s1 + $0xb4] sm:$0x3] %v1306_v47  ;;  %v1318_v49 = vld [vmem:[#allocation0 + $0x2e0] sm:$0x3] }
  0xc2   :  { %3635 = vst [vmem:[%s5558_s1 + $0xb6] sm:$0x3] %v1312_v48  ;;  %v1324_v50 = vld [vmem:[#allocation0 + $0x2e8] sm:$0x3]  ;;  %v1330_v51 = vld [vmem:[#allocation0 + $0x2f0] sm:$0x3] }
  0xc3   :  { %3636 = vst [vmem:[%s5558_s1 + $0xb8] sm:$0x3] %v1318_v49  ;;  %3637 = vst [vmem:[%s5558_s1 + $0xba] sm:$0x3] %v1324_v50  ;;  %v1336_v54 = vld [vmem:[#allocation0 + $0x2f8] sm:$0x3] }
  0xc4   :  { %3638 = vst [vmem:[%s5558_s1 + $0xbc] sm:$0x3] %v1330_v51  ;;  %v1246_v55 = vld [vmem:[#allocation0 + $0x280] sm:$0x3]  ;;  %v1252_v56 = vld [vmem:[#allocation0 + $0x288] sm:$0x3] }
  0xc5   :  { %511 = vst.msk [vmem:[#allocation0 + $0x4c1] ss:$8 sm:$0xf] %vm3_vm0, %v508_v52   ;;  %513 = vst.msk [vmem:[#allocation0 + $0x4c1] ss:$8 sm:$0xf0] %vm3_vm0, %v508_v52  }
  0xc6   :  { %502 = vst.msk [vmem:[#allocation0 + $0x481] ss:$8 sm:$0xf] %vm3_vm0, %v499_v53   ;;  %504 = vst.msk [vmem:[#allocation0 + $0x481] ss:$8 sm:$0xf0] %vm3_vm0, %v499_v53  }
  0xc7   :  { %3639 = vst [vmem:[%s5558_s1 + $0xbe] sm:$0x3] %v1336_v54  ;;  %3624 = vst [vmem:[%s5558_s1 + $0xa0] sm:$0x3] %v1246_v55  ;;  %v1258_v57 = vld [vmem:[#allocation0 + $0x290] sm:$0x3] }
  0xc8   :  { %3625 = vst [vmem:[%s5558_s1 + $0xa2] sm:$0x3] %v1252_v56  ;;  %v1264_v58 = vld [vmem:[#allocation0 + $0x298] sm:$0x3]  ;;  %v1270_v59 = vld [vmem:[#allocation0 + $0x2a0] sm:$0x3] }
  0xc9   :  { %3626 = vst [vmem:[%s5558_s1 + $0xa4] sm:$0x3] %v1258_v57  ;;  %3627 = vst [vmem:[%s5558_s1 + $0xa6] sm:$0x3] %v1264_v58  ;;  %v1276_v60 = vld [vmem:[#allocation0 + $0x2a8] sm:$0x3]  ;;  %v598_v58 = vpop.permute.xlu1 %597  }
  0xca   :  { %3628 = vst [vmem:[%s5558_s1 + $0xa8] sm:$0x3] %v1270_v59  ;;  %v1282_v61 = vld [vmem:[#allocation0 + $0x2b0] sm:$0x3]  ;;  %v1288_v62 = vld [vmem:[#allocation0 + $0x2b8] sm:$0x3]  ;;  %v589_v59 = vpop.permute.xlu0 %588  }
  0xcb   :  { %3629 = vst [vmem:[%s5558_s1 + $0xaa] sm:$0x3] %v1276_v60  ;;  %3630 = vst [vmem:[%s5558_s1 + $0xac] sm:$0x3] %v1282_v61  ;;  %v1390_v63 = vld [vmem:[#allocation0 + $0x340] sm:$0x3] }
  0xcc   :  { %3631 = vst [vmem:[%s5558_s1 + $0xae] sm:$0x3] %v1288_v62  ;;  %v1396_v0 = vld [vmem:[#allocation0 + $0x348] sm:$0x3]  ;;  %v1402_v1 = vld [vmem:[#allocation0 + $0x350] sm:$0x3] }
  0xcd   :  { %3648 = vst [vmem:[%s5558_s1 + $0xd0] sm:$0x3] %v1390_v63  ;;  %3649 = vst [vmem:[%s5558_s1 + $0xd2] sm:$0x3] %v1396_v0  ;;  %v1408_v4 = vld [vmem:[#allocation0 + $0x358] sm:$0x3] }
  0xce   :  { %3650 = vst [vmem:[%s5558_s1 + $0xd4] sm:$0x3] %v1402_v1  ;;  %v1414_v5 = vld [vmem:[#allocation0 + $0x360] sm:$0x3]  ;;  %v1420_v6 = vld [vmem:[#allocation0 + $0x368] sm:$0x3] }
  0xcf   :  { %529 = vst.msk [vmem:[#allocation0 + $0x541] ss:$8 sm:$0xf] %vm3_vm0, %v526_v2   ;;  %531 = vst.msk [vmem:[#allocation0 + $0x541] ss:$8 sm:$0xf0] %vm3_vm0, %v526_v2  }
  0xd0   :  { %520 = vst.msk [vmem:[#allocation0 + $0x501] ss:$8 sm:$0xf] %vm3_vm0, %v517_v3   ;;  %522 = vst.msk [vmem:[#allocation0 + $0x501] ss:$8 sm:$0xf0] %vm3_vm0, %v517_v3  }
  0xd1   :  { %3651 = vst [vmem:[%s5558_s1 + $0xd6] sm:$0x3] %v1408_v4  ;;  %3652 = vst [vmem:[%s5558_s1 + $0xd8] sm:$0x3] %v1414_v5  ;;  %v1426_v7 = vld [vmem:[#allocation0 + $0x370] sm:$0x3] }
  0xd2   :  { %3653 = vst [vmem:[%s5558_s1 + $0xda] sm:$0x3] %v1420_v6  ;;  %v1432_v8 = vld [vmem:[#allocation0 + $0x378] sm:$0x3]  ;;  %v1342_v9 = vld [vmem:[#allocation0 + $0x300] sm:$0x3] }
  0xd3   :  { %3654 = vst [vmem:[%s5558_s1 + $0xdc] sm:$0x3] %v1426_v7  ;;  %3655 = vst [vmem:[%s5558_s1 + $0xde] sm:$0x3] %v1432_v8  ;;  %v1348_v10 = vld [vmem:[#allocation0 + $0x308] sm:$0x3]  ;;  %v616_v8 = vpop.permute.xlu1 %615  }
  0xd4   :  { %3640 = vst [vmem:[%s5558_s1 + $0xc0] sm:$0x3] %v1342_v9  ;;  %v1354_v11 = vld [vmem:[#allocation0 + $0x310] sm:$0x3]  ;;  %v1360_v12 = vld [vmem:[#allocation0 + $0x318] sm:$0x3]  ;;  %v607_v9 = vpop.permute.xlu0 %606  }
  0xd5   :  { %3641 = vst [vmem:[%s5558_s1 + $0xc2] sm:$0x3] %v1348_v10  ;;  %3642 = vst [vmem:[%s5558_s1 + $0xc4] sm:$0x3] %v1354_v11  ;;  %v1366_v13 = vld [vmem:[#allocation0 + $0x320] sm:$0x3] }
  0xd6   :  { %3643 = vst [vmem:[%s5558_s1 + $0xc6] sm:$0x3] %v1360_v12  ;;  %v1372_v14 = vld [vmem:[#allocation0 + $0x328] sm:$0x3]  ;;  %v1378_v15 = vld [vmem:[#allocation0 + $0x330] sm:$0x3] }
  0xd7   :  { %3644 = vst [vmem:[%s5558_s1 + $0xc8] sm:$0x3] %v1366_v13  ;;  %3645 = vst [vmem:[%s5558_s1 + $0xca] sm:$0x3] %v1372_v14  ;;  %v1384_v18 = vld [vmem:[#allocation0 + $0x338] sm:$0x3] }
  0xd8   :  { %3646 = vst [vmem:[%s5558_s1 + $0xcc] sm:$0x3] %v1378_v15  ;;  %v1486_v19 = vld [vmem:[#allocation0 + $0x3c0] sm:$0x3]  ;;  %v1492_v20 = vld [vmem:[#allocation0 + $0x3c8] sm:$0x3] }
  0xd9   :  { %547 = vst.msk [vmem:[#allocation0 + $0x5c1] ss:$8 sm:$0xf] %vm3_vm0, %v544_v16   ;;  %549 = vst.msk [vmem:[#allocation0 + $0x5c1] ss:$8 sm:$0xf0] %vm3_vm0, %v544_v16  }
  0xda   :  { %538 = vst.msk [vmem:[#allocation0 + $0x581] ss:$8 sm:$0xf] %vm3_vm0, %v535_v17   ;;  %540 = vst.msk [vmem:[#allocation0 + $0x581] ss:$8 sm:$0xf0] %vm3_vm0, %v535_v17  }
  0xdb   :  { %3647 = vst [vmem:[%s5558_s1 + $0xce] sm:$0x3] %v1384_v18  ;;  %3664 = vst [vmem:[%s5558_s1 + $0xf0] sm:$0x3] %v1486_v19  ;;  %v1498_v21 = vld [vmem:[#allocation0 + $0x3d0] sm:$0x3] }
  0xdc   :  { %3665 = vst [vmem:[%s5558_s1 + $0xf2] sm:$0x3] %v1492_v20  ;;  %v1504_v22 = vld [vmem:[#allocation0 + $0x3d8] sm:$0x3]  ;;  %v1510_v23 = vld [vmem:[#allocation0 + $0x3e0] sm:$0x3] }
  0xdd   :  { %3666 = vst [vmem:[%s5558_s1 + $0xf4] sm:$0x3] %v1498_v21  ;;  %3667 = vst [vmem:[%s5558_s1 + $0xf6] sm:$0x3] %v1504_v22  ;;  %v1516_v24 = vld [vmem:[#allocation0 + $0x3e8] sm:$0x3]  ;;  %v634_v22 = vpop.permute.xlu1 %633  }
  0xde   :  { %3668 = vst [vmem:[%s5558_s1 + $0xf8] sm:$0x3] %v1510_v23  ;;  %v1522_v25 = vld [vmem:[#allocation0 + $0x3f0] sm:$0x3]  ;;  %v1528_v26 = vld [vmem:[#allocation0 + $0x3f8] sm:$0x3]  ;;  %v625_v23 = vpop.permute.xlu0 %624  }
  0xdf   :  { %3669 = vst [vmem:[%s5558_s1 + $0xfa] sm:$0x3] %v1516_v24  ;;  %3670 = vst [vmem:[%s5558_s1 + $0xfc] sm:$0x3] %v1522_v25  ;;  %v1438_v27 = vld [vmem:[#allocation0 + $0x380] sm:$0x3] }
  0xe0   :  { %3671 = vst [vmem:[%s5558_s1 + $0xfe] sm:$0x3] %v1528_v26  ;;  %v1444_v28 = vld [vmem:[#allocation0 + $0x388] sm:$0x3]  ;;  %v1450_v29 = vld [vmem:[#allocation0 + $0x390] sm:$0x3] }
  0xe1   :  { %3656 = vst [vmem:[%s5558_s1 + $0xe0] sm:$0x3] %v1438_v27  ;;  %3657 = vst [vmem:[%s5558_s1 + $0xe2] sm:$0x3] %v1444_v28  ;;  %v1456_v32 = vld [vmem:[#allocation0 + $0x398] sm:$0x3] }
  0xe2   :  { %3658 = vst [vmem:[%s5558_s1 + $0xe4] sm:$0x3] %v1450_v29  ;;  %v1462_v33 = vld [vmem:[#allocation0 + $0x3a0] sm:$0x3]  ;;  %v1468_v34 = vld [vmem:[#allocation0 + $0x3a8] sm:$0x3] }
  0xe3   :  { %565 = vst.msk [vmem:[#allocation0 + $0x641] ss:$8 sm:$0xf] %vm3_vm0, %v562_v30   ;;  %567 = vst.msk [vmem:[#allocation0 + $0x641] ss:$8 sm:$0xf0] %vm3_vm0, %v562_v30  }
  0xe4   :  { %556 = vst.msk [vmem:[#allocation0 + $0x601] ss:$8 sm:$0xf] %vm3_vm0, %v553_v31   ;;  %558 = vst.msk [vmem:[#allocation0 + $0x601] ss:$8 sm:$0xf0] %vm3_vm0, %v553_v31  }
  0xe5   :  { %3659 = vst [vmem:[%s5558_s1 + $0xe6] sm:$0x3] %v1456_v32  ;;  %3660 = vst [vmem:[%s5558_s1 + $0xe8] sm:$0x3] %v1462_v33  ;;  %v1474_v35 = vld [vmem:[#allocation0 + $0x3b0] sm:$0x3] }
  0xe6   :  { %3661 = vst [vmem:[%s5558_s1 + $0xea] sm:$0x3] %v1468_v34  ;;  %v1480_v36 = vld [vmem:[#allocation0 + $0x3b8] sm:$0x3]  ;;  %v1582_v37 = vld [vmem:[#allocation0 + $0x440] sm:$0x3] }
  0xe7   :  { %3662 = vst [vmem:[%s5558_s1 + $0xec] sm:$0x3] %v1474_v35  ;;  %3663 = vst [vmem:[%s5558_s1 + $0xee] sm:$0x3] %v1480_v36  ;;  %v1588_v38 = vld [vmem:[#allocation0 + $0x448] sm:$0x3]  ;;  %v652_v36 = vpop.permute.xlu1 %651  }
  0xe8   :  { %3680 = vst [vmem:[%s5558_s1 + $0x110] sm:$0x3] %v1582_v37  ;;  %v1594_v39 = vld [vmem:[#allocation0 + $0x450] sm:$0x3]  ;;  %v1600_v40 = vld [vmem:[#allocation0 + $0x458] sm:$0x3]  ;;  %v643_v37 = vpop.permute.xlu0 %642  }
  0xe9   :  { %3681 = vst [vmem:[%s5558_s1 + $0x112] sm:$0x3] %v1588_v38  ;;  %3682 = vst [vmem:[%s5558_s1 + $0x114] sm:$0x3] %v1594_v39  ;;  %v1606_v41 = vld [vmem:[#allocation0 + $0x460] sm:$0x3] }
  0xea   :  { %3683 = vst [vmem:[%s5558_s1 + $0x116] sm:$0x3] %v1600_v40  ;;  %v1612_v42 = vld [vmem:[#allocation0 + $0x468] sm:$0x3]  ;;  %v1618_v43 = vld [vmem:[#allocation0 + $0x470] sm:$0x3] }
  0xeb   :  { %3684 = vst [vmem:[%s5558_s1 + $0x118] sm:$0x3] %v1606_v41  ;;  %3685 = vst [vmem:[%s5558_s1 + $0x11a] sm:$0x3] %v1612_v42  ;;  %v1624_v46 = vld [vmem:[#allocation0 + $0x478] sm:$0x3] }
  0xec   :  { %3686 = vst [vmem:[%s5558_s1 + $0x11c] sm:$0x3] %v1618_v43  ;;  %v1534_v47 = vld [vmem:[#allocation0 + $0x400] sm:$0x3]  ;;  %v1540_v48 = vld [vmem:[#allocation0 + $0x408] sm:$0x3] }
  0xed   :  { %583 = vst.msk [vmem:[#allocation0 + $0x6c1] ss:$8 sm:$0xf] %vm3_vm0, %v580_v44   ;;  %585 = vst.msk [vmem:[#allocation0 + $0x6c1] ss:$8 sm:$0xf0] %vm3_vm0, %v580_v44  }
  0xee   :  { %574 = vst.msk [vmem:[#allocation0 + $0x681] ss:$8 sm:$0xf] %vm3_vm0, %v571_v45   ;;  %576 = vst.msk [vmem:[#allocation0 + $0x681] ss:$8 sm:$0xf0] %vm3_vm0, %v571_v45  }
  0xef   :  { %3687 = vst [vmem:[%s5558_s1 + $0x11e] sm:$0x3] %v1624_v46  ;;  %3672 = vst [vmem:[%s5558_s1 + $0x100] sm:$0x3] %v1534_v47  ;;  %v1546_v49 = vld [vmem:[#allocation0 + $0x410] sm:$0x3] }
  0xf0   :  { %3673 = vst [vmem:[%s5558_s1 + $0x102] sm:$0x3] %v1540_v48  ;;  %v1552_v50 = vld [vmem:[#allocation0 + $0x418] sm:$0x3]  ;;  %v1558_v51 = vld [vmem:[#allocation0 + $0x420] sm:$0x3] }
  0xf1   :  { %3674 = vst [vmem:[%s5558_s1 + $0x104] sm:$0x3] %v1546_v49  ;;  %3675 = vst [vmem:[%s5558_s1 + $0x106] sm:$0x3] %v1552_v50  ;;  %v1564_v52 = vld [vmem:[#allocation0 + $0x428] sm:$0x3]  ;;  %v670_v50 = vpop.permute.xlu1 %669  }
  0xf2   :  { %3676 = vst [vmem:[%s5558_s1 + $0x108] sm:$0x3] %v1558_v51  ;;  %v1570_v53 = vld [vmem:[#allocation0 + $0x430] sm:$0x3]  ;;  %v1576_v54 = vld [vmem:[#allocation0 + $0x438] sm:$0x3]  ;;  %v661_v51 = vpop.permute.xlu0 %660  }
  0xf3   :  { %3677 = vst [vmem:[%s5558_s1 + $0x10a] sm:$0x3] %v1564_v52  ;;  %3678 = vst [vmem:[%s5558_s1 + $0x10c] sm:$0x3] %v1570_v53  ;;  %v1678_v55 = vld [vmem:[#allocation0 + $0x4c0] sm:$0x3] }
  0xf4   :  { %3679 = vst [vmem:[%s5558_s1 + $0x10e] sm:$0x3] %v1576_v54  ;;  %v1684_v56 = vld [vmem:[#allocation0 + $0x4c8] sm:$0x3]  ;;  %v1690_v57 = vld [vmem:[#allocation0 + $0x4d0] sm:$0x3] }
  0xf5   :  { %3696 = vst [vmem:[%s5558_s1 + $0x130] sm:$0x3] %v1678_v55  ;;  %3697 = vst [vmem:[%s5558_s1 + $0x132] sm:$0x3] %v1684_v56  ;;  %v1696_v60 = vld [vmem:[#allocation0 + $0x4d8] sm:$0x3] }
  0xf6   :  { %3698 = vst [vmem:[%s5558_s1 + $0x134] sm:$0x3] %v1690_v57  ;;  %v1702_v61 = vld [vmem:[#allocation0 + $0x4e0] sm:$0x3]  ;;  %v1708_v62 = vld [vmem:[#allocation0 + $0x4e8] sm:$0x3] }
  0xf7   :  { %601 = vst.msk [vmem:[#allocation0 + $0x741] ss:$8 sm:$0xf] %vm3_vm0, %v598_v58   ;;  %603 = vst.msk [vmem:[#allocation0 + $0x741] ss:$8 sm:$0xf0] %vm3_vm0, %v598_v58  }
  0xf8   :  { %592 = vst.msk [vmem:[#allocation0 + $0x701] ss:$8 sm:$0xf] %vm3_vm0, %v589_v59   ;;  %594 = vst.msk [vmem:[#allocation0 + $0x701] ss:$8 sm:$0xf0] %vm3_vm0, %v589_v59  }
  0xf9   :  { %3699 = vst [vmem:[%s5558_s1 + $0x136] sm:$0x3] %v1696_v60  ;;  %3700 = vst [vmem:[%s5558_s1 + $0x138] sm:$0x3] %v1702_v61  ;;  %v1714_v63 = vld [vmem:[#allocation0 + $0x4f0] sm:$0x3] }
  0xfa   :  { %3701 = vst [vmem:[%s5558_s1 + $0x13a] sm:$0x3] %v1708_v62  ;;  %v1720_v0 = vld [vmem:[#allocation0 + $0x4f8] sm:$0x3]  ;;  %v1630_v1 = vld [vmem:[#allocation0 + $0x480] sm:$0x3] }
  0xfb   :  { %3702 = vst [vmem:[%s5558_s1 + $0x13c] sm:$0x3] %v1714_v63  ;;  %3703 = vst [vmem:[%s5558_s1 + $0x13e] sm:$0x3] %v1720_v0  ;;  %v1636_v2 = vld [vmem:[#allocation0 + $0x488] sm:$0x3]  ;;  %v688_v0 = vpop.permute.xlu1 %687  }
  0xfc   :  { %3688 = vst [vmem:[%s5558_s1 + $0x120] sm:$0x3] %v1630_v1  ;;  %v1642_v3 = vld [vmem:[#allocation0 + $0x490] sm:$0x3]  ;;  %v1648_v4 = vld [vmem:[#allocation0 + $0x498] sm:$0x3]  ;;  %v679_v1 = vpop.permute.xlu0 %678  }
  0xfd   :  { %3689 = vst [vmem:[%s5558_s1 + $0x122] sm:$0x3] %v1636_v2  ;;  %3690 = vst [vmem:[%s5558_s1 + $0x124] sm:$0x3] %v1642_v3  ;;  %v1654_v5 = vld [vmem:[#allocation0 + $0x4a0] sm:$0x3] }
  0xfe   :  { %3691 = vst [vmem:[%s5558_s1 + $0x126] sm:$0x3] %v1648_v4  ;;  %v1660_v6 = vld [vmem:[#allocation0 + $0x4a8] sm:$0x3]  ;;  %v1666_v7 = vld [vmem:[#allocation0 + $0x4b0] sm:$0x3] }
  0xff   :  { %3692 = vst [vmem:[%s5558_s1 + $0x128] sm:$0x3] %v1654_v5  ;;  %3693 = vst [vmem:[%s5558_s1 + $0x12a] sm:$0x3] %v1660_v6  ;;  %v1672_v10 = vld [vmem:[#allocation0 + $0x4b8] sm:$0x3] }
 0x100   :  { %3694 = vst [vmem:[%s5558_s1 + $0x12c] sm:$0x3] %v1666_v7  ;;  %v1774_v11 = vld [vmem:[#allocation0 + $0x540] sm:$0x3]  ;;  %v1780_v12 = vld [vmem:[#allocation0 + $0x548] sm:$0x3] }
 0x101   :  { %619 = vst.msk [vmem:[#allocation0 + $0x7c1] ss:$8 sm:$0xf] %vm3_vm0, %v616_v8   ;;  %621 = vst.msk [vmem:[#allocation0 + $0x7c1] ss:$8 sm:$0xf0] %vm3_vm0, %v616_v8  }
 0x102   :  { %610 = vst.msk [vmem:[#allocation0 + $0x781] ss:$8 sm:$0xf] %vm3_vm0, %v607_v9   ;;  %612 = vst.msk [vmem:[#allocation0 + $0x781] ss:$8 sm:$0xf0] %vm3_vm0, %v607_v9  }
 0x103   :  { %3695 = vst [vmem:[%s5558_s1 + $0x12e] sm:$0x3] %v1672_v10  ;;  %3712 = vst [vmem:[%s5558_s1 + $0x150] sm:$0x3] %v1774_v11  ;;  %v1786_v13 = vld [vmem:[#allocation0 + $0x550] sm:$0x3] }
 0x104   :  { %3713 = vst [vmem:[%s5558_s1 + $0x152] sm:$0x3] %v1780_v12  ;;  %v1792_v14 = vld [vmem:[#allocation0 + $0x558] sm:$0x3]  ;;  %v1798_v15 = vld [vmem:[#allocation0 + $0x560] sm:$0x3] }
 0x105   :  { %3714 = vst [vmem:[%s5558_s1 + $0x154] sm:$0x3] %v1786_v13  ;;  %3715 = vst [vmem:[%s5558_s1 + $0x156] sm:$0x3] %v1792_v14  ;;  %v1804_v16 = vld [vmem:[#allocation0 + $0x568] sm:$0x3]  ;;  %v706_v14 = vpop.permute.xlu1 %705  }
 0x106   :  { %3716 = vst [vmem:[%s5558_s1 + $0x158] sm:$0x3] %v1798_v15  ;;  %v1810_v17 = vld [vmem:[#allocation0 + $0x570] sm:$0x3]  ;;  %v1816_v18 = vld [vmem:[#allocation0 + $0x578] sm:$0x3]  ;;  %v697_v15 = vpop.permute.xlu0 %696  }
 0x107   :  { %3717 = vst [vmem:[%s5558_s1 + $0x15a] sm:$0x3] %v1804_v16  ;;  %3718 = vst [vmem:[%s5558_s1 + $0x15c] sm:$0x3] %v1810_v17  ;;  %v1726_v19 = vld [vmem:[#allocation0 + $0x500] sm:$0x3] }
 0x108   :  { %3719 = vst [vmem:[%s5558_s1 + $0x15e] sm:$0x3] %v1816_v18  ;;  %v1732_v20 = vld [vmem:[#allocation0 + $0x508] sm:$0x3]  ;;  %v1738_v21 = vld [vmem:[#allocation0 + $0x510] sm:$0x3] }
 0x109   :  { %3704 = vst [vmem:[%s5558_s1 + $0x140] sm:$0x3] %v1726_v19  ;;  %3705 = vst [vmem:[%s5558_s1 + $0x142] sm:$0x3] %v1732_v20  ;;  %v1744_v24 = vld [vmem:[#allocation0 + $0x518] sm:$0x3] }
 0x10a   :  { %3706 = vst [vmem:[%s5558_s1 + $0x144] sm:$0x3] %v1738_v21  ;;  %v1750_v25 = vld [vmem:[#allocation0 + $0x520] sm:$0x3]  ;;  %v1756_v26 = vld [vmem:[#allocation0 + $0x528] sm:$0x3] }
 0x10b   :  { %637 = vst.msk [vmem:[#allocation0 + $0x841] ss:$8 sm:$0xf] %vm3_vm0, %v634_v22   ;;  %639 = vst.msk [vmem:[#allocation0 + $0x841] ss:$8 sm:$0xf0] %vm3_vm0, %v634_v22  }
 0x10c   :  { %628 = vst.msk [vmem:[#allocation0 + $0x801] ss:$8 sm:$0xf] %vm3_vm0, %v625_v23   ;;  %630 = vst.msk [vmem:[#allocation0 + $0x801] ss:$8 sm:$0xf0] %vm3_vm0, %v625_v23  }
 0x10d   :  { %3707 = vst [vmem:[%s5558_s1 + $0x146] sm:$0x3] %v1744_v24  ;;  %3708 = vst [vmem:[%s5558_s1 + $0x148] sm:$0x3] %v1750_v25  ;;  %v1762_v27 = vld [vmem:[#allocation0 + $0x530] sm:$0x3] }
 0x10e   :  { %3709 = vst [vmem:[%s5558_s1 + $0x14a] sm:$0x3] %v1756_v26  ;;  %v1768_v28 = vld [vmem:[#allocation0 + $0x538] sm:$0x3]  ;;  %v1870_v29 = vld [vmem:[#allocation0 + $0x5c0] sm:$0x3] }
 0x10f   :  { %3710 = vst [vmem:[%s5558_s1 + $0x14c] sm:$0x3] %v1762_v27  ;;  %3711 = vst [vmem:[%s5558_s1 + $0x14e] sm:$0x3] %v1768_v28  ;;  %v1876_v30 = vld [vmem:[#allocation0 + $0x5c8] sm:$0x3]  ;;  %v724_v28 = vpop.permute.xlu1 %723  }
 0x110   :  { %3728 = vst [vmem:[%s5558_s1 + $0x170] sm:$0x3] %v1870_v29  ;;  %v1882_v31 = vld [vmem:[#allocation0 + $0x5d0] sm:$0x3]  ;;  %v1888_v32 = vld [vmem:[#allocation0 + $0x5d8] sm:$0x3]  ;;  %v715_v29 = vpop.permute.xlu0 %714  }
 0x111   :  { %3729 = vst [vmem:[%s5558_s1 + $0x172] sm:$0x3] %v1876_v30  ;;  %3730 = vst [vmem:[%s5558_s1 + $0x174] sm:$0x3] %v1882_v31  ;;  %v1894_v33 = vld [vmem:[#allocation0 + $0x5e0] sm:$0x3] }
 0x112   :  { %3731 = vst [vmem:[%s5558_s1 + $0x176] sm:$0x3] %v1888_v32  ;;  %v1900_v34 = vld [vmem:[#allocation0 + $0x5e8] sm:$0x3]  ;;  %v1906_v35 = vld [vmem:[#allocation0 + $0x5f0] sm:$0x3] }
 0x113   :  { %3732 = vst [vmem:[%s5558_s1 + $0x178] sm:$0x3] %v1894_v33  ;;  %3733 = vst [vmem:[%s5558_s1 + $0x17a] sm:$0x3] %v1900_v34  ;;  %v1912_v38 = vld [vmem:[#allocation0 + $0x5f8] sm:$0x3] }
 0x114   :  { %3734 = vst [vmem:[%s5558_s1 + $0x17c] sm:$0x3] %v1906_v35  ;;  %v1822_v39 = vld [vmem:[#allocation0 + $0x580] sm:$0x3]  ;;  %v1828_v40 = vld [vmem:[#allocation0 + $0x588] sm:$0x3] }
 0x115   :  { %655 = vst.msk [vmem:[#allocation0 + $0x8c1] ss:$8 sm:$0xf] %vm3_vm0, %v652_v36   ;;  %657 = vst.msk [vmem:[#allocation0 + $0x8c1] ss:$8 sm:$0xf0] %vm3_vm0, %v652_v36  }
 0x116   :  { %646 = vst.msk [vmem:[#allocation0 + $0x881] ss:$8 sm:$0xf] %vm3_vm0, %v643_v37   ;;  %648 = vst.msk [vmem:[#allocation0 + $0x881] ss:$8 sm:$0xf0] %vm3_vm0, %v643_v37  }
 0x117   :  { %3735 = vst [vmem:[%s5558_s1 + $0x17e] sm:$0x3] %v1912_v38  ;;  %3720 = vst [vmem:[%s5558_s1 + $0x160] sm:$0x3] %v1822_v39  ;;  %v1834_v41 = vld [vmem:[#allocation0 + $0x590] sm:$0x3] }
 0x118   :  { %3721 = vst [vmem:[%s5558_s1 + $0x162] sm:$0x3] %v1828_v40  ;;  %v1840_v42 = vld [vmem:[#allocation0 + $0x598] sm:$0x3]  ;;  %v1846_v43 = vld [vmem:[#allocation0 + $0x5a0] sm:$0x3] }
 0x119   :  { %3722 = vst [vmem:[%s5558_s1 + $0x164] sm:$0x3] %v1834_v41  ;;  %3723 = vst [vmem:[%s5558_s1 + $0x166] sm:$0x3] %v1840_v42  ;;  %v1852_v44 = vld [vmem:[#allocation0 + $0x5a8] sm:$0x3]  ;;  %v742_v42 = vpop.permute.xlu1 %741  }
 0x11a   :  { %3724 = vst [vmem:[%s5558_s1 + $0x168] sm:$0x3] %v1846_v43  ;;  %v1858_v45 = vld [vmem:[#allocation0 + $0x5b0] sm:$0x3]  ;;  %v1864_v46 = vld [vmem:[#allocation0 + $0x5b8] sm:$0x3]  ;;  %v733_v43 = vpop.permute.xlu0 %732  }
 0x11b   :  { %3725 = vst [vmem:[%s5558_s1 + $0x16a] sm:$0x3] %v1852_v44  ;;  %3726 = vst [vmem:[%s5558_s1 + $0x16c] sm:$0x3] %v1858_v45  ;;  %v1966_v47 = vld [vmem:[#allocation0 + $0x640] sm:$0x3] }
 0x11c   :  { %3727 = vst [vmem:[%s5558_s1 + $0x16e] sm:$0x3] %v1864_v46  ;;  %v1972_v48 = vld [vmem:[#allocation0 + $0x648] sm:$0x3]  ;;  %v1978_v49 = vld [vmem:[#allocation0 + $0x650] sm:$0x3] }
 0x11d   :  { %3744 = vst [vmem:[%s5558_s1 + $0x190] sm:$0x3] %v1966_v47  ;;  %3745 = vst [vmem:[%s5558_s1 + $0x192] sm:$0x3] %v1972_v48  ;;  %v1984_v52 = vld [vmem:[#allocation0 + $0x658] sm:$0x3] }
 0x11e   :  { %3746 = vst [vmem:[%s5558_s1 + $0x194] sm:$0x3] %v1978_v49  ;;  %v1990_v53 = vld [vmem:[#allocation0 + $0x660] sm:$0x3]  ;;  %v1996_v54 = vld [vmem:[#allocation0 + $0x668] sm:$0x3] }
 0x11f   :  { %673 = vst.msk [vmem:[#allocation0 + $0x941] ss:$8 sm:$0xf] %vm3_vm0, %v670_v50   ;;  %675 = vst.msk [vmem:[#allocation0 + $0x941] ss:$8 sm:$0xf0] %vm3_vm0, %v670_v50  }
 0x120   :  { %664 = vst.msk [vmem:[#allocation0 + $0x901] ss:$8 sm:$0xf] %vm3_vm0, %v661_v51   ;;  %666 = vst.msk [vmem:[#allocation0 + $0x901] ss:$8 sm:$0xf0] %vm3_vm0, %v661_v51  }
 0x121   :  { %3747 = vst [vmem:[%s5558_s1 + $0x196] sm:$0x3] %v1984_v52  ;;  %3748 = vst [vmem:[%s5558_s1 + $0x198] sm:$0x3] %v1990_v53  ;;  %v2002_v55 = vld [vmem:[#allocation0 + $0x670] sm:$0x3] }
 0x122   :  { %3749 = vst [vmem:[%s5558_s1 + $0x19a] sm:$0x3] %v1996_v54  ;;  %v2008_v56 = vld [vmem:[#allocation0 + $0x678] sm:$0x3]  ;;  %v1918_v57 = vld [vmem:[#allocation0 + $0x600] sm:$0x3] }
 0x123   :  { %3750 = vst [vmem:[%s5558_s1 + $0x19c] sm:$0x3] %v2002_v55  ;;  %3751 = vst [vmem:[%s5558_s1 + $0x19e] sm:$0x3] %v2008_v56  ;;  %v1924_v58 = vld [vmem:[#allocation0 + $0x608] sm:$0x3]  ;;  %v760_v56 = vpop.permute.xlu1 %759  }
 0x124   :  { %3736 = vst [vmem:[%s5558_s1 + $0x180] sm:$0x3] %v1918_v57  ;;  %v1930_v59 = vld [vmem:[#allocation0 + $0x610] sm:$0x3]  ;;  %v1936_v60 = vld [vmem:[#allocation0 + $0x618] sm:$0x3]  ;;  %v751_v57 = vpop.permute.xlu0 %750  }
 0x125   :  { %3737 = vst [vmem:[%s5558_s1 + $0x182] sm:$0x3] %v1924_v58  ;;  %3738 = vst [vmem:[%s5558_s1 + $0x184] sm:$0x3] %v1930_v59  ;;  %v1942_v61 = vld [vmem:[#allocation0 + $0x620] sm:$0x3] }
 0x126   :  { %3739 = vst [vmem:[%s5558_s1 + $0x186] sm:$0x3] %v1936_v60  ;;  %v1948_v62 = vld [vmem:[#allocation0 + $0x628] sm:$0x3]  ;;  %v1954_v63 = vld [vmem:[#allocation0 + $0x630] sm:$0x3] }
 0x127   :  { %3740 = vst [vmem:[%s5558_s1 + $0x188] sm:$0x3] %v1942_v61  ;;  %3741 = vst [vmem:[%s5558_s1 + $0x18a] sm:$0x3] %v1948_v62  ;;  %v1960_v2 = vld [vmem:[#allocation0 + $0x638] sm:$0x3] }
 0x128   :  { %3742 = vst [vmem:[%s5558_s1 + $0x18c] sm:$0x3] %v1954_v63  ;;  %v2062_v3 = vld [vmem:[#allocation0 + $0x6c0] sm:$0x3]  ;;  %v2068_v4 = vld [vmem:[#allocation0 + $0x6c8] sm:$0x3] }
 0x129   :  { %691 = vst.msk [vmem:[#allocation0 + $0x9c1] ss:$8 sm:$0xf] %vm3_vm0, %v688_v0   ;;  %693 = vst.msk [vmem:[#allocation0 + $0x9c1] ss:$8 sm:$0xf0] %vm3_vm0, %v688_v0  }
 0x12a   :  { %682 = vst.msk [vmem:[#allocation0 + $0x981] ss:$8 sm:$0xf] %vm3_vm0, %v679_v1   ;;  %684 = vst.msk [vmem:[#allocation0 + $0x981] ss:$8 sm:$0xf0] %vm3_vm0, %v679_v1  }
 0x12b   :  { %3743 = vst [vmem:[%s5558_s1 + $0x18e] sm:$0x3] %v1960_v2  ;;  %3760 = vst [vmem:[%s5558_s1 + $0x1b0] sm:$0x3] %v2062_v3  ;;  %v2074_v5 = vld [vmem:[#allocation0 + $0x6d0] sm:$0x3] }
 0x12c   :  { %3761 = vst [vmem:[%s5558_s1 + $0x1b2] sm:$0x3] %v2068_v4  ;;  %v2080_v6 = vld [vmem:[#allocation0 + $0x6d8] sm:$0x3]  ;;  %v2086_v7 = vld [vmem:[#allocation0 + $0x6e0] sm:$0x3] }
 0x12d   :  { %3762 = vst [vmem:[%s5558_s1 + $0x1b4] sm:$0x3] %v2074_v5  ;;  %3763 = vst [vmem:[%s5558_s1 + $0x1b6] sm:$0x3] %v2080_v6  ;;  %v2092_v8 = vld [vmem:[#allocation0 + $0x6e8] sm:$0x3] }
 0x12e   :  { %3764 = vst [vmem:[%s5558_s1 + $0x1b8] sm:$0x3] %v2086_v7  ;;  %v2098_v9 = vld [vmem:[#allocation0 + $0x6f0] sm:$0x3]  ;;  %v2104_v10 = vld [vmem:[#allocation0 + $0x6f8] sm:$0x3] }
 0x12f   :  { %3765 = vst [vmem:[%s5558_s1 + $0x1ba] sm:$0x3] %v2092_v8  ;;  %3766 = vst [vmem:[%s5558_s1 + $0x1bc] sm:$0x3] %v2098_v9  ;;  %v2014_v11 = vld [vmem:[#allocation0 + $0x680] sm:$0x3] }
 0x130   :  { %3767 = vst [vmem:[%s5558_s1 + $0x1be] sm:$0x3] %v2104_v10  ;;  %v2020_v12 = vld [vmem:[#allocation0 + $0x688] sm:$0x3]  ;;  %v2026_v13 = vld [vmem:[#allocation0 + $0x690] sm:$0x3] }
 0x131   :  { %3752 = vst [vmem:[%s5558_s1 + $0x1a0] sm:$0x3] %v2014_v11  ;;  %3753 = vst [vmem:[%s5558_s1 + $0x1a2] sm:$0x3] %v2020_v12  ;;  %v2032_v16 = vld [vmem:[#allocation0 + $0x698] sm:$0x3] }
 0x132   :  { %3754 = vst [vmem:[%s5558_s1 + $0x1a4] sm:$0x3] %v2026_v13  ;;  %v2038_v17 = vld [vmem:[#allocation0 + $0x6a0] sm:$0x3]  ;;  %v2044_v18 = vld [vmem:[#allocation0 + $0x6a8] sm:$0x3] }
 0x133   :  { %709 = vst.msk [vmem:[#allocation0 + $0xa41] ss:$8 sm:$0xf] %vm3_vm0, %v706_v14   ;;  %711 = vst.msk [vmem:[#allocation0 + $0xa41] ss:$8 sm:$0xf0] %vm3_vm0, %v706_v14  }
 0x134   :  { %700 = vst.msk [vmem:[#allocation0 + $0xa01] ss:$8 sm:$0xf] %vm3_vm0, %v697_v15   ;;  %702 = vst.msk [vmem:[#allocation0 + $0xa01] ss:$8 sm:$0xf0] %vm3_vm0, %v697_v15  }
 0x135   :  { %3755 = vst [vmem:[%s5558_s1 + $0x1a6] sm:$0x3] %v2032_v16  ;;  %3756 = vst [vmem:[%s5558_s1 + $0x1a8] sm:$0x3] %v2038_v17  ;;  %v2050_v19 = vld [vmem:[#allocation0 + $0x6b0] sm:$0x3] }
 0x136   :  { %3757 = vst [vmem:[%s5558_s1 + $0x1aa] sm:$0x3] %v2044_v18  ;;  %v2056_v20 = vld [vmem:[#allocation0 + $0x6b8] sm:$0x3]  ;;  %v2158_v21 = vld [vmem:[#allocation0 + $0x740] sm:$0x3] }
 0x137   :  { %3758 = vst [vmem:[%s5558_s1 + $0x1ac] sm:$0x3] %v2050_v19  ;;  %3759 = vst [vmem:[%s5558_s1 + $0x1ae] sm:$0x3] %v2056_v20  ;;  %v2164_v22 = vld [vmem:[#allocation0 + $0x748] sm:$0x3] }
 0x138   :  { %3776 = vst [vmem:[%s5558_s1 + $0x1d0] sm:$0x3] %v2158_v21  ;;  %v2170_v23 = vld [vmem:[#allocation0 + $0x750] sm:$0x3]  ;;  %v2176_v24 = vld [vmem:[#allocation0 + $0x758] sm:$0x3] }
 0x139   :  { %3777 = vst [vmem:[%s5558_s1 + $0x1d2] sm:$0x3] %v2164_v22  ;;  %3778 = vst [vmem:[%s5558_s1 + $0x1d4] sm:$0x3] %v2170_v23  ;;  %v2182_v25 = vld [vmem:[#allocation0 + $0x760] sm:$0x3] }
 0x13a   :  { %3779 = vst [vmem:[%s5558_s1 + $0x1d6] sm:$0x3] %v2176_v24  ;;  %v2188_v26 = vld [vmem:[#allocation0 + $0x768] sm:$0x3]  ;;  %v2194_v27 = vld [vmem:[#allocation0 + $0x770] sm:$0x3] }
 0x13b   :  { %3780 = vst [vmem:[%s5558_s1 + $0x1d8] sm:$0x3] %v2182_v25  ;;  %3781 = vst [vmem:[%s5558_s1 + $0x1da] sm:$0x3] %v2188_v26  ;;  %v2200_v30 = vld [vmem:[#allocation0 + $0x778] sm:$0x3] }
 0x13c   :  { %3782 = vst [vmem:[%s5558_s1 + $0x1dc] sm:$0x3] %v2194_v27  ;;  %v2110_v31 = vld [vmem:[#allocation0 + $0x700] sm:$0x3]  ;;  %v2116_v32 = vld [vmem:[#allocation0 + $0x708] sm:$0x3] }
 0x13d   :  { %727 = vst.msk [vmem:[#allocation0 + $0xac1] ss:$8 sm:$0xf] %vm3_vm0, %v724_v28   ;;  %729 = vst.msk [vmem:[#allocation0 + $0xac1] ss:$8 sm:$0xf0] %vm3_vm0, %v724_v28  }
 0x13e   :  { %718 = vst.msk [vmem:[#allocation0 + $0xa81] ss:$8 sm:$0xf] %vm3_vm0, %v715_v29   ;;  %720 = vst.msk [vmem:[#allocation0 + $0xa81] ss:$8 sm:$0xf0] %vm3_vm0, %v715_v29  }
 0x13f   :  { %3783 = vst [vmem:[%s5558_s1 + $0x1de] sm:$0x3] %v2200_v30  ;;  %3768 = vst [vmem:[%s5558_s1 + $0x1c0] sm:$0x3] %v2110_v31  ;;  %v2122_v33 = vld [vmem:[#allocation0 + $0x710] sm:$0x3] }
 0x140   :  { %3769 = vst [vmem:[%s5558_s1 + $0x1c2] sm:$0x3] %v2116_v32  ;;  %v2128_v34 = vld [vmem:[#allocation0 + $0x718] sm:$0x3]  ;;  %v2134_v35 = vld [vmem:[#allocation0 + $0x720] sm:$0x3] }
 0x141   :  { %3770 = vst [vmem:[%s5558_s1 + $0x1c4] sm:$0x3] %v2122_v33  ;;  %3771 = vst [vmem:[%s5558_s1 + $0x1c6] sm:$0x3] %v2128_v34  ;;  %v2140_v36 = vld [vmem:[#allocation0 + $0x728] sm:$0x3] }
 0x142   :  { %3772 = vst [vmem:[%s5558_s1 + $0x1c8] sm:$0x3] %v2134_v35  ;;  %v2146_v37 = vld [vmem:[#allocation0 + $0x730] sm:$0x3]  ;;  %v2152_v38 = vld [vmem:[#allocation0 + $0x738] sm:$0x3] }
 0x143   :  { %3773 = vst [vmem:[%s5558_s1 + $0x1ca] sm:$0x3] %v2140_v36  ;;  %3774 = vst [vmem:[%s5558_s1 + $0x1cc] sm:$0x3] %v2146_v37  ;;  %v2254_v39 = vld [vmem:[#allocation0 + $0x7c0] sm:$0x3] }
 0x144   :  { %3775 = vst [vmem:[%s5558_s1 + $0x1ce] sm:$0x3] %v2152_v38  ;;  %v2260_v40 = vld [vmem:[#allocation0 + $0x7c8] sm:$0x3]  ;;  %v2266_v41 = vld [vmem:[#allocation0 + $0x7d0] sm:$0x3] }
 0x145   :  { %3792 = vst [vmem:[%s5558_s1 + $0x1f0] sm:$0x3] %v2254_v39  ;;  %3793 = vst [vmem:[%s5558_s1 + $0x1f2] sm:$0x3] %v2260_v40  ;;  %v2272_v44 = vld [vmem:[#allocation0 + $0x7d8] sm:$0x3] }
 0x146   :  { %3794 = vst [vmem:[%s5558_s1 + $0x1f4] sm:$0x3] %v2266_v41  ;;  %v2278_v45 = vld [vmem:[#allocation0 + $0x7e0] sm:$0x3]  ;;  %v2284_v46 = vld [vmem:[#allocation0 + $0x7e8] sm:$0x3] }
 0x147   :  { %745 = vst.msk [vmem:[#allocation0 + $0xb41] ss:$8 sm:$0xf] %vm3_vm0, %v742_v42   ;;  %747 = vst.msk [vmem:[#allocation0 + $0xb41] ss:$8 sm:$0xf0] %vm3_vm0, %v742_v42  }
 0x148   :  { %736 = vst.msk [vmem:[#allocation0 + $0xb01] ss:$8 sm:$0xf] %vm3_vm0, %v733_v43   ;;  %738 = vst.msk [vmem:[#allocation0 + $0xb01] ss:$8 sm:$0xf0] %vm3_vm0, %v733_v43  }
 0x149   :  { %3795 = vst [vmem:[%s5558_s1 + $0x1f6] sm:$0x3] %v2272_v44  ;;  %3796 = vst [vmem:[%s5558_s1 + $0x1f8] sm:$0x3] %v2278_v45  ;;  %v2290_v47 = vld [vmem:[#allocation0 + $0x7f0] sm:$0x3] }
 0x14a   :  { %3797 = vst [vmem:[%s5558_s1 + $0x1fa] sm:$0x3] %v2284_v46  ;;  %v2296_v48 = vld [vmem:[#allocation0 + $0x7f8] sm:$0x3]  ;;  %v2206_v49 = vld [vmem:[#allocation0 + $0x780] sm:$0x3] }
 0x14b   :  { %3798 = vst [vmem:[%s5558_s1 + $0x1fc] sm:$0x3] %v2290_v47  ;;  %3799 = vst [vmem:[%s5558_s1 + $0x1fe] sm:$0x3] %v2296_v48  ;;  %v2212_v50 = vld [vmem:[#allocation0 + $0x788] sm:$0x3] }
 0x14c   :  { %3784 = vst [vmem:[%s5558_s1 + $0x1e0] sm:$0x3] %v2206_v49  ;;  %v2218_v51 = vld [vmem:[#allocation0 + $0x790] sm:$0x3]  ;;  %v2224_v52 = vld [vmem:[#allocation0 + $0x798] sm:$0x3] }
 0x14d   :  { %3785 = vst [vmem:[%s5558_s1 + $0x1e2] sm:$0x3] %v2212_v50  ;;  %3786 = vst [vmem:[%s5558_s1 + $0x1e4] sm:$0x3] %v2218_v51  ;;  %v2230_v53 = vld [vmem:[#allocation0 + $0x7a0] sm:$0x3] }
 0x14e   :  { %3787 = vst [vmem:[%s5558_s1 + $0x1e6] sm:$0x3] %v2224_v52  ;;  %v2236_v54 = vld [vmem:[#allocation0 + $0x7a8] sm:$0x3]  ;;  %v2242_v55 = vld [vmem:[#allocation0 + $0x7b0] sm:$0x3] }
 0x14f   :  { %3788 = vst [vmem:[%s5558_s1 + $0x1e8] sm:$0x3] %v2230_v53  ;;  %3789 = vst [vmem:[%s5558_s1 + $0x1ea] sm:$0x3] %v2236_v54  ;;  %v2248_v58 = vld [vmem:[#allocation0 + $0x7b8] sm:$0x3] }
 0x150   :  { %3790 = vst [vmem:[%s5558_s1 + $0x1ec] sm:$0x3] %v2242_v55  ;;  %v2350_v59 = vld [vmem:[#allocation0 + $0x840] sm:$0x3]  ;;  %v2356_v60 = vld [vmem:[#allocation0 + $0x848] sm:$0x3] }
 0x151   :  { %763 = vst.msk [vmem:[#allocation0 + $0xbc1] ss:$8 sm:$0xf] %vm3_vm0, %v760_v56   ;;  %765 = vst.msk [vmem:[#allocation0 + $0xbc1] ss:$8 sm:$0xf0] %vm3_vm0, %v760_v56  }
 0x152   :  { %754 = vst.msk [vmem:[#allocation0 + $0xb81] ss:$8 sm:$0xf] %vm3_vm0, %v751_v57   ;;  %756 = vst.msk [vmem:[#allocation0 + $0xb81] ss:$8 sm:$0xf0] %vm3_vm0, %v751_v57  }
 0x153   :  { %3791 = vst [vmem:[%s5558_s1 + $0x1ee] sm:$0x3] %v2248_v58  ;;  %3808 = vst [vmem:[%s5558_s1 + $0x210] sm:$0x3] %v2350_v59  ;;  %v2362_v61 = vld [vmem:[#allocation0 + $0x850] sm:$0x3] }
 0x154   :  { %3809 = vst [vmem:[%s5558_s1 + $0x212] sm:$0x3] %v2356_v60  ;;  %v2368_v62 = vld [vmem:[#allocation0 + $0x858] sm:$0x3]  ;;  %v2374_v63 = vld [vmem:[#allocation0 + $0x860] sm:$0x3] }
 0x155   :  { %3810 = vst [vmem:[%s5558_s1 + $0x214] sm:$0x3] %v2362_v61  ;;  %3811 = vst [vmem:[%s5558_s1 + $0x216] sm:$0x3] %v2368_v62  ;;  %v2380_v0 = vld [vmem:[#allocation0 + $0x868] sm:$0x3] }
 0x156   :  { %3812 = vst [vmem:[%s5558_s1 + $0x218] sm:$0x3] %v2374_v63  ;;  %v2386_v1 = vld [vmem:[#allocation0 + $0x870] sm:$0x3]  ;;  %v2392_v2 = vld [vmem:[#allocation0 + $0x878] sm:$0x3] }
 0x157   :  { %3813 = vst [vmem:[%s5558_s1 + $0x21a] sm:$0x3] %v2380_v0  ;;  %3814 = vst [vmem:[%s5558_s1 + $0x21c] sm:$0x3] %v2386_v1  ;;  %v2302_v3 = vld [vmem:[#allocation0 + $0x800] sm:$0x3] }
 0x158   :  { %3815 = vst [vmem:[%s5558_s1 + $0x21e] sm:$0x3] %v2392_v2  ;;  %v2308_v4 = vld [vmem:[#allocation0 + $0x808] sm:$0x3]  ;;  %v2314_v5 = vld [vmem:[#allocation0 + $0x810] sm:$0x3] }
 0x159   :  { %3800 = vst [vmem:[%s5558_s1 + $0x200] sm:$0x3] %v2302_v3  ;;  %3801 = vst [vmem:[%s5558_s1 + $0x202] sm:$0x3] %v2308_v4  ;;  %v2320_v6 = vld [vmem:[#allocation0 + $0x818] sm:$0x3] }
 0x15a   :  { %3802 = vst [vmem:[%s5558_s1 + $0x204] sm:$0x3] %v2314_v5  ;;  %v2326_v7 = vld [vmem:[#allocation0 + $0x820] sm:$0x3]  ;;  %v2332_v8 = vld [vmem:[#allocation0 + $0x828] sm:$0x3] }
 0x15b   :  { %3803 = vst [vmem:[%s5558_s1 + $0x206] sm:$0x3] %v2320_v6  ;;  %3804 = vst [vmem:[%s5558_s1 + $0x208] sm:$0x3] %v2326_v7  ;;  %v2338_v9 = vld [vmem:[#allocation0 + $0x830] sm:$0x3] }
 0x15c   :  { %3805 = vst [vmem:[%s5558_s1 + $0x20a] sm:$0x3] %v2332_v8  ;;  %v2344_v10 = vld [vmem:[#allocation0 + $0x838] sm:$0x3]  ;;  %v2446_v11 = vld [vmem:[#allocation0 + $0x8c0] sm:$0x3] }
 0x15d   :  { %3806 = vst [vmem:[%s5558_s1 + $0x20c] sm:$0x3] %v2338_v9  ;;  %3807 = vst [vmem:[%s5558_s1 + $0x20e] sm:$0x3] %v2344_v10  ;;  %v2452_v12 = vld [vmem:[#allocation0 + $0x8c8] sm:$0x3] }
 0x15e   :  { %3824 = vst [vmem:[%s5558_s1 + $0x230] sm:$0x3] %v2446_v11  ;;  %v2458_v13 = vld [vmem:[#allocation0 + $0x8d0] sm:$0x3]  ;;  %v2464_v14 = vld [vmem:[#allocation0 + $0x8d8] sm:$0x3] }
 0x15f   :  { %3825 = vst [vmem:[%s5558_s1 + $0x232] sm:$0x3] %v2452_v12  ;;  %3826 = vst [vmem:[%s5558_s1 + $0x234] sm:$0x3] %v2458_v13  ;;  %v2470_v15 = vld [vmem:[#allocation0 + $0x8e0] sm:$0x3] }
 0x160   :  { %3827 = vst [vmem:[%s5558_s1 + $0x236] sm:$0x3] %v2464_v14  ;;  %v2476_v16 = vld [vmem:[#allocation0 + $0x8e8] sm:$0x3]  ;;  %v2482_v17 = vld [vmem:[#allocation0 + $0x8f0] sm:$0x3] }
 0x161   :  { %3828 = vst [vmem:[%s5558_s1 + $0x238] sm:$0x3] %v2470_v15  ;;  %3829 = vst [vmem:[%s5558_s1 + $0x23a] sm:$0x3] %v2476_v16  ;;  %v2488_v18 = vld [vmem:[#allocation0 + $0x8f8] sm:$0x3] }
 0x162   :  { %3830 = vst [vmem:[%s5558_s1 + $0x23c] sm:$0x3] %v2482_v17  ;;  %v2398_v19 = vld [vmem:[#allocation0 + $0x880] sm:$0x3]  ;;  %v2404_v20 = vld [vmem:[#allocation0 + $0x888] sm:$0x3] }
 0x163   :  { %3831 = vst [vmem:[%s5558_s1 + $0x23e] sm:$0x3] %v2488_v18  ;;  %3816 = vst [vmem:[%s5558_s1 + $0x220] sm:$0x3] %v2398_v19  ;;  %v2410_v21 = vld [vmem:[#allocation0 + $0x890] sm:$0x3] }
 0x164   :  { %3817 = vst [vmem:[%s5558_s1 + $0x222] sm:$0x3] %v2404_v20  ;;  %v2416_v22 = vld [vmem:[#allocation0 + $0x898] sm:$0x3]  ;;  %v2422_v23 = vld [vmem:[#allocation0 + $0x8a0] sm:$0x3] }
 0x165   :  { %3818 = vst [vmem:[%s5558_s1 + $0x224] sm:$0x3] %v2410_v21  ;;  %3819 = vst [vmem:[%s5558_s1 + $0x226] sm:$0x3] %v2416_v22  ;;  %v2428_v24 = vld [vmem:[#allocation0 + $0x8a8] sm:$0x3] }
 0x166   :  { %3820 = vst [vmem:[%s5558_s1 + $0x228] sm:$0x3] %v2422_v23  ;;  %v2434_v25 = vld [vmem:[#allocation0 + $0x8b0] sm:$0x3]  ;;  %v2440_v26 = vld [vmem:[#allocation0 + $0x8b8] sm:$0x3] }
 0x167   :  { %3821 = vst [vmem:[%s5558_s1 + $0x22a] sm:$0x3] %v2428_v24  ;;  %3822 = vst [vmem:[%s5558_s1 + $0x22c] sm:$0x3] %v2434_v25  ;;  %v2542_v27 = vld [vmem:[#allocation0 + $0x940] sm:$0x3] }
 0x168   :  { %3823 = vst [vmem:[%s5558_s1 + $0x22e] sm:$0x3] %v2440_v26  ;;  %v2548_v28 = vld [vmem:[#allocation0 + $0x948] sm:$0x3]  ;;  %v2554_v29 = vld [vmem:[#allocation0 + $0x950] sm:$0x3] }
 0x169   :  { %3840 = vst [vmem:[%s5558_s1 + $0x250] sm:$0x3] %v2542_v27  ;;  %3841 = vst [vmem:[%s5558_s1 + $0x252] sm:$0x3] %v2548_v28  ;;  %v2560_v30 = vld [vmem:[#allocation0 + $0x958] sm:$0x3] }
 0x16a   :  { %3842 = vst [vmem:[%s5558_s1 + $0x254] sm:$0x3] %v2554_v29  ;;  %v2566_v31 = vld [vmem:[#allocation0 + $0x960] sm:$0x3]  ;;  %v2572_v32 = vld [vmem:[#allocation0 + $0x968] sm:$0x3] }
 0x16b   :  { %3843 = vst [vmem:[%s5558_s1 + $0x256] sm:$0x3] %v2560_v30  ;;  %3844 = vst [vmem:[%s5558_s1 + $0x258] sm:$0x3] %v2566_v31  ;;  %v2578_v33 = vld [vmem:[#allocation0 + $0x970] sm:$0x3] }
 0x16c   :  { %3845 = vst [vmem:[%s5558_s1 + $0x25a] sm:$0x3] %v2572_v32  ;;  %v2584_v34 = vld [vmem:[#allocation0 + $0x978] sm:$0x3]  ;;  %v2494_v35 = vld [vmem:[#allocation0 + $0x900] sm:$0x3] }
 0x16d   :  { %3846 = vst [vmem:[%s5558_s1 + $0x25c] sm:$0x3] %v2578_v33  ;;  %3847 = vst [vmem:[%s5558_s1 + $0x25e] sm:$0x3] %v2584_v34  ;;  %v2500_v36 = vld [vmem:[#allocation0 + $0x908] sm:$0x3] }
 0x16e   :  { %3832 = vst [vmem:[%s5558_s1 + $0x240] sm:$0x3] %v2494_v35  ;;  %v2506_v37 = vld [vmem:[#allocation0 + $0x910] sm:$0x3]  ;;  %v2512_v38 = vld [vmem:[#allocation0 + $0x918] sm:$0x3] }
 0x16f   :  { %3833 = vst [vmem:[%s5558_s1 + $0x242] sm:$0x3] %v2500_v36  ;;  %3834 = vst [vmem:[%s5558_s1 + $0x244] sm:$0x3] %v2506_v37  ;;  %v2518_v39 = vld [vmem:[#allocation0 + $0x920] sm:$0x3] }
 0x170   :  { %3835 = vst [vmem:[%s5558_s1 + $0x246] sm:$0x3] %v2512_v38  ;;  %v2524_v40 = vld [vmem:[#allocation0 + $0x928] sm:$0x3]  ;;  %v2530_v41 = vld [vmem:[#allocation0 + $0x930] sm:$0x3] }
 0x171   :  { %3836 = vst [vmem:[%s5558_s1 + $0x248] sm:$0x3] %v2518_v39  ;;  %3837 = vst [vmem:[%s5558_s1 + $0x24a] sm:$0x3] %v2524_v40  ;;  %v2536_v42 = vld [vmem:[#allocation0 + $0x938] sm:$0x3] }
 0x172   :  { %3838 = vst [vmem:[%s5558_s1 + $0x24c] sm:$0x3] %v2530_v41  ;;  %v2638_v43 = vld [vmem:[#allocation0 + $0x9c0] sm:$0x3]  ;;  %v2644_v44 = vld [vmem:[#allocation0 + $0x9c8] sm:$0x3] }
 0x173   :  { %3839 = vst [vmem:[%s5558_s1 + $0x24e] sm:$0x3] %v2536_v42  ;;  %3856 = vst [vmem:[%s5558_s1 + $0x270] sm:$0x3] %v2638_v43  ;;  %v2650_v45 = vld [vmem:[#allocation0 + $0x9d0] sm:$0x3] }
 0x174   :  { %3857 = vst [vmem:[%s5558_s1 + $0x272] sm:$0x3] %v2644_v44  ;;  %v2656_v46 = vld [vmem:[#allocation0 + $0x9d8] sm:$0x3]  ;;  %v2662_v47 = vld [vmem:[#allocation0 + $0x9e0] sm:$0x3] }
 0x175   :  { %3858 = vst [vmem:[%s5558_s1 + $0x274] sm:$0x3] %v2650_v45  ;;  %3859 = vst [vmem:[%s5558_s1 + $0x276] sm:$0x3] %v2656_v46  ;;  %v2668_v48 = vld [vmem:[#allocation0 + $0x9e8] sm:$0x3] }
 0x176   :  { %3860 = vst [vmem:[%s5558_s1 + $0x278] sm:$0x3] %v2662_v47  ;;  %v2674_v49 = vld [vmem:[#allocation0 + $0x9f0] sm:$0x3]  ;;  %v2680_v50 = vld [vmem:[#allocation0 + $0x9f8] sm:$0x3] }
 0x177   :  { %3861 = vst [vmem:[%s5558_s1 + $0x27a] sm:$0x3] %v2668_v48  ;;  %3862 = vst [vmem:[%s5558_s1 + $0x27c] sm:$0x3] %v2674_v49  ;;  %v2590_v51 = vld [vmem:[#allocation0 + $0x980] sm:$0x3] }
 0x178   :  { %3863 = vst [vmem:[%s5558_s1 + $0x27e] sm:$0x3] %v2680_v50  ;;  %v2596_v52 = vld [vmem:[#allocation0 + $0x988] sm:$0x3]  ;;  %v2602_v53 = vld [vmem:[#allocation0 + $0x990] sm:$0x3] }
 0x179   :  { %3848 = vst [vmem:[%s5558_s1 + $0x260] sm:$0x3] %v2590_v51  ;;  %3849 = vst [vmem:[%s5558_s1 + $0x262] sm:$0x3] %v2596_v52  ;;  %v2608_v54 = vld [vmem:[#allocation0 + $0x998] sm:$0x3] }
 0x17a   :  { %3850 = vst [vmem:[%s5558_s1 + $0x264] sm:$0x3] %v2602_v53  ;;  %v2614_v55 = vld [vmem:[#allocation0 + $0x9a0] sm:$0x3]  ;;  %v2620_v56 = vld [vmem:[#allocation0 + $0x9a8] sm:$0x3] }
 0x17b   :  { %3851 = vst [vmem:[%s5558_s1 + $0x266] sm:$0x3] %v2608_v54  ;;  %3852 = vst [vmem:[%s5558_s1 + $0x268] sm:$0x3] %v2614_v55  ;;  %v2626_v57 = vld [vmem:[#allocation0 + $0x9b0] sm:$0x3] }
 0x17c   :  { %3853 = vst [vmem:[%s5558_s1 + $0x26a] sm:$0x3] %v2620_v56  ;;  %v2632_v58 = vld [vmem:[#allocation0 + $0x9b8] sm:$0x3]  ;;  %v2734_v59 = vld [vmem:[#allocation0 + $0xa40] sm:$0x3] }
 0x17d   :  { %3854 = vst [vmem:[%s5558_s1 + $0x26c] sm:$0x3] %v2626_v57  ;;  %3855 = vst [vmem:[%s5558_s1 + $0x26e] sm:$0x3] %v2632_v58  ;;  %v2740_v60 = vld [vmem:[#allocation0 + $0xa48] sm:$0x3] }
 0x17e   :  { %3872 = vst [vmem:[%s5558_s1 + $0x290] sm:$0x3] %v2734_v59  ;;  %v2746_v61 = vld [vmem:[#allocation0 + $0xa50] sm:$0x3]  ;;  %v2752_v62 = vld [vmem:[#allocation0 + $0xa58] sm:$0x3] }
 0x17f   :  { %3873 = vst [vmem:[%s5558_s1 + $0x292] sm:$0x3] %v2740_v60  ;;  %3874 = vst [vmem:[%s5558_s1 + $0x294] sm:$0x3] %v2746_v61  ;;  %v2758_v63 = vld [vmem:[#allocation0 + $0xa60] sm:$0x3] }
 0x180   :  { %3875 = vst [vmem:[%s5558_s1 + $0x296] sm:$0x3] %v2752_v62  ;;  %v2764_v0 = vld [vmem:[#allocation0 + $0xa68] sm:$0x3]  ;;  %v2770_v1 = vld [vmem:[#allocation0 + $0xa70] sm:$0x3] }
 0x181   :  { %3876 = vst [vmem:[%s5558_s1 + $0x298] sm:$0x3] %v2758_v63  ;;  %3877 = vst [vmem:[%s5558_s1 + $0x29a] sm:$0x3] %v2764_v0  ;;  %v2776_v2 = vld [vmem:[#allocation0 + $0xa78] sm:$0x3] }
 0x182   :  { %3878 = vst [vmem:[%s5558_s1 + $0x29c] sm:$0x3] %v2770_v1  ;;  %v2686_v3 = vld [vmem:[#allocation0 + $0xa00] sm:$0x3]  ;;  %v2692_v4 = vld [vmem:[#allocation0 + $0xa08] sm:$0x3] }
 0x183   :  { %3879 = vst [vmem:[%s5558_s1 + $0x29e] sm:$0x3] %v2776_v2  ;;  %3864 = vst [vmem:[%s5558_s1 + $0x280] sm:$0x3] %v2686_v3  ;;  %v2698_v5 = vld [vmem:[#allocation0 + $0xa10] sm:$0x3] }
 0x184   :  { %3865 = vst [vmem:[%s5558_s1 + $0x282] sm:$0x3] %v2692_v4  ;;  %v2704_v6 = vld [vmem:[#allocation0 + $0xa18] sm:$0x3]  ;;  %v2710_v7 = vld [vmem:[#allocation0 + $0xa20] sm:$0x3] }
 0x185   :  { %3866 = vst [vmem:[%s5558_s1 + $0x284] sm:$0x3] %v2698_v5  ;;  %3867 = vst [vmem:[%s5558_s1 + $0x286] sm:$0x3] %v2704_v6  ;;  %v2716_v8 = vld [vmem:[#allocation0 + $0xa28] sm:$0x3] }
 0x186   :  { %3868 = vst [vmem:[%s5558_s1 + $0x288] sm:$0x3] %v2710_v7  ;;  %v2722_v9 = vld [vmem:[#allocation0 + $0xa30] sm:$0x3]  ;;  %v2728_v10 = vld [vmem:[#allocation0 + $0xa38] sm:$0x3] }
 0x187   :  { %3869 = vst [vmem:[%s5558_s1 + $0x28a] sm:$0x3] %v2716_v8  ;;  %3870 = vst [vmem:[%s5558_s1 + $0x28c] sm:$0x3] %v2722_v9  ;;  %v2830_v11 = vld [vmem:[#allocation0 + $0xac0] sm:$0x3] }
 0x188   :  { %3871 = vst [vmem:[%s5558_s1 + $0x28e] sm:$0x3] %v2728_v10  ;;  %v2836_v12 = vld [vmem:[#allocation0 + $0xac8] sm:$0x3]  ;;  %v2842_v13 = vld [vmem:[#allocation0 + $0xad0] sm:$0x3] }
 0x189   :  { %3888 = vst [vmem:[%s5558_s1 + $0x2b0] sm:$0x3] %v2830_v11  ;;  %3889 = vst [vmem:[%s5558_s1 + $0x2b2] sm:$0x3] %v2836_v12  ;;  %v2848_v14 = vld [vmem:[#allocation0 + $0xad8] sm:$0x3] }
 0x18a   :  { %3890 = vst [vmem:[%s5558_s1 + $0x2b4] sm:$0x3] %v2842_v13  ;;  %v2854_v15 = vld [vmem:[#allocation0 + $0xae0] sm:$0x3]  ;;  %v2860_v16 = vld [vmem:[#allocation0 + $0xae8] sm:$0x3] }
 0x18b   :  { %3891 = vst [vmem:[%s5558_s1 + $0x2b6] sm:$0x3] %v2848_v14  ;;  %3892 = vst [vmem:[%s5558_s1 + $0x2b8] sm:$0x3] %v2854_v15  ;;  %v2866_v17 = vld [vmem:[#allocation0 + $0xaf0] sm:$0x3] }
 0x18c   :  { %3893 = vst [vmem:[%s5558_s1 + $0x2ba] sm:$0x3] %v2860_v16  ;;  %v2872_v18 = vld [vmem:[#allocation0 + $0xaf8] sm:$0x3]  ;;  %v2782_v19 = vld [vmem:[#allocation0 + $0xa80] sm:$0x3] }
 0x18d   :  { %3894 = vst [vmem:[%s5558_s1 + $0x2bc] sm:$0x3] %v2866_v17  ;;  %3895 = vst [vmem:[%s5558_s1 + $0x2be] sm:$0x3] %v2872_v18  ;;  %v2788_v20 = vld [vmem:[#allocation0 + $0xa88] sm:$0x3] }
 0x18e   :  { %3880 = vst [vmem:[%s5558_s1 + $0x2a0] sm:$0x3] %v2782_v19  ;;  %v2794_v21 = vld [vmem:[#allocation0 + $0xa90] sm:$0x3]  ;;  %v2800_v22 = vld [vmem:[#allocation0 + $0xa98] sm:$0x3] }
 0x18f   :  { %3881 = vst [vmem:[%s5558_s1 + $0x2a2] sm:$0x3] %v2788_v20  ;;  %3882 = vst [vmem:[%s5558_s1 + $0x2a4] sm:$0x3] %v2794_v21  ;;  %v2806_v23 = vld [vmem:[#allocation0 + $0xaa0] sm:$0x3] }
 0x190   :  { %3883 = vst [vmem:[%s5558_s1 + $0x2a6] sm:$0x3] %v2800_v22  ;;  %v2812_v24 = vld [vmem:[#allocation0 + $0xaa8] sm:$0x3]  ;;  %v2818_v25 = vld [vmem:[#allocation0 + $0xab0] sm:$0x3] }
 0x191   :  { %3884 = vst [vmem:[%s5558_s1 + $0x2a8] sm:$0x3] %v2806_v23  ;;  %3885 = vst [vmem:[%s5558_s1 + $0x2aa] sm:$0x3] %v2812_v24  ;;  %v2824_v26 = vld [vmem:[#allocation0 + $0xab8] sm:$0x3] }
 0x192   :  { %3886 = vst [vmem:[%s5558_s1 + $0x2ac] sm:$0x3] %v2818_v25  ;;  %v2926_v27 = vld [vmem:[#allocation0 + $0xb40] sm:$0x3]  ;;  %v2932_v28 = vld [vmem:[#allocation0 + $0xb48] sm:$0x3] }
 0x193   :  { %3887 = vst [vmem:[%s5558_s1 + $0x2ae] sm:$0x3] %v2824_v26  ;;  %3904 = vst [vmem:[%s5558_s1 + $0x2d0] sm:$0x3] %v2926_v27  ;;  %v2938_v29 = vld [vmem:[#allocation0 + $0xb50] sm:$0x3] }
 0x194   :  { %3905 = vst [vmem:[%s5558_s1 + $0x2d2] sm:$0x3] %v2932_v28  ;;  %v2944_v30 = vld [vmem:[#allocation0 + $0xb58] sm:$0x3]  ;;  %v2950_v31 = vld [vmem:[#allocation0 + $0xb60] sm:$0x3] }
 0x195   :  { %3906 = vst [vmem:[%s5558_s1 + $0x2d4] sm:$0x3] %v2938_v29  ;;  %3907 = vst [vmem:[%s5558_s1 + $0x2d6] sm:$0x3] %v2944_v30  ;;  %v2956_v32 = vld [vmem:[#allocation0 + $0xb68] sm:$0x3] }
 0x196   :  { %3908 = vst [vmem:[%s5558_s1 + $0x2d8] sm:$0x3] %v2950_v31  ;;  %v2962_v33 = vld [vmem:[#allocation0 + $0xb70] sm:$0x3]  ;;  %v2968_v34 = vld [vmem:[#allocation0 + $0xb78] sm:$0x3] }
 0x197   :  { %3909 = vst [vmem:[%s5558_s1 + $0x2da] sm:$0x3] %v2956_v32  ;;  %3910 = vst [vmem:[%s5558_s1 + $0x2dc] sm:$0x3] %v2962_v33  ;;  %v2878_v35 = vld [vmem:[#allocation0 + $0xb00] sm:$0x3] }
 0x198   :  { %3911 = vst [vmem:[%s5558_s1 + $0x2de] sm:$0x3] %v2968_v34  ;;  %v2884_v36 = vld [vmem:[#allocation0 + $0xb08] sm:$0x3]  ;;  %v2890_v37 = vld [vmem:[#allocation0 + $0xb10] sm:$0x3] }
 0x199   :  { %3896 = vst [vmem:[%s5558_s1 + $0x2c0] sm:$0x3] %v2878_v35  ;;  %3897 = vst [vmem:[%s5558_s1 + $0x2c2] sm:$0x3] %v2884_v36  ;;  %v2896_v38 = vld [vmem:[#allocation0 + $0xb18] sm:$0x3] }
 0x19a   :  { %3898 = vst [vmem:[%s5558_s1 + $0x2c4] sm:$0x3] %v2890_v37  ;;  %v2902_v39 = vld [vmem:[#allocation0 + $0xb20] sm:$0x3]  ;;  %v2908_v40 = vld [vmem:[#allocation0 + $0xb28] sm:$0x3] }
 0x19b   :  { %3899 = vst [vmem:[%s5558_s1 + $0x2c6] sm:$0x3] %v2896_v38  ;;  %3900 = vst [vmem:[%s5558_s1 + $0x2c8] sm:$0x3] %v2902_v39  ;;  %v2914_v41 = vld [vmem:[#allocation0 + $0xb30] sm:$0x3] }
 0x19c   :  { %3901 = vst [vmem:[%s5558_s1 + $0x2ca] sm:$0x3] %v2908_v40  ;;  %v2920_v42 = vld [vmem:[#allocation0 + $0xb38] sm:$0x3]  ;;  %v3022_v43 = vld [vmem:[#allocation0 + $0xbc0] sm:$0x3] }
 0x19d   :  { %3902 = vst [vmem:[%s5558_s1 + $0x2cc] sm:$0x3] %v2914_v41  ;;  %3903 = vst [vmem:[%s5558_s1 + $0x2ce] sm:$0x3] %v2920_v42  ;;  %v3028_v44 = vld [vmem:[#allocation0 + $0xbc8] sm:$0x3] }
 0x19e   :  { %3920 = vst [vmem:[%s5558_s1 + $0x2f0] sm:$0x3] %v3022_v43  ;;  %v3034_v45 = vld [vmem:[#allocation0 + $0xbd0] sm:$0x3]  ;;  %v3040_v46 = vld [vmem:[#allocation0 + $0xbd8] sm:$0x3] }
 0x19f   :  { %3921 = vst [vmem:[%s5558_s1 + $0x2f2] sm:$0x3] %v3028_v44  ;;  %3922 = vst [vmem:[%s5558_s1 + $0x2f4] sm:$0x3] %v3034_v45  ;;  %v3046_v47 = vld [vmem:[#allocation0 + $0xbe0] sm:$0x3] }
 0x1a0   :  { %3923 = vst [vmem:[%s5558_s1 + $0x2f6] sm:$0x3] %v3040_v46  ;;  %v3052_v48 = vld [vmem:[#allocation0 + $0xbe8] sm:$0x3]  ;;  %v3058_v49 = vld [vmem:[#allocation0 + $0xbf0] sm:$0x3] }
 0x1a1   :  { %3924 = vst [vmem:[%s5558_s1 + $0x2f8] sm:$0x3] %v3046_v47  ;;  %3925 = vst [vmem:[%s5558_s1 + $0x2fa] sm:$0x3] %v3052_v48  ;;  %v3064_v50 = vld [vmem:[#allocation0 + $0xbf8] sm:$0x3] }
 0x1a2   :  { %3926 = vst [vmem:[%s5558_s1 + $0x2fc] sm:$0x3] %v3058_v49  ;;  %v2974_v51 = vld [vmem:[#allocation0 + $0xb80] sm:$0x3]  ;;  %v2980_v52 = vld [vmem:[#allocation0 + $0xb88] sm:$0x3] }
 0x1a3   :  { %3927 = vst [vmem:[%s5558_s1 + $0x2fe] sm:$0x3] %v3064_v50  ;;  %3912 = vst [vmem:[%s5558_s1 + $0x2e0] sm:$0x3] %v2974_v51  ;;  %v2986_v53 = vld [vmem:[#allocation0 + $0xb90] sm:$0x3] }
 0x1a4   :  { %3913 = vst [vmem:[%s5558_s1 + $0x2e2] sm:$0x3] %v2980_v52  ;;  %v2992_v54 = vld [vmem:[#allocation0 + $0xb98] sm:$0x3]  ;;  %v2998_v55 = vld [vmem:[#allocation0 + $0xba0] sm:$0x3] }
 0x1a5   :  { %3914 = vst [vmem:[%s5558_s1 + $0x2e4] sm:$0x3] %v2986_v53  ;;  %3915 = vst [vmem:[%s5558_s1 + $0x2e6] sm:$0x3] %v2992_v54  ;;  %v3004_v56 = vld [vmem:[#allocation0 + $0xba8] sm:$0x3] }
 0x1a6   :  { %3916 = vst [vmem:[%s5558_s1 + $0x2e8] sm:$0x3] %v2998_v55  ;;  %v3010_v57 = vld [vmem:[#allocation0 + $0xbb0] sm:$0x3]  ;;  %v3016_v58 = vld [vmem:[#allocation0 + $0xbb8] sm:$0x3] }
 0x1a7   :  { %3917 = vst [vmem:[%s5558_s1 + $0x2ea] sm:$0x3] %v3004_v56  ;;  %3918 = vst [vmem:[%s5558_s1 + $0x2ec] sm:$0x3] %v3010_v57 }
 0x1a8   :  { %3919 = vst [vmem:[%s5558_s1 + $0x2ee] sm:$0x3] %v3016_v58 }

// kernel: squeeze.6
= control target key start
LH: loop header
LB: loop body
LE: loop exit
PB: predicated region body
PF: predicated region fallthrough
CT: control target
= control target key end

     0   :  { %s4537_s10 = smov 120   ;;  %vm3_vm0 = vcmask 64512   ;;  %s4539_s9 = smov 104   ;;  %s9186_s0 = inlined_call_operand.vmem [shape: f32[2,3,1,64,64], index: 0, kind: input, shape index: {}]   ;;  %s9187_s1 = inlined_call_operand.vmem [shape: f32[2,3,8,8,8,8], index: 1, kind: output, shape index: {}]  }
   0x1   :  { %v4557_v0 = vld [vmem:[%s9186_s0 + $0x10] sm:$0xff]   ;;  %v4562_v1 = vld [vmem:[%s9186_s0] sm:$0xff]   ;;  %v4571_v2 = vld [vmem:[%s9186_s0 + $0x18] sm:$0xff]   ;;  %s4540_s8 = smov 96   ;;  %s4541_s14 = smov 88  }
   0x2   :  { %354 = vrot.lane.b32.xlu1 %v4557_v0, %s4537_s10  ;;  %336 = vrot.lane.b32.xlu0 %v4562_v1, %s4537_s10  ;;  %v4576_v3 = vld [vmem:[%s9186_s0 + $0x8] sm:$0xff]   ;;  %v4590_v5 = vld [vmem:[%s9186_s0 + $0x20] sm:$0xff]   ;;  %s4542_s26 = smov 80   ;;  %s4543_s28 = smov 72  }
   0x3   :  { %v4585_v4 = vld [vmem:[%s9186_s0 + $0x28] sm:$0xff]   ;;  %v4599_v6 = vld [vmem:[%s9186_s0 + $0x38] sm:$0xff]   ;;  %v4604_v7 = vld [vmem:[%s9186_s0 + $0x30] sm:$0xff]  }
   0x4   :  { %v4613_v8 = vld [vmem:[%s9186_s0 + $0x48] sm:$0xff]   ;;  %v4618_v9 = vld [vmem:[%s9186_s0 + $0x40] sm:$0xff]   ;;  %v4627_v10 = vld [vmem:[%s9186_s0 + $0x58] sm:$0xff]  }
   0x5   :  { %v4632_v11 = vld [vmem:[%s9186_s0 + $0x50] sm:$0xff]   ;;  %v4641_v12 = vld [vmem:[%s9186_s0 + $0x68] sm:$0xff]   ;;  %v4646_v13 = vld [vmem:[%s9186_s0 + $0x60] sm:$0xff]  }
   0x6   :  { %363 = vrot.lane.b32.xlu1 %v4571_v2, %s4537_s10  ;;  %345 = vrot.lane.b32.xlu0 %v4576_v3, %s4537_s10  ;;  %v4655_v14 = vld [vmem:[%s9186_s0 + $0x78] sm:$0xff]   ;;  %v4660_v15 = vld [vmem:[%s9186_s0 + $0x70] sm:$0xff]  }
   0x7   :  { %v4669_v16 = vld [vmem:[%s9186_s0 + $0x88] sm:$0xff]   ;;  %v4674_v17 = vld [vmem:[%s9186_s0 + $0x80] sm:$0xff]   ;;  %v4683_v18 = vld [vmem:[%s9186_s0 + $0x98] sm:$0xff]  }
   0x8   :  { %v4688_v19 = vld [vmem:[%s9186_s0 + $0x90] sm:$0xff]   ;;  %v4697_v20 = vld [vmem:[%s9186_s0 + $0xa8] sm:$0xff]   ;;  %v4702_v21 = vld [vmem:[%s9186_s0 + $0xa0] sm:$0xff]  }
   0x9   :  { %v4711_v22 = vld [vmem:[%s9186_s0 + $0xb8] sm:$0xff]   ;;  %v4716_v23 = vld [vmem:[%s9186_s0 + $0xb0] sm:$0xff]   ;;  %v4725_v24 = vld [vmem:[%s9186_s0 + $0xc8] sm:$0xff]  }
   0xa   :  { %381 = vrot.lane.b32.xlu1 %v4585_v4, %s4537_s10  ;;  %372 = vrot.lane.b32.xlu0 %v4590_v5, %s4537_s10  ;;  %v4730_v25 = vld [vmem:[%s9186_s0 + $0xc0] sm:$0xff]   ;;  %v4739_v26 = vld [vmem:[%s9186_s0 + $0xd8] sm:$0xff]  }
   0xb   :  { %v4744_v27 = vld [vmem:[%s9186_s0 + $0xd0] sm:$0xff]   ;;  %v4753_v28 = vld [vmem:[%s9186_s0 + $0xe8] sm:$0xff]   ;;  %v4758_v29 = vld [vmem:[%s9186_s0 + $0xe0] sm:$0xff]  }
   0xc   :  { %v4767_v30 = vld [vmem:[%s9186_s0 + $0xf8] sm:$0xff]   ;;  %v4772_v31 = vld [vmem:[%s9186_s0 + $0xf0] sm:$0xff]   ;;  %v4781_v32 = vld [vmem:[%s9186_s0 + $0x108] sm:$0xff]  }
   0xd   :  { %v4786_v33 = vld [vmem:[%s9186_s0 + $0x100] sm:$0xff]   ;;  %v4795_v34 = vld [vmem:[%s9186_s0 + $0x118] sm:$0xff]   ;;  %v4800_v35 = vld [vmem:[%s9186_s0 + $0x110] sm:$0xff]  }
   0xe   :  { %399 = vrot.lane.b32.xlu1 %v4599_v6, %s4537_s10  ;;  %390 = vrot.lane.b32.xlu0 %v4604_v7, %s4537_s10  ;;  %v4809_v36 = vld [vmem:[%s9186_s0 + $0x128] sm:$0xff]   ;;  %v4814_v37 = vld [vmem:[%s9186_s0 + $0x120] sm:$0xff]  }
   0xf   :  { %v4823_v38 = vld [vmem:[%s9186_s0 + $0x138] sm:$0xff]   ;;  %v4828_v39 = vld [vmem:[%s9186_s0 + $0x130] sm:$0xff]   ;;  %v4837_v40 = vld [vmem:[%s9186_s0 + $0x148] sm:$0xff]  }
  0x10   :  { %v4842_v41 = vld [vmem:[%s9186_s0 + $0x140] sm:$0xff]   ;;  %v4851_v42 = vld [vmem:[%s9186_s0 + $0x158] sm:$0xff]   ;;  %v4856_v43 = vld [vmem:[%s9186_s0 + $0x150] sm:$0xff]  }
  0x11   :  { %v4865_v44 = vld [vmem:[%s9186_s0 + $0x168] sm:$0xff]   ;;  %v4870_v45 = vld [vmem:[%s9186_s0 + $0x160] sm:$0xff]   ;;  %v4879_v46 = vld [vmem:[%s9186_s0 + $0x178] sm:$0xff]  }
  0x12   :  { %417 = vrot.lane.b32.xlu1 %v4613_v8, %s4537_s10  ;;  %408 = vrot.lane.b32.xlu0 %v4618_v9, %s4537_s10  ;;  %v4884_v47 = vld [vmem:[%s9186_s0 + $0x170] sm:$0xff]  }
  0x16   :  { %435 = vrot.lane.b32.xlu1 %v4627_v10, %s4537_s10  ;;  %426 = vrot.lane.b32.xlu0 %v4632_v11, %s4537_s10 }
  0x1a   :  { %453 = vrot.lane.b32.xlu1 %v4641_v12, %s4537_s10  ;;  %444 = vrot.lane.b32.xlu0 %v4646_v13, %s4537_s10 }
  0x1e   :  { %471 = vrot.lane.b32.xlu1 %v4655_v14, %s4537_s10  ;;  %462 = vrot.lane.b32.xlu0 %v4660_v15, %s4537_s10 }
  0x22   :  { %489 = vrot.lane.b32.xlu1 %v4669_v16, %s4537_s10  ;;  %480 = vrot.lane.b32.xlu0 %v4674_v17, %s4537_s10 }
  0x26   :  { %507 = vrot.lane.b32.xlu1 %v4683_v18, %s4537_s10  ;;  %498 = vrot.lane.b32.xlu0 %v4688_v19, %s4537_s10 }
  0x2a   :  { %525 = vrot.lane.b32.xlu1 %v4697_v20, %s4537_s10  ;;  %516 = vrot.lane.b32.xlu0 %v4702_v21, %s4537_s10 }
  0x2e   :  { %543 = vrot.lane.b32.xlu1 %v4711_v22, %s4537_s10  ;;  %534 = vrot.lane.b32.xlu0 %v4716_v23, %s4537_s10 }
  0x32   :  { %561 = vrot.lane.b32.xlu1 %v4725_v24, %s4537_s10  ;;  %552 = vrot.lane.b32.xlu0 %v4730_v25, %s4537_s10 }
  0x36   :  { %579 = vrot.lane.b32.xlu1 %v4739_v26, %s4537_s10  ;;  %570 = vrot.lane.b32.xlu0 %v4744_v27, %s4537_s10 }
  0x3a   :  { %597 = vrot.lane.b32.xlu1 %v4753_v28, %s4537_s10  ;;  %588 = vrot.lane.b32.xlu0 %v4758_v29, %s4537_s10 }
  0x3e   :  { %615 = vrot.lane.b32.xlu1 %v4767_v30, %s4537_s10  ;;  %606 = vrot.lane.b32.xlu0 %v4772_v31, %s4537_s10 }
  0x42   :  { %633 = vrot.lane.b32.xlu1 %v4781_v32, %s4537_s10  ;;  %624 = vrot.lane.b32.xlu0 %v4786_v33, %s4537_s10 }
  0x46   :  { %651 = vrot.lane.b32.xlu1 %v4795_v34, %s4537_s10  ;;  %642 = vrot.lane.b32.xlu0 %v4800_v35, %s4537_s10 }
  0x4a   :  { %669 = vrot.lane.b32.xlu1 %v4809_v36, %s4537_s10  ;;  %660 = vrot.lane.b32.xlu0 %v4814_v37, %s4537_s10 }
  0x4e   :  { %687 = vrot.lane.b32.xlu1 %v4823_v38, %s4537_s10  ;;  %678 = vrot.lane.b32.xlu0 %v4828_v39, %s4537_s10 }
  0x52   :  { %705 = vrot.lane.b32.xlu1 %v4837_v40, %s4537_s10  ;;  %696 = vrot.lane.b32.xlu0 %v4842_v41, %s4537_s10 }
  0x56   :  { %723 = vrot.lane.b32.xlu1 %v4851_v42, %s4537_s10  ;;  %714 = vrot.lane.b32.xlu0 %v4856_v43, %s4537_s10 }
  0x5a   :  { %741 = vrot.lane.b32.xlu1 %v4865_v44, %s4537_s10  ;;  %732 = vrot.lane.b32.xlu0 %v4870_v45, %s4537_s10 }
  0x5e   :  { %759 = vrot.lane.b32.xlu1 %v4879_v46, %s4537_s10  ;;  %750 = vrot.lane.b32.xlu0 %v4884_v47, %s4537_s10  ;;  %s4538_s10 = smov 112  }
  0x62   :  { %776 = vrot.lane.b32.xlu1 %v4576_v3, %s4538_s10  ;;  %767 = vrot.lane.b32.xlu0 %v4562_v1, %s4538_s10 }
  0x66   :  { %794 = vrot.lane.b32.xlu1 %v4571_v2, %s4538_s10  ;;  %785 = vrot.lane.b32.xlu0 %v4557_v0, %s4538_s10 }
  0x6a   :  { %812 = vrot.lane.b32.xlu1 %v4585_v4, %s4538_s10  ;;  %803 = vrot.lane.b32.xlu0 %v4590_v5, %s4538_s10 }
  0x6e   :  { %830 = vrot.lane.b32.xlu1 %v4599_v6, %s4538_s10  ;;  %821 = vrot.lane.b32.xlu0 %v4604_v7, %s4538_s10 }
  0x72   :  { %848 = vrot.lane.b32.xlu1 %v4613_v8, %s4538_s10  ;;  %839 = vrot.lane.b32.xlu0 %v4618_v9, %s4538_s10 }
  0x74   :  { %v355_v48 = vpop.permute.xlu1 %354   ;;  %v337_v49 = vpop.permute.xlu0 %336  }
  0x75   :  { %3499 = vst.msk [vmem:[%s9187_s1 + $0x81] ss:$8 sm:$0xf] %vm3_vm0, %v355_v48   ;;  %3500 = vst.msk [vmem:[%s9187_s1 + $0x81] ss:$8 sm:$0xf0] %vm3_vm0, %v355_v48  }
  0x76   :  { %3493 = vst.msk [vmem:[%s9187_s1 + $0x1] ss:$8 sm:$0xf] %vm3_vm0, %v337_v49   ;;  %3494 = vst.msk [vmem:[%s9187_s1 + $0x1] ss:$8 sm:$0xf0] %vm3_vm0, %v337_v49   ;;  %866 = vrot.lane.b32.xlu1 %v4627_v10, %s4538_s10  ;;  %857 = vrot.lane.b32.xlu0 %v4632_v11, %s4538_s10 }
  0x78   :  { %v364_v50 = vpop.permute.xlu1 %363   ;;  %v346_v51 = vpop.permute.xlu0 %345  }
  0x79   :  { %3502 = vst.msk [vmem:[%s9187_s1 + $0xc1] ss:$8 sm:$0xf] %vm3_vm0, %v364_v50   ;;  %3503 = vst.msk [vmem:[%s9187_s1 + $0xc1] ss:$8 sm:$0xf0] %vm3_vm0, %v364_v50  }
  0x7a   :  { %3496 = vst.msk [vmem:[%s9187_s1 + $0x41] ss:$8 sm:$0xf] %vm3_vm0, %v346_v51   ;;  %3497 = vst.msk [vmem:[%s9187_s1 + $0x41] ss:$8 sm:$0xf0] %vm3_vm0, %v346_v51   ;;  %884 = vrot.lane.b32.xlu1 %v4641_v12, %s4538_s10  ;;  %875 = vrot.lane.b32.xlu0 %v4646_v13, %s4538_s10 }
  0x7c   :  { %v382_v52 = vpop.permute.xlu1 %381   ;;  %v373_v53 = vpop.permute.xlu0 %372  }
  0x7d   :  { %3508 = vst.msk [vmem:[%s9187_s1 + $0x141] ss:$8 sm:$0xf] %vm3_vm0, %v382_v52   ;;  %3509 = vst.msk [vmem:[%s9187_s1 + $0x141] ss:$8 sm:$0xf0] %vm3_vm0, %v382_v52  }
  0x7e   :  { %3505 = vst.msk [vmem:[%s9187_s1 + $0x101] ss:$8 sm:$0xf] %vm3_vm0, %v373_v53   ;;  %3506 = vst.msk [vmem:[%s9187_s1 + $0x101] ss:$8 sm:$0xf0] %vm3_vm0, %v373_v53   ;;  %902 = vrot.lane.b32.xlu1 %v4655_v14, %s4538_s10  ;;  %893 = vrot.lane.b32.xlu0 %v4660_v15, %s4538_s10 }
  0x80   :  { %v400_v54 = vpop.permute.xlu1 %399   ;;  %v391_v55 = vpop.permute.xlu0 %390  }
  0x81   :  { %3514 = vst.msk [vmem:[%s9187_s1 + $0x1c1] ss:$8 sm:$0xf] %vm3_vm0, %v400_v54   ;;  %3515 = vst.msk [vmem:[%s9187_s1 + $0x1c1] ss:$8 sm:$0xf0] %vm3_vm0, %v400_v54  }
  0x82   :  { %3511 = vst.msk [vmem:[%s9187_s1 + $0x181] ss:$8 sm:$0xf] %vm3_vm0, %v391_v55   ;;  %3512 = vst.msk [vmem:[%s9187_s1 + $0x181] ss:$8 sm:$0xf0] %vm3_vm0, %v391_v55   ;;  %920 = vrot.lane.b32.xlu1 %v4669_v16, %s4538_s10  ;;  %911 = vrot.lane.b32.xlu0 %v4674_v17, %s4538_s10 }
  0x84   :  { %v418_v56 = vpop.permute.xlu1 %417   ;;  %v409_v57 = vpop.permute.xlu0 %408  }
  0x85   :  { %3520 = vst.msk [vmem:[%s9187_s1 + $0x241] ss:$8 sm:$0xf] %vm3_vm0, %v418_v56   ;;  %3521 = vst.msk [vmem:[%s9187_s1 + $0x241] ss:$8 sm:$0xf0] %vm3_vm0, %v418_v56  }
  0x86   :  { %3517 = vst.msk [vmem:[%s9187_s1 + $0x201] ss:$8 sm:$0xf] %vm3_vm0, %v409_v57   ;;  %3518 = vst.msk [vmem:[%s9187_s1 + $0x201] ss:$8 sm:$0xf0] %vm3_vm0, %v409_v57   ;;  %938 = vrot.lane.b32.xlu1 %v4683_v18, %s4538_s10  ;;  %929 = vrot.lane.b32.xlu0 %v4688_v19, %s4538_s10 }
  0x88   :  { %v436_v58 = vpop.permute.xlu1 %435   ;;  %v427_v59 = vpop.permute.xlu0 %426  }
  0x89   :  { %3526 = vst.msk [vmem:[%s9187_s1 + $0x2c1] ss:$8 sm:$0xf] %vm3_vm0, %v436_v58   ;;  %3527 = vst.msk [vmem:[%s9187_s1 + $0x2c1] ss:$8 sm:$0xf0] %vm3_vm0, %v436_v58  }
  0x8a   :  { %3523 = vst.msk [vmem:[%s9187_s1 + $0x281] ss:$8 sm:$0xf] %vm3_vm0, %v427_v59   ;;  %3524 = vst.msk [vmem:[%s9187_s1 + $0x281] ss:$8 sm:$0xf0] %vm3_vm0, %v427_v59   ;;  %956 = vrot.lane.b32.xlu1 %v4697_v20, %s4538_s10  ;;  %947 = vrot.lane.b32.xlu0 %v4702_v21, %s4538_s10 }
  0x8c   :  { %v454_v60 = vpop.permute.xlu1 %453   ;;  %v445_v61 = vpop.permute.xlu0 %444  }
  0x8d   :  { %3532 = vst.msk [vmem:[%s9187_s1 + $0x341] ss:$8 sm:$0xf] %vm3_vm0, %v454_v60   ;;  %3533 = vst.msk [vmem:[%s9187_s1 + $0x341] ss:$8 sm:$0xf0] %vm3_vm0, %v454_v60  }
  0x8e   :  { %3529 = vst.msk [vmem:[%s9187_s1 + $0x301] ss:$8 sm:$0xf] %vm3_vm0, %v445_v61   ;;  %3530 = vst.msk [vmem:[%s9187_s1 + $0x301] ss:$8 sm:$0xf0] %vm3_vm0, %v445_v61   ;;  %974 = vrot.lane.b32.xlu1 %v4711_v22, %s4538_s10  ;;  %965 = vrot.lane.b32.xlu0 %v4716_v23, %s4538_s10 }
  0x90   :  { %v472_v62 = vpop.permute.xlu1 %471   ;;  %v463_v63 = vpop.permute.xlu0 %462  }
  0x91   :  { %3538 = vst.msk [vmem:[%s9187_s1 + $0x3c1] ss:$8 sm:$0xf] %vm3_vm0, %v472_v62   ;;  %3539 = vst.msk [vmem:[%s9187_s1 + $0x3c1] ss:$8 sm:$0xf0] %vm3_vm0, %v472_v62  }
  0x92   :  { %3535 = vst.msk [vmem:[%s9187_s1 + $0x381] ss:$8 sm:$0xf] %vm3_vm0, %v463_v63   ;;  %3536 = vst.msk [vmem:[%s9187_s1 + $0x381] ss:$8 sm:$0xf0] %vm3_vm0, %v463_v63   ;;  %992 = vrot.lane.b32.xlu1 %v4725_v24, %s4538_s10  ;;  %983 = vrot.lane.b32.xlu0 %v4730_v25, %s4538_s10 }
  0x94   :  { %v490_v48 = vpop.permute.xlu1 %489   ;;  %v481_v49 = vpop.permute.xlu0 %480  }
  0x95   :  { %3544 = vst.msk [vmem:[%s9187_s1 + $0x441] ss:$8 sm:$0xf] %vm3_vm0, %v490_v48   ;;  %3545 = vst.msk [vmem:[%s9187_s1 + $0x441] ss:$8 sm:$0xf0] %vm3_vm0, %v490_v48  }
  0x96   :  { %3541 = vst.msk [vmem:[%s9187_s1 + $0x401] ss:$8 sm:$0xf] %vm3_vm0, %v481_v49   ;;  %3542 = vst.msk [vmem:[%s9187_s1 + $0x401] ss:$8 sm:$0xf0] %vm3_vm0, %v481_v49   ;;  %1010 = vrot.lane.b32.xlu1 %v4739_v26, %s4538_s10  ;;  %1001 = vrot.lane.b32.xlu0 %v4744_v27, %s4538_s10 }
  0x98   :  { %v508_v50 = vpop.permute.xlu1 %507   ;;  %v499_v51 = vpop.permute.xlu0 %498  }
  0x99   :  { %3550 = vst.msk [vmem:[%s9187_s1 + $0x4c1] ss:$8 sm:$0xf] %vm3_vm0, %v508_v50   ;;  %3551 = vst.msk [vmem:[%s9187_s1 + $0x4c1] ss:$8 sm:$0xf0] %vm3_vm0, %v508_v50  }
  0x9a   :  { %3547 = vst.msk [vmem:[%s9187_s1 + $0x481] ss:$8 sm:$0xf] %vm3_vm0, %v499_v51   ;;  %3548 = vst.msk [vmem:[%s9187_s1 + $0x481] ss:$8 sm:$0xf0] %vm3_vm0, %v499_v51   ;;  %1028 = vrot.lane.b32.xlu1 %v4753_v28, %s4538_s10  ;;  %1019 = vrot.lane.b32.xlu0 %v4758_v29, %s4538_s10 }
  0x9c   :  { %v526_v52 = vpop.permute.xlu1 %525   ;;  %v517_v53 = vpop.permute.xlu0 %516  }
  0x9d   :  { %3556 = vst.msk [vmem:[%s9187_s1 + $0x541] ss:$8 sm:$0xf] %vm3_vm0, %v526_v52   ;;  %3557 = vst.msk [vmem:[%s9187_s1 + $0x541] ss:$8 sm:$0xf0] %vm3_vm0, %v526_v52  }
  0x9e   :  { %3553 = vst.msk [vmem:[%s9187_s1 + $0x501] ss:$8 sm:$0xf] %vm3_vm0, %v517_v53   ;;  %3554 = vst.msk [vmem:[%s9187_s1 + $0x501] ss:$8 sm:$0xf0] %vm3_vm0, %v517_v53   ;;  %1046 = vrot.lane.b32.xlu1 %v4767_v30, %s4538_s10  ;;  %1037 = vrot.lane.b32.xlu0 %v4772_v31, %s4538_s10 }
  0xa0   :  { %v544_v54 = vpop.permute.xlu1 %543   ;;  %v535_v55 = vpop.permute.xlu0 %534  }
  0xa1   :  { %3562 = vst.msk [vmem:[%s9187_s1 + $0x5c1] ss:$8 sm:$0xf] %vm3_vm0, %v544_v54   ;;  %3563 = vst.msk [vmem:[%s9187_s1 + $0x5c1] ss:$8 sm:$0xf0] %vm3_vm0, %v544_v54  }
  0xa2   :  { %3559 = vst.msk [vmem:[%s9187_s1 + $0x581] ss:$8 sm:$0xf] %vm3_vm0, %v535_v55   ;;  %3560 = vst.msk [vmem:[%s9187_s1 + $0x581] ss:$8 sm:$0xf0] %vm3_vm0, %v535_v55   ;;  %1064 = vrot.lane.b32.xlu1 %v4781_v32, %s4538_s10  ;;  %1055 = vrot.lane.b32.xlu0 %v4786_v33, %s4538_s10 }
  0xa4   :  { %v562_v56 = vpop.permute.xlu1 %561   ;;  %v553_v57 = vpop.permute.xlu0 %552  }
  0xa5   :  { %3568 = vst.msk [vmem:[%s9187_s1 + $0x641] ss:$8 sm:$0xf] %vm3_vm0, %v562_v56   ;;  %3569 = vst.msk [vmem:[%s9187_s1 + $0x641] ss:$8 sm:$0xf0] %vm3_vm0, %v562_v56  }
  0xa6   :  { %3565 = vst.msk [vmem:[%s9187_s1 + $0x601] ss:$8 sm:$0xf] %vm3_vm0, %v553_v57   ;;  %3566 = vst.msk [vmem:[%s9187_s1 + $0x601] ss:$8 sm:$0xf0] %vm3_vm0, %v553_v57   ;;  %1082 = vrot.lane.b32.xlu1 %v4795_v34, %s4538_s10  ;;  %1073 = vrot.lane.b32.xlu0 %v4800_v35, %s4538_s10 }
  0xa8   :  { %v580_v58 = vpop.permute.xlu1 %579   ;;  %v571_v59 = vpop.permute.xlu0 %570  }
  0xa9   :  { %3574 = vst.msk [vmem:[%s9187_s1 + $0x6c1] ss:$8 sm:$0xf] %vm3_vm0, %v580_v58   ;;  %3575 = vst.msk [vmem:[%s9187_s1 + $0x6c1] ss:$8 sm:$0xf0] %vm3_vm0, %v580_v58  }
  0xaa   :  { %3571 = vst.msk [vmem:[%s9187_s1 + $0x681] ss:$8 sm:$0xf] %vm3_vm0, %v571_v59   ;;  %3572 = vst.msk [vmem:[%s9187_s1 + $0x681] ss:$8 sm:$0xf0] %vm3_vm0, %v571_v59   ;;  %1100 = vrot.lane.b32.xlu1 %v4809_v36, %s4538_s10  ;;  %1091 = vrot.lane.b32.xlu0 %v4814_v37, %s4538_s10 }
  0xab   :  { %v5803_v58 = vld [vmem:[%s9186_s0 + $0x18] sm:$0xff]   ;;  %v5808_v59 = vld [vmem:[%s9186_s0 + $0x10] sm:$0xff]  }
  0xac   :  { %v598_v60 = vpop.permute.xlu1 %597   ;;  %v589_v61 = vpop.permute.xlu0 %588  }
  0xad   :  { %3580 = vst.msk [vmem:[%s9187_s1 + $0x741] ss:$8 sm:$0xf] %vm3_vm0, %v598_v60   ;;  %3581 = vst.msk [vmem:[%s9187_s1 + $0x741] ss:$8 sm:$0xf0] %vm3_vm0, %v598_v60  }
  0xae   :  { %3577 = vst.msk [vmem:[%s9187_s1 + $0x701] ss:$8 sm:$0xf] %vm3_vm0, %v589_v61   ;;  %3578 = vst.msk [vmem:[%s9187_s1 + $0x701] ss:$8 sm:$0xf0] %vm3_vm0, %v589_v61   ;;  %1118 = vrot.lane.b32.xlu1 %v4823_v38, %s4538_s10  ;;  %1109 = vrot.lane.b32.xlu0 %v4828_v39, %s4538_s10 }
  0xb0   :  { %v616_v62 = vpop.permute.xlu1 %615   ;;  %v607_v63 = vpop.permute.xlu0 %606  }
  0xb1   :  { %3586 = vst.msk [vmem:[%s9187_s1 + $0x7c1] ss:$8 sm:$0xf] %vm3_vm0, %v616_v62   ;;  %3587 = vst.msk [vmem:[%s9187_s1 + $0x7c1] ss:$8 sm:$0xf0] %vm3_vm0, %v616_v62  }
  0xb2   :  { %3583 = vst.msk [vmem:[%s9187_s1 + $0x781] ss:$8 sm:$0xf] %vm3_vm0, %v607_v63   ;;  %3584 = vst.msk [vmem:[%s9187_s1 + $0x781] ss:$8 sm:$0xf0] %vm3_vm0, %v607_v63   ;;  %1136 = vrot.lane.b32.xlu1 %v4837_v40, %s4538_s10  ;;  %1127 = vrot.lane.b32.xlu0 %v4842_v41, %s4538_s10 }
  0xb3   :  { %v5833_v62 = vld [vmem:[%s9186_s0 + $0x28] sm:$0xff]   ;;  %v5838_v63 = vld [vmem:[%s9186_s0 + $0x20] sm:$0xff]  }
  0xb4   :  { %v634_v48 = vpop.permute.xlu1 %633   ;;  %v625_v49 = vpop.permute.xlu0 %624  }
  0xb5   :  { %3592 = vst.msk [vmem:[%s9187_s1 + $0x841] ss:$8 sm:$0xf] %vm3_vm0, %v634_v48   ;;  %3593 = vst.msk [vmem:[%s9187_s1 + $0x841] ss:$8 sm:$0xf0] %vm3_vm0, %v634_v48  }
  0xb6   :  { %3589 = vst.msk [vmem:[%s9187_s1 + $0x801] ss:$8 sm:$0xf] %vm3_vm0, %v625_v49   ;;  %3590 = vst.msk [vmem:[%s9187_s1 + $0x801] ss:$8 sm:$0xf0] %vm3_vm0, %v625_v49   ;;  %1154 = vrot.lane.b32.xlu1 %v4851_v42, %s4538_s10  ;;  %1145 = vrot.lane.b32.xlu0 %v4856_v43, %s4538_s10 }
  0xb8   :  { %v652_v50 = vpop.permute.xlu1 %651   ;;  %v643_v51 = vpop.permute.xlu0 %642  }
  0xb9   :  { %3598 = vst.msk [vmem:[%s9187_s1 + $0x8c1] ss:$8 sm:$0xf] %vm3_vm0, %v652_v50   ;;  %3599 = vst.msk [vmem:[%s9187_s1 + $0x8c1] ss:$8 sm:$0xf0] %vm3_vm0, %v652_v50  }
  0xba   :  { %3595 = vst.msk [vmem:[%s9187_s1 + $0x881] ss:$8 sm:$0xf] %vm3_vm0, %v643_v51   ;;  %3596 = vst.msk [vmem:[%s9187_s1 + $0x881] ss:$8 sm:$0xf0] %vm3_vm0, %v643_v51   ;;  %1172 = vrot.lane.b32.xlu1 %v4865_v44, %s4538_s10  ;;  %1163 = vrot.lane.b32.xlu0 %v4870_v45, %s4538_s10 }
  0xbb   :  { %v5863_v50 = vld [vmem:[%s9186_s0 + $0x38] sm:$0xff]   ;;  %v5868_v51 = vld [vmem:[%s9186_s0 + $0x30] sm:$0xff]  }
  0xbc   :  { %v670_v52 = vpop.permute.xlu1 %669   ;;  %v661_v53 = vpop.permute.xlu0 %660  }
  0xbd   :  { %3604 = vst.msk [vmem:[%s9187_s1 + $0x941] ss:$8 sm:$0xf] %vm3_vm0, %v670_v52   ;;  %3605 = vst.msk [vmem:[%s9187_s1 + $0x941] ss:$8 sm:$0xf0] %vm3_vm0, %v670_v52  }
  0xbe   :  { %3601 = vst.msk [vmem:[%s9187_s1 + $0x901] ss:$8 sm:$0xf] %vm3_vm0, %v661_v53   ;;  %3602 = vst.msk [vmem:[%s9187_s1 + $0x901] ss:$8 sm:$0xf0] %vm3_vm0, %v661_v53   ;;  %1190 = vrot.lane.b32.xlu1 %v4879_v46, %s4538_s10  ;;  %1181 = vrot.lane.b32.xlu0 %v4884_v47, %s4538_s10 }
  0xc0   :  { %v688_v54 = vpop.permute.xlu1 %687   ;;  %v679_v55 = vpop.permute.xlu0 %678  }
  0xc1   :  { %3610 = vst.msk [vmem:[%s9187_s1 + $0x9c1] ss:$8 sm:$0xf] %vm3_vm0, %v688_v54   ;;  %3611 = vst.msk [vmem:[%s9187_s1 + $0x9c1] ss:$8 sm:$0xf0] %vm3_vm0, %v688_v54  }
  0xc2   :  { %3607 = vst.msk [vmem:[%s9187_s1 + $0x981] ss:$8 sm:$0xf] %vm3_vm0, %v679_v55   ;;  %3608 = vst.msk [vmem:[%s9187_s1 + $0x981] ss:$8 sm:$0xf0] %vm3_vm0, %v679_v55   ;;  %1207 = vrot.lane.b32.xlu1 %v4576_v3, %s4539_s9  ;;  %1198 = vrot.lane.b32.xlu0 %v4562_v1, %s4539_s9 }
  0xc3   :  { %v5893_v54 = vld [vmem:[%s9186_s0 + $0x48] sm:$0xff]   ;;  %v5898_v55 = vld [vmem:[%s9186_s0 + $0x40] sm:$0xff]  }
  0xc4   :  { %v706_v1 = vpop.permute.xlu1 %705   ;;  %v697_v3 = vpop.permute.xlu0 %696  }
  0xc5   :  { %3616 = vst.msk [vmem:[%s9187_s1 + $0xa41] ss:$8 sm:$0xf] %vm3_vm0, %v706_v1   ;;  %3617 = vst.msk [vmem:[%s9187_s1 + $0xa41] ss:$8 sm:$0xf0] %vm3_vm0, %v706_v1  }
  0xc6   :  { %3613 = vst.msk [vmem:[%s9187_s1 + $0xa01] ss:$8 sm:$0xf] %vm3_vm0, %v697_v3   ;;  %3614 = vst.msk [vmem:[%s9187_s1 + $0xa01] ss:$8 sm:$0xf0] %vm3_vm0, %v697_v3   ;;  %1225 = vrot.lane.b32.xlu1 %v4571_v2, %s4539_s9  ;;  %1216 = vrot.lane.b32.xlu0 %v4557_v0, %s4539_s9 }
  0xc8   :  { %v724_v0 = vpop.permute.xlu1 %723   ;;  %v715_v2 = vpop.permute.xlu0 %714  }
  0xc9   :  { %3622 = vst.msk [vmem:[%s9187_s1 + $0xac1] ss:$8 sm:$0xf] %vm3_vm0, %v724_v0   ;;  %3623 = vst.msk [vmem:[%s9187_s1 + $0xac1] ss:$8 sm:$0xf0] %vm3_vm0, %v724_v0  }
  0xca   :  { %3619 = vst.msk [vmem:[%s9187_s1 + $0xa81] ss:$8 sm:$0xf] %vm3_vm0, %v715_v2   ;;  %3620 = vst.msk [vmem:[%s9187_s1 + $0xa81] ss:$8 sm:$0xf0] %vm3_vm0, %v715_v2   ;;  %1243 = vrot.lane.b32.xlu1 %v4585_v4, %s4539_s9  ;;  %1234 = vrot.lane.b32.xlu0 %v4590_v5, %s4539_s9 }
  0xcb   :  { %v5923_v0 = vld [vmem:[%s9186_s0 + $0x58] sm:$0xff]   ;;  %v5928_v2 = vld [vmem:[%s9186_s0 + $0x50] sm:$0xff]  }
  0xcc   :  { %v742_v4 = vpop.permute.xlu1 %741   ;;  %v733_v5 = vpop.permute.xlu0 %732  }
  0xcd   :  { %3628 = vst.msk [vmem:[%s9187_s1 + $0xb41] ss:$8 sm:$0xf] %vm3_vm0, %v742_v4   ;;  %3629 = vst.msk [vmem:[%s9187_s1 + $0xb41] ss:$8 sm:$0xf0] %vm3_vm0, %v742_v4  }
  0xce   :  { %3625 = vst.msk [vmem:[%s9187_s1 + $0xb01] ss:$8 sm:$0xf] %vm3_vm0, %v733_v5   ;;  %3626 = vst.msk [vmem:[%s9187_s1 + $0xb01] ss:$8 sm:$0xf0] %vm3_vm0, %v733_v5   ;;  %1261 = vrot.lane.b32.xlu1 %v4599_v6, %s4539_s9  ;;  %1252 = vrot.lane.b32.xlu0 %v4604_v7, %s4539_s9 }
  0xd0   :  { %v760_v6 = vpop.permute.xlu1 %759   ;;  %v751_v7 = vpop.permute.xlu0 %750  }
  0xd1   :  { %3634 = vst.msk [vmem:[%s9187_s1 + $0xbc1] ss:$8 sm:$0xf] %vm3_vm0, %v760_v6   ;;  %3635 = vst.msk [vmem:[%s9187_s1 + $0xbc1] ss:$8 sm:$0xf0] %vm3_vm0, %v760_v6  }
  0xd2   :  { %3631 = vst.msk [vmem:[%s9187_s1 + $0xb81] ss:$8 sm:$0xf] %vm3_vm0, %v751_v7   ;;  %3632 = vst.msk [vmem:[%s9187_s1 + $0xb81] ss:$8 sm:$0xf0] %vm3_vm0, %v751_v7   ;;  %1279 = vrot.lane.b32.xlu1 %v4613_v8, %s4539_s9  ;;  %1270 = vrot.lane.b32.xlu0 %v4618_v9, %s4539_s9 }
  0xd3   :  { %v5953_v6 = vld [vmem:[%s9186_s0 + $0x68] sm:$0xff]   ;;  %v5958_v7 = vld [vmem:[%s9186_s0 + $0x60] sm:$0xff]  }
  0xd4   :  { %v777_v8 = vpop.permute.xlu1 %776   ;;  %v768_v9 = vpop.permute.xlu0 %767  }
  0xd5   :  { %3639 = vst.msk [vmem:[%s9187_s1 + $0x42] ss:$8 sm:$0xf] %vm3_vm0, %v777_v8   ;;  %3640 = vst.msk [vmem:[%s9187_s1 + $0x42] ss:$8 sm:$0xf0] %vm3_vm0, %v777_v8  }
  0xd6   :  { %3636 = vst.msk [vmem:[%s9187_s1 + $0x2] ss:$8 sm:$0xf] %vm3_vm0, %v768_v9   ;;  %3637 = vst.msk [vmem:[%s9187_s1 + $0x2] ss:$8 sm:$0xf0] %vm3_vm0, %v768_v9   ;;  %1297 = vrot.lane.b32.xlu1 %v4627_v10, %s4539_s9  ;;  %1288 = vrot.lane.b32.xlu0 %v4632_v11, %s4539_s9 }
  0xd8   :  { %v795_v10 = vpop.permute.xlu1 %794   ;;  %v786_v11 = vpop.permute.xlu0 %785  }
  0xd9   :  { %3645 = vst.msk [vmem:[%s9187_s1 + $0xc2] ss:$8 sm:$0xf] %vm3_vm0, %v795_v10   ;;  %3646 = vst.msk [vmem:[%s9187_s1 + $0xc2] ss:$8 sm:$0xf0] %vm3_vm0, %v795_v10  }
  0xda   :  { %3642 = vst.msk [vmem:[%s9187_s1 + $0x82] ss:$8 sm:$0xf] %vm3_vm0, %v786_v11   ;;  %3643 = vst.msk [vmem:[%s9187_s1 + $0x82] ss:$8 sm:$0xf0] %vm3_vm0, %v786_v11   ;;  %1315 = vrot.lane.b32.xlu1 %v4641_v12, %s4539_s9  ;;  %1306 = vrot.lane.b32.xlu0 %v4646_v13, %s4539_s9 }
  0xdb   :  { %v5983_v10 = vld [vmem:[%s9186_s0 + $0x78] sm:$0xff]   ;;  %v5988_v11 = vld [vmem:[%s9186_s0 + $0x70] sm:$0xff]  }
  0xdc   :  { %v813_v12 = vpop.permute.xlu1 %812   ;;  %v804_v13 = vpop.permute.xlu0 %803  }
  0xdd   :  { %3651 = vst.msk [vmem:[%s9187_s1 + $0x142] ss:$8 sm:$0xf] %vm3_vm0, %v813_v12   ;;  %3652 = vst.msk [vmem:[%s9187_s1 + $0x142] ss:$8 sm:$0xf0] %vm3_vm0, %v813_v12  }
  0xde   :  { %3648 = vst.msk [vmem:[%s9187_s1 + $0x102] ss:$8 sm:$0xf] %vm3_vm0, %v804_v13   ;;  %3649 = vst.msk [vmem:[%s9187_s1 + $0x102] ss:$8 sm:$0xf0] %vm3_vm0, %v804_v13   ;;  %1333 = vrot.lane.b32.xlu1 %v4655_v14, %s4539_s9  ;;  %1324 = vrot.lane.b32.xlu0 %v4660_v15, %s4539_s9 }
  0xe0   :  { %v831_v14 = vpop.permute.xlu1 %830   ;;  %v822_v15 = vpop.permute.xlu0 %821  }
  0xe1   :  { %3657 = vst.msk [vmem:[%s9187_s1 + $0x1c2] ss:$8 sm:$0xf] %vm3_vm0, %v831_v14   ;;  %3658 = vst.msk [vmem:[%s9187_s1 + $0x1c2] ss:$8 sm:$0xf0] %vm3_vm0, %v831_v14  }
  0xe2   :  { %3654 = vst.msk [vmem:[%s9187_s1 + $0x182] ss:$8 sm:$0xf] %vm3_vm0, %v822_v15   ;;  %3655 = vst.msk [vmem:[%s9187_s1 + $0x182] ss:$8 sm:$0xf0] %vm3_vm0, %v822_v15   ;;  %1351 = vrot.lane.b32.xlu1 %v4669_v16, %s4539_s9  ;;  %1342 = vrot.lane.b32.xlu0 %v4674_v17, %s4539_s9 }
  0xe3   :  { %v6013_v14 = vld [vmem:[%s9186_s0 + $0x88] sm:$0xff]   ;;  %v6018_v15 = vld [vmem:[%s9186_s0 + $0x80] sm:$0xff]  }
  0xe4   :  { %v849_v16 = vpop.permute.xlu1 %848   ;;  %v840_v17 = vpop.permute.xlu0 %839  }
  0xe5   :  { %3663 = vst.msk [vmem:[%s9187_s1 + $0x242] ss:$8 sm:$0xf] %vm3_vm0, %v849_v16   ;;  %3664 = vst.msk [vmem:[%s9187_s1 + $0x242] ss:$8 sm:$0xf0] %vm3_vm0, %v849_v16  }
  0xe6   :  { %3660 = vst.msk [vmem:[%s9187_s1 + $0x202] ss:$8 sm:$0xf] %vm3_vm0, %v840_v17   ;;  %3661 = vst.msk [vmem:[%s9187_s1 + $0x202] ss:$8 sm:$0xf0] %vm3_vm0, %v840_v17   ;;  %1369 = vrot.lane.b32.xlu1 %v4683_v18, %s4539_s9  ;;  %1360 = vrot.lane.b32.xlu0 %v4688_v19, %s4539_s9 }
  0xe8   :  { %v867_v18 = vpop.permute.xlu1 %866   ;;  %v858_v19 = vpop.permute.xlu0 %857  }
  0xe9   :  { %3669 = vst.msk [vmem:[%s9187_s1 + $0x2c2] ss:$8 sm:$0xf] %vm3_vm0, %v867_v18   ;;  %3670 = vst.msk [vmem:[%s9187_s1 + $0x2c2] ss:$8 sm:$0xf0] %vm3_vm0, %v867_v18  }
  0xea   :  { %3666 = vst.msk [vmem:[%s9187_s1 + $0x282] ss:$8 sm:$0xf] %vm3_vm0, %v858_v19   ;;  %3667 = vst.msk [vmem:[%s9187_s1 + $0x282] ss:$8 sm:$0xf0] %vm3_vm0, %v858_v19   ;;  %1387 = vrot.lane.b32.xlu1 %v4697_v20, %s4539_s9  ;;  %1378 = vrot.lane.b32.xlu0 %v4702_v21, %s4539_s9 }
  0xeb   :  { %v6043_v18 = vld [vmem:[%s9186_s0 + $0x98] sm:$0xff]   ;;  %v6048_v19 = vld [vmem:[%s9186_s0 + $0x90] sm:$0xff]  }
  0xec   :  { %v885_v20 = vpop.permute.xlu1 %884   ;;  %v876_v21 = vpop.permute.xlu0 %875  }
  0xed   :  { %3675 = vst.msk [vmem:[%s9187_s1 + $0x342] ss:$8 sm:$0xf] %vm3_vm0, %v885_v20   ;;  %3676 = vst.msk [vmem:[%s9187_s1 + $0x342] ss:$8 sm:$0xf0] %vm3_vm0, %v885_v20  }
  0xee   :  { %3672 = vst.msk [vmem:[%s9187_s1 + $0x302] ss:$8 sm:$0xf] %vm3_vm0, %v876_v21   ;;  %3673 = vst.msk [vmem:[%s9187_s1 + $0x302] ss:$8 sm:$0xf0] %vm3_vm0, %v876_v21   ;;  %1405 = vrot.lane.b32.xlu1 %v4711_v22, %s4539_s9  ;;  %1396 = vrot.lane.b32.xlu0 %v4716_v23, %s4539_s9 }
  0xf0   :  { %v903_v22 = vpop.permute.xlu1 %902   ;;  %v894_v23 = vpop.permute.xlu0 %893  }
  0xf1   :  { %3681 = vst.msk [vmem:[%s9187_s1 + $0x3c2] ss:$8 sm:$0xf] %vm3_vm0, %v903_v22   ;;  %3682 = vst.msk [vmem:[%s9187_s1 + $0x3c2] ss:$8 sm:$0xf0] %vm3_vm0, %v903_v22  }
  0xf2   :  { %3678 = vst.msk [vmem:[%s9187_s1 + $0x382] ss:$8 sm:$0xf] %vm3_vm0, %v894_v23   ;;  %3679 = vst.msk [vmem:[%s9187_s1 + $0x382] ss:$8 sm:$0xf0] %vm3_vm0, %v894_v23   ;;  %1423 = vrot.lane.b32.xlu1 %v4725_v24, %s4539_s9  ;;  %1414 = vrot.lane.b32.xlu0 %v4730_v25, %s4539_s9 }
  0xf3   :  { %v6073_v22 = vld [vmem:[%s9186_s0 + $0xa8] sm:$0xff]   ;;  %v6078_v23 = vld [vmem:[%s9186_s0 + $0xa0] sm:$0xff]  }
  0xf4   :  { %v921_v24 = vpop.permute.xlu1 %920   ;;  %v912_v25 = vpop.permute.xlu0 %911  }
  0xf5   :  { %3687 = vst.msk [vmem:[%s9187_s1 + $0x442] ss:$8 sm:$0xf] %vm3_vm0, %v921_v24   ;;  %3688 = vst.msk [vmem:[%s9187_s1 + $0x442] ss:$8 sm:$0xf0] %vm3_vm0, %v921_v24  }
  0xf6   :  { %3684 = vst.msk [vmem:[%s9187_s1 + $0x402] ss:$8 sm:$0xf] %vm3_vm0, %v912_v25   ;;  %3685 = vst.msk [vmem:[%s9187_s1 + $0x402] ss:$8 sm:$0xf0] %vm3_vm0, %v912_v25   ;;  %1441 = vrot.lane.b32.xlu1 %v4739_v26, %s4539_s9  ;;  %1432 = vrot.lane.b32.xlu0 %v4744_v27, %s4539_s9 }
  0xf8   :  { %v939_v26 = vpop.permute.xlu1 %938   ;;  %v930_v27 = vpop.permute.xlu0 %929  }
  0xf9   :  { %3693 = vst.msk [vmem:[%s9187_s1 + $0x4c2] ss:$8 sm:$0xf] %vm3_vm0, %v939_v26   ;;  %3694 = vst.msk [vmem:[%s9187_s1 + $0x4c2] ss:$8 sm:$0xf0] %vm3_vm0, %v939_v26  }
  0xfa   :  { %3690 = vst.msk [vmem:[%s9187_s1 + $0x482] ss:$8 sm:$0xf] %vm3_vm0, %v930_v27   ;;  %3691 = vst.msk [vmem:[%s9187_s1 + $0x482] ss:$8 sm:$0xf0] %vm3_vm0, %v930_v27   ;;  %1459 = vrot.lane.b32.xlu1 %v4753_v28, %s4539_s9  ;;  %1450 = vrot.lane.b32.xlu0 %v4758_v29, %s4539_s9 }
  0xfb   :  { %v6103_v26 = vld [vmem:[%s9186_s0 + $0xb8] sm:$0xff]   ;;  %v6108_v27 = vld [vmem:[%s9186_s0 + $0xb0] sm:$0xff]  }
  0xfc   :  { %v957_v28 = vpop.permute.xlu1 %956   ;;  %v948_v29 = vpop.permute.xlu0 %947  }
  0xfd   :  { %3699 = vst.msk [vmem:[%s9187_s1 + $0x542] ss:$8 sm:$0xf] %vm3_vm0, %v957_v28   ;;  %3700 = vst.msk [vmem:[%s9187_s1 + $0x542] ss:$8 sm:$0xf0] %vm3_vm0, %v957_v28  }
  0xfe   :  { %3696 = vst.msk [vmem:[%s9187_s1 + $0x502] ss:$8 sm:$0xf] %vm3_vm0, %v948_v29   ;;  %3697 = vst.msk [vmem:[%s9187_s1 + $0x502] ss:$8 sm:$0xf0] %vm3_vm0, %v948_v29   ;;  %1477 = vrot.lane.b32.xlu1 %v4767_v30, %s4539_s9  ;;  %1468 = vrot.lane.b32.xlu0 %v4772_v31, %s4539_s9 }
 0x100   :  { %v975_v30 = vpop.permute.xlu1 %974   ;;  %v966_v31 = vpop.permute.xlu0 %965  }
 0x101   :  { %3705 = vst.msk [vmem:[%s9187_s1 + $0x5c2] ss:$8 sm:$0xf] %vm3_vm0, %v975_v30   ;;  %3706 = vst.msk [vmem:[%s9187_s1 + $0x5c2] ss:$8 sm:$0xf0] %vm3_vm0, %v975_v30  }
 0x102   :  { %3702 = vst.msk [vmem:[%s9187_s1 + $0x582] ss:$8 sm:$0xf] %vm3_vm0, %v966_v31   ;;  %3703 = vst.msk [vmem:[%s9187_s1 + $0x582] ss:$8 sm:$0xf0] %vm3_vm0, %v966_v31   ;;  %1495 = vrot.lane.b32.xlu1 %v4781_v32, %s4539_s9  ;;  %1486 = vrot.lane.b32.xlu0 %v4786_v33, %s4539_s9 }
 0x103   :  { %v6133_v30 = vld [vmem:[%s9186_s0 + $0xc8] sm:$0xff]   ;;  %v6138_v31 = vld [vmem:[%s9186_s0 + $0xc0] sm:$0xff]  }
 0x104   :  { %v993_v32 = vpop.permute.xlu1 %992   ;;  %v984_v33 = vpop.permute.xlu0 %983  }
 0x105   :  { %3711 = vst.msk [vmem:[%s9187_s1 + $0x642] ss:$8 sm:$0xf] %vm3_vm0, %v993_v32   ;;  %3712 = vst.msk [vmem:[%s9187_s1 + $0x642] ss:$8 sm:$0xf0] %vm3_vm0, %v993_v32  }
 0x106   :  { %3708 = vst.msk [vmem:[%s9187_s1 + $0x602] ss:$8 sm:$0xf] %vm3_vm0, %v984_v33   ;;  %3709 = vst.msk [vmem:[%s9187_s1 + $0x602] ss:$8 sm:$0xf0] %vm3_vm0, %v984_v33   ;;  %1513 = vrot.lane.b32.xlu1 %v4795_v34, %s4539_s9  ;;  %1504 = vrot.lane.b32.xlu0 %v4800_v35, %s4539_s9 }
 0x108   :  { %v1011_v34 = vpop.permute.xlu1 %1010   ;;  %v1002_v35 = vpop.permute.xlu0 %1001  }
 0x109   :  { %3717 = vst.msk [vmem:[%s9187_s1 + $0x6c2] ss:$8 sm:$0xf] %vm3_vm0, %v1011_v34   ;;  %3718 = vst.msk [vmem:[%s9187_s1 + $0x6c2] ss:$8 sm:$0xf0] %vm3_vm0, %v1011_v34  }
 0x10a   :  { %3714 = vst.msk [vmem:[%s9187_s1 + $0x682] ss:$8 sm:$0xf] %vm3_vm0, %v1002_v35   ;;  %3715 = vst.msk [vmem:[%s9187_s1 + $0x682] ss:$8 sm:$0xf0] %vm3_vm0, %v1002_v35   ;;  %1531 = vrot.lane.b32.xlu1 %v4809_v36, %s4539_s9  ;;  %1522 = vrot.lane.b32.xlu0 %v4814_v37, %s4539_s9 }
 0x10b   :  { %v6163_v34 = vld [vmem:[%s9186_s0 + $0xd8] sm:$0xff]   ;;  %v6168_v35 = vld [vmem:[%s9186_s0 + $0xd0] sm:$0xff]  }
 0x10c   :  { %v1029_v36 = vpop.permute.xlu1 %1028   ;;  %v1020_v37 = vpop.permute.xlu0 %1019  }
 0x10d   :  { %3723 = vst.msk [vmem:[%s9187_s1 + $0x742] ss:$8 sm:$0xf] %vm3_vm0, %v1029_v36   ;;  %3724 = vst.msk [vmem:[%s9187_s1 + $0x742] ss:$8 sm:$0xf0] %vm3_vm0, %v1029_v36  }
 0x10e   :  { %3720 = vst.msk [vmem:[%s9187_s1 + $0x702] ss:$8 sm:$0xf] %vm3_vm0, %v1020_v37   ;;  %3721 = vst.msk [vmem:[%s9187_s1 + $0x702] ss:$8 sm:$0xf0] %vm3_vm0, %v1020_v37   ;;  %1549 = vrot.lane.b32.xlu1 %v4823_v38, %s4539_s9  ;;  %1540 = vrot.lane.b32.xlu0 %v4828_v39, %s4539_s9 }
 0x110   :  { %v1047_v38 = vpop.permute.xlu1 %1046   ;;  %v1038_v39 = vpop.permute.xlu0 %1037  }
 0x111   :  { %3729 = vst.msk [vmem:[%s9187_s1 + $0x7c2] ss:$8 sm:$0xf] %vm3_vm0, %v1047_v38   ;;  %3730 = vst.msk [vmem:[%s9187_s1 + $0x7c2] ss:$8 sm:$0xf0] %vm3_vm0, %v1047_v38  }
 0x112   :  { %3726 = vst.msk [vmem:[%s9187_s1 + $0x782] ss:$8 sm:$0xf] %vm3_vm0, %v1038_v39   ;;  %3727 = vst.msk [vmem:[%s9187_s1 + $0x782] ss:$8 sm:$0xf0] %vm3_vm0, %v1038_v39   ;;  %1567 = vrot.lane.b32.xlu1 %v4837_v40, %s4539_s9  ;;  %1558 = vrot.lane.b32.xlu0 %v4842_v41, %s4539_s9 }
 0x113   :  { %v6193_v38 = vld [vmem:[%s9186_s0 + $0xe8] sm:$0xff]   ;;  %v6198_v39 = vld [vmem:[%s9186_s0 + $0xe0] sm:$0xff]  }
 0x114   :  { %v1065_v40 = vpop.permute.xlu1 %1064   ;;  %v1056_v41 = vpop.permute.xlu0 %1055  }
 0x115   :  { %3735 = vst.msk [vmem:[%s9187_s1 + $0x842] ss:$8 sm:$0xf] %vm3_vm0, %v1065_v40   ;;  %3736 = vst.msk [vmem:[%s9187_s1 + $0x842] ss:$8 sm:$0xf0] %vm3_vm0, %v1065_v40  }
 0x116   :  { %3732 = vst.msk [vmem:[%s9187_s1 + $0x802] ss:$8 sm:$0xf] %vm3_vm0, %v1056_v41   ;;  %3733 = vst.msk [vmem:[%s9187_s1 + $0x802] ss:$8 sm:$0xf0] %vm3_vm0, %v1056_v41   ;;  %1585 = vrot.lane.b32.xlu1 %v4851_v42, %s4539_s9  ;;  %1576 = vrot.lane.b32.xlu0 %v4856_v43, %s4539_s9 }
 0x118   :  { %v1083_v42 = vpop.permute.xlu1 %1082   ;;  %v1074_v43 = vpop.permute.xlu0 %1073  }
 0x119   :  { %3741 = vst.msk [vmem:[%s9187_s1 + $0x8c2] ss:$8 sm:$0xf] %vm3_vm0, %v1083_v42   ;;  %3742 = vst.msk [vmem:[%s9187_s1 + $0x8c2] ss:$8 sm:$0xf0] %vm3_vm0, %v1083_v42  }
 0x11a   :  { %3738 = vst.msk [vmem:[%s9187_s1 + $0x882] ss:$8 sm:$0xf] %vm3_vm0, %v1074_v43   ;;  %3739 = vst.msk [vmem:[%s9187_s1 + $0x882] ss:$8 sm:$0xf0] %vm3_vm0, %v1074_v43   ;;  %1603 = vrot.lane.b32.xlu1 %v4865_v44, %s4539_s9  ;;  %1594 = vrot.lane.b32.xlu0 %v4870_v45, %s4539_s9 }
 0x11b   :  { %v6223_v42 = vld [vmem:[%s9186_s0 + $0xf8] sm:$0xff]   ;;  %v6228_v43 = vld [vmem:[%s9186_s0 + $0xf0] sm:$0xff]  }
 0x11c   :  { %v1101_v44 = vpop.permute.xlu1 %1100   ;;  %v1092_v45 = vpop.permute.xlu0 %1091  }
 0x11d   :  { %3747 = vst.msk [vmem:[%s9187_s1 + $0x942] ss:$8 sm:$0xf] %vm3_vm0, %v1101_v44   ;;  %3748 = vst.msk [vmem:[%s9187_s1 + $0x942] ss:$8 sm:$0xf0] %vm3_vm0, %v1101_v44  }
 0x11e   :  { %3744 = vst.msk [vmem:[%s9187_s1 + $0x902] ss:$8 sm:$0xf] %vm3_vm0, %v1092_v45   ;;  %3745 = vst.msk [vmem:[%s9187_s1 + $0x902] ss:$8 sm:$0xf0] %vm3_vm0, %v1092_v45   ;;  %1621 = vrot.lane.b32.xlu1 %v4879_v46, %s4539_s9  ;;  %1612 = vrot.lane.b32.xlu0 %v4884_v47, %s4539_s9 }
 0x11f   :  { %v5773_v46 = vld [vmem:[%s9186_s0 + $0x8] sm:$0xff]   ;;  %v5778_v47 = vld [vmem:[%s9186_s0] sm:$0xff]  }
 0x120   :  { %v1119_v56 = vpop.permute.xlu1 %1118   ;;  %v1110_v57 = vpop.permute.xlu0 %1109  }
 0x121   :  { %3753 = vst.msk [vmem:[%s9187_s1 + $0x9c2] ss:$8 sm:$0xf] %vm3_vm0, %v1119_v56   ;;  %3754 = vst.msk [vmem:[%s9187_s1 + $0x9c2] ss:$8 sm:$0xf0] %vm3_vm0, %v1119_v56  }
 0x122   :  { %3750 = vst.msk [vmem:[%s9187_s1 + $0x982] ss:$8 sm:$0xf] %vm3_vm0, %v1110_v57   ;;  %3751 = vst.msk [vmem:[%s9187_s1 + $0x982] ss:$8 sm:$0xf0] %vm3_vm0, %v1110_v57   ;;  %1638 = vrot.lane.b32.xlu1 %v5773_v46, %s4540_s8  ;;  %1629 = vrot.lane.b32.xlu0 %v5778_v47, %s4540_s8 }
 0x123   :  { %v6253_v56 = vld [vmem:[%s9186_s0 + $0x108] sm:$0xff]   ;;  %v6258_v57 = vld [vmem:[%s9186_s0 + $0x100] sm:$0xff]  }
 0x124   :  { %v1137_v60 = vpop.permute.xlu1 %1136   ;;  %v1128_v61 = vpop.permute.xlu0 %1127  }
 0x125   :  { %3759 = vst.msk [vmem:[%s9187_s1 + $0xa42] ss:$8 sm:$0xf] %vm3_vm0, %v1137_v60   ;;  %3760 = vst.msk [vmem:[%s9187_s1 + $0xa42] ss:$8 sm:$0xf0] %vm3_vm0, %v1137_v60  }
 0x126   :  { %3756 = vst.msk [vmem:[%s9187_s1 + $0xa02] ss:$8 sm:$0xf] %vm3_vm0, %v1128_v61   ;;  %3757 = vst.msk [vmem:[%s9187_s1 + $0xa02] ss:$8 sm:$0xf0] %vm3_vm0, %v1128_v61   ;;  %1656 = vrot.lane.b32.xlu1 %v5803_v58, %s4540_s8  ;;  %1647 = vrot.lane.b32.xlu0 %v5808_v59, %s4540_s8 }
 0x128   :  { %v1155_v48 = vpop.permute.xlu1 %1154   ;;  %v1146_v49 = vpop.permute.xlu0 %1145  }
 0x129   :  { %3765 = vst.msk [vmem:[%s9187_s1 + $0xac2] ss:$8 sm:$0xf] %vm3_vm0, %v1155_v48   ;;  %3766 = vst.msk [vmem:[%s9187_s1 + $0xac2] ss:$8 sm:$0xf0] %vm3_vm0, %v1155_v48  }
 0x12a   :  { %3762 = vst.msk [vmem:[%s9187_s1 + $0xa82] ss:$8 sm:$0xf] %vm3_vm0, %v1146_v49   ;;  %3763 = vst.msk [vmem:[%s9187_s1 + $0xa82] ss:$8 sm:$0xf0] %vm3_vm0, %v1146_v49   ;;  %1674 = vrot.lane.b32.xlu1 %v5833_v62, %s4540_s8  ;;  %1665 = vrot.lane.b32.xlu0 %v5838_v63, %s4540_s8 }
 0x12b   :  { %v6283_v48 = vld [vmem:[%s9186_s0 + $0x118] sm:$0xff]   ;;  %v6288_v49 = vld [vmem:[%s9186_s0 + $0x110] sm:$0xff]  }
 0x12c   :  { %v1173_v52 = vpop.permute.xlu1 %1172   ;;  %v1164_v53 = vpop.permute.xlu0 %1163  }
 0x12d   :  { %3771 = vst.msk [vmem:[%s9187_s1 + $0xb42] ss:$8 sm:$0xf] %vm3_vm0, %v1173_v52   ;;  %3772 = vst.msk [vmem:[%s9187_s1 + $0xb42] ss:$8 sm:$0xf0] %vm3_vm0, %v1173_v52  }
 0x12e   :  { %3768 = vst.msk [vmem:[%s9187_s1 + $0xb02] ss:$8 sm:$0xf] %vm3_vm0, %v1164_v53   ;;  %3769 = vst.msk [vmem:[%s9187_s1 + $0xb02] ss:$8 sm:$0xf0] %vm3_vm0, %v1164_v53   ;;  %1692 = vrot.lane.b32.xlu1 %v5863_v50, %s4540_s8  ;;  %1683 = vrot.lane.b32.xlu0 %v5868_v51, %s4540_s8 }
 0x130   :  { %v1191_v1 = vpop.permute.xlu1 %1190   ;;  %v1182_v3 = vpop.permute.xlu0 %1181  }
 0x131   :  { %3777 = vst.msk [vmem:[%s9187_s1 + $0xbc2] ss:$8 sm:$0xf] %vm3_vm0, %v1191_v1   ;;  %3778 = vst.msk [vmem:[%s9187_s1 + $0xbc2] ss:$8 sm:$0xf0] %vm3_vm0, %v1191_v1  }
 0x132   :  { %3774 = vst.msk [vmem:[%s9187_s1 + $0xb82] ss:$8 sm:$0xf] %vm3_vm0, %v1182_v3   ;;  %3775 = vst.msk [vmem:[%s9187_s1 + $0xb82] ss:$8 sm:$0xf0] %vm3_vm0, %v1182_v3   ;;  %1710 = vrot.lane.b32.xlu1 %v5893_v54, %s4540_s8  ;;  %1701 = vrot.lane.b32.xlu0 %v5898_v55, %s4540_s8 }
 0x133   :  { %v6313_v1 = vld [vmem:[%s9186_s0 + $0x128] sm:$0xff]   ;;  %v6318_v3 = vld [vmem:[%s9186_s0 + $0x120] sm:$0xff]  }
 0x134   :  { %v1208_v4 = vpop.permute.xlu1 %1207   ;;  %v1199_v5 = vpop.permute.xlu0 %1198  }
 0x135   :  { %3782 = vst.msk [vmem:[%s9187_s1 + $0x43] ss:$8 sm:$0xf] %vm3_vm0, %v1208_v4   ;;  %3783 = vst.msk [vmem:[%s9187_s1 + $0x43] ss:$8 sm:$0xf0] %vm3_vm0, %v1208_v4  }
 0x136   :  { %3779 = vst.msk [vmem:[%s9187_s1 + $0x3] ss:$8 sm:$0xf] %vm3_vm0, %v1199_v5   ;;  %3780 = vst.msk [vmem:[%s9187_s1 + $0x3] ss:$8 sm:$0xf0] %vm3_vm0, %v1199_v5   ;;  %1728 = vrot.lane.b32.xlu1 %v5923_v0, %s4540_s8  ;;  %1719 = vrot.lane.b32.xlu0 %v5928_v2, %s4540_s8 }
 0x138   :  { %v1226_v8 = vpop.permute.xlu1 %1225   ;;  %v1217_v9 = vpop.permute.xlu0 %1216  }
 0x139   :  { %3788 = vst.msk [vmem:[%s9187_s1 + $0xc3] ss:$8 sm:$0xf] %vm3_vm0, %v1226_v8   ;;  %3789 = vst.msk [vmem:[%s9187_s1 + $0xc3] ss:$8 sm:$0xf0] %vm3_vm0, %v1226_v8  }
 0x13a   :  { %3785 = vst.msk [vmem:[%s9187_s1 + $0x83] ss:$8 sm:$0xf] %vm3_vm0, %v1217_v9   ;;  %3786 = vst.msk [vmem:[%s9187_s1 + $0x83] ss:$8 sm:$0xf0] %vm3_vm0, %v1217_v9   ;;  %1746 = vrot.lane.b32.xlu1 %v5953_v6, %s4540_s8  ;;  %1737 = vrot.lane.b32.xlu0 %v5958_v7, %s4540_s8 }
 0x13b   :  { %v6343_v8 = vld [vmem:[%s9186_s0 + $0x138] sm:$0xff]   ;;  %v6348_v9 = vld [vmem:[%s9186_s0 + $0x130] sm:$0xff]  }
 0x13c   :  { %v1244_v12 = vpop.permute.xlu1 %1243   ;;  %v1235_v13 = vpop.permute.xlu0 %1234  }
 0x13d   :  { %3794 = vst.msk [vmem:[%s9187_s1 + $0x143] ss:$8 sm:$0xf] %vm3_vm0, %v1244_v12   ;;  %3795 = vst.msk [vmem:[%s9187_s1 + $0x143] ss:$8 sm:$0xf0] %vm3_vm0, %v1244_v12  }
 0x13e   :  { %3791 = vst.msk [vmem:[%s9187_s1 + $0x103] ss:$8 sm:$0xf] %vm3_vm0, %v1235_v13   ;;  %3792 = vst.msk [vmem:[%s9187_s1 + $0x103] ss:$8 sm:$0xf0] %vm3_vm0, %v1235_v13   ;;  %1764 = vrot.lane.b32.xlu1 %v5983_v10, %s4540_s8  ;;  %1755 = vrot.lane.b32.xlu0 %v5988_v11, %s4540_s8 }
 0x140   :  { %v1262_v16 = vpop.permute.xlu1 %1261   ;;  %v1253_v17 = vpop.permute.xlu0 %1252  }
 0x141   :  { %3800 = vst.msk [vmem:[%s9187_s1 + $0x1c3] ss:$8 sm:$0xf] %vm3_vm0, %v1262_v16   ;;  %3801 = vst.msk [vmem:[%s9187_s1 + $0x1c3] ss:$8 sm:$0xf0] %vm3_vm0, %v1262_v16  }
 0x142   :  { %3797 = vst.msk [vmem:[%s9187_s1 + $0x183] ss:$8 sm:$0xf] %vm3_vm0, %v1253_v17   ;;  %3798 = vst.msk [vmem:[%s9187_s1 + $0x183] ss:$8 sm:$0xf0] %vm3_vm0, %v1253_v17   ;;  %1782 = vrot.lane.b32.xlu1 %v6013_v14, %s4540_s8  ;;  %1773 = vrot.lane.b32.xlu0 %v6018_v15, %s4540_s8 }
 0x143   :  { %v6373_v16 = vld [vmem:[%s9186_s0 + $0x148] sm:$0xff]   ;;  %v6378_v17 = vld [vmem:[%s9186_s0 + $0x140] sm:$0xff]  }
 0x144   :  { %v1280_v20 = vpop.permute.xlu1 %1279   ;;  %v1271_v21 = vpop.permute.xlu0 %1270  }
 0x145   :  { %3806 = vst.msk [vmem:[%s9187_s1 + $0x243] ss:$8 sm:$0xf] %vm3_vm0, %v1280_v20   ;;  %3807 = vst.msk [vmem:[%s9187_s1 + $0x243] ss:$8 sm:$0xf0] %vm3_vm0, %v1280_v20  }
 0x146   :  { %3803 = vst.msk [vmem:[%s9187_s1 + $0x203] ss:$8 sm:$0xf] %vm3_vm0, %v1271_v21   ;;  %3804 = vst.msk [vmem:[%s9187_s1 + $0x203] ss:$8 sm:$0xf0] %vm3_vm0, %v1271_v21   ;;  %1800 = vrot.lane.b32.xlu1 %v6043_v18, %s4540_s8  ;;  %1791 = vrot.lane.b32.xlu0 %v6048_v19, %s4540_s8 }
 0x148   :  { %v1298_v24 = vpop.permute.xlu1 %1297   ;;  %v1289_v25 = vpop.permute.xlu0 %1288  }
 0x149   :  { %3812 = vst.msk [vmem:[%s9187_s1 + $0x2c3] ss:$8 sm:$0xf] %vm3_vm0, %v1298_v24   ;;  %3813 = vst.msk [vmem:[%s9187_s1 + $0x2c3] ss:$8 sm:$0xf0] %vm3_vm0, %v1298_v24  }
 0x14a   :  { %3809 = vst.msk [vmem:[%s9187_s1 + $0x283] ss:$8 sm:$0xf] %vm3_vm0, %v1289_v25   ;;  %3810 = vst.msk [vmem:[%s9187_s1 + $0x283] ss:$8 sm:$0xf0] %vm3_vm0, %v1289_v25   ;;  %1818 = vrot.lane.b32.xlu1 %v6073_v22, %s4540_s8  ;;  %1809 = vrot.lane.b32.xlu0 %v6078_v23, %s4540_s8 }
 0x14b   :  { %v6403_v24 = vld [vmem:[%s9186_s0 + $0x158] sm:$0xff]   ;;  %v6408_v25 = vld [vmem:[%s9186_s0 + $0x150] sm:$0xff]  }
 0x14c   :  { %v1316_v28 = vpop.permute.xlu1 %1315   ;;  %v1307_v29 = vpop.permute.xlu0 %1306  }
 0x14d   :  { %3818 = vst.msk [vmem:[%s9187_s1 + $0x343] ss:$8 sm:$0xf] %vm3_vm0, %v1316_v28   ;;  %3819 = vst.msk [vmem:[%s9187_s1 + $0x343] ss:$8 sm:$0xf0] %vm3_vm0, %v1316_v28  }
 0x14e   :  { %3815 = vst.msk [vmem:[%s9187_s1 + $0x303] ss:$8 sm:$0xf] %vm3_vm0, %v1307_v29   ;;  %3816 = vst.msk [vmem:[%s9187_s1 + $0x303] ss:$8 sm:$0xf0] %vm3_vm0, %v1307_v29   ;;  %1836 = vrot.lane.b32.xlu1 %v6103_v26, %s4540_s8  ;;  %1827 = vrot.lane.b32.xlu0 %v6108_v27, %s4540_s8 }
 0x150   :  { %v1334_v32 = vpop.permute.xlu1 %1333   ;;  %v1325_v33 = vpop.permute.xlu0 %1324  }
 0x151   :  { %3824 = vst.msk [vmem:[%s9187_s1 + $0x3c3] ss:$8 sm:$0xf] %vm3_vm0, %v1334_v32   ;;  %3825 = vst.msk [vmem:[%s9187_s1 + $0x3c3] ss:$8 sm:$0xf0] %vm3_vm0, %v1334_v32  }
 0x152   :  { %3821 = vst.msk [vmem:[%s9187_s1 + $0x383] ss:$8 sm:$0xf] %vm3_vm0, %v1325_v33   ;;  %3822 = vst.msk [vmem:[%s9187_s1 + $0x383] ss:$8 sm:$0xf0] %vm3_vm0, %v1325_v33   ;;  %1854 = vrot.lane.b32.xlu1 %v6133_v30, %s4540_s8  ;;  %1845 = vrot.lane.b32.xlu0 %v6138_v31, %s4540_s8 }
 0x153   :  { %v6433_v32 = vld [vmem:[%s9186_s0 + $0x168] sm:$0xff]   ;;  %v6438_v33 = vld [vmem:[%s9186_s0 + $0x160] sm:$0xff]  }
 0x154   :  { %v1352_v36 = vpop.permute.xlu1 %1351   ;;  %v1343_v37 = vpop.permute.xlu0 %1342  }
 0x155   :  { %3830 = vst.msk [vmem:[%s9187_s1 + $0x443] ss:$8 sm:$0xf] %vm3_vm0, %v1352_v36   ;;  %3831 = vst.msk [vmem:[%s9187_s1 + $0x443] ss:$8 sm:$0xf0] %vm3_vm0, %v1352_v36  }
 0x156   :  { %3827 = vst.msk [vmem:[%s9187_s1 + $0x403] ss:$8 sm:$0xf] %vm3_vm0, %v1343_v37   ;;  %3828 = vst.msk [vmem:[%s9187_s1 + $0x403] ss:$8 sm:$0xf0] %vm3_vm0, %v1343_v37   ;;  %1872 = vrot.lane.b32.xlu1 %v6163_v34, %s4540_s8  ;;  %1863 = vrot.lane.b32.xlu0 %v6168_v35, %s4540_s8 }
 0x158   :  { %v1370_v40 = vpop.permute.xlu1 %1369   ;;  %v1361_v41 = vpop.permute.xlu0 %1360  }
 0x159   :  { %3836 = vst.msk [vmem:[%s9187_s1 + $0x4c3] ss:$8 sm:$0xf] %vm3_vm0, %v1370_v40   ;;  %3837 = vst.msk [vmem:[%s9187_s1 + $0x4c3] ss:$8 sm:$0xf0] %vm3_vm0, %v1370_v40  }
 0x15a   :  { %3833 = vst.msk [vmem:[%s9187_s1 + $0x483] ss:$8 sm:$0xf] %vm3_vm0, %v1361_v41   ;;  %3834 = vst.msk [vmem:[%s9187_s1 + $0x483] ss:$8 sm:$0xf0] %vm3_vm0, %v1361_v41   ;;  %1890 = vrot.lane.b32.xlu1 %v6193_v38, %s4540_s8  ;;  %1881 = vrot.lane.b32.xlu0 %v6198_v39, %s4540_s8 }
 0x15b   :  { %v6463_v40 = vld [vmem:[%s9186_s0 + $0x178] sm:$0xff]   ;;  %v6468_v41 = vld [vmem:[%s9186_s0 + $0x170] sm:$0xff]  }
 0x15c   :  { %v1388_v44 = vpop.permute.xlu1 %1387   ;;  %v1379_v45 = vpop.permute.xlu0 %1378  }
 0x15d   :  { %3842 = vst.msk [vmem:[%s9187_s1 + $0x543] ss:$8 sm:$0xf] %vm3_vm0, %v1388_v44   ;;  %3843 = vst.msk [vmem:[%s9187_s1 + $0x543] ss:$8 sm:$0xf0] %vm3_vm0, %v1388_v44  }
 0x15e   :  { %3839 = vst.msk [vmem:[%s9187_s1 + $0x503] ss:$8 sm:$0xf] %vm3_vm0, %v1379_v45   ;;  %3840 = vst.msk [vmem:[%s9187_s1 + $0x503] ss:$8 sm:$0xf0] %vm3_vm0, %v1379_v45   ;;  %1908 = vrot.lane.b32.xlu1 %v6223_v42, %s4540_s8  ;;  %1899 = vrot.lane.b32.xlu0 %v6228_v43, %s4540_s8 }
 0x160   :  { %v1406_v60 = vpop.permute.xlu1 %1405   ;;  %v1397_v61 = vpop.permute.xlu0 %1396  }
 0x161   :  { %3848 = vst.msk [vmem:[%s9187_s1 + $0x5c3] ss:$8 sm:$0xf] %vm3_vm0, %v1406_v60   ;;  %3849 = vst.msk [vmem:[%s9187_s1 + $0x5c3] ss:$8 sm:$0xf0] %vm3_vm0, %v1406_v60  }
 0x162   :  { %3845 = vst.msk [vmem:[%s9187_s1 + $0x583] ss:$8 sm:$0xf] %vm3_vm0, %v1397_v61   ;;  %3846 = vst.msk [vmem:[%s9187_s1 + $0x583] ss:$8 sm:$0xf0] %vm3_vm0, %v1397_v61   ;;  %1926 = vrot.lane.b32.xlu1 %v6253_v56, %s4540_s8  ;;  %1917 = vrot.lane.b32.xlu0 %v6258_v57, %s4540_s8 }
 0x164   :  { %v1424_v52 = vpop.permute.xlu1 %1423   ;;  %v1415_v53 = vpop.permute.xlu0 %1414  }
 0x165   :  { %3854 = vst.msk [vmem:[%s9187_s1 + $0x643] ss:$8 sm:$0xf] %vm3_vm0, %v1424_v52   ;;  %3855 = vst.msk [vmem:[%s9187_s1 + $0x643] ss:$8 sm:$0xf0] %vm3_vm0, %v1424_v52  }
 0x166   :  { %3851 = vst.msk [vmem:[%s9187_s1 + $0x603] ss:$8 sm:$0xf] %vm3_vm0, %v1415_v53   ;;  %3852 = vst.msk [vmem:[%s9187_s1 + $0x603] ss:$8 sm:$0xf0] %vm3_vm0, %v1415_v53   ;;  %1944 = vrot.lane.b32.xlu1 %v6283_v48, %s4540_s8  ;;  %1935 = vrot.lane.b32.xlu0 %v6288_v49, %s4540_s8 }
 0x168   :  { %v1442_v4 = vpop.permute.xlu1 %1441   ;;  %v1433_v5 = vpop.permute.xlu0 %1432  }
 0x169   :  { %3860 = vst.msk [vmem:[%s9187_s1 + $0x6c3] ss:$8 sm:$0xf] %vm3_vm0, %v1442_v4   ;;  %3861 = vst.msk [vmem:[%s9187_s1 + $0x6c3] ss:$8 sm:$0xf0] %vm3_vm0, %v1442_v4  }
 0x16a   :  { %3857 = vst.msk [vmem:[%s9187_s1 + $0x683] ss:$8 sm:$0xf] %vm3_vm0, %v1433_v5   ;;  %3858 = vst.msk [vmem:[%s9187_s1 + $0x683] ss:$8 sm:$0xf0] %vm3_vm0, %v1433_v5   ;;  %1962 = vrot.lane.b32.xlu1 %v6313_v1, %s4540_s8  ;;  %1953 = vrot.lane.b32.xlu0 %v6318_v3, %s4540_s8 }
 0x16c   :  { %v1460_v12 = vpop.permute.xlu1 %1459   ;;  %v1451_v13 = vpop.permute.xlu0 %1450  }
 0x16d   :  { %3866 = vst.msk [vmem:[%s9187_s1 + $0x743] ss:$8 sm:$0xf] %vm3_vm0, %v1460_v12   ;;  %3867 = vst.msk [vmem:[%s9187_s1 + $0x743] ss:$8 sm:$0xf0] %vm3_vm0, %v1460_v12  }
 0x16e   :  { %3863 = vst.msk [vmem:[%s9187_s1 + $0x703] ss:$8 sm:$0xf] %vm3_vm0, %v1451_v13   ;;  %3864 = vst.msk [vmem:[%s9187_s1 + $0x703] ss:$8 sm:$0xf0] %vm3_vm0, %v1451_v13   ;;  %1980 = vrot.lane.b32.xlu1 %v6343_v8, %s4540_s8  ;;  %1971 = vrot.lane.b32.xlu0 %v6348_v9, %s4540_s8 }
 0x170   :  { %v1478_v20 = vpop.permute.xlu1 %1477   ;;  %v1469_v21 = vpop.permute.xlu0 %1468  }
 0x171   :  { %3872 = vst.msk [vmem:[%s9187_s1 + $0x7c3] ss:$8 sm:$0xf] %vm3_vm0, %v1478_v20   ;;  %3873 = vst.msk [vmem:[%s9187_s1 + $0x7c3] ss:$8 sm:$0xf0] %vm3_vm0, %v1478_v20  }
 0x172   :  { %3869 = vst.msk [vmem:[%s9187_s1 + $0x783] ss:$8 sm:$0xf] %vm3_vm0, %v1469_v21   ;;  %3870 = vst.msk [vmem:[%s9187_s1 + $0x783] ss:$8 sm:$0xf0] %vm3_vm0, %v1469_v21   ;;  %1998 = vrot.lane.b32.xlu1 %v6373_v16, %s4540_s8  ;;  %1989 = vrot.lane.b32.xlu0 %v6378_v17, %s4540_s8 }
 0x174   :  { %v1496_v28 = vpop.permute.xlu1 %1495   ;;  %v1487_v29 = vpop.permute.xlu0 %1486  }
 0x175   :  { %3878 = vst.msk [vmem:[%s9187_s1 + $0x843] ss:$8 sm:$0xf] %vm3_vm0, %v1496_v28   ;;  %3879 = vst.msk [vmem:[%s9187_s1 + $0x843] ss:$8 sm:$0xf0] %vm3_vm0, %v1496_v28  }
 0x176   :  { %3875 = vst.msk [vmem:[%s9187_s1 + $0x803] ss:$8 sm:$0xf] %vm3_vm0, %v1487_v29   ;;  %3876 = vst.msk [vmem:[%s9187_s1 + $0x803] ss:$8 sm:$0xf0] %vm3_vm0, %v1487_v29   ;;  %2016 = vrot.lane.b32.xlu1 %v6403_v24, %s4540_s8  ;;  %2007 = vrot.lane.b32.xlu0 %v6408_v25, %s4540_s8 }
 0x178   :  { %v1514_v36 = vpop.permute.xlu1 %1513   ;;  %v1505_v37 = vpop.permute.xlu0 %1504  }
 0x179   :  { %3884 = vst.msk [vmem:[%s9187_s1 + $0x8c3] ss:$8 sm:$0xf] %vm3_vm0, %v1514_v36   ;;  %3885 = vst.msk [vmem:[%s9187_s1 + $0x8c3] ss:$8 sm:$0xf0] %vm3_vm0, %v1514_v36  }
 0x17a   :  { %3881 = vst.msk [vmem:[%s9187_s1 + $0x883] ss:$8 sm:$0xf] %vm3_vm0, %v1505_v37   ;;  %3882 = vst.msk [vmem:[%s9187_s1 + $0x883] ss:$8 sm:$0xf0] %vm3_vm0, %v1505_v37   ;;  %2034 = vrot.lane.b32.xlu1 %v6433_v32, %s4540_s8  ;;  %2025 = vrot.lane.b32.xlu0 %v6438_v33, %s4540_s8 }
 0x17c   :  { %v1532_v44 = vpop.permute.xlu1 %1531   ;;  %v1523_v45 = vpop.permute.xlu0 %1522  }
 0x17d   :  { %3890 = vst.msk [vmem:[%s9187_s1 + $0x943] ss:$8 sm:$0xf] %vm3_vm0, %v1532_v44   ;;  %3891 = vst.msk [vmem:[%s9187_s1 + $0x943] ss:$8 sm:$0xf0] %vm3_vm0, %v1532_v44  }
 0x17e   :  { %3887 = vst.msk [vmem:[%s9187_s1 + $0x903] ss:$8 sm:$0xf] %vm3_vm0, %v1523_v45   ;;  %3888 = vst.msk [vmem:[%s9187_s1 + $0x903] ss:$8 sm:$0xf0] %vm3_vm0, %v1523_v45   ;;  %2052 = vrot.lane.b32.xlu1 %v6463_v40, %s4540_s8  ;;  %2043 = vrot.lane.b32.xlu0 %v6468_v41, %s4540_s8 }
 0x17f   :  { %v6829_v44 = vld [vmem:[%s9186_s0 + $0x8] sm:$0xff]   ;;  %v6834_v45 = vld [vmem:[%s9186_s0] sm:$0xff]  }
 0x180   :  { %v1550_v60 = vpop.permute.xlu1 %1549   ;;  %v1541_v61 = vpop.permute.xlu0 %1540   ;;  %4 = vst.msk [vmem:[%s9187_s1] ss:$8 sm:$0xf] %vm3_vm0, %v6834_v45   ;;  %5 = vst.msk [vmem:[%s9187_s1] ss:$8 sm:$0xf0] %vm3_vm0, %v6834_v45  }
 0x181   :  { %3896 = vst.msk [vmem:[%s9187_s1 + $0x9c3] ss:$8 sm:$0xf] %vm3_vm0, %v1550_v60   ;;  %3897 = vst.msk [vmem:[%s9187_s1 + $0x9c3] ss:$8 sm:$0xf0] %vm3_vm0, %v1550_v60  }
 0x182   :  { %3893 = vst.msk [vmem:[%s9187_s1 + $0x983] ss:$8 sm:$0xf] %vm3_vm0, %v1541_v61   ;;  %3894 = vst.msk [vmem:[%s9187_s1 + $0x983] ss:$8 sm:$0xf0] %vm3_vm0, %v1541_v61   ;;  %2069 = vrot.lane.b32.xlu1 %v5773_v46, %s4541_s14  ;;  %2060 = vrot.lane.b32.xlu0 %v5778_v47, %s4541_s14 }
 0x183   :  { %3353 = vst.msk [vmem:[%s9187_s1 + $0x40] ss:$8 sm:$0xf] %vm3_vm0, %v6829_v44   ;;  %3354 = vst.msk [vmem:[%s9187_s1 + $0x40] ss:$8 sm:$0xf0] %vm3_vm0, %v6829_v44  }
 0x184   :  { %v1568_v52 = vpop.permute.xlu1 %1567   ;;  %v1559_v53 = vpop.permute.xlu0 %1558   ;;  %v6879_v60 = vld [vmem:[%s9186_s0 + $0x18] sm:$0xff]   ;;  %v6884_v61 = vld [vmem:[%s9186_s0 + $0x10] sm:$0xff]  }
 0x185   :  { %3902 = vst.msk [vmem:[%s9187_s1 + $0xa43] ss:$8 sm:$0xf] %vm3_vm0, %v1568_v52   ;;  %3903 = vst.msk [vmem:[%s9187_s1 + $0xa43] ss:$8 sm:$0xf0] %vm3_vm0, %v1568_v52  }
 0x186   :  { %3899 = vst.msk [vmem:[%s9187_s1 + $0xa03] ss:$8 sm:$0xf] %vm3_vm0, %v1559_v53   ;;  %3900 = vst.msk [vmem:[%s9187_s1 + $0xa03] ss:$8 sm:$0xf0] %vm3_vm0, %v1559_v53   ;;  %2087 = vrot.lane.b32.xlu1 %v5803_v58, %s4541_s14  ;;  %2078 = vrot.lane.b32.xlu0 %v5808_v59, %s4541_s14 }
 0x187   :  { %3356 = vst.msk [vmem:[%s9187_s1 + $0x80] ss:$8 sm:$0xf] %vm3_vm0, %v6884_v61   ;;  %3357 = vst.msk [vmem:[%s9187_s1 + $0x80] ss:$8 sm:$0xf0] %vm3_vm0, %v6884_v61  }
 0x188   :  { %v1586_v4 = vpop.permute.xlu1 %1585   ;;  %v1577_v5 = vpop.permute.xlu0 %1576   ;;  %3359 = vst.msk [vmem:[%s9187_s1 + $0xc0] ss:$8 sm:$0xf] %vm3_vm0, %v6879_v60   ;;  %3360 = vst.msk [vmem:[%s9187_s1 + $0xc0] ss:$8 sm:$0xf0] %vm3_vm0, %v6879_v60  }
 0x189   :  { %3908 = vst.msk [vmem:[%s9187_s1 + $0xac3] ss:$8 sm:$0xf] %vm3_vm0, %v1586_v4   ;;  %3909 = vst.msk [vmem:[%s9187_s1 + $0xac3] ss:$8 sm:$0xf0] %vm3_vm0, %v1586_v4  }
 0x18a   :  { %3905 = vst.msk [vmem:[%s9187_s1 + $0xa83] ss:$8 sm:$0xf] %vm3_vm0, %v1577_v5   ;;  %3906 = vst.msk [vmem:[%s9187_s1 + $0xa83] ss:$8 sm:$0xf0] %vm3_vm0, %v1577_v5   ;;  %2105 = vrot.lane.b32.xlu1 %v5833_v62, %s4541_s14  ;;  %2096 = vrot.lane.b32.xlu0 %v5838_v63, %s4541_s14 }
 0x18b   :  { %v6929_v52 = vld [vmem:[%s9186_s0 + $0x28] sm:$0xff]   ;;  %v6934_v53 = vld [vmem:[%s9186_s0 + $0x20] sm:$0xff]   ;;  %v6979_v4 = vld [vmem:[%s9186_s0 + $0x38] sm:$0xff]  }
 0x18c   :  { %v1604_v12 = vpop.permute.xlu1 %1603   ;;  %v1595_v13 = vpop.permute.xlu0 %1594   ;;  %3362 = vst.msk [vmem:[%s9187_s1 + $0x100] ss:$8 sm:$0xf] %vm3_vm0, %v6934_v53   ;;  %3363 = vst.msk [vmem:[%s9187_s1 + $0x100] ss:$8 sm:$0xf0] %vm3_vm0, %v6934_v53  }
 0x18d   :  { %3914 = vst.msk [vmem:[%s9187_s1 + $0xb43] ss:$8 sm:$0xf] %vm3_vm0, %v1604_v12   ;;  %3915 = vst.msk [vmem:[%s9187_s1 + $0xb43] ss:$8 sm:$0xf0] %vm3_vm0, %v1604_v12  }
 0x18e   :  { %3911 = vst.msk [vmem:[%s9187_s1 + $0xb03] ss:$8 sm:$0xf] %vm3_vm0, %v1595_v13   ;;  %3912 = vst.msk [vmem:[%s9187_s1 + $0xb03] ss:$8 sm:$0xf0] %vm3_vm0, %v1595_v13   ;;  %2123 = vrot.lane.b32.xlu1 %v5863_v50, %s4541_s14  ;;  %2114 = vrot.lane.b32.xlu0 %v5868_v51, %s4541_s14 }
 0x18f   :  { %3365 = vst.msk [vmem:[%s9187_s1 + $0x140] ss:$8 sm:$0xf] %vm3_vm0, %v6929_v52   ;;  %3366 = vst.msk [vmem:[%s9187_s1 + $0x140] ss:$8 sm:$0xf0] %vm3_vm0, %v6929_v52  }
 0x190   :  { %v1622_v20 = vpop.permute.xlu1 %1621   ;;  %v1613_v21 = vpop.permute.xlu0 %1612   ;;  %v6984_v5 = vld [vmem:[%s9186_s0 + $0x30] sm:$0xff]   ;;  %3371 = vst.msk [vmem:[%s9187_s1 + $0x1c0] ss:$8 sm:$0xf] %vm3_vm0, %v6979_v4   ;;  %v7029_v12 = vld [vmem:[%s9186_s0 + $0x48] sm:$0xff]   ;;  %v7034_v13 = vld [vmem:[%s9186_s0 + $0x40] sm:$0xff]  }
 0x191   :  { %3920 = vst.msk [vmem:[%s9187_s1 + $0xbc3] ss:$8 sm:$0xf] %vm3_vm0, %v1622_v20   ;;  %3921 = vst.msk [vmem:[%s9187_s1 + $0xbc3] ss:$8 sm:$0xf0] %vm3_vm0, %v1622_v20  }
 0x192   :  { %3917 = vst.msk [vmem:[%s9187_s1 + $0xb83] ss:$8 sm:$0xf] %vm3_vm0, %v1613_v21   ;;  %3918 = vst.msk [vmem:[%s9187_s1 + $0xb83] ss:$8 sm:$0xf0] %vm3_vm0, %v1613_v21   ;;  %2141 = vrot.lane.b32.xlu1 %v5893_v54, %s4541_s14  ;;  %2132 = vrot.lane.b32.xlu0 %v5898_v55, %s4541_s14 }
 0x193   :  { %3368 = vst.msk [vmem:[%s9187_s1 + $0x180] ss:$8 sm:$0xf] %vm3_vm0, %v6984_v5   ;;  %3369 = vst.msk [vmem:[%s9187_s1 + $0x180] ss:$8 sm:$0xf0] %vm3_vm0, %v6984_v5  }
 0x194   :  { %v1639_v28 = vpop.permute.xlu1 %1638   ;;  %v1630_v29 = vpop.permute.xlu0 %1629   ;;  %3372 = vst.msk [vmem:[%s9187_s1 + $0x1c0] ss:$8 sm:$0xf0] %vm3_vm0, %v6979_v4   ;;  %3374 = vst.msk [vmem:[%s9187_s1 + $0x200] ss:$8 sm:$0xf] %vm3_vm0, %v7034_v13  }
 0x195   :  { %3925 = vst.msk [vmem:[%s9187_s1 + $0x44] ss:$8 sm:$0xf] %vm3_vm0, %v1639_v28   ;;  %3926 = vst.msk [vmem:[%s9187_s1 + $0x44] ss:$8 sm:$0xf0] %vm3_vm0, %v1639_v28  }
 0x196   :  { %3922 = vst.msk [vmem:[%s9187_s1 + $0x4] ss:$8 sm:$0xf] %vm3_vm0, %v1630_v29   ;;  %3923 = vst.msk [vmem:[%s9187_s1 + $0x4] ss:$8 sm:$0xf0] %vm3_vm0, %v1630_v29   ;;  %2159 = vrot.lane.b32.xlu1 %v5923_v0, %s4541_s14  ;;  %2150 = vrot.lane.b32.xlu0 %v5928_v2, %s4541_s14 }
 0x197   :  { %3375 = vst.msk [vmem:[%s9187_s1 + $0x200] ss:$8 sm:$0xf0] %vm3_vm0, %v7034_v13   ;;  %3377 = vst.msk [vmem:[%s9187_s1 + $0x240] ss:$8 sm:$0xf] %vm3_vm0, %v7029_v12  }
 0x198   :  { %v1657_v36 = vpop.permute.xlu1 %1656   ;;  %v1648_v37 = vpop.permute.xlu0 %1647   ;;  %3378 = vst.msk [vmem:[%s9187_s1 + $0x240] ss:$8 sm:$0xf0] %vm3_vm0, %v7029_v12   ;;  %v7079_v20 = vld [vmem:[%s9186_s0 + $0x58] sm:$0xff]   ;;  %v7084_v21 = vld [vmem:[%s9186_s0 + $0x50] sm:$0xff]   ;;  %v7129_v28 = vld [vmem:[%s9186_s0 + $0x68] sm:$0xff]  }
 0x199   :  { %3931 = vst.msk [vmem:[%s9187_s1 + $0xc4] ss:$8 sm:$0xf] %vm3_vm0, %v1657_v36   ;;  %3932 = vst.msk [vmem:[%s9187_s1 + $0xc4] ss:$8 sm:$0xf0] %vm3_vm0, %v1657_v36  }
 0x19a   :  { %3928 = vst.msk [vmem:[%s9187_s1 + $0x84] ss:$8 sm:$0xf] %vm3_vm0, %v1648_v37   ;;  %3929 = vst.msk [vmem:[%s9187_s1 + $0x84] ss:$8 sm:$0xf0] %vm3_vm0, %v1648_v37   ;;  %2177 = vrot.lane.b32.xlu1 %v5953_v6, %s4541_s14  ;;  %2168 = vrot.lane.b32.xlu0 %v5958_v7, %s4541_s14 }
 0x19b   :  { %3380 = vst.msk [vmem:[%s9187_s1 + $0x280] ss:$8 sm:$0xf] %vm3_vm0, %v7084_v21   ;;  %3381 = vst.msk [vmem:[%s9187_s1 + $0x280] ss:$8 sm:$0xf0] %vm3_vm0, %v7084_v21  }
 0x19c   :  { %v1675_v6 = vpop.permute.xlu1 %1674   ;;  %v1666_v7 = vpop.permute.xlu0 %1665   ;;  %3383 = vst.msk [vmem:[%s9187_s1 + $0x2c0] ss:$8 sm:$0xf] %vm3_vm0, %v7079_v20   ;;  %3384 = vst.msk [vmem:[%s9187_s1 + $0x2c0] ss:$8 sm:$0xf0] %vm3_vm0, %v7079_v20  }
 0x19d   :  { %3937 = vst.msk [vmem:[%s9187_s1 + $0x144] ss:$8 sm:$0xf] %vm3_vm0, %v1675_v6   ;;  %3938 = vst.msk [vmem:[%s9187_s1 + $0x144] ss:$8 sm:$0xf0] %vm3_vm0, %v1675_v6  }
 0x19e   :  { %3934 = vst.msk [vmem:[%s9187_s1 + $0x104] ss:$8 sm:$0xf] %vm3_vm0, %v1666_v7   ;;  %3935 = vst.msk [vmem:[%s9187_s1 + $0x104] ss:$8 sm:$0xf0] %vm3_vm0, %v1666_v7   ;;  %2195 = vrot.lane.b32.xlu1 %v5983_v10, %s4541_s14  ;;  %2186 = vrot.lane.b32.xlu0 %v5988_v11, %s4541_s14 }
 0x19f   :  { %v7134_v29 = vld [vmem:[%s9186_s0 + $0x60] sm:$0xff]   ;;  %3389 = vst.msk [vmem:[%s9187_s1 + $0x340] ss:$8 sm:$0xf] %vm3_vm0, %v7129_v28   ;;  %v7179_v36 = vld [vmem:[%s9186_s0 + $0x78] sm:$0xff]   ;;  %v7184_v37 = vld [vmem:[%s9186_s0 + $0x70] sm:$0xff]  }
 0x1a0   :  { %v1693_v10 = vpop.permute.xlu1 %1692   ;;  %v1684_v11 = vpop.permute.xlu0 %1683   ;;  %3386 = vst.msk [vmem:[%s9187_s1 + $0x300] ss:$8 sm:$0xf] %vm3_vm0, %v7134_v29   ;;  %3387 = vst.msk [vmem:[%s9187_s1 + $0x300] ss:$8 sm:$0xf0] %vm3_vm0, %v7134_v29  }
 0x1a1   :  { %3943 = vst.msk [vmem:[%s9187_s1 + $0x1c4] ss:$8 sm:$0xf] %vm3_vm0, %v1693_v10   ;;  %3944 = vst.msk [vmem:[%s9187_s1 + $0x1c4] ss:$8 sm:$0xf0] %vm3_vm0, %v1693_v10  }
 0x1a2   :  { %3940 = vst.msk [vmem:[%s9187_s1 + $0x184] ss:$8 sm:$0xf] %vm3_vm0, %v1684_v11   ;;  %3941 = vst.msk [vmem:[%s9187_s1 + $0x184] ss:$8 sm:$0xf0] %vm3_vm0, %v1684_v11   ;;  %2213 = vrot.lane.b32.xlu1 %v6013_v14, %s4541_s14  ;;  %2204 = vrot.lane.b32.xlu0 %v6018_v15, %s4541_s14 }
 0x1a3   :  { %3390 = vst.msk [vmem:[%s9187_s1 + $0x340] ss:$8 sm:$0xf0] %vm3_vm0, %v7129_v28   ;;  %3392 = vst.msk [vmem:[%s9187_s1 + $0x380] ss:$8 sm:$0xf] %vm3_vm0, %v7184_v37  }
 0x1a4   :  { %v1711_v14 = vpop.permute.xlu1 %1710   ;;  %v1702_v15 = vpop.permute.xlu0 %1701   ;;  %3393 = vst.msk [vmem:[%s9187_s1 + $0x380] ss:$8 sm:$0xf0] %vm3_vm0, %v7184_v37   ;;  %3395 = vst.msk [vmem:[%s9187_s1 + $0x3c0] ss:$8 sm:$0xf] %vm3_vm0, %v7179_v36  }
 0x1a5   :  { %3949 = vst.msk [vmem:[%s9187_s1 + $0x244] ss:$8 sm:$0xf] %vm3_vm0, %v1711_v14   ;;  %3950 = vst.msk [vmem:[%s9187_s1 + $0x244] ss:$8 sm:$0xf0] %vm3_vm0, %v1711_v14  }
 0x1a6   :  { %3946 = vst.msk [vmem:[%s9187_s1 + $0x204] ss:$8 sm:$0xf] %vm3_vm0, %v1702_v15   ;;  %3947 = vst.msk [vmem:[%s9187_s1 + $0x204] ss:$8 sm:$0xf0] %vm3_vm0, %v1702_v15   ;;  %2231 = vrot.lane.b32.xlu1 %v6043_v18, %s4541_s14  ;;  %2222 = vrot.lane.b32.xlu0 %v6048_v19, %s4541_s14 }
 0x1a7   :  { %3396 = vst.msk [vmem:[%s9187_s1 + $0x3c0] ss:$8 sm:$0xf0] %vm3_vm0, %v7179_v36   ;;  %v7229_v6 = vld [vmem:[%s9186_s0 + $0x88] sm:$0xff]   ;;  %v7234_v7 = vld [vmem:[%s9186_s0 + $0x80] sm:$0xff]   ;;  %v7279_v10 = vld [vmem:[%s9186_s0 + $0x98] sm:$0xff]  }
 0x1a8   :  { %v1729_v18 = vpop.permute.xlu1 %1728   ;;  %v1720_v19 = vpop.permute.xlu0 %1719   ;;  %3398 = vst.msk [vmem:[%s9187_s1 + $0x400] ss:$8 sm:$0xf] %vm3_vm0, %v7234_v7   ;;  %3399 = vst.msk [vmem:[%s9187_s1 + $0x400] ss:$8 sm:$0xf0] %vm3_vm0, %v7234_v7  }
 0x1a9   :  { %3955 = vst.msk [vmem:[%s9187_s1 + $0x2c4] ss:$8 sm:$0xf] %vm3_vm0, %v1729_v18   ;;  %3956 = vst.msk [vmem:[%s9187_s1 + $0x2c4] ss:$8 sm:$0xf0] %vm3_vm0, %v1729_v18  }
 0x1aa   :  { %3952 = vst.msk [vmem:[%s9187_s1 + $0x284] ss:$8 sm:$0xf] %vm3_vm0, %v1720_v19   ;;  %3953 = vst.msk [vmem:[%s9187_s1 + $0x284] ss:$8 sm:$0xf0] %vm3_vm0, %v1720_v19   ;;  %2249 = vrot.lane.b32.xlu1 %v6073_v22, %s4541_s14  ;;  %2240 = vrot.lane.b32.xlu0 %v6078_v23, %s4541_s14 }
 0x1ab   :  { %3401 = vst.msk [vmem:[%s9187_s1 + $0x440] ss:$8 sm:$0xf] %vm3_vm0, %v7229_v6   ;;  %3402 = vst.msk [vmem:[%s9187_s1 + $0x440] ss:$8 sm:$0xf0] %vm3_vm0, %v7229_v6  }
 0x1ac   :  { %v1747_v22 = vpop.permute.xlu1 %1746   ;;  %v1738_v23 = vpop.permute.xlu0 %1737   ;;  %v7284_v11 = vld [vmem:[%s9186_s0 + $0x90] sm:$0xff]   ;;  %3407 = vst.msk [vmem:[%s9187_s1 + $0x4c0] ss:$8 sm:$0xf] %vm3_vm0, %v7279_v10   ;;  %v7329_v14 = vld [vmem:[%s9186_s0 + $0xa8] sm:$0xff]   ;;  %v7334_v15 = vld [vmem:[%s9186_s0 + $0xa0] sm:$0xff]  }
 0x1ad   :  { %3961 = vst.msk [vmem:[%s9187_s1 + $0x344] ss:$8 sm:$0xf] %vm3_vm0, %v1747_v22   ;;  %3962 = vst.msk [vmem:[%s9187_s1 + $0x344] ss:$8 sm:$0xf0] %vm3_vm0, %v1747_v22  }
 0x1ae   :  { %3958 = vst.msk [vmem:[%s9187_s1 + $0x304] ss:$8 sm:$0xf] %vm3_vm0, %v1738_v23   ;;  %3959 = vst.msk [vmem:[%s9187_s1 + $0x304] ss:$8 sm:$0xf0] %vm3_vm0, %v1738_v23   ;;  %2267 = vrot.lane.b32.xlu1 %v6103_v26, %s4541_s14  ;;  %2258 = vrot.lane.b32.xlu0 %v6108_v27, %s4541_s14 }
 0x1af   :  { %3404 = vst.msk [vmem:[%s9187_s1 + $0x480] ss:$8 sm:$0xf] %vm3_vm0, %v7284_v11   ;;  %3405 = vst.msk [vmem:[%s9187_s1 + $0x480] ss:$8 sm:$0xf0] %vm3_vm0, %v7284_v11  }
 0x1b0   :  { %v1765_v26 = vpop.permute.xlu1 %1764   ;;  %v1756_v27 = vpop.permute.xlu0 %1755   ;;  %3408 = vst.msk [vmem:[%s9187_s1 + $0x4c0] ss:$8 sm:$0xf0] %vm3_vm0, %v7279_v10   ;;  %3410 = vst.msk [vmem:[%s9187_s1 + $0x500] ss:$8 sm:$0xf] %vm3_vm0, %v7334_v15  }
 0x1b1   :  { %3967 = vst.msk [vmem:[%s9187_s1 + $0x3c4] ss:$8 sm:$0xf] %vm3_vm0, %v1765_v26   ;;  %3968 = vst.msk [vmem:[%s9187_s1 + $0x3c4] ss:$8 sm:$0xf0] %vm3_vm0, %v1765_v26  }
 0x1b2   :  { %3964 = vst.msk [vmem:[%s9187_s1 + $0x384] ss:$8 sm:$0xf] %vm3_vm0, %v1756_v27   ;;  %3965 = vst.msk [vmem:[%s9187_s1 + $0x384] ss:$8 sm:$0xf0] %vm3_vm0, %v1756_v27   ;;  %2285 = vrot.lane.b32.xlu1 %v6133_v30, %s4541_s14  ;;  %2276 = vrot.lane.b32.xlu0 %v6138_v31, %s4541_s14 }
 0x1b3   :  { %3411 = vst.msk [vmem:[%s9187_s1 + $0x500] ss:$8 sm:$0xf0] %vm3_vm0, %v7334_v15   ;;  %3413 = vst.msk [vmem:[%s9187_s1 + $0x540] ss:$8 sm:$0xf] %vm3_vm0, %v7329_v14  }
 0x1b4   :  { %v1783_v30 = vpop.permute.xlu1 %1782   ;;  %v1774_v31 = vpop.permute.xlu0 %1773   ;;  %3414 = vst.msk [vmem:[%s9187_s1 + $0x540] ss:$8 sm:$0xf0] %vm3_vm0, %v7329_v14   ;;  %v7379_v18 = vld [vmem:[%s9186_s0 + $0xb8] sm:$0xff]   ;;  %v7384_v19 = vld [vmem:[%s9186_s0 + $0xb0] sm:$0xff]   ;;  %v7429_v22 = vld [vmem:[%s9186_s0 + $0xc8] sm:$0xff]  }
 0x1b5   :  { %3973 = vst.msk [vmem:[%s9187_s1 + $0x444] ss:$8 sm:$0xf] %vm3_vm0, %v1783_v30   ;;  %3974 = vst.msk [vmem:[%s9187_s1 + $0x444] ss:$8 sm:$0xf0] %vm3_vm0, %v1783_v30  }
 0x1b6   :  { %3970 = vst.msk [vmem:[%s9187_s1 + $0x404] ss:$8 sm:$0xf] %vm3_vm0, %v1774_v31   ;;  %3971 = vst.msk [vmem:[%s9187_s1 + $0x404] ss:$8 sm:$0xf0] %vm3_vm0, %v1774_v31   ;;  %2303 = vrot.lane.b32.xlu1 %v6163_v34, %s4541_s14  ;;  %2294 = vrot.lane.b32.xlu0 %v6168_v35, %s4541_s14 }
 0x1b7   :  { %3416 = vst.msk [vmem:[%s9187_s1 + $0x580] ss:$8 sm:$0xf] %vm3_vm0, %v7384_v19   ;;  %3417 = vst.msk [vmem:[%s9187_s1 + $0x580] ss:$8 sm:$0xf0] %vm3_vm0, %v7384_v19  }
 0x1b8   :  { %v1801_v34 = vpop.permute.xlu1 %1800   ;;  %v1792_v35 = vpop.permute.xlu0 %1791   ;;  %3419 = vst.msk [vmem:[%s9187_s1 + $0x5c0] ss:$8 sm:$0xf] %vm3_vm0, %v7379_v18   ;;  %3420 = vst.msk [vmem:[%s9187_s1 + $0x5c0] ss:$8 sm:$0xf0] %vm3_vm0, %v7379_v18  }
 0x1b9   :  { %3979 = vst.msk [vmem:[%s9187_s1 + $0x4c4] ss:$8 sm:$0xf] %vm3_vm0, %v1801_v34   ;;  %3980 = vst.msk [vmem:[%s9187_s1 + $0x4c4] ss:$8 sm:$0xf0] %vm3_vm0, %v1801_v34  }
 0x1ba   :  { %3976 = vst.msk [vmem:[%s9187_s1 + $0x484] ss:$8 sm:$0xf] %vm3_vm0, %v1792_v35   ;;  %3977 = vst.msk [vmem:[%s9187_s1 + $0x484] ss:$8 sm:$0xf0] %vm3_vm0, %v1792_v35   ;;  %2321 = vrot.lane.b32.xlu1 %v6193_v38, %s4541_s14  ;;  %2312 = vrot.lane.b32.xlu0 %v6198_v39, %s4541_s14 }
 0x1bb   :  { %v7434_v23 = vld [vmem:[%s9186_s0 + $0xc0] sm:$0xff]   ;;  %3425 = vst.msk [vmem:[%s9187_s1 + $0x640] ss:$8 sm:$0xf] %vm3_vm0, %v7429_v22   ;;  %v7479_v26 = vld [vmem:[%s9186_s0 + $0xd8] sm:$0xff]   ;;  %v7484_v27 = vld [vmem:[%s9186_s0 + $0xd0] sm:$0xff]  }
 0x1bc   :  { %v1819_v38 = vpop.permute.xlu1 %1818   ;;  %v1810_v39 = vpop.permute.xlu0 %1809   ;;  %3422 = vst.msk [vmem:[%s9187_s1 + $0x600] ss:$8 sm:$0xf] %vm3_vm0, %v7434_v23   ;;  %3423 = vst.msk [vmem:[%s9187_s1 + $0x600] ss:$8 sm:$0xf0] %vm3_vm0, %v7434_v23  }
 0x1bd   :  { %3985 = vst.msk [vmem:[%s9187_s1 + $0x544] ss:$8 sm:$0xf] %vm3_vm0, %v1819_v38   ;;  %3986 = vst.msk [vmem:[%s9187_s1 + $0x544] ss:$8 sm:$0xf0] %vm3_vm0, %v1819_v38  }
 0x1be   :  { %3982 = vst.msk [vmem:[%s9187_s1 + $0x504] ss:$8 sm:$0xf] %vm3_vm0, %v1810_v39   ;;  %3983 = vst.msk [vmem:[%s9187_s1 + $0x504] ss:$8 sm:$0xf0] %vm3_vm0, %v1810_v39   ;;  %2339 = vrot.lane.b32.xlu1 %v6223_v42, %s4541_s14  ;;  %2330 = vrot.lane.b32.xlu0 %v6228_v43, %s4541_s14 }
 0x1bf   :  { %3426 = vst.msk [vmem:[%s9187_s1 + $0x640] ss:$8 sm:$0xf0] %vm3_vm0, %v7429_v22   ;;  %3428 = vst.msk [vmem:[%s9187_s1 + $0x680] ss:$8 sm:$0xf] %vm3_vm0, %v7484_v27  }
 0x1c0   :  { %v1837_v42 = vpop.permute.xlu1 %1836   ;;  %v1828_v43 = vpop.permute.xlu0 %1827   ;;  %3429 = vst.msk [vmem:[%s9187_s1 + $0x680] ss:$8 sm:$0xf0] %vm3_vm0, %v7484_v27   ;;  %3431 = vst.msk [vmem:[%s9187_s1 + $0x6c0] ss:$8 sm:$0xf] %vm3_vm0, %v7479_v26  }
 0x1c1   :  { %3991 = vst.msk [vmem:[%s9187_s1 + $0x5c4] ss:$8 sm:$0xf] %vm3_vm0, %v1837_v42   ;;  %3992 = vst.msk [vmem:[%s9187_s1 + $0x5c4] ss:$8 sm:$0xf0] %vm3_vm0, %v1837_v42  }
 0x1c2   :  { %3988 = vst.msk [vmem:[%s9187_s1 + $0x584] ss:$8 sm:$0xf] %vm3_vm0, %v1828_v43   ;;  %3989 = vst.msk [vmem:[%s9187_s1 + $0x584] ss:$8 sm:$0xf0] %vm3_vm0, %v1828_v43   ;;  %2357 = vrot.lane.b32.xlu1 %v6253_v56, %s4541_s14  ;;  %2348 = vrot.lane.b32.xlu0 %v6258_v57, %s4541_s14 }
 0x1c3   :  { %3432 = vst.msk [vmem:[%s9187_s1 + $0x6c0] ss:$8 sm:$0xf0] %vm3_vm0, %v7479_v26   ;;  %v7529_v30 = vld [vmem:[%s9186_s0 + $0xe8] sm:$0xff]   ;;  %v7534_v31 = vld [vmem:[%s9186_s0 + $0xe0] sm:$0xff]   ;;  %v7583_v42 = vld [vmem:[%s9186_s0 + $0xf8] sm:$0xff]  }
 0x1c4   :  { %v1855_v56 = vpop.permute.xlu1 %1854   ;;  %v1846_v57 = vpop.permute.xlu0 %1845   ;;  %v4501_v34 = vld [vmem:[%s9186_s0 + $0x68] sm:$0xff]   ;;  %v4502_v35 = vld [vmem:[%s9186_s0 + $0x60] sm:$0xff]   ;;  %3434 = vst.msk [vmem:[%s9187_s1 + $0x700] ss:$8 sm:$0xf] %vm3_vm0, %v7534_v31   ;;  %v7588_v43 = vld [vmem:[%s9186_s0 + $0xf0] sm:$0xff]  }
 0x1c5   :  { %3997 = vst.msk [vmem:[%s9187_s1 + $0x644] ss:$8 sm:$0xf] %vm3_vm0, %v1855_v56   ;;  %3998 = vst.msk [vmem:[%s9187_s1 + $0x644] ss:$8 sm:$0xf0] %vm3_vm0, %v1855_v56  }
 0x1c6   :  { %3994 = vst.msk [vmem:[%s9187_s1 + $0x604] ss:$8 sm:$0xf] %vm3_vm0, %v1846_v57   ;;  %3995 = vst.msk [vmem:[%s9187_s1 + $0x604] ss:$8 sm:$0xf0] %vm3_vm0, %v1846_v57   ;;  %2375 = vrot.lane.b32.xlu1 %v6283_v48, %s4541_s14  ;;  %2366 = vrot.lane.b32.xlu0 %v6288_v49, %s4541_s14 }
 0x1c7   :  { %3435 = vst.msk [vmem:[%s9187_s1 + $0x700] ss:$8 sm:$0xf0] %vm3_vm0, %v7534_v31   ;;  %3437 = vst.msk [vmem:[%s9187_s1 + $0x740] ss:$8 sm:$0xf] %vm3_vm0, %v7529_v30  }
 0x1c8   :  { %v1873_v48 = vpop.permute.xlu1 %1872   ;;  %v1864_v49 = vpop.permute.xlu0 %1863   ;;  %3438 = vst.msk [vmem:[%s9187_s1 + $0x740] ss:$8 sm:$0xf0] %vm3_vm0, %v7529_v30   ;;  %v4503_v56 = vld [vmem:[%s9186_s0 + $0x78] sm:$0xff]   ;;  %v4504_v57 = vld [vmem:[%s9186_s0 + $0x70] sm:$0xff]  }
 0x1c9   :  { %4003 = vst.msk [vmem:[%s9187_s1 + $0x6c4] ss:$8 sm:$0xf] %vm3_vm0, %v1873_v48   ;;  %4004 = vst.msk [vmem:[%s9187_s1 + $0x6c4] ss:$8 sm:$0xf0] %vm3_vm0, %v1873_v48  }
 0x1ca   :  { %4000 = vst.msk [vmem:[%s9187_s1 + $0x684] ss:$8 sm:$0xf] %vm3_vm0, %v1864_v49   ;;  %4001 = vst.msk [vmem:[%s9187_s1 + $0x684] ss:$8 sm:$0xf0] %vm3_vm0, %v1864_v49   ;;  %2393 = vrot.lane.b32.xlu1 %v6313_v1, %s4541_s14  ;;  %2384 = vrot.lane.b32.xlu0 %v6318_v3, %s4541_s14 }
 0x1cb   :  { %3440 = vst.msk [vmem:[%s9187_s1 + $0x780] ss:$8 sm:$0xf] %vm3_vm0, %v7588_v43   ;;  %3441 = vst.msk [vmem:[%s9187_s1 + $0x780] ss:$8 sm:$0xf0] %vm3_vm0, %v7588_v43  }
 0x1cc   :  { %v1891_v1 = vpop.permute.xlu1 %1890   ;;  %v1882_v3 = vpop.permute.xlu0 %1881   ;;  %3443 = vst.msk [vmem:[%s9187_s1 + $0x7c0] ss:$8 sm:$0xf] %vm3_vm0, %v7583_v42   ;;  %3444 = vst.msk [vmem:[%s9187_s1 + $0x7c0] ss:$8 sm:$0xf0] %vm3_vm0, %v7583_v42  }
 0x1cd   :  { %4009 = vst.msk [vmem:[%s9187_s1 + $0x744] ss:$8 sm:$0xf] %vm3_vm0, %v1891_v1   ;;  %4010 = vst.msk [vmem:[%s9187_s1 + $0x744] ss:$8 sm:$0xf0] %vm3_vm0, %v1891_v1  }
 0x1ce   :  { %4006 = vst.msk [vmem:[%s9187_s1 + $0x704] ss:$8 sm:$0xf] %vm3_vm0, %v1882_v3   ;;  %4007 = vst.msk [vmem:[%s9187_s1 + $0x704] ss:$8 sm:$0xf0] %vm3_vm0, %v1882_v3   ;;  %2411 = vrot.lane.b32.xlu1 %v6343_v8, %s4541_s14  ;;  %2402 = vrot.lane.b32.xlu0 %v6348_v9, %s4541_s14 }
 0x1cf   :  { %v7637_v1 = vld [vmem:[%s9186_s0 + $0x108] sm:$0xff]   ;;  %v7642_v3 = vld [vmem:[%s9186_s0 + $0x100] sm:$0xff]  }
 0x1d0   :  { %v1909_v8 = vpop.permute.xlu1 %1908   ;;  %v1900_v9 = vpop.permute.xlu0 %1899   ;;  %3446 = vst.msk [vmem:[%s9187_s1 + $0x800] ss:$8 sm:$0xf] %vm3_vm0, %v7642_v3   ;;  %3447 = vst.msk [vmem:[%s9187_s1 + $0x800] ss:$8 sm:$0xf0] %vm3_vm0, %v7642_v3  }
 0x1d1   :  { %4015 = vst.msk [vmem:[%s9187_s1 + $0x7c4] ss:$8 sm:$0xf] %vm3_vm0, %v1909_v8   ;;  %4016 = vst.msk [vmem:[%s9187_s1 + $0x7c4] ss:$8 sm:$0xf0] %vm3_vm0, %v1909_v8  }
 0x1d2   :  { %4012 = vst.msk [vmem:[%s9187_s1 + $0x784] ss:$8 sm:$0xf] %vm3_vm0, %v1900_v9   ;;  %4013 = vst.msk [vmem:[%s9187_s1 + $0x784] ss:$8 sm:$0xf0] %vm3_vm0, %v1900_v9   ;;  %2429 = vrot.lane.b32.xlu1 %v6373_v16, %s4541_s14  ;;  %2420 = vrot.lane.b32.xlu0 %v6378_v17, %s4541_s14 }
 0x1d3   :  { %v4505_v8 = vld [vmem:[%s9186_s0 + $0x88] sm:$0xff]   ;;  %v4506_v9 = vld [vmem:[%s9186_s0 + $0x80] sm:$0xff]   ;;  %3449 = vst.msk [vmem:[%s9187_s1 + $0x840] ss:$8 sm:$0xf] %vm3_vm0, %v7637_v1  }
 0x1d4   :  { %v1927_v16 = vpop.permute.xlu1 %1926   ;;  %v1918_v17 = vpop.permute.xlu0 %1917   ;;  %3450 = vst.msk [vmem:[%s9187_s1 + $0x840] ss:$8 sm:$0xf0] %vm3_vm0, %v7637_v1  }
 0x1d5   :  { %4021 = vst.msk [vmem:[%s9187_s1 + $0x844] ss:$8 sm:$0xf] %vm3_vm0, %v1927_v16   ;;  %4022 = vst.msk [vmem:[%s9187_s1 + $0x844] ss:$8 sm:$0xf0] %vm3_vm0, %v1927_v16  }
 0x1d6   :  { %4018 = vst.msk [vmem:[%s9187_s1 + $0x804] ss:$8 sm:$0xf] %vm3_vm0, %v1918_v17   ;;  %4019 = vst.msk [vmem:[%s9187_s1 + $0x804] ss:$8 sm:$0xf0] %vm3_vm0, %v1918_v17   ;;  %2447 = vrot.lane.b32.xlu1 %v6403_v24, %s4541_s14  ;;  %2438 = vrot.lane.b32.xlu0 %v6408_v25, %s4541_s14 }
 0x1d8   :  { %v1945_v24 = vpop.permute.xlu1 %1944   ;;  %v1936_v25 = vpop.permute.xlu0 %1935  }
 0x1d9   :  { %4027 = vst.msk [vmem:[%s9187_s1 + $0x8c4] ss:$8 sm:$0xf] %vm3_vm0, %v1945_v24   ;;  %4028 = vst.msk [vmem:[%s9187_s1 + $0x8c4] ss:$8 sm:$0xf0] %vm3_vm0, %v1945_v24  }
 0x1da   :  { %4024 = vst.msk [vmem:[%s9187_s1 + $0x884] ss:$8 sm:$0xf] %vm3_vm0, %v1936_v25   ;;  %4025 = vst.msk [vmem:[%s9187_s1 + $0x884] ss:$8 sm:$0xf0] %vm3_vm0, %v1936_v25   ;;  %2465 = vrot.lane.b32.xlu1 %v6433_v32, %s4541_s14  ;;  %2456 = vrot.lane.b32.xlu0 %v6438_v33, %s4541_s14 }
 0x1db   :  { %v7691_v24 = vld [vmem:[%s9186_s0 + $0x118] sm:$0xff]   ;;  %v7696_v25 = vld [vmem:[%s9186_s0 + $0x110] sm:$0xff]  }
 0x1dc   :  { %v1963_v32 = vpop.permute.xlu1 %1962   ;;  %v1954_v33 = vpop.permute.xlu0 %1953   ;;  %3452 = vst.msk [vmem:[%s9187_s1 + $0x880] ss:$8 sm:$0xf] %vm3_vm0, %v7696_v25   ;;  %3453 = vst.msk [vmem:[%s9187_s1 + $0x880] ss:$8 sm:$0xf0] %vm3_vm0, %v7696_v25  }
 0x1dd   :  { %4033 = vst.msk [vmem:[%s9187_s1 + $0x944] ss:$8 sm:$0xf] %vm3_vm0, %v1963_v32   ;;  %4034 = vst.msk [vmem:[%s9187_s1 + $0x944] ss:$8 sm:$0xf0] %vm3_vm0, %v1963_v32  }
 0x1de   :  { %4030 = vst.msk [vmem:[%s9187_s1 + $0x904] ss:$8 sm:$0xf] %vm3_vm0, %v1954_v33   ;;  %4031 = vst.msk [vmem:[%s9187_s1 + $0x904] ss:$8 sm:$0xf0] %vm3_vm0, %v1954_v33   ;;  %2483 = vrot.lane.b32.xlu1 %v6463_v40, %s4541_s14  ;;  %2474 = vrot.lane.b32.xlu0 %v6468_v41, %s4541_s14 }
 0x1df   :  { %v4507_v32 = vld [vmem:[%s9186_s0 + $0x98] sm:$0xff]   ;;  %v4508_v33 = vld [vmem:[%s9186_s0 + $0x90] sm:$0xff]   ;;  %3455 = vst.msk [vmem:[%s9187_s1 + $0x8c0] ss:$8 sm:$0xf] %vm3_vm0, %v7691_v24  }
 0x1e0   :  { %v1981_v40 = vpop.permute.xlu1 %1980   ;;  %v1972_v41 = vpop.permute.xlu0 %1971   ;;  %3456 = vst.msk [vmem:[%s9187_s1 + $0x8c0] ss:$8 sm:$0xf0] %vm3_vm0, %v7691_v24  }
 0x1e1   :  { %4039 = vst.msk [vmem:[%s9187_s1 + $0x9c4] ss:$8 sm:$0xf] %vm3_vm0, %v1981_v40   ;;  %4040 = vst.msk [vmem:[%s9187_s1 + $0x9c4] ss:$8 sm:$0xf0] %vm3_vm0, %v1981_v40  }
 0x1e2   :  { %4036 = vst.msk [vmem:[%s9187_s1 + $0x984] ss:$8 sm:$0xf] %vm3_vm0, %v1972_v41   ;;  %4037 = vst.msk [vmem:[%s9187_s1 + $0x984] ss:$8 sm:$0xf0] %vm3_vm0, %v1972_v41   ;;  %2500 = vrot.lane.b32.xlu1 %v5773_v46, %s4542_s26  ;;  %2491 = vrot.lane.b32.xlu0 %v5778_v47, %s4542_s26 }
 0x1e4   :  { %v1999_v46 = vpop.permute.xlu1 %1998   ;;  %v1990_v47 = vpop.permute.xlu0 %1989  }
 0x1e5   :  { %4045 = vst.msk [vmem:[%s9187_s1 + $0xa44] ss:$8 sm:$0xf] %vm3_vm0, %v1999_v46   ;;  %4046 = vst.msk [vmem:[%s9187_s1 + $0xa44] ss:$8 sm:$0xf0] %vm3_vm0, %v1999_v46  }
 0x1e6   :  { %4042 = vst.msk [vmem:[%s9187_s1 + $0xa04] ss:$8 sm:$0xf] %vm3_vm0, %v1990_v47   ;;  %4043 = vst.msk [vmem:[%s9187_s1 + $0xa04] ss:$8 sm:$0xf0] %vm3_vm0, %v1990_v47   ;;  %2518 = vrot.lane.b32.xlu1 %v5803_v58, %s4542_s26  ;;  %2509 = vrot.lane.b32.xlu0 %v5808_v59, %s4542_s26 }
 0x1e7   :  { %v7745_v46 = vld [vmem:[%s9186_s0 + $0x128] sm:$0xff]   ;;  %v7750_v47 = vld [vmem:[%s9186_s0 + $0x120] sm:$0xff]  }
 0x1e8   :  { %v2017_v58 = vpop.permute.xlu1 %2016   ;;  %v2008_v59 = vpop.permute.xlu0 %2007   ;;  %3458 = vst.msk [vmem:[%s9187_s1 + $0x900] ss:$8 sm:$0xf] %vm3_vm0, %v7750_v47   ;;  %3459 = vst.msk [vmem:[%s9187_s1 + $0x900] ss:$8 sm:$0xf0] %vm3_vm0, %v7750_v47  }
 0x1e9   :  { %4051 = vst.msk [vmem:[%s9187_s1 + $0xac4] ss:$8 sm:$0xf] %vm3_vm0, %v2017_v58   ;;  %4052 = vst.msk [vmem:[%s9187_s1 + $0xac4] ss:$8 sm:$0xf0] %vm3_vm0, %v2017_v58  }
 0x1ea   :  { %4048 = vst.msk [vmem:[%s9187_s1 + $0xa84] ss:$8 sm:$0xf] %vm3_vm0, %v2008_v59   ;;  %4049 = vst.msk [vmem:[%s9187_s1 + $0xa84] ss:$8 sm:$0xf0] %vm3_vm0, %v2008_v59   ;;  %2536 = vrot.lane.b32.xlu1 %v5833_v62, %s4542_s26  ;;  %2527 = vrot.lane.b32.xlu0 %v5838_v63, %s4542_s26 }
 0x1eb   :  { %v4509_v58 = vld [vmem:[%s9186_s0 + $0xa8] sm:$0xff]   ;;  %v4510_v59 = vld [vmem:[%s9186_s0 + $0xa0] sm:$0xff]   ;;  %3461 = vst.msk [vmem:[%s9187_s1 + $0x940] ss:$8 sm:$0xf] %vm3_vm0, %v7745_v46  }
 0x1ec   :  { %v2035_v62 = vpop.permute.xlu1 %2034   ;;  %v2026_v63 = vpop.permute.xlu0 %2025   ;;  %3462 = vst.msk [vmem:[%s9187_s1 + $0x940] ss:$8 sm:$0xf0] %vm3_vm0, %v7745_v46  }
 0x1ed   :  { %4057 = vst.msk [vmem:[%s9187_s1 + $0xb44] ss:$8 sm:$0xf] %vm3_vm0, %v2035_v62   ;;  %4058 = vst.msk [vmem:[%s9187_s1 + $0xb44] ss:$8 sm:$0xf0] %vm3_vm0, %v2035_v62  }
 0x1ee   :  { %4054 = vst.msk [vmem:[%s9187_s1 + $0xb04] ss:$8 sm:$0xf] %vm3_vm0, %v2026_v63   ;;  %4055 = vst.msk [vmem:[%s9187_s1 + $0xb04] ss:$8 sm:$0xf0] %vm3_vm0, %v2026_v63   ;;  %2554 = vrot.lane.b32.xlu1 %v5863_v50, %s4542_s26  ;;  %2545 = vrot.lane.b32.xlu0 %v5868_v51, %s4542_s26 }
 0x1f0   :  { %v2053_v50 = vpop.permute.xlu1 %2052   ;;  %v2044_v51 = vpop.permute.xlu0 %2043  }
 0x1f1   :  { %4063 = vst.msk [vmem:[%s9187_s1 + $0xbc4] ss:$8 sm:$0xf] %vm3_vm0, %v2053_v50   ;;  %4064 = vst.msk [vmem:[%s9187_s1 + $0xbc4] ss:$8 sm:$0xf0] %vm3_vm0, %v2053_v50  }
 0x1f2   :  { %4060 = vst.msk [vmem:[%s9187_s1 + $0xb84] ss:$8 sm:$0xf] %vm3_vm0, %v2044_v51   ;;  %4061 = vst.msk [vmem:[%s9187_s1 + $0xb84] ss:$8 sm:$0xf0] %vm3_vm0, %v2044_v51   ;;  %2572 = vrot.lane.b32.xlu1 %v5893_v54, %s4542_s26  ;;  %2563 = vrot.lane.b32.xlu0 %v5898_v55, %s4542_s26 }
 0x1f3   :  { %v7799_v50 = vld [vmem:[%s9186_s0 + $0x138] sm:$0xff]   ;;  %v7804_v51 = vld [vmem:[%s9186_s0 + $0x130] sm:$0xff]  }
 0x1f4   :  { %v2070_v54 = vpop.permute.xlu1 %2069   ;;  %v2061_v55 = vpop.permute.xlu0 %2060   ;;  %3464 = vst.msk [vmem:[%s9187_s1 + $0x980] ss:$8 sm:$0xf] %vm3_vm0, %v7804_v51   ;;  %3465 = vst.msk [vmem:[%s9187_s1 + $0x980] ss:$8 sm:$0xf0] %vm3_vm0, %v7804_v51  }
 0x1f5   :  { %4068 = vst.msk [vmem:[%s9187_s1 + $0x45] ss:$8 sm:$0xf] %vm3_vm0, %v2070_v54   ;;  %4069 = vst.msk [vmem:[%s9187_s1 + $0x45] ss:$8 sm:$0xf0] %vm3_vm0, %v2070_v54  }
 0x1f6   :  { %4065 = vst.msk [vmem:[%s9187_s1 + $0x5] ss:$8 sm:$0xf] %vm3_vm0, %v2061_v55   ;;  %4066 = vst.msk [vmem:[%s9187_s1 + $0x5] ss:$8 sm:$0xf0] %vm3_vm0, %v2061_v55   ;;  %2590 = vrot.lane.b32.xlu1 %v5923_v0, %s4542_s26  ;;  %2581 = vrot.lane.b32.xlu0 %v5928_v2, %s4542_s26 }
 0x1f7   :  { %v4511_v54 = vld [vmem:[%s9186_s0 + $0xb8] sm:$0xff]   ;;  %v4512_v55 = vld [vmem:[%s9186_s0 + $0xb0] sm:$0xff]   ;;  %3467 = vst.msk [vmem:[%s9187_s1 + $0x9c0] ss:$8 sm:$0xf] %vm3_vm0, %v7799_v50  }
 0x1f8   :  { %v2088_v0 = vpop.permute.xlu1 %2087   ;;  %v2079_v2 = vpop.permute.xlu0 %2078   ;;  %3468 = vst.msk [vmem:[%s9187_s1 + $0x9c0] ss:$8 sm:$0xf0] %vm3_vm0, %v7799_v50  }
 0x1f9   :  { %4074 = vst.msk [vmem:[%s9187_s1 + $0xc5] ss:$8 sm:$0xf] %vm3_vm0, %v2088_v0   ;;  %4075 = vst.msk [vmem:[%s9187_s1 + $0xc5] ss:$8 sm:$0xf0] %vm3_vm0, %v2088_v0  }
 0x1fa   :  { %4071 = vst.msk [vmem:[%s9187_s1 + $0x85] ss:$8 sm:$0xf] %vm3_vm0, %v2079_v2   ;;  %4072 = vst.msk [vmem:[%s9187_s1 + $0x85] ss:$8 sm:$0xf0] %vm3_vm0, %v2079_v2   ;;  %2608 = vrot.lane.b32.xlu1 %v4501_v34, %s4542_s26  ;;  %2599 = vrot.lane.b32.xlu0 %v4502_v35, %s4542_s26 }
 0x1fb   :  { %v7853_v34 = vld [vmem:[%s9186_s0 + $0x148] sm:$0xff]   ;;  %v7858_v35 = vld [vmem:[%s9186_s0 + $0x140] sm:$0xff]  }
 0x1fc   :  { %v2106_v38 = vpop.permute.xlu1 %2105   ;;  %v2097_v39 = vpop.permute.xlu0 %2096   ;;  %3470 = vst.msk [vmem:[%s9187_s1 + $0xa00] ss:$8 sm:$0xf] %vm3_vm0, %v7858_v35   ;;  %3471 = vst.msk [vmem:[%s9187_s1 + $0xa00] ss:$8 sm:$0xf0] %vm3_vm0, %v7858_v35  }
 0x1fd   :  { %4080 = vst.msk [vmem:[%s9187_s1 + $0x145] ss:$8 sm:$0xf] %vm3_vm0, %v2106_v38   ;;  %4081 = vst.msk [vmem:[%s9187_s1 + $0x145] ss:$8 sm:$0xf0] %vm3_vm0, %v2106_v38  }
 0x1fe   :  { %4077 = vst.msk [vmem:[%s9187_s1 + $0x105] ss:$8 sm:$0xf] %vm3_vm0, %v2097_v39   ;;  %4078 = vst.msk [vmem:[%s9187_s1 + $0x105] ss:$8 sm:$0xf0] %vm3_vm0, %v2097_v39   ;;  %2626 = vrot.lane.b32.xlu1 %v4503_v56, %s4542_s26  ;;  %2617 = vrot.lane.b32.xlu0 %v4504_v57, %s4542_s26 }
 0x1ff   :  { %v4513_v38 = vld [vmem:[%s9186_s0 + $0xc8] sm:$0xff]   ;;  %v4514_v39 = vld [vmem:[%s9186_s0 + $0xc0] sm:$0xff]   ;;  %3473 = vst.msk [vmem:[%s9187_s1 + $0xa40] ss:$8 sm:$0xf] %vm3_vm0, %v7853_v34  }
 0x200   :  { %v2124_v48 = vpop.permute.xlu1 %2123   ;;  %v2115_v49 = vpop.permute.xlu0 %2114   ;;  %3474 = vst.msk [vmem:[%s9187_s1 + $0xa40] ss:$8 sm:$0xf0] %vm3_vm0, %v7853_v34  }
 0x201   :  { %4086 = vst.msk [vmem:[%s9187_s1 + $0x1c5] ss:$8 sm:$0xf] %vm3_vm0, %v2124_v48   ;;  %4087 = vst.msk [vmem:[%s9187_s1 + $0x1c5] ss:$8 sm:$0xf0] %vm3_vm0, %v2124_v48  }
 0x202   :  { %4083 = vst.msk [vmem:[%s9187_s1 + $0x185] ss:$8 sm:$0xf] %vm3_vm0, %v2115_v49   ;;  %4084 = vst.msk [vmem:[%s9187_s1 + $0x185] ss:$8 sm:$0xf0] %vm3_vm0, %v2115_v49   ;;  %2644 = vrot.lane.b32.xlu1 %v4505_v8, %s4542_s26  ;;  %2635 = vrot.lane.b32.xlu0 %v4506_v9, %s4542_s26 }
 0x203   :  { %v7907_v48 = vld [vmem:[%s9186_s0 + $0x158] sm:$0xff]   ;;  %v7912_v49 = vld [vmem:[%s9186_s0 + $0x150] sm:$0xff]  }
 0x204   :  { %v2142_v16 = vpop.permute.xlu1 %2141   ;;  %v2133_v17 = vpop.permute.xlu0 %2132   ;;  %v4515_v8 = vld [vmem:[%s9186_s0 + $0xd8] sm:$0xff]   ;;  %v4516_v9 = vld [vmem:[%s9186_s0 + $0xd0] sm:$0xff]   ;;  %3476 = vst.msk [vmem:[%s9187_s1 + $0xa80] ss:$8 sm:$0xf] %vm3_vm0, %v7912_v49  }
 0x205   :  { %4092 = vst.msk [vmem:[%s9187_s1 + $0x245] ss:$8 sm:$0xf] %vm3_vm0, %v2142_v16   ;;  %4093 = vst.msk [vmem:[%s9187_s1 + $0x245] ss:$8 sm:$0xf0] %vm3_vm0, %v2142_v16  }
 0x206   :  { %4089 = vst.msk [vmem:[%s9187_s1 + $0x205] ss:$8 sm:$0xf] %vm3_vm0, %v2133_v17   ;;  %4090 = vst.msk [vmem:[%s9187_s1 + $0x205] ss:$8 sm:$0xf0] %vm3_vm0, %v2133_v17   ;;  %2662 = vrot.lane.b32.xlu1 %v4507_v32, %s4542_s26  ;;  %2653 = vrot.lane.b32.xlu0 %v4508_v33, %s4542_s26 }
 0x207   :  { %3477 = vst.msk [vmem:[%s9187_s1 + $0xa80] ss:$8 sm:$0xf0] %vm3_vm0, %v7912_v49   ;;  %3479 = vst.msk [vmem:[%s9187_s1 + $0xac0] ss:$8 sm:$0xf] %vm3_vm0, %v7907_v48  }
 0x208   :  { %v2160_v40 = vpop.permute.xlu1 %2159   ;;  %v2151_v41 = vpop.permute.xlu0 %2150   ;;  %3480 = vst.msk [vmem:[%s9187_s1 + $0xac0] ss:$8 sm:$0xf0] %vm3_vm0, %v7907_v48   ;;  %v7961_v32 = vld [vmem:[%s9186_s0 + $0x168] sm:$0xff]   ;;  %v7966_v33 = vld [vmem:[%s9186_s0 + $0x160] sm:$0xff]  }
 0x209   :  { %4098 = vst.msk [vmem:[%s9187_s1 + $0x2c5] ss:$8 sm:$0xf] %vm3_vm0, %v2160_v40   ;;  %4099 = vst.msk [vmem:[%s9187_s1 + $0x2c5] ss:$8 sm:$0xf0] %vm3_vm0, %v2160_v40  }
 0x20a   :  { %4095 = vst.msk [vmem:[%s9187_s1 + $0x285] ss:$8 sm:$0xf] %vm3_vm0, %v2151_v41   ;;  %4096 = vst.msk [vmem:[%s9187_s1 + $0x285] ss:$8 sm:$0xf0] %vm3_vm0, %v2151_v41   ;;  %2680 = vrot.lane.b32.xlu1 %v4509_v58, %s4542_s26  ;;  %2671 = vrot.lane.b32.xlu0 %v4510_v59, %s4542_s26 }
 0x20b   :  { %v4517_v40 = vld [vmem:[%s9186_s0 + $0xe8] sm:$0xff]   ;;  %v4518_v41 = vld [vmem:[%s9186_s0 + $0xe0] sm:$0xff]   ;;  %3482 = vst.msk [vmem:[%s9187_s1 + $0xb00] ss:$8 sm:$0xf] %vm3_vm0, %v7966_v33  }
 0x20c   :  { %v2178_v62 = vpop.permute.xlu1 %2177   ;;  %v2169_v63 = vpop.permute.xlu0 %2168   ;;  %3483 = vst.msk [vmem:[%s9187_s1 + $0xb00] ss:$8 sm:$0xf0] %vm3_vm0, %v7966_v33   ;;  %3485 = vst.msk [vmem:[%s9187_s1 + $0xb40] ss:$8 sm:$0xf] %vm3_vm0, %v7961_v32  }
 0x20d   :  { %4104 = vst.msk [vmem:[%s9187_s1 + $0x345] ss:$8 sm:$0xf] %vm3_vm0, %v2178_v62   ;;  %4105 = vst.msk [vmem:[%s9187_s1 + $0x345] ss:$8 sm:$0xf0] %vm3_vm0, %v2178_v62  }
 0x20e   :  { %4101 = vst.msk [vmem:[%s9187_s1 + $0x305] ss:$8 sm:$0xf] %vm3_vm0, %v2169_v63   ;;  %4102 = vst.msk [vmem:[%s9187_s1 + $0x305] ss:$8 sm:$0xf0] %vm3_vm0, %v2169_v63   ;;  %2698 = vrot.lane.b32.xlu1 %v4511_v54, %s4542_s26  ;;  %2689 = vrot.lane.b32.xlu0 %v4512_v55, %s4542_s26 }
 0x20f   :  { %3486 = vst.msk [vmem:[%s9187_s1 + $0xb40] ss:$8 sm:$0xf0] %vm3_vm0, %v7961_v32   ;;  %v8015_v62 = vld [vmem:[%s9186_s0 + $0x178] sm:$0xff]   ;;  %v8020_v63 = vld [vmem:[%s9186_s0 + $0x170] sm:$0xff]  }
 0x210   :  { %v2196_v0 = vpop.permute.xlu1 %2195   ;;  %v2187_v2 = vpop.permute.xlu0 %2186   ;;  %v4519_v54 = vld [vmem:[%s9186_s0 + $0xf8] sm:$0xff]   ;;  %v4520_v55 = vld [vmem:[%s9186_s0 + $0xf0] sm:$0xff]   ;;  %3488 = vst.msk [vmem:[%s9187_s1 + $0xb80] ss:$8 sm:$0xf] %vm3_vm0, %v8020_v63  }
 0x211   :  { %4110 = vst.msk [vmem:[%s9187_s1 + $0x3c5] ss:$8 sm:$0xf] %vm3_vm0, %v2196_v0   ;;  %4111 = vst.msk [vmem:[%s9187_s1 + $0x3c5] ss:$8 sm:$0xf0] %vm3_vm0, %v2196_v0  }
 0x212   :  { %4107 = vst.msk [vmem:[%s9187_s1 + $0x385] ss:$8 sm:$0xf] %vm3_vm0, %v2187_v2   ;;  %4108 = vst.msk [vmem:[%s9187_s1 + $0x385] ss:$8 sm:$0xf0] %vm3_vm0, %v2187_v2   ;;  %2716 = vrot.lane.b32.xlu1 %v4513_v38, %s4542_s26  ;;  %2707 = vrot.lane.b32.xlu0 %v4514_v39, %s4542_s26 }
 0x213   :  { %3489 = vst.msk [vmem:[%s9187_s1 + $0xb80] ss:$8 sm:$0xf0] %vm3_vm0, %v8020_v63   ;;  %3491 = vst.msk [vmem:[%s9187_s1 + $0xbc0] ss:$8 sm:$0xf] %vm3_vm0, %v8015_v62  }
 0x214   :  { %v2214_v56 = vpop.permute.xlu1 %2213   ;;  %v2205_v57 = vpop.permute.xlu0 %2204   ;;  %3492 = vst.msk [vmem:[%s9187_s1 + $0xbc0] ss:$8 sm:$0xf0] %vm3_vm0, %v8015_v62   ;;  %v4521_v38 = vld [vmem:[%s9186_s0 + $0x108] sm:$0xff]   ;;  %v4522_v39 = vld [vmem:[%s9186_s0 + $0x100] sm:$0xff]  }
 0x215   :  { %4116 = vst.msk [vmem:[%s9187_s1 + $0x445] ss:$8 sm:$0xf] %vm3_vm0, %v2214_v56   ;;  %4117 = vst.msk [vmem:[%s9187_s1 + $0x445] ss:$8 sm:$0xf0] %vm3_vm0, %v2214_v56  }
 0x216   :  { %4113 = vst.msk [vmem:[%s9187_s1 + $0x405] ss:$8 sm:$0xf] %vm3_vm0, %v2205_v57   ;;  %4114 = vst.msk [vmem:[%s9187_s1 + $0x405] ss:$8 sm:$0xf0] %vm3_vm0, %v2205_v57   ;;  %2734 = vrot.lane.b32.xlu1 %v4515_v8, %s4542_s26  ;;  %2725 = vrot.lane.b32.xlu0 %v4516_v9, %s4542_s26 }
 0x217   :  { %v4523_v8 = vld [vmem:[%s9186_s0 + $0x118] sm:$0xff]   ;;  %v4524_v9 = vld [vmem:[%s9186_s0 + $0x110] sm:$0xff]  }
 0x218   :  { %v2232_v16 = vpop.permute.xlu1 %2231   ;;  %v2223_v17 = vpop.permute.xlu0 %2222  }
 0x219   :  { %4122 = vst.msk [vmem:[%s9187_s1 + $0x4c5] ss:$8 sm:$0xf] %vm3_vm0, %v2232_v16   ;;  %4123 = vst.msk [vmem:[%s9187_s1 + $0x4c5] ss:$8 sm:$0xf0] %vm3_vm0, %v2232_v16  }
 0x21a   :  { %4119 = vst.msk [vmem:[%s9187_s1 + $0x485] ss:$8 sm:$0xf] %vm3_vm0, %v2223_v17   ;;  %4120 = vst.msk [vmem:[%s9187_s1 + $0x485] ss:$8 sm:$0xf0] %vm3_vm0, %v2223_v17   ;;  %2752 = vrot.lane.b32.xlu1 %v4517_v40, %s4542_s26  ;;  %2743 = vrot.lane.b32.xlu0 %v4518_v41, %s4542_s26 }
 0x21b   :  { %v4525_v40 = vld [vmem:[%s9186_s0 + $0x128] sm:$0xff]   ;;  %v4526_v41 = vld [vmem:[%s9186_s0 + $0x120] sm:$0xff]  }
 0x21c   :  { %v2250_v58 = vpop.permute.xlu1 %2249   ;;  %v2241_v59 = vpop.permute.xlu0 %2240  }
 0x21d   :  { %4128 = vst.msk [vmem:[%s9187_s1 + $0x545] ss:$8 sm:$0xf] %vm3_vm0, %v2250_v58   ;;  %4129 = vst.msk [vmem:[%s9187_s1 + $0x545] ss:$8 sm:$0xf0] %vm3_vm0, %v2250_v58  }
 0x21e   :  { %4125 = vst.msk [vmem:[%s9187_s1 + $0x505] ss:$8 sm:$0xf] %vm3_vm0, %v2241_v59   ;;  %4126 = vst.msk [vmem:[%s9187_s1 + $0x505] ss:$8 sm:$0xf0] %vm3_vm0, %v2241_v59   ;;  %2770 = vrot.lane.b32.xlu1 %v4519_v54, %s4542_s26  ;;  %2761 = vrot.lane.b32.xlu0 %v4520_v55, %s4542_s26 }
 0x21f   :  { %v4527_v54 = vld [vmem:[%s9186_s0 + $0x138] sm:$0xff]   ;;  %v4528_v55 = vld [vmem:[%s9186_s0 + $0x130] sm:$0xff]  }
 0x220   :  { %v2268_v0 = vpop.permute.xlu1 %2267   ;;  %v2259_v2 = vpop.permute.xlu0 %2258  }
 0x221   :  { %4134 = vst.msk [vmem:[%s9187_s1 + $0x5c5] ss:$8 sm:$0xf] %vm3_vm0, %v2268_v0   ;;  %4135 = vst.msk [vmem:[%s9187_s1 + $0x5c5] ss:$8 sm:$0xf0] %vm3_vm0, %v2268_v0  }
 0x222   :  { %4131 = vst.msk [vmem:[%s9187_s1 + $0x585] ss:$8 sm:$0xf] %vm3_vm0, %v2259_v2   ;;  %4132 = vst.msk [vmem:[%s9187_s1 + $0x585] ss:$8 sm:$0xf0] %vm3_vm0, %v2259_v2   ;;  %2788 = vrot.lane.b32.xlu1 %v4521_v38, %s4542_s26  ;;  %2779 = vrot.lane.b32.xlu0 %v4522_v39, %s4542_s26 }
 0x223   :  { %v4529_v38 = vld [vmem:[%s9186_s0 + $0x148] sm:$0xff]   ;;  %v4530_v39 = vld [vmem:[%s9186_s0 + $0x140] sm:$0xff]  }
 0x224   :  { %v2286_v56 = vpop.permute.xlu1 %2285   ;;  %v2277_v57 = vpop.permute.xlu0 %2276  }
 0x225   :  { %4140 = vst.msk [vmem:[%s9187_s1 + $0x645] ss:$8 sm:$0xf] %vm3_vm0, %v2286_v56   ;;  %4141 = vst.msk [vmem:[%s9187_s1 + $0x645] ss:$8 sm:$0xf0] %vm3_vm0, %v2286_v56  }
 0x226   :  { %4137 = vst.msk [vmem:[%s9187_s1 + $0x605] ss:$8 sm:$0xf] %vm3_vm0, %v2277_v57   ;;  %4138 = vst.msk [vmem:[%s9187_s1 + $0x605] ss:$8 sm:$0xf0] %vm3_vm0, %v2277_v57   ;;  %2806 = vrot.lane.b32.xlu1 %v4523_v8, %s4542_s26  ;;  %2797 = vrot.lane.b32.xlu0 %v4524_v9, %s4542_s26 }
 0x227   :  { %v4531_v8 = vld [vmem:[%s9186_s0 + $0x158] sm:$0xff]   ;;  %v4532_v9 = vld [vmem:[%s9186_s0 + $0x150] sm:$0xff]  }
 0x228   :  { %v2304_v16 = vpop.permute.xlu1 %2303   ;;  %v2295_v17 = vpop.permute.xlu0 %2294  }
 0x229   :  { %4146 = vst.msk [vmem:[%s9187_s1 + $0x6c5] ss:$8 sm:$0xf] %vm3_vm0, %v2304_v16   ;;  %4147 = vst.msk [vmem:[%s9187_s1 + $0x6c5] ss:$8 sm:$0xf0] %vm3_vm0, %v2304_v16  }
 0x22a   :  { %4143 = vst.msk [vmem:[%s9187_s1 + $0x685] ss:$8 sm:$0xf] %vm3_vm0, %v2295_v17   ;;  %4144 = vst.msk [vmem:[%s9187_s1 + $0x685] ss:$8 sm:$0xf0] %vm3_vm0, %v2295_v17   ;;  %2824 = vrot.lane.b32.xlu1 %v4525_v40, %s4542_s26  ;;  %2815 = vrot.lane.b32.xlu0 %v4526_v41, %s4542_s26 }
 0x22b   :  { %v4533_v40 = vld [vmem:[%s9186_s0 + $0x168] sm:$0xff]   ;;  %v4534_v41 = vld [vmem:[%s9186_s0 + $0x160] sm:$0xff]  }
 0x22c   :  { %v2322_v58 = vpop.permute.xlu1 %2321   ;;  %v2313_v59 = vpop.permute.xlu0 %2312  }
 0x22d   :  { %4152 = vst.msk [vmem:[%s9187_s1 + $0x745] ss:$8 sm:$0xf] %vm3_vm0, %v2322_v58   ;;  %4153 = vst.msk [vmem:[%s9187_s1 + $0x745] ss:$8 sm:$0xf0] %vm3_vm0, %v2322_v58  }
 0x22e   :  { %4149 = vst.msk [vmem:[%s9187_s1 + $0x705] ss:$8 sm:$0xf] %vm3_vm0, %v2313_v59   ;;  %4150 = vst.msk [vmem:[%s9187_s1 + $0x705] ss:$8 sm:$0xf0] %vm3_vm0, %v2313_v59   ;;  %2842 = vrot.lane.b32.xlu1 %v4527_v54, %s4542_s26  ;;  %2833 = vrot.lane.b32.xlu0 %v4528_v55, %s4542_s26 }
 0x22f   :  { %v4535_v54 = vld [vmem:[%s9186_s0 + $0x178] sm:$0xff]   ;;  %v4536_v55 = vld [vmem:[%s9186_s0 + $0x170] sm:$0xff]  }
 0x230   :  { %v2340_v0 = vpop.permute.xlu1 %2339   ;;  %v2331_v2 = vpop.permute.xlu0 %2330  }
 0x231   :  { %4158 = vst.msk [vmem:[%s9187_s1 + $0x7c5] ss:$8 sm:$0xf] %vm3_vm0, %v2340_v0   ;;  %4159 = vst.msk [vmem:[%s9187_s1 + $0x7c5] ss:$8 sm:$0xf0] %vm3_vm0, %v2340_v0  }
 0x232   :  { %4155 = vst.msk [vmem:[%s9187_s1 + $0x785] ss:$8 sm:$0xf] %vm3_vm0, %v2331_v2   ;;  %4156 = vst.msk [vmem:[%s9187_s1 + $0x785] ss:$8 sm:$0xf0] %vm3_vm0, %v2331_v2   ;;  %2860 = vrot.lane.b32.xlu1 %v4529_v38, %s4542_s26  ;;  %2851 = vrot.lane.b32.xlu0 %v4530_v39, %s4542_s26 }
 0x234   :  { %v2358_v56 = vpop.permute.xlu1 %2357   ;;  %v2349_v57 = vpop.permute.xlu0 %2348  }
 0x235   :  { %4164 = vst.msk [vmem:[%s9187_s1 + $0x845] ss:$8 sm:$0xf] %vm3_vm0, %v2358_v56   ;;  %4165 = vst.msk [vmem:[%s9187_s1 + $0x845] ss:$8 sm:$0xf0] %vm3_vm0, %v2358_v56  }
 0x236   :  { %4161 = vst.msk [vmem:[%s9187_s1 + $0x805] ss:$8 sm:$0xf] %vm3_vm0, %v2349_v57   ;;  %4162 = vst.msk [vmem:[%s9187_s1 + $0x805] ss:$8 sm:$0xf0] %vm3_vm0, %v2349_v57   ;;  %2878 = vrot.lane.b32.xlu1 %v4531_v8, %s4542_s26  ;;  %2869 = vrot.lane.b32.xlu0 %v4532_v9, %s4542_s26 }
 0x238   :  { %v2376_v16 = vpop.permute.xlu1 %2375   ;;  %v2367_v17 = vpop.permute.xlu0 %2366  }
 0x239   :  { %4170 = vst.msk [vmem:[%s9187_s1 + $0x8c5] ss:$8 sm:$0xf] %vm3_vm0, %v2376_v16   ;;  %4171 = vst.msk [vmem:[%s9187_s1 + $0x8c5] ss:$8 sm:$0xf0] %vm3_vm0, %v2376_v16  }
 0x23a   :  { %4167 = vst.msk [vmem:[%s9187_s1 + $0x885] ss:$8 sm:$0xf] %vm3_vm0, %v2367_v17   ;;  %4168 = vst.msk [vmem:[%s9187_s1 + $0x885] ss:$8 sm:$0xf0] %vm3_vm0, %v2367_v17   ;;  %2896 = vrot.lane.b32.xlu1 %v4533_v40, %s4542_s26  ;;  %2887 = vrot.lane.b32.xlu0 %v4534_v41, %s4542_s26 }
 0x23c   :  { %v2394_v58 = vpop.permute.xlu1 %2393   ;;  %v2385_v59 = vpop.permute.xlu0 %2384  }
 0x23d   :  { %4176 = vst.msk [vmem:[%s9187_s1 + $0x945] ss:$8 sm:$0xf] %vm3_vm0, %v2394_v58   ;;  %4177 = vst.msk [vmem:[%s9187_s1 + $0x945] ss:$8 sm:$0xf0] %vm3_vm0, %v2394_v58  }
 0x23e   :  { %4173 = vst.msk [vmem:[%s9187_s1 + $0x905] ss:$8 sm:$0xf] %vm3_vm0, %v2385_v59   ;;  %4174 = vst.msk [vmem:[%s9187_s1 + $0x905] ss:$8 sm:$0xf0] %vm3_vm0, %v2385_v59   ;;  %2914 = vrot.lane.b32.xlu1 %v4535_v54, %s4542_s26  ;;  %2905 = vrot.lane.b32.xlu0 %v4536_v55, %s4542_s26 }
 0x240   :  { %v2412_v0 = vpop.permute.xlu1 %2411   ;;  %v2403_v2 = vpop.permute.xlu0 %2402  }
 0x241   :  { %4182 = vst.msk [vmem:[%s9187_s1 + $0x9c5] ss:$8 sm:$0xf] %vm3_vm0, %v2412_v0   ;;  %4183 = vst.msk [vmem:[%s9187_s1 + $0x9c5] ss:$8 sm:$0xf0] %vm3_vm0, %v2412_v0  }
 0x242   :  { %4179 = vst.msk [vmem:[%s9187_s1 + $0x985] ss:$8 sm:$0xf] %vm3_vm0, %v2403_v2   ;;  %4180 = vst.msk [vmem:[%s9187_s1 + $0x985] ss:$8 sm:$0xf0] %vm3_vm0, %v2403_v2   ;;  %2931 = vrot.lane.b32.xlu1 %v6829_v44, %s4543_s28  ;;  %2922 = vrot.lane.b32.xlu0 %v6834_v45, %s4543_s28 }
 0x244   :  { %v2430_v44 = vpop.permute.xlu1 %2429   ;;  %v2421_v45 = vpop.permute.xlu0 %2420  }
 0x245   :  { %4188 = vst.msk [vmem:[%s9187_s1 + $0xa45] ss:$8 sm:$0xf] %vm3_vm0, %v2430_v44   ;;  %4189 = vst.msk [vmem:[%s9187_s1 + $0xa45] ss:$8 sm:$0xf0] %vm3_vm0, %v2430_v44  }
 0x246   :  { %4185 = vst.msk [vmem:[%s9187_s1 + $0xa05] ss:$8 sm:$0xf] %vm3_vm0, %v2421_v45   ;;  %4186 = vst.msk [vmem:[%s9187_s1 + $0xa05] ss:$8 sm:$0xf0] %vm3_vm0, %v2421_v45   ;;  %2949 = vrot.lane.b32.xlu1 %v6879_v60, %s4543_s28  ;;  %2940 = vrot.lane.b32.xlu0 %v6884_v61, %s4543_s28 }
 0x248   :  { %v2448_v60 = vpop.permute.xlu1 %2447   ;;  %v2439_v61 = vpop.permute.xlu0 %2438  }
 0x249   :  { %4194 = vst.msk [vmem:[%s9187_s1 + $0xac5] ss:$8 sm:$0xf] %vm3_vm0, %v2448_v60   ;;  %4195 = vst.msk [vmem:[%s9187_s1 + $0xac5] ss:$8 sm:$0xf0] %vm3_vm0, %v2448_v60  }
 0x24a   :  { %4191 = vst.msk [vmem:[%s9187_s1 + $0xa85] ss:$8 sm:$0xf] %vm3_vm0, %v2439_v61   ;;  %4192 = vst.msk [vmem:[%s9187_s1 + $0xa85] ss:$8 sm:$0xf0] %vm3_vm0, %v2439_v61   ;;  %2967 = vrot.lane.b32.xlu1 %v6929_v52, %s4543_s28  ;;  %2958 = vrot.lane.b32.xlu0 %v6934_v53, %s4543_s28 }
 0x24c   :  { %v2466_v52 = vpop.permute.xlu1 %2465   ;;  %v2457_v53 = vpop.permute.xlu0 %2456  }
 0x24d   :  { %4200 = vst.msk [vmem:[%s9187_s1 + $0xb45] ss:$8 sm:$0xf] %vm3_vm0, %v2466_v52   ;;  %4201 = vst.msk [vmem:[%s9187_s1 + $0xb45] ss:$8 sm:$0xf0] %vm3_vm0, %v2466_v52  }
 0x24e   :  { %4197 = vst.msk [vmem:[%s9187_s1 + $0xb05] ss:$8 sm:$0xf] %vm3_vm0, %v2457_v53   ;;  %4198 = vst.msk [vmem:[%s9187_s1 + $0xb05] ss:$8 sm:$0xf0] %vm3_vm0, %v2457_v53   ;;  %2985 = vrot.lane.b32.xlu1 %v6979_v4, %s4543_s28  ;;  %2976 = vrot.lane.b32.xlu0 %v6984_v5, %s4543_s28 }
 0x250   :  { %v2484_v4 = vpop.permute.xlu1 %2483   ;;  %v2475_v5 = vpop.permute.xlu0 %2474  }
 0x251   :  { %4206 = vst.msk [vmem:[%s9187_s1 + $0xbc5] ss:$8 sm:$0xf] %vm3_vm0, %v2484_v4   ;;  %4207 = vst.msk [vmem:[%s9187_s1 + $0xbc5] ss:$8 sm:$0xf0] %vm3_vm0, %v2484_v4  }
 0x252   :  { %4203 = vst.msk [vmem:[%s9187_s1 + $0xb85] ss:$8 sm:$0xf] %vm3_vm0, %v2475_v5   ;;  %4204 = vst.msk [vmem:[%s9187_s1 + $0xb85] ss:$8 sm:$0xf0] %vm3_vm0, %v2475_v5   ;;  %3003 = vrot.lane.b32.xlu1 %v7029_v12, %s4543_s28  ;;  %2994 = vrot.lane.b32.xlu0 %v7034_v13, %s4543_s28 }
 0x254   :  { %v2501_v12 = vpop.permute.xlu1 %2500   ;;  %v2492_v13 = vpop.permute.xlu0 %2491  }
 0x255   :  { %4211 = vst.msk [vmem:[%s9187_s1 + $0x46] ss:$8 sm:$0xf] %vm3_vm0, %v2501_v12   ;;  %4212 = vst.msk [vmem:[%s9187_s1 + $0x46] ss:$8 sm:$0xf0] %vm3_vm0, %v2501_v12  }
 0x256   :  { %4208 = vst.msk [vmem:[%s9187_s1 + $0x6] ss:$8 sm:$0xf] %vm3_vm0, %v2492_v13   ;;  %4209 = vst.msk [vmem:[%s9187_s1 + $0x6] ss:$8 sm:$0xf0] %vm3_vm0, %v2492_v13   ;;  %3021 = vrot.lane.b32.xlu1 %v7079_v20, %s4543_s28  ;;  %3012 = vrot.lane.b32.xlu0 %v7084_v21, %s4543_s28 }
 0x258   :  { %v2519_v20 = vpop.permute.xlu1 %2518   ;;  %v2510_v21 = vpop.permute.xlu0 %2509  }
 0x259   :  { %4217 = vst.msk [vmem:[%s9187_s1 + $0xc6] ss:$8 sm:$0xf] %vm3_vm0, %v2519_v20   ;;  %4218 = vst.msk [vmem:[%s9187_s1 + $0xc6] ss:$8 sm:$0xf0] %vm3_vm0, %v2519_v20  }
 0x25a   :  { %4214 = vst.msk [vmem:[%s9187_s1 + $0x86] ss:$8 sm:$0xf] %vm3_vm0, %v2510_v21   ;;  %4215 = vst.msk [vmem:[%s9187_s1 + $0x86] ss:$8 sm:$0xf0] %vm3_vm0, %v2510_v21   ;;  %3039 = vrot.lane.b32.xlu1 %v7129_v28, %s4543_s28  ;;  %3030 = vrot.lane.b32.xlu0 %v7134_v29, %s4543_s28 }
 0x25c   :  { %v2537_v28 = vpop.permute.xlu1 %2536   ;;  %v2528_v29 = vpop.permute.xlu0 %2527  }
 0x25d   :  { %4223 = vst.msk [vmem:[%s9187_s1 + $0x146] ss:$8 sm:$0xf] %vm3_vm0, %v2537_v28   ;;  %4224 = vst.msk [vmem:[%s9187_s1 + $0x146] ss:$8 sm:$0xf0] %vm3_vm0, %v2537_v28  }
 0x25e   :  { %4220 = vst.msk [vmem:[%s9187_s1 + $0x106] ss:$8 sm:$0xf] %vm3_vm0, %v2528_v29   ;;  %4221 = vst.msk [vmem:[%s9187_s1 + $0x106] ss:$8 sm:$0xf0] %vm3_vm0, %v2528_v29   ;;  %3057 = vrot.lane.b32.xlu1 %v7179_v36, %s4543_s28  ;;  %3048 = vrot.lane.b32.xlu0 %v7184_v37, %s4543_s28 }
 0x260   :  { %v2555_v36 = vpop.permute.xlu1 %2554   ;;  %v2546_v37 = vpop.permute.xlu0 %2545  }
 0x261   :  { %4229 = vst.msk [vmem:[%s9187_s1 + $0x1c6] ss:$8 sm:$0xf] %vm3_vm0, %v2555_v36   ;;  %4230 = vst.msk [vmem:[%s9187_s1 + $0x1c6] ss:$8 sm:$0xf0] %vm3_vm0, %v2555_v36  }
 0x262   :  { %4226 = vst.msk [vmem:[%s9187_s1 + $0x186] ss:$8 sm:$0xf] %vm3_vm0, %v2546_v37   ;;  %4227 = vst.msk [vmem:[%s9187_s1 + $0x186] ss:$8 sm:$0xf0] %vm3_vm0, %v2546_v37   ;;  %3075 = vrot.lane.b32.xlu1 %v7229_v6, %s4543_s28  ;;  %3066 = vrot.lane.b32.xlu0 %v7234_v7, %s4543_s28 }
 0x264   :  { %v2573_v6 = vpop.permute.xlu1 %2572   ;;  %v2564_v7 = vpop.permute.xlu0 %2563  }
 0x265   :  { %4235 = vst.msk [vmem:[%s9187_s1 + $0x246] ss:$8 sm:$0xf] %vm3_vm0, %v2573_v6   ;;  %4236 = vst.msk [vmem:[%s9187_s1 + $0x246] ss:$8 sm:$0xf0] %vm3_vm0, %v2573_v6  }
 0x266   :  { %4232 = vst.msk [vmem:[%s9187_s1 + $0x206] ss:$8 sm:$0xf] %vm3_vm0, %v2564_v7   ;;  %4233 = vst.msk [vmem:[%s9187_s1 + $0x206] ss:$8 sm:$0xf0] %vm3_vm0, %v2564_v7   ;;  %3093 = vrot.lane.b32.xlu1 %v7279_v10, %s4543_s28  ;;  %3084 = vrot.lane.b32.xlu0 %v7284_v11, %s4543_s28 }
 0x268   :  { %v2591_v10 = vpop.permute.xlu1 %2590   ;;  %v2582_v11 = vpop.permute.xlu0 %2581  }
 0x269   :  { %4241 = vst.msk [vmem:[%s9187_s1 + $0x2c6] ss:$8 sm:$0xf] %vm3_vm0, %v2591_v10   ;;  %4242 = vst.msk [vmem:[%s9187_s1 + $0x2c6] ss:$8 sm:$0xf0] %vm3_vm0, %v2591_v10  }
 0x26a   :  { %4238 = vst.msk [vmem:[%s9187_s1 + $0x286] ss:$8 sm:$0xf] %vm3_vm0, %v2582_v11   ;;  %4239 = vst.msk [vmem:[%s9187_s1 + $0x286] ss:$8 sm:$0xf0] %vm3_vm0, %v2582_v11   ;;  %3111 = vrot.lane.b32.xlu1 %v7329_v14, %s4543_s28  ;;  %3102 = vrot.lane.b32.xlu0 %v7334_v15, %s4543_s28 }
 0x26c   :  { %v2609_v14 = vpop.permute.xlu1 %2608   ;;  %v2600_v15 = vpop.permute.xlu0 %2599  }
 0x26d   :  { %4247 = vst.msk [vmem:[%s9187_s1 + $0x346] ss:$8 sm:$0xf] %vm3_vm0, %v2609_v14   ;;  %4248 = vst.msk [vmem:[%s9187_s1 + $0x346] ss:$8 sm:$0xf0] %vm3_vm0, %v2609_v14  }
 0x26e   :  { %4244 = vst.msk [vmem:[%s9187_s1 + $0x306] ss:$8 sm:$0xf] %vm3_vm0, %v2600_v15   ;;  %4245 = vst.msk [vmem:[%s9187_s1 + $0x306] ss:$8 sm:$0xf0] %vm3_vm0, %v2600_v15   ;;  %3129 = vrot.lane.b32.xlu1 %v7379_v18, %s4543_s28  ;;  %3120 = vrot.lane.b32.xlu0 %v7384_v19, %s4543_s28 }
 0x270   :  { %v2627_v18 = vpop.permute.xlu1 %2626   ;;  %v2618_v19 = vpop.permute.xlu0 %2617  }
 0x271   :  { %4253 = vst.msk [vmem:[%s9187_s1 + $0x3c6] ss:$8 sm:$0xf] %vm3_vm0, %v2627_v18   ;;  %4254 = vst.msk [vmem:[%s9187_s1 + $0x3c6] ss:$8 sm:$0xf0] %vm3_vm0, %v2627_v18  }
 0x272   :  { %4250 = vst.msk [vmem:[%s9187_s1 + $0x386] ss:$8 sm:$0xf] %vm3_vm0, %v2618_v19   ;;  %4251 = vst.msk [vmem:[%s9187_s1 + $0x386] ss:$8 sm:$0xf0] %vm3_vm0, %v2618_v19   ;;  %3147 = vrot.lane.b32.xlu1 %v7429_v22, %s4543_s28  ;;  %3138 = vrot.lane.b32.xlu0 %v7434_v23, %s4543_s28 }
 0x274   :  { %v2645_v22 = vpop.permute.xlu1 %2644   ;;  %v2636_v23 = vpop.permute.xlu0 %2635  }
 0x275   :  { %4259 = vst.msk [vmem:[%s9187_s1 + $0x446] ss:$8 sm:$0xf] %vm3_vm0, %v2645_v22   ;;  %4260 = vst.msk [vmem:[%s9187_s1 + $0x446] ss:$8 sm:$0xf0] %vm3_vm0, %v2645_v22  }
 0x276   :  { %4256 = vst.msk [vmem:[%s9187_s1 + $0x406] ss:$8 sm:$0xf] %vm3_vm0, %v2636_v23   ;;  %4257 = vst.msk [vmem:[%s9187_s1 + $0x406] ss:$8 sm:$0xf0] %vm3_vm0, %v2636_v23   ;;  %3165 = vrot.lane.b32.xlu1 %v7479_v26, %s4543_s28  ;;  %3156 = vrot.lane.b32.xlu0 %v7484_v27, %s4543_s28 }
 0x278   :  { %v2663_v26 = vpop.permute.xlu1 %2662   ;;  %v2654_v27 = vpop.permute.xlu0 %2653  }
 0x279   :  { %4265 = vst.msk [vmem:[%s9187_s1 + $0x4c6] ss:$8 sm:$0xf] %vm3_vm0, %v2663_v26   ;;  %4266 = vst.msk [vmem:[%s9187_s1 + $0x4c6] ss:$8 sm:$0xf0] %vm3_vm0, %v2663_v26  }
 0x27a   :  { %4262 = vst.msk [vmem:[%s9187_s1 + $0x486] ss:$8 sm:$0xf] %vm3_vm0, %v2654_v27   ;;  %4263 = vst.msk [vmem:[%s9187_s1 + $0x486] ss:$8 sm:$0xf0] %vm3_vm0, %v2654_v27   ;;  %3183 = vrot.lane.b32.xlu1 %v7529_v30, %s4543_s28  ;;  %3174 = vrot.lane.b32.xlu0 %v7534_v31, %s4543_s28 }
 0x27c   :  { %v2681_v30 = vpop.permute.xlu1 %2680   ;;  %v2672_v31 = vpop.permute.xlu0 %2671  }
 0x27d   :  { %4271 = vst.msk [vmem:[%s9187_s1 + $0x546] ss:$8 sm:$0xf] %vm3_vm0, %v2681_v30   ;;  %4272 = vst.msk [vmem:[%s9187_s1 + $0x546] ss:$8 sm:$0xf0] %vm3_vm0, %v2681_v30  }
 0x27e   :  { %4268 = vst.msk [vmem:[%s9187_s1 + $0x506] ss:$8 sm:$0xf] %vm3_vm0, %v2672_v31   ;;  %4269 = vst.msk [vmem:[%s9187_s1 + $0x506] ss:$8 sm:$0xf0] %vm3_vm0, %v2672_v31   ;;  %3201 = vrot.lane.b32.xlu1 %v7583_v42, %s4543_s28  ;;  %3192 = vrot.lane.b32.xlu0 %v7588_v43, %s4543_s28 }
 0x280   :  { %v2699_v42 = vpop.permute.xlu1 %2698   ;;  %v2690_v43 = vpop.permute.xlu0 %2689  }
 0x281   :  { %4277 = vst.msk [vmem:[%s9187_s1 + $0x5c6] ss:$8 sm:$0xf] %vm3_vm0, %v2699_v42   ;;  %4278 = vst.msk [vmem:[%s9187_s1 + $0x5c6] ss:$8 sm:$0xf0] %vm3_vm0, %v2699_v42  }
 0x282   :  { %4274 = vst.msk [vmem:[%s9187_s1 + $0x586] ss:$8 sm:$0xf] %vm3_vm0, %v2690_v43   ;;  %4275 = vst.msk [vmem:[%s9187_s1 + $0x586] ss:$8 sm:$0xf0] %vm3_vm0, %v2690_v43   ;;  %3219 = vrot.lane.b32.xlu1 %v7637_v1, %s4543_s28  ;;  %3210 = vrot.lane.b32.xlu0 %v7642_v3, %s4543_s28 }
 0x284   :  { %v2717_v1 = vpop.permute.xlu1 %2716   ;;  %v2708_v3 = vpop.permute.xlu0 %2707  }
 0x285   :  { %4283 = vst.msk [vmem:[%s9187_s1 + $0x646] ss:$8 sm:$0xf] %vm3_vm0, %v2717_v1   ;;  %4284 = vst.msk [vmem:[%s9187_s1 + $0x646] ss:$8 sm:$0xf0] %vm3_vm0, %v2717_v1  }
 0x286   :  { %4280 = vst.msk [vmem:[%s9187_s1 + $0x606] ss:$8 sm:$0xf] %vm3_vm0, %v2708_v3   ;;  %4281 = vst.msk [vmem:[%s9187_s1 + $0x606] ss:$8 sm:$0xf0] %vm3_vm0, %v2708_v3   ;;  %3237 = vrot.lane.b32.xlu1 %v7691_v24, %s4543_s28  ;;  %3228 = vrot.lane.b32.xlu0 %v7696_v25, %s4543_s28 }
 0x288   :  { %v2735_v24 = vpop.permute.xlu1 %2734   ;;  %v2726_v25 = vpop.permute.xlu0 %2725  }
 0x289   :  { %4289 = vst.msk [vmem:[%s9187_s1 + $0x6c6] ss:$8 sm:$0xf] %vm3_vm0, %v2735_v24   ;;  %4290 = vst.msk [vmem:[%s9187_s1 + $0x6c6] ss:$8 sm:$0xf0] %vm3_vm0, %v2735_v24  }
 0x28a   :  { %4286 = vst.msk [vmem:[%s9187_s1 + $0x686] ss:$8 sm:$0xf] %vm3_vm0, %v2726_v25   ;;  %4287 = vst.msk [vmem:[%s9187_s1 + $0x686] ss:$8 sm:$0xf0] %vm3_vm0, %v2726_v25   ;;  %3255 = vrot.lane.b32.xlu1 %v7745_v46, %s4543_s28  ;;  %3246 = vrot.lane.b32.xlu0 %v7750_v47, %s4543_s28 }
 0x28c   :  { %v2753_v46 = vpop.permute.xlu1 %2752   ;;  %v2744_v47 = vpop.permute.xlu0 %2743  }
 0x28d   :  { %4295 = vst.msk [vmem:[%s9187_s1 + $0x746] ss:$8 sm:$0xf] %vm3_vm0, %v2753_v46   ;;  %4296 = vst.msk [vmem:[%s9187_s1 + $0x746] ss:$8 sm:$0xf0] %vm3_vm0, %v2753_v46  }
 0x28e   :  { %4292 = vst.msk [vmem:[%s9187_s1 + $0x706] ss:$8 sm:$0xf] %vm3_vm0, %v2744_v47   ;;  %4293 = vst.msk [vmem:[%s9187_s1 + $0x706] ss:$8 sm:$0xf0] %vm3_vm0, %v2744_v47   ;;  %3273 = vrot.lane.b32.xlu1 %v7799_v50, %s4543_s28  ;;  %3264 = vrot.lane.b32.xlu0 %v7804_v51, %s4543_s28 }
 0x290   :  { %v2771_v50 = vpop.permute.xlu1 %2770   ;;  %v2762_v51 = vpop.permute.xlu0 %2761  }
 0x291   :  { %4301 = vst.msk [vmem:[%s9187_s1 + $0x7c6] ss:$8 sm:$0xf] %vm3_vm0, %v2771_v50   ;;  %4302 = vst.msk [vmem:[%s9187_s1 + $0x7c6] ss:$8 sm:$0xf0] %vm3_vm0, %v2771_v50  }
 0x292   :  { %4298 = vst.msk [vmem:[%s9187_s1 + $0x786] ss:$8 sm:$0xf] %vm3_vm0, %v2762_v51   ;;  %4299 = vst.msk [vmem:[%s9187_s1 + $0x786] ss:$8 sm:$0xf0] %vm3_vm0, %v2762_v51   ;;  %3291 = vrot.lane.b32.xlu1 %v7853_v34, %s4543_s28  ;;  %3282 = vrot.lane.b32.xlu0 %v7858_v35, %s4543_s28 }
 0x294   :  { %v2789_v34 = vpop.permute.xlu1 %2788   ;;  %v2780_v35 = vpop.permute.xlu0 %2779  }
 0x295   :  { %4307 = vst.msk [vmem:[%s9187_s1 + $0x846] ss:$8 sm:$0xf] %vm3_vm0, %v2789_v34   ;;  %4308 = vst.msk [vmem:[%s9187_s1 + $0x846] ss:$8 sm:$0xf0] %vm3_vm0, %v2789_v34  }
 0x296   :  { %4304 = vst.msk [vmem:[%s9187_s1 + $0x806] ss:$8 sm:$0xf] %vm3_vm0, %v2780_v35   ;;  %4305 = vst.msk [vmem:[%s9187_s1 + $0x806] ss:$8 sm:$0xf0] %vm3_vm0, %v2780_v35   ;;  %3309 = vrot.lane.b32.xlu1 %v7907_v48, %s4543_s28  ;;  %3300 = vrot.lane.b32.xlu0 %v7912_v49, %s4543_s28 }
 0x298   :  { %v2807_v48 = vpop.permute.xlu1 %2806   ;;  %v2798_v49 = vpop.permute.xlu0 %2797  }
 0x299   :  { %4313 = vst.msk [vmem:[%s9187_s1 + $0x8c6] ss:$8 sm:$0xf] %vm3_vm0, %v2807_v48   ;;  %4314 = vst.msk [vmem:[%s9187_s1 + $0x8c6] ss:$8 sm:$0xf0] %vm3_vm0, %v2807_v48  }
 0x29a   :  { %4310 = vst.msk [vmem:[%s9187_s1 + $0x886] ss:$8 sm:$0xf] %vm3_vm0, %v2798_v49   ;;  %4311 = vst.msk [vmem:[%s9187_s1 + $0x886] ss:$8 sm:$0xf0] %vm3_vm0, %v2798_v49   ;;  %3327 = vrot.lane.b32.xlu1 %v7961_v32, %s4543_s28  ;;  %3318 = vrot.lane.b32.xlu0 %v7966_v33, %s4543_s28 }
 0x29c   :  { %v2825_v32 = vpop.permute.xlu1 %2824   ;;  %v2816_v33 = vpop.permute.xlu0 %2815  }
 0x29d   :  { %4319 = vst.msk [vmem:[%s9187_s1 + $0x946] ss:$8 sm:$0xf] %vm3_vm0, %v2825_v32   ;;  %4320 = vst.msk [vmem:[%s9187_s1 + $0x946] ss:$8 sm:$0xf0] %vm3_vm0, %v2825_v32  }
 0x29e   :  { %4316 = vst.msk [vmem:[%s9187_s1 + $0x906] ss:$8 sm:$0xf] %vm3_vm0, %v2816_v33   ;;  %4317 = vst.msk [vmem:[%s9187_s1 + $0x906] ss:$8 sm:$0xf0] %vm3_vm0, %v2816_v33   ;;  %3345 = vrot.lane.b32.xlu1 %v8015_v62, %s4543_s28  ;;  %3336 = vrot.lane.b32.xlu0 %v8020_v63, %s4543_s28 }
 0x2a0   :  { %v2843_v62 = vpop.permute.xlu1 %2842   ;;  %v2834_v63 = vpop.permute.xlu0 %2833  }
 0x2a1   :  { %4325 = vst.msk [vmem:[%s9187_s1 + $0x9c6] ss:$8 sm:$0xf] %vm3_vm0, %v2843_v62   ;;  %4326 = vst.msk [vmem:[%s9187_s1 + $0x9c6] ss:$8 sm:$0xf0] %vm3_vm0, %v2843_v62  }
 0x2a2   :  { %4322 = vst.msk [vmem:[%s9187_s1 + $0x986] ss:$8 sm:$0xf] %vm3_vm0, %v2834_v63   ;;  %4323 = vst.msk [vmem:[%s9187_s1 + $0x986] ss:$8 sm:$0xf0] %vm3_vm0, %v2834_v63  }
 0x2a4   :  { %v2861_v38 = vpop.permute.xlu1 %2860   ;;  %v2852_v39 = vpop.permute.xlu0 %2851  }
 0x2a5   :  { %4331 = vst.msk [vmem:[%s9187_s1 + $0xa46] ss:$8 sm:$0xf] %vm3_vm0, %v2861_v38   ;;  %4332 = vst.msk [vmem:[%s9187_s1 + $0xa46] ss:$8 sm:$0xf0] %vm3_vm0, %v2861_v38  }
 0x2a6   :  { %4328 = vst.msk [vmem:[%s9187_s1 + $0xa06] ss:$8 sm:$0xf] %vm3_vm0, %v2852_v39   ;;  %4329 = vst.msk [vmem:[%s9187_s1 + $0xa06] ss:$8 sm:$0xf0] %vm3_vm0, %v2852_v39  }
 0x2a8   :  { %v2879_v56 = vpop.permute.xlu1 %2878   ;;  %v2870_v57 = vpop.permute.xlu0 %2869  }
 0x2a9   :  { %4337 = vst.msk [vmem:[%s9187_s1 + $0xac6] ss:$8 sm:$0xf] %vm3_vm0, %v2879_v56   ;;  %4338 = vst.msk [vmem:[%s9187_s1 + $0xac6] ss:$8 sm:$0xf0] %vm3_vm0, %v2879_v56  }
 0x2aa   :  { %4334 = vst.msk [vmem:[%s9187_s1 + $0xa86] ss:$8 sm:$0xf] %vm3_vm0, %v2870_v57   ;;  %4335 = vst.msk [vmem:[%s9187_s1 + $0xa86] ss:$8 sm:$0xf0] %vm3_vm0, %v2870_v57  }
 0x2ac   :  { %v2897_v8 = vpop.permute.xlu1 %2896   ;;  %v2888_v9 = vpop.permute.xlu0 %2887  }
 0x2ad   :  { %4343 = vst.msk [vmem:[%s9187_s1 + $0xb46] ss:$8 sm:$0xf] %vm3_vm0, %v2897_v8   ;;  %4344 = vst.msk [vmem:[%s9187_s1 + $0xb46] ss:$8 sm:$0xf0] %vm3_vm0, %v2897_v8  }
 0x2ae   :  { %4340 = vst.msk [vmem:[%s9187_s1 + $0xb06] ss:$8 sm:$0xf] %vm3_vm0, %v2888_v9   ;;  %4341 = vst.msk [vmem:[%s9187_s1 + $0xb06] ss:$8 sm:$0xf0] %vm3_vm0, %v2888_v9  }
 0x2b0   :  { %v2915_v16 = vpop.permute.xlu1 %2914   ;;  %v2906_v17 = vpop.permute.xlu0 %2905  }
 0x2b1   :  { %4349 = vst.msk [vmem:[%s9187_s1 + $0xbc6] ss:$8 sm:$0xf] %vm3_vm0, %v2915_v16   ;;  %4350 = vst.msk [vmem:[%s9187_s1 + $0xbc6] ss:$8 sm:$0xf0] %vm3_vm0, %v2915_v16  }
 0x2b2   :  { %4346 = vst.msk [vmem:[%s9187_s1 + $0xb86] ss:$8 sm:$0xf] %vm3_vm0, %v2906_v17   ;;  %4347 = vst.msk [vmem:[%s9187_s1 + $0xb86] ss:$8 sm:$0xf0] %vm3_vm0, %v2906_v17  }
 0x2b4   :  { %v2932_v40 = vpop.permute.xlu1 %2931   ;;  %v2923_v41 = vpop.permute.xlu0 %2922  }
 0x2b5   :  { %4354 = vst.msk [vmem:[%s9187_s1 + $0x47] ss:$8 sm:$0xf] %vm3_vm0, %v2932_v40   ;;  %4355 = vst.msk [vmem:[%s9187_s1 + $0x47] ss:$8 sm:$0xf0] %vm3_vm0, %v2932_v40  }
 0x2b6   :  { %4351 = vst.msk [vmem:[%s9187_s1 + $0x7] ss:$8 sm:$0xf] %vm3_vm0, %v2923_v41   ;;  %4352 = vst.msk [vmem:[%s9187_s1 + $0x7] ss:$8 sm:$0xf0] %vm3_vm0, %v2923_v41  }
 0x2b8   :  { %v2950_v58 = vpop.permute.xlu1 %2949   ;;  %v2941_v59 = vpop.permute.xlu0 %2940  }
 0x2b9   :  { %4360 = vst.msk [vmem:[%s9187_s1 + $0xc7] ss:$8 sm:$0xf] %vm3_vm0, %v2950_v58   ;;  %4361 = vst.msk [vmem:[%s9187_s1 + $0xc7] ss:$8 sm:$0xf0] %vm3_vm0, %v2950_v58  }
 0x2ba   :  { %4357 = vst.msk [vmem:[%s9187_s1 + $0x87] ss:$8 sm:$0xf] %vm3_vm0, %v2941_v59   ;;  %4358 = vst.msk [vmem:[%s9187_s1 + $0x87] ss:$8 sm:$0xf0] %vm3_vm0, %v2941_v59  }
 0x2bc   :  { %v2968_v54 = vpop.permute.xlu1 %2967   ;;  %v2959_v55 = vpop.permute.xlu0 %2958  }
 0x2bd   :  { %4366 = vst.msk [vmem:[%s9187_s1 + $0x147] ss:$8 sm:$0xf] %vm3_vm0, %v2968_v54   ;;  %4367 = vst.msk [vmem:[%s9187_s1 + $0x147] ss:$8 sm:$0xf0] %vm3_vm0, %v2968_v54  }
 0x2be   :  { %4363 = vst.msk [vmem:[%s9187_s1 + $0x107] ss:$8 sm:$0xf] %vm3_vm0, %v2959_v55   ;;  %4364 = vst.msk [vmem:[%s9187_s1 + $0x107] ss:$8 sm:$0xf0] %vm3_vm0, %v2959_v55  }
 0x2c0   :  { %v2986_v0 = vpop.permute.xlu1 %2985   ;;  %v2977_v2 = vpop.permute.xlu0 %2976  }
 0x2c1   :  { %4372 = vst.msk [vmem:[%s9187_s1 + $0x1c7] ss:$8 sm:$0xf] %vm3_vm0, %v2986_v0   ;;  %4373 = vst.msk [vmem:[%s9187_s1 + $0x1c7] ss:$8 sm:$0xf0] %vm3_vm0, %v2986_v0  }
 0x2c2   :  { %4369 = vst.msk [vmem:[%s9187_s1 + $0x187] ss:$8 sm:$0xf] %vm3_vm0, %v2977_v2   ;;  %4370 = vst.msk [vmem:[%s9187_s1 + $0x187] ss:$8 sm:$0xf0] %vm3_vm0, %v2977_v2  }
 0x2c4   :  { %v3004_v44 = vpop.permute.xlu1 %3003   ;;  %v2995_v45 = vpop.permute.xlu0 %2994  }
 0x2c5   :  { %4378 = vst.msk [vmem:[%s9187_s1 + $0x247] ss:$8 sm:$0xf] %vm3_vm0, %v3004_v44   ;;  %4379 = vst.msk [vmem:[%s9187_s1 + $0x247] ss:$8 sm:$0xf0] %vm3_vm0, %v3004_v44  }
 0x2c6   :  { %4375 = vst.msk [vmem:[%s9187_s1 + $0x207] ss:$8 sm:$0xf] %vm3_vm0, %v2995_v45   ;;  %4376 = vst.msk [vmem:[%s9187_s1 + $0x207] ss:$8 sm:$0xf0] %vm3_vm0, %v2995_v45  }
 0x2c8   :  { %v3022_v60 = vpop.permute.xlu1 %3021   ;;  %v3013_v61 = vpop.permute.xlu0 %3012  }
 0x2c9   :  { %4384 = vst.msk [vmem:[%s9187_s1 + $0x2c7] ss:$8 sm:$0xf] %vm3_vm0, %v3022_v60   ;;  %4385 = vst.msk [vmem:[%s9187_s1 + $0x2c7] ss:$8 sm:$0xf0] %vm3_vm0, %v3022_v60  }
 0x2ca   :  { %4381 = vst.msk [vmem:[%s9187_s1 + $0x287] ss:$8 sm:$0xf] %vm3_vm0, %v3013_v61   ;;  %4382 = vst.msk [vmem:[%s9187_s1 + $0x287] ss:$8 sm:$0xf0] %vm3_vm0, %v3013_v61  }
 0x2cc   :  { %v3040_v52 = vpop.permute.xlu1 %3039   ;;  %v3031_v53 = vpop.permute.xlu0 %3030  }
 0x2cd   :  { %4390 = vst.msk [vmem:[%s9187_s1 + $0x347] ss:$8 sm:$0xf] %vm3_vm0, %v3040_v52   ;;  %4391 = vst.msk [vmem:[%s9187_s1 + $0x347] ss:$8 sm:$0xf0] %vm3_vm0, %v3040_v52  }
 0x2ce   :  { %4387 = vst.msk [vmem:[%s9187_s1 + $0x307] ss:$8 sm:$0xf] %vm3_vm0, %v3031_v53   ;;  %4388 = vst.msk [vmem:[%s9187_s1 + $0x307] ss:$8 sm:$0xf0] %vm3_vm0, %v3031_v53  }
 0x2d0   :  { %v3058_v4 = vpop.permute.xlu1 %3057   ;;  %v3049_v5 = vpop.permute.xlu0 %3048  }
 0x2d1   :  { %4396 = vst.msk [vmem:[%s9187_s1 + $0x3c7] ss:$8 sm:$0xf] %vm3_vm0, %v3058_v4   ;;  %4397 = vst.msk [vmem:[%s9187_s1 + $0x3c7] ss:$8 sm:$0xf0] %vm3_vm0, %v3058_v4  }
 0x2d2   :  { %4393 = vst.msk [vmem:[%s9187_s1 + $0x387] ss:$8 sm:$0xf] %vm3_vm0, %v3049_v5   ;;  %4394 = vst.msk [vmem:[%s9187_s1 + $0x387] ss:$8 sm:$0xf0] %vm3_vm0, %v3049_v5  }
 0x2d4   :  { %v3076_v12 = vpop.permute.xlu1 %3075   ;;  %v3067_v13 = vpop.permute.xlu0 %3066  }
 0x2d5   :  { %4402 = vst.msk [vmem:[%s9187_s1 + $0x447] ss:$8 sm:$0xf] %vm3_vm0, %v3076_v12   ;;  %4403 = vst.msk [vmem:[%s9187_s1 + $0x447] ss:$8 sm:$0xf0] %vm3_vm0, %v3076_v12  }
 0x2d6   :  { %4399 = vst.msk [vmem:[%s9187_s1 + $0x407] ss:$8 sm:$0xf] %vm3_vm0, %v3067_v13   ;;  %4400 = vst.msk [vmem:[%s9187_s1 + $0x407] ss:$8 sm:$0xf0] %vm3_vm0, %v3067_v13  }
 0x2d8   :  { %v3094_v20 = vpop.permute.xlu1 %3093   ;;  %v3085_v21 = vpop.permute.xlu0 %3084  }
 0x2d9   :  { %4408 = vst.msk [vmem:[%s9187_s1 + $0x4c7] ss:$8 sm:$0xf] %vm3_vm0, %v3094_v20   ;;  %4409 = vst.msk [vmem:[%s9187_s1 + $0x4c7] ss:$8 sm:$0xf0] %vm3_vm0, %v3094_v20  }
 0x2da   :  { %4405 = vst.msk [vmem:[%s9187_s1 + $0x487] ss:$8 sm:$0xf] %vm3_vm0, %v3085_v21   ;;  %4406 = vst.msk [vmem:[%s9187_s1 + $0x487] ss:$8 sm:$0xf0] %vm3_vm0, %v3085_v21  }
 0x2dc   :  { %v3112_v28 = vpop.permute.xlu1 %3111   ;;  %v3103_v29 = vpop.permute.xlu0 %3102  }
 0x2dd   :  { %4414 = vst.msk [vmem:[%s9187_s1 + $0x547] ss:$8 sm:$0xf] %vm3_vm0, %v3112_v28   ;;  %4415 = vst.msk [vmem:[%s9187_s1 + $0x547] ss:$8 sm:$0xf0] %vm3_vm0, %v3112_v28  }
 0x2de   :  { %4411 = vst.msk [vmem:[%s9187_s1 + $0x507] ss:$8 sm:$0xf] %vm3_vm0, %v3103_v29   ;;  %4412 = vst.msk [vmem:[%s9187_s1 + $0x507] ss:$8 sm:$0xf0] %vm3_vm0, %v3103_v29  }
 0x2e0   :  { %v3130_v36 = vpop.permute.xlu1 %3129   ;;  %v3121_v37 = vpop.permute.xlu0 %3120  }
 0x2e1   :  { %4420 = vst.msk [vmem:[%s9187_s1 + $0x5c7] ss:$8 sm:$0xf] %vm3_vm0, %v3130_v36   ;;  %4421 = vst.msk [vmem:[%s9187_s1 + $0x5c7] ss:$8 sm:$0xf0] %vm3_vm0, %v3130_v36  }
 0x2e2   :  { %4417 = vst.msk [vmem:[%s9187_s1 + $0x587] ss:$8 sm:$0xf] %vm3_vm0, %v3121_v37   ;;  %4418 = vst.msk [vmem:[%s9187_s1 + $0x587] ss:$8 sm:$0xf0] %vm3_vm0, %v3121_v37  }
 0x2e4   :  { %v3148_v6 = vpop.permute.xlu1 %3147   ;;  %v3139_v7 = vpop.permute.xlu0 %3138  }
 0x2e5   :  { %4426 = vst.msk [vmem:[%s9187_s1 + $0x647] ss:$8 sm:$0xf] %vm3_vm0, %v3148_v6   ;;  %4427 = vst.msk [vmem:[%s9187_s1 + $0x647] ss:$8 sm:$0xf0] %vm3_vm0, %v3148_v6  }
 0x2e6   :  { %4423 = vst.msk [vmem:[%s9187_s1 + $0x607] ss:$8 sm:$0xf] %vm3_vm0, %v3139_v7   ;;  %4424 = vst.msk [vmem:[%s9187_s1 + $0x607] ss:$8 sm:$0xf0] %vm3_vm0, %v3139_v7  }
 0x2e8   :  { %v3166_v10 = vpop.permute.xlu1 %3165   ;;  %v3157_v11 = vpop.permute.xlu0 %3156  }
 0x2e9   :  { %4432 = vst.msk [vmem:[%s9187_s1 + $0x6c7] ss:$8 sm:$0xf] %vm3_vm0, %v3166_v10   ;;  %4433 = vst.msk [vmem:[%s9187_s1 + $0x6c7] ss:$8 sm:$0xf0] %vm3_vm0, %v3166_v10  }
 0x2ea   :  { %4429 = vst.msk [vmem:[%s9187_s1 + $0x687] ss:$8 sm:$0xf] %vm3_vm0, %v3157_v11   ;;  %4430 = vst.msk [vmem:[%s9187_s1 + $0x687] ss:$8 sm:$0xf0] %vm3_vm0, %v3157_v11  }
 0x2ec   :  { %v3184_v14 = vpop.permute.xlu1 %3183   ;;  %v3175_v15 = vpop.permute.xlu0 %3174  }
 0x2ed   :  { %4438 = vst.msk [vmem:[%s9187_s1 + $0x747] ss:$8 sm:$0xf] %vm3_vm0, %v3184_v14   ;;  %4439 = vst.msk [vmem:[%s9187_s1 + $0x747] ss:$8 sm:$0xf0] %vm3_vm0, %v3184_v14  }
 0x2ee   :  { %4435 = vst.msk [vmem:[%s9187_s1 + $0x707] ss:$8 sm:$0xf] %vm3_vm0, %v3175_v15   ;;  %4436 = vst.msk [vmem:[%s9187_s1 + $0x707] ss:$8 sm:$0xf0] %vm3_vm0, %v3175_v15  }
 0x2f0   :  { %v3202_v18 = vpop.permute.xlu1 %3201   ;;  %v3193_v19 = vpop.permute.xlu0 %3192  }
 0x2f1   :  { %4444 = vst.msk [vmem:[%s9187_s1 + $0x7c7] ss:$8 sm:$0xf] %vm3_vm0, %v3202_v18   ;;  %4445 = vst.msk [vmem:[%s9187_s1 + $0x7c7] ss:$8 sm:$0xf0] %vm3_vm0, %v3202_v18  }
 0x2f2   :  { %4441 = vst.msk [vmem:[%s9187_s1 + $0x787] ss:$8 sm:$0xf] %vm3_vm0, %v3193_v19   ;;  %4442 = vst.msk [vmem:[%s9187_s1 + $0x787] ss:$8 sm:$0xf0] %vm3_vm0, %v3193_v19  }
 0x2f4   :  { %v3220_v22 = vpop.permute.xlu1 %3219   ;;  %v3211_v23 = vpop.permute.xlu0 %3210  }
 0x2f5   :  { %4450 = vst.msk [vmem:[%s9187_s1 + $0x847] ss:$8 sm:$0xf] %vm3_vm0, %v3220_v22   ;;  %4451 = vst.msk [vmem:[%s9187_s1 + $0x847] ss:$8 sm:$0xf0] %vm3_vm0, %v3220_v22  }
 0x2f6   :  { %4447 = vst.msk [vmem:[%s9187_s1 + $0x807] ss:$8 sm:$0xf] %vm3_vm0, %v3211_v23   ;;  %4448 = vst.msk [vmem:[%s9187_s1 + $0x807] ss:$8 sm:$0xf0] %vm3_vm0, %v3211_v23  }
 0x2f8   :  { %v3238_v26 = vpop.permute.xlu1 %3237   ;;  %v3229_v27 = vpop.permute.xlu0 %3228  }
 0x2f9   :  { %4456 = vst.msk [vmem:[%s9187_s1 + $0x8c7] ss:$8 sm:$0xf] %vm3_vm0, %v3238_v26   ;;  %4457 = vst.msk [vmem:[%s9187_s1 + $0x8c7] ss:$8 sm:$0xf0] %vm3_vm0, %v3238_v26  }
 0x2fa   :  { %4453 = vst.msk [vmem:[%s9187_s1 + $0x887] ss:$8 sm:$0xf] %vm3_vm0, %v3229_v27   ;;  %4454 = vst.msk [vmem:[%s9187_s1 + $0x887] ss:$8 sm:$0xf0] %vm3_vm0, %v3229_v27  }
 0x2fc   :  { %v3256_v30 = vpop.permute.xlu1 %3255   ;;  %v3247_v31 = vpop.permute.xlu0 %3246  }
 0x2fd   :  { %4462 = vst.msk [vmem:[%s9187_s1 + $0x947] ss:$8 sm:$0xf] %vm3_vm0, %v3256_v30   ;;  %4463 = vst.msk [vmem:[%s9187_s1 + $0x947] ss:$8 sm:$0xf0] %vm3_vm0, %v3256_v30  }
 0x2fe   :  { %4459 = vst.msk [vmem:[%s9187_s1 + $0x907] ss:$8 sm:$0xf] %vm3_vm0, %v3247_v31   ;;  %4460 = vst.msk [vmem:[%s9187_s1 + $0x907] ss:$8 sm:$0xf0] %vm3_vm0, %v3247_v31  }
 0x300   :  { %v3274_v42 = vpop.permute.xlu1 %3273   ;;  %v3265_v43 = vpop.permute.xlu0 %3264  }
 0x301   :  { %4468 = vst.msk [vmem:[%s9187_s1 + $0x9c7] ss:$8 sm:$0xf] %vm3_vm0, %v3274_v42   ;;  %4469 = vst.msk [vmem:[%s9187_s1 + $0x9c7] ss:$8 sm:$0xf0] %vm3_vm0, %v3274_v42  }
 0x302   :  { %4465 = vst.msk [vmem:[%s9187_s1 + $0x987] ss:$8 sm:$0xf] %vm3_vm0, %v3265_v43   ;;  %4466 = vst.msk [vmem:[%s9187_s1 + $0x987] ss:$8 sm:$0xf0] %vm3_vm0, %v3265_v43  }
 0x304   :  { %v3292_v1 = vpop.permute.xlu1 %3291   ;;  %v3283_v3 = vpop.permute.xlu0 %3282  }
 0x305   :  { %4474 = vst.msk [vmem:[%s9187_s1 + $0xa47] ss:$8 sm:$0xf] %vm3_vm0, %v3292_v1   ;;  %4475 = vst.msk [vmem:[%s9187_s1 + $0xa47] ss:$8 sm:$0xf0] %vm3_vm0, %v3292_v1  }
 0x306   :  { %4471 = vst.msk [vmem:[%s9187_s1 + $0xa07] ss:$8 sm:$0xf] %vm3_vm0, %v3283_v3   ;;  %4472 = vst.msk [vmem:[%s9187_s1 + $0xa07] ss:$8 sm:$0xf0] %vm3_vm0, %v3283_v3  }
 0x308   :  { %v3310_v24 = vpop.permute.xlu1 %3309   ;;  %v3301_v25 = vpop.permute.xlu0 %3300  }
 0x309   :  { %4480 = vst.msk [vmem:[%s9187_s1 + $0xac7] ss:$8 sm:$0xf] %vm3_vm0, %v3310_v24   ;;  %4481 = vst.msk [vmem:[%s9187_s1 + $0xac7] ss:$8 sm:$0xf0] %vm3_vm0, %v3310_v24  }
 0x30a   :  { %4477 = vst.msk [vmem:[%s9187_s1 + $0xa87] ss:$8 sm:$0xf] %vm3_vm0, %v3301_v25   ;;  %4478 = vst.msk [vmem:[%s9187_s1 + $0xa87] ss:$8 sm:$0xf0] %vm3_vm0, %v3301_v25  }
 0x30c   :  { %v3328_v46 = vpop.permute.xlu1 %3327   ;;  %v3319_v47 = vpop.permute.xlu0 %3318  }
 0x30d   :  { %4486 = vst.msk [vmem:[%s9187_s1 + $0xb47] ss:$8 sm:$0xf] %vm3_vm0, %v3328_v46   ;;  %4487 = vst.msk [vmem:[%s9187_s1 + $0xb47] ss:$8 sm:$0xf0] %vm3_vm0, %v3328_v46  }
 0x30e   :  { %4483 = vst.msk [vmem:[%s9187_s1 + $0xb07] ss:$8 sm:$0xf] %vm3_vm0, %v3319_v47   ;;  %4484 = vst.msk [vmem:[%s9187_s1 + $0xb07] ss:$8 sm:$0xf0] %vm3_vm0, %v3319_v47  }
 0x310   :  { %v3346_v50 = vpop.permute.xlu1 %3345   ;;  %v3337_v51 = vpop.permute.xlu0 %3336  }
 0x311   :  { %4492 = vst.msk [vmem:[%s9187_s1 + $0xbc7] ss:$8 sm:$0xf] %vm3_vm0, %v3346_v50   ;;  %4493 = vst.msk [vmem:[%s9187_s1 + $0xbc7] ss:$8 sm:$0xf0] %vm3_vm0, %v3346_v50  }
 0x312   :  { %4489 = vst.msk [vmem:[%s9187_s1 + $0xb87] ss:$8 sm:$0xf] %vm3_vm0, %v3337_v51   ;;  %4490 = vst.msk [vmem:[%s9187_s1 + $0xb87] ss:$8 sm:$0xf0] %vm3_vm0, %v3337_v51  }

// kernel: squeeze.7
= control target key start
LH: loop header
LB: loop body
LE: loop exit
PB: predicated region body
PF: predicated region fallthrough
CT: control target
= control target key end

     0   :  { %vm3_vm0 = vcmask 130048   ;;  %s4887_s12 = smov 112   ;;  %s4889_s19 = smov 80   ;;  %s7093_s0 = inlined_call_operand.vmem [shape: f32[2,3,1,64,64], index: 0, kind: input, shape index: {}]   ;;  %s7094_s1 = inlined_call_operand.vmem [shape: f32[2,3,4,16,4,16], index: 1, kind: output, shape index: {}]  }
   0x1   :  { %v4903_v0 = vld [vmem:[%s7093_s0 + $0x10] sm:$0xff]   ;;  %v4908_v1 = vld [vmem:[%s7093_s0] sm:$0xff]   ;;  %v4913_v2 = vld [vmem:[%s7093_s0 + $0x18] sm:$0xff]  }
   0x2   :  { %354 = vrot.lane.b32.xlu1 %v4903_v0, %s4887_s12  ;;  %336 = vrot.lane.b32.xlu0 %v4908_v1, %s4887_s12  ;;  %v4922_v3 = vld [vmem:[%s7093_s0 + $0x8] sm:$0xff]   ;;  %4 = vst.msk [vmem:[#allocation0] ss:$8 sm:$0xf] %vm3_vm0, %v4908_v1   ;;  %v4944_v5 = vld [vmem:[%s7093_s0 + $0x20] sm:$0xff]  }
   0x3   :  { %v4927_v4 = vld [vmem:[%s7093_s0 + $0x28] sm:$0xff]   ;;  %5 = vst.msk [vmem:[#allocation0] ss:$8 sm:$0xf0] %vm3_vm0, %v4908_v1   ;;  %v4949_v6 = vld [vmem:[%s7093_s0 + $0x38] sm:$0xff]   ;;  %v4954_v7 = vld [vmem:[%s7093_s0 + $0x30] sm:$0xff]  }
   0x4   :  { %24 = vst.msk [vmem:[#allocation0 + $0xc0] ss:$8 sm:$0xf] %vm3_vm0, %v4913_v2   ;;  %26 = vst.msk [vmem:[#allocation0 + $0xc0] ss:$8 sm:$0xf0] %vm3_vm0, %v4913_v2  }
   0x5   :  { %17 = vst.msk [vmem:[#allocation0 + $0x80] ss:$8 sm:$0xf] %vm3_vm0, %v4903_v0   ;;  %19 = vst.msk [vmem:[#allocation0 + $0x80] ss:$8 sm:$0xf0] %vm3_vm0, %v4903_v0  }
   0x6   :  { %10 = vst.msk [vmem:[#allocation0 + $0x40] ss:$8 sm:$0xf] %vm3_vm0, %v4922_v3   ;;  %12 = vst.msk [vmem:[#allocation0 + $0x40] ss:$8 sm:$0xf0] %vm3_vm0, %v4922_v3   ;;  %363 = vrot.lane.b32.xlu1 %v4913_v2, %s4887_s12  ;;  %345 = vrot.lane.b32.xlu0 %v4922_v3, %s4887_s12 }
   0x7   :  { %38 = vst.msk [vmem:[#allocation0 + $0x140] ss:$8 sm:$0xf] %vm3_vm0, %v4927_v4   ;;  %40 = vst.msk [vmem:[#allocation0 + $0x140] ss:$8 sm:$0xf0] %vm3_vm0, %v4927_v4  }
   0x8   :  { %v4967_v8 = vld [vmem:[%s7093_s0 + $0x48] sm:$0xff]   ;;  %v4972_v9 = vld [vmem:[%s7093_s0 + $0x40] sm:$0xff]   ;;  %v4977_v10 = vld [vmem:[%s7093_s0 + $0x58] sm:$0xff]   ;;  %31 = vst.msk [vmem:[#allocation0 + $0x100] ss:$8 sm:$0xf] %vm3_vm0, %v4944_v5  }
   0x9   :  { %33 = vst.msk [vmem:[#allocation0 + $0x100] ss:$8 sm:$0xf0] %vm3_vm0, %v4944_v5   ;;  %52 = vst.msk [vmem:[#allocation0 + $0x1c0] ss:$8 sm:$0xf] %vm3_vm0, %v4949_v6  }
   0xa   :  { %54 = vst.msk [vmem:[#allocation0 + $0x1c0] ss:$8 sm:$0xf0] %vm3_vm0, %v4949_v6   ;;  %45 = vst.msk [vmem:[#allocation0 + $0x180] ss:$8 sm:$0xf] %vm3_vm0, %v4954_v7   ;;  %381 = vrot.lane.b32.xlu1 %v4927_v4, %s4887_s12  ;;  %372 = vrot.lane.b32.xlu0 %v4944_v5, %s4887_s12 }
   0xb   :  { %47 = vst.msk [vmem:[#allocation0 + $0x180] ss:$8 sm:$0xf0] %vm3_vm0, %v4954_v7   ;;  %v4994_v11 = vld [vmem:[%s7093_s0 + $0x50] sm:$0xff]   ;;  %v4999_v12 = vld [vmem:[%s7093_s0 + $0x68] sm:$0xff]   ;;  %v5004_v13 = vld [vmem:[%s7093_s0 + $0x60] sm:$0xff]  }
   0xc   :  { %66 = vst.msk [vmem:[#allocation0 + $0x240] ss:$8 sm:$0xf] %vm3_vm0, %v4967_v8   ;;  %68 = vst.msk [vmem:[#allocation0 + $0x240] ss:$8 sm:$0xf0] %vm3_vm0, %v4967_v8  }
   0xd   :  { %59 = vst.msk [vmem:[#allocation0 + $0x200] ss:$8 sm:$0xf] %vm3_vm0, %v4972_v9   ;;  %61 = vst.msk [vmem:[#allocation0 + $0x200] ss:$8 sm:$0xf0] %vm3_vm0, %v4972_v9  }
   0xe   :  { %80 = vst.msk [vmem:[#allocation0 + $0x2c0] ss:$8 sm:$0xf] %vm3_vm0, %v4977_v10   ;;  %82 = vst.msk [vmem:[#allocation0 + $0x2c0] ss:$8 sm:$0xf0] %vm3_vm0, %v4977_v10   ;;  %399 = vrot.lane.b32.xlu1 %v4949_v6, %s4887_s12  ;;  %390 = vrot.lane.b32.xlu0 %v4954_v7, %s4887_s12 }
   0xf   :  { %v5025_v14 = vld [vmem:[%s7093_s0 + $0x78] sm:$0xff]   ;;  %73 = vst.msk [vmem:[#allocation0 + $0x280] ss:$8 sm:$0xf] %vm3_vm0, %v4994_v11   ;;  %v5066_v15 = vld [vmem:[%s7093_s0 + $0x70] sm:$0xff]   ;;  %v5075_v16 = vld [vmem:[%s7093_s0 + $0x88] sm:$0xff]  }
  0x10   :  { %75 = vst.msk [vmem:[#allocation0 + $0x280] ss:$8 sm:$0xf0] %vm3_vm0, %v4994_v11   ;;  %94 = vst.msk [vmem:[#allocation0 + $0x340] ss:$8 sm:$0xf] %vm3_vm0, %v4999_v12  }
  0x11   :  { %96 = vst.msk [vmem:[#allocation0 + $0x340] ss:$8 sm:$0xf0] %vm3_vm0, %v4999_v12   ;;  %87 = vst.msk [vmem:[#allocation0 + $0x300] ss:$8 sm:$0xf] %vm3_vm0, %v5004_v13  }
  0x12   :  { %89 = vst.msk [vmem:[#allocation0 + $0x300] ss:$8 sm:$0xf0] %vm3_vm0, %v5004_v13   ;;  %110 = vst.msk [vmem:[#allocation0 + $0x3c0] ss:$8 sm:$0xf0] %vm3_vm0, %v5025_v14   ;;  %417 = vrot.lane.b32.xlu1 %v4967_v8, %s4887_s12  ;;  %408 = vrot.lane.b32.xlu0 %v4972_v9, %s4887_s12 }
  0x13   :  { %108 = vst.msk [vmem:[#allocation0 + $0x3c0] ss:$8 sm:$0xf] %vm3_vm0, %v5025_v14   ;;  %v5080_v17 = vld [vmem:[%s7093_s0 + $0x80] sm:$0xff]   ;;  %v5089_v18 = vld [vmem:[%s7093_s0 + $0x98] sm:$0xff]   ;;  %v5094_v19 = vld [vmem:[%s7093_s0 + $0x90] sm:$0xff]  }
  0x14   :  { %v5103_v20 = vld [vmem:[%s7093_s0 + $0xa8] sm:$0xff]   ;;  %v5108_v21 = vld [vmem:[%s7093_s0 + $0xa0] sm:$0xff]   ;;  %v5117_v22 = vld [vmem:[%s7093_s0 + $0xb8] sm:$0xff]  }
  0x15   :  { %v5122_v23 = vld [vmem:[%s7093_s0 + $0xb0] sm:$0xff]   ;;  %v5131_v24 = vld [vmem:[%s7093_s0 + $0xc8] sm:$0xff]   ;;  %v5136_v25 = vld [vmem:[%s7093_s0 + $0xc0] sm:$0xff]  }
  0x16   :  { %435 = vrot.lane.b32.xlu1 %v4977_v10, %s4887_s12  ;;  %426 = vrot.lane.b32.xlu0 %v4994_v11, %s4887_s12  ;;  %v5145_v26 = vld [vmem:[%s7093_s0 + $0xd8] sm:$0xff]   ;;  %v5150_v27 = vld [vmem:[%s7093_s0 + $0xd0] sm:$0xff]  }
  0x17   :  { %v5159_v28 = vld [vmem:[%s7093_s0 + $0xe8] sm:$0xff]   ;;  %v5164_v29 = vld [vmem:[%s7093_s0 + $0xe0] sm:$0xff]   ;;  %v5173_v30 = vld [vmem:[%s7093_s0 + $0xf8] sm:$0xff]  }
  0x18   :  { %v5178_v31 = vld [vmem:[%s7093_s0 + $0xf0] sm:$0xff]   ;;  %v5187_v32 = vld [vmem:[%s7093_s0 + $0x108] sm:$0xff]   ;;  %v5192_v33 = vld [vmem:[%s7093_s0 + $0x100] sm:$0xff]  }
  0x19   :  { %v5201_v34 = vld [vmem:[%s7093_s0 + $0x118] sm:$0xff]   ;;  %v5206_v35 = vld [vmem:[%s7093_s0 + $0x110] sm:$0xff]   ;;  %v5215_v36 = vld [vmem:[%s7093_s0 + $0x128] sm:$0xff]  }
  0x1a   :  { %453 = vrot.lane.b32.xlu1 %v4999_v12, %s4887_s12  ;;  %444 = vrot.lane.b32.xlu0 %v5004_v13, %s4887_s12  ;;  %v5220_v37 = vld [vmem:[%s7093_s0 + $0x120] sm:$0xff]   ;;  %v5229_v38 = vld [vmem:[%s7093_s0 + $0x138] sm:$0xff]  }
  0x1b   :  { %v5234_v39 = vld [vmem:[%s7093_s0 + $0x130] sm:$0xff]   ;;  %v5243_v40 = vld [vmem:[%s7093_s0 + $0x148] sm:$0xff]   ;;  %v5248_v41 = vld [vmem:[%s7093_s0 + $0x140] sm:$0xff]  }
  0x1c   :  { %v5257_v42 = vld [vmem:[%s7093_s0 + $0x158] sm:$0xff]   ;;  %v5262_v43 = vld [vmem:[%s7093_s0 + $0x150] sm:$0xff]   ;;  %v5271_v44 = vld [vmem:[%s7093_s0 + $0x168] sm:$0xff]  }
  0x1d   :  { %v5276_v45 = vld [vmem:[%s7093_s0 + $0x160] sm:$0xff]   ;;  %v5285_v46 = vld [vmem:[%s7093_s0 + $0x178] sm:$0xff]   ;;  %v5290_v47 = vld [vmem:[%s7093_s0 + $0x170] sm:$0xff]  }
  0x1e   :  { %471 = vrot.lane.b32.xlu1 %v5025_v14, %s4887_s12  ;;  %462 = vrot.lane.b32.xlu0 %v5066_v15, %s4887_s12 }
  0x22   :  { %489 = vrot.lane.b32.xlu1 %v5075_v16, %s4887_s12  ;;  %480 = vrot.lane.b32.xlu0 %v5080_v17, %s4887_s12 }
  0x26   :  { %507 = vrot.lane.b32.xlu1 %v5089_v18, %s4887_s12  ;;  %498 = vrot.lane.b32.xlu0 %v5094_v19, %s4887_s12 }
  0x2a   :  { %525 = vrot.lane.b32.xlu1 %v5103_v20, %s4887_s12  ;;  %516 = vrot.lane.b32.xlu0 %v5108_v21, %s4887_s12 }
  0x2e   :  { %543 = vrot.lane.b32.xlu1 %v5117_v22, %s4887_s12  ;;  %534 = vrot.lane.b32.xlu0 %v5122_v23, %s4887_s12 }
  0x32   :  { %561 = vrot.lane.b32.xlu1 %v5131_v24, %s4887_s12  ;;  %552 = vrot.lane.b32.xlu0 %v5136_v25, %s4887_s12 }
  0x36   :  { %579 = vrot.lane.b32.xlu1 %v5145_v26, %s4887_s12  ;;  %570 = vrot.lane.b32.xlu0 %v5150_v27, %s4887_s12 }
  0x3a   :  { %597 = vrot.lane.b32.xlu1 %v5159_v28, %s4887_s12  ;;  %588 = vrot.lane.b32.xlu0 %v5164_v29, %s4887_s12 }
  0x3e   :  { %615 = vrot.lane.b32.xlu1 %v5173_v30, %s4887_s12  ;;  %606 = vrot.lane.b32.xlu0 %v5178_v31, %s4887_s12 }
  0x42   :  { %633 = vrot.lane.b32.xlu1 %v5187_v32, %s4887_s12  ;;  %624 = vrot.lane.b32.xlu0 %v5192_v33, %s4887_s12 }
  0x46   :  { %651 = vrot.lane.b32.xlu1 %v5201_v34, %s4887_s12  ;;  %642 = vrot.lane.b32.xlu0 %v5206_v35, %s4887_s12 }
  0x4a   :  { %669 = vrot.lane.b32.xlu1 %v5215_v36, %s4887_s12  ;;  %660 = vrot.lane.b32.xlu0 %v5220_v37, %s4887_s12 }
  0x4e   :  { %687 = vrot.lane.b32.xlu1 %v5229_v38, %s4887_s12  ;;  %678 = vrot.lane.b32.xlu0 %v5234_v39, %s4887_s12 }
  0x52   :  { %705 = vrot.lane.b32.xlu1 %v5243_v40, %s4887_s12  ;;  %696 = vrot.lane.b32.xlu0 %v5248_v41, %s4887_s12 }
  0x56   :  { %723 = vrot.lane.b32.xlu1 %v5257_v42, %s4887_s12  ;;  %714 = vrot.lane.b32.xlu0 %v5262_v43, %s4887_s12 }
  0x5a   :  { %741 = vrot.lane.b32.xlu1 %v5271_v44, %s4887_s12  ;;  %732 = vrot.lane.b32.xlu0 %v5276_v45, %s4887_s12 }
  0x5e   :  { %759 = vrot.lane.b32.xlu1 %v5285_v46, %s4887_s12  ;;  %750 = vrot.lane.b32.xlu0 %v5290_v47, %s4887_s12  ;;  %s4888_s12 = smov 96  }
  0x62   :  { %776 = vrot.lane.b32.xlu1 %v4922_v3, %s4888_s12  ;;  %767 = vrot.lane.b32.xlu0 %v4908_v1, %s4888_s12 }
  0x66   :  { %794 = vrot.lane.b32.xlu1 %v4913_v2, %s4888_s12  ;;  %785 = vrot.lane.b32.xlu0 %v4903_v0, %s4888_s12 }
  0x6a   :  { %812 = vrot.lane.b32.xlu1 %v4927_v4, %s4888_s12  ;;  %803 = vrot.lane.b32.xlu0 %v4944_v5, %s4888_s12 }
  0x6e   :  { %830 = vrot.lane.b32.xlu1 %v4949_v6, %s4888_s12  ;;  %821 = vrot.lane.b32.xlu0 %v4954_v7, %s4888_s12 }
  0x72   :  { %848 = vrot.lane.b32.xlu1 %v4967_v8, %s4888_s12  ;;  %839 = vrot.lane.b32.xlu0 %v4972_v9, %s4888_s12 }
  0x74   :  { %v355_v48 = vpop.permute.xlu1 %354   ;;  %v337_v49 = vpop.permute.xlu0 %336  }
  0x75   :  { %358 = vst.msk [vmem:[#allocation0 + $0x81] ss:$8 sm:$0xf] %vm3_vm0, %v355_v48   ;;  %360 = vst.msk [vmem:[#allocation0 + $0x81] ss:$8 sm:$0xf0] %vm3_vm0, %v355_v48  }
  0x76   :  { %340 = vst.msk [vmem:[#allocation0 + $0x1] ss:$8 sm:$0xf] %vm3_vm0, %v337_v49   ;;  %342 = vst.msk [vmem:[#allocation0 + $0x1] ss:$8 sm:$0xf0] %vm3_vm0, %v337_v49   ;;  %866 = vrot.lane.b32.xlu1 %v4977_v10, %s4888_s12  ;;  %857 = vrot.lane.b32.xlu0 %v4994_v11, %s4888_s12 }
  0x78   :  { %v364_v50 = vpop.permute.xlu1 %363   ;;  %v346_v51 = vpop.permute.xlu0 %345  }
  0x79   :  { %367 = vst.msk [vmem:[#allocation0 + $0xc1] ss:$8 sm:$0xf] %vm3_vm0, %v364_v50   ;;  %369 = vst.msk [vmem:[#allocation0 + $0xc1] ss:$8 sm:$0xf0] %vm3_vm0, %v364_v50  }
  0x7a   :  { %349 = vst.msk [vmem:[#allocation0 + $0x41] ss:$8 sm:$0xf] %vm3_vm0, %v346_v51   ;;  %351 = vst.msk [vmem:[#allocation0 + $0x41] ss:$8 sm:$0xf0] %vm3_vm0, %v346_v51   ;;  %884 = vrot.lane.b32.xlu1 %v4999_v12, %s4888_s12  ;;  %875 = vrot.lane.b32.xlu0 %v5004_v13, %s4888_s12 }
  0x7c   :  { %v382_v52 = vpop.permute.xlu1 %381   ;;  %v373_v53 = vpop.permute.xlu0 %372  }
  0x7d   :  { %385 = vst.msk [vmem:[#allocation0 + $0x141] ss:$8 sm:$0xf] %vm3_vm0, %v382_v52   ;;  %387 = vst.msk [vmem:[#allocation0 + $0x141] ss:$8 sm:$0xf0] %vm3_vm0, %v382_v52  }
  0x7e   :  { %376 = vst.msk [vmem:[#allocation0 + $0x101] ss:$8 sm:$0xf] %vm3_vm0, %v373_v53   ;;  %378 = vst.msk [vmem:[#allocation0 + $0x101] ss:$8 sm:$0xf0] %vm3_vm0, %v373_v53   ;;  %902 = vrot.lane.b32.xlu1 %v5025_v14, %s4888_s12  ;;  %893 = vrot.lane.b32.xlu0 %v5066_v15, %s4888_s12 }
  0x80   :  { %v400_v54 = vpop.permute.xlu1 %399   ;;  %v391_v55 = vpop.permute.xlu0 %390  }
  0x81   :  { %403 = vst.msk [vmem:[#allocation0 + $0x1c1] ss:$8 sm:$0xf] %vm3_vm0, %v400_v54   ;;  %405 = vst.msk [vmem:[#allocation0 + $0x1c1] ss:$8 sm:$0xf0] %vm3_vm0, %v400_v54  }
  0x82   :  { %394 = vst.msk [vmem:[#allocation0 + $0x181] ss:$8 sm:$0xf] %vm3_vm0, %v391_v55   ;;  %396 = vst.msk [vmem:[#allocation0 + $0x181] ss:$8 sm:$0xf0] %vm3_vm0, %v391_v55   ;;  %920 = vrot.lane.b32.xlu1 %v5075_v16, %s4888_s12  ;;  %911 = vrot.lane.b32.xlu0 %v5080_v17, %s4888_s12 }
  0x84   :  { %v418_v56 = vpop.permute.xlu1 %417   ;;  %v409_v57 = vpop.permute.xlu0 %408  }
  0x85   :  { %421 = vst.msk [vmem:[#allocation0 + $0x241] ss:$8 sm:$0xf] %vm3_vm0, %v418_v56   ;;  %423 = vst.msk [vmem:[#allocation0 + $0x241] ss:$8 sm:$0xf0] %vm3_vm0, %v418_v56  }
  0x86   :  { %412 = vst.msk [vmem:[#allocation0 + $0x201] ss:$8 sm:$0xf] %vm3_vm0, %v409_v57   ;;  %414 = vst.msk [vmem:[#allocation0 + $0x201] ss:$8 sm:$0xf0] %vm3_vm0, %v409_v57   ;;  %938 = vrot.lane.b32.xlu1 %v5089_v18, %s4888_s12  ;;  %929 = vrot.lane.b32.xlu0 %v5094_v19, %s4888_s12 }
  0x88   :  { %v436_v58 = vpop.permute.xlu1 %435   ;;  %v427_v59 = vpop.permute.xlu0 %426  }
  0x89   :  { %439 = vst.msk [vmem:[#allocation0 + $0x2c1] ss:$8 sm:$0xf] %vm3_vm0, %v436_v58   ;;  %441 = vst.msk [vmem:[#allocation0 + $0x2c1] ss:$8 sm:$0xf0] %vm3_vm0, %v436_v58  }
  0x8a   :  { %430 = vst.msk [vmem:[#allocation0 + $0x281] ss:$8 sm:$0xf] %vm3_vm0, %v427_v59   ;;  %432 = vst.msk [vmem:[#allocation0 + $0x281] ss:$8 sm:$0xf0] %vm3_vm0, %v427_v59   ;;  %956 = vrot.lane.b32.xlu1 %v5103_v20, %s4888_s12  ;;  %947 = vrot.lane.b32.xlu0 %v5108_v21, %s4888_s12 }
  0x8c   :  { %v454_v60 = vpop.permute.xlu1 %453   ;;  %v445_v61 = vpop.permute.xlu0 %444  }
  0x8d   :  { %457 = vst.msk [vmem:[#allocation0 + $0x341] ss:$8 sm:$0xf] %vm3_vm0, %v454_v60   ;;  %459 = vst.msk [vmem:[#allocation0 + $0x341] ss:$8 sm:$0xf0] %vm3_vm0, %v454_v60  }
  0x8e   :  { %448 = vst.msk [vmem:[#allocation0 + $0x301] ss:$8 sm:$0xf] %vm3_vm0, %v445_v61   ;;  %450 = vst.msk [vmem:[#allocation0 + $0x301] ss:$8 sm:$0xf0] %vm3_vm0, %v445_v61   ;;  %974 = vrot.lane.b32.xlu1 %v5117_v22, %s4888_s12  ;;  %965 = vrot.lane.b32.xlu0 %v5122_v23, %s4888_s12 }
  0x90   :  { %v472_v62 = vpop.permute.xlu1 %471   ;;  %v463_v63 = vpop.permute.xlu0 %462  }
  0x91   :  { %475 = vst.msk [vmem:[#allocation0 + $0x3c1] ss:$8 sm:$0xf] %vm3_vm0, %v472_v62   ;;  %477 = vst.msk [vmem:[#allocation0 + $0x3c1] ss:$8 sm:$0xf0] %vm3_vm0, %v472_v62  }
  0x92   :  { %466 = vst.msk [vmem:[#allocation0 + $0x381] ss:$8 sm:$0xf] %vm3_vm0, %v463_v63   ;;  %468 = vst.msk [vmem:[#allocation0 + $0x381] ss:$8 sm:$0xf0] %vm3_vm0, %v463_v63   ;;  %992 = vrot.lane.b32.xlu1 %v5131_v24, %s4888_s12  ;;  %983 = vrot.lane.b32.xlu0 %v5136_v25, %s4888_s12 }
  0x94   :  { %v490_v48 = vpop.permute.xlu1 %489   ;;  %v481_v49 = vpop.permute.xlu0 %480  }
  0x95   :  { %493 = vst.msk [vmem:[#allocation0 + $0x441] ss:$8 sm:$0xf] %vm3_vm0, %v490_v48   ;;  %495 = vst.msk [vmem:[#allocation0 + $0x441] ss:$8 sm:$0xf0] %vm3_vm0, %v490_v48  }
  0x96   :  { %484 = vst.msk [vmem:[#allocation0 + $0x401] ss:$8 sm:$0xf] %vm3_vm0, %v481_v49   ;;  %486 = vst.msk [vmem:[#allocation0 + $0x401] ss:$8 sm:$0xf0] %vm3_vm0, %v481_v49   ;;  %1010 = vrot.lane.b32.xlu1 %v5145_v26, %s4888_s12  ;;  %1001 = vrot.lane.b32.xlu0 %v5150_v27, %s4888_s12 }
  0x98   :  { %v508_v50 = vpop.permute.xlu1 %507   ;;  %v499_v51 = vpop.permute.xlu0 %498  }
  0x99   :  { %511 = vst.msk [vmem:[#allocation0 + $0x4c1] ss:$8 sm:$0xf] %vm3_vm0, %v508_v50   ;;  %513 = vst.msk [vmem:[#allocation0 + $0x4c1] ss:$8 sm:$0xf0] %vm3_vm0, %v508_v50  }
  0x9a   :  { %502 = vst.msk [vmem:[#allocation0 + $0x481] ss:$8 sm:$0xf] %vm3_vm0, %v499_v51   ;;  %504 = vst.msk [vmem:[#allocation0 + $0x481] ss:$8 sm:$0xf0] %vm3_vm0, %v499_v51   ;;  %1028 = vrot.lane.b32.xlu1 %v5159_v28, %s4888_s12  ;;  %1019 = vrot.lane.b32.xlu0 %v5164_v29, %s4888_s12 }
  0x9c   :  { %v526_v52 = vpop.permute.xlu1 %525   ;;  %v517_v53 = vpop.permute.xlu0 %516  }
  0x9d   :  { %529 = vst.msk [vmem:[#allocation0 + $0x541] ss:$8 sm:$0xf] %vm3_vm0, %v526_v52   ;;  %531 = vst.msk [vmem:[#allocation0 + $0x541] ss:$8 sm:$0xf0] %vm3_vm0, %v526_v52  }
  0x9e   :  { %520 = vst.msk [vmem:[#allocation0 + $0x501] ss:$8 sm:$0xf] %vm3_vm0, %v517_v53   ;;  %522 = vst.msk [vmem:[#allocation0 + $0x501] ss:$8 sm:$0xf0] %vm3_vm0, %v517_v53   ;;  %1046 = vrot.lane.b32.xlu1 %v5173_v30, %s4888_s12  ;;  %1037 = vrot.lane.b32.xlu0 %v5178_v31, %s4888_s12 }
  0xa0   :  { %v544_v54 = vpop.permute.xlu1 %543   ;;  %v535_v55 = vpop.permute.xlu0 %534  }
  0xa1   :  { %547 = vst.msk [vmem:[#allocation0 + $0x5c1] ss:$8 sm:$0xf] %vm3_vm0, %v544_v54   ;;  %549 = vst.msk [vmem:[#allocation0 + $0x5c1] ss:$8 sm:$0xf0] %vm3_vm0, %v544_v54  }
  0xa2   :  { %538 = vst.msk [vmem:[#allocation0 + $0x581] ss:$8 sm:$0xf] %vm3_vm0, %v535_v55   ;;  %540 = vst.msk [vmem:[#allocation0 + $0x581] ss:$8 sm:$0xf0] %vm3_vm0, %v535_v55   ;;  %1064 = vrot.lane.b32.xlu1 %v5187_v32, %s4888_s12  ;;  %1055 = vrot.lane.b32.xlu0 %v5192_v33, %s4888_s12 }
  0xa4   :  { %v562_v56 = vpop.permute.xlu1 %561   ;;  %v553_v57 = vpop.permute.xlu0 %552  }
  0xa5   :  { %565 = vst.msk [vmem:[#allocation0 + $0x641] ss:$8 sm:$0xf] %vm3_vm0, %v562_v56   ;;  %567 = vst.msk [vmem:[#allocation0 + $0x641] ss:$8 sm:$0xf0] %vm3_vm0, %v562_v56  }
  0xa6   :  { %556 = vst.msk [vmem:[#allocation0 + $0x601] ss:$8 sm:$0xf] %vm3_vm0, %v553_v57   ;;  %558 = vst.msk [vmem:[#allocation0 + $0x601] ss:$8 sm:$0xf0] %vm3_vm0, %v553_v57   ;;  %1082 = vrot.lane.b32.xlu1 %v5201_v34, %s4888_s12  ;;  %1073 = vrot.lane.b32.xlu0 %v5206_v35, %s4888_s12 }
  0xa7   :  { %v4326_v56 = vld [vmem:[%s7093_s0 + $0x70] sm:$0xff]  }
  0xa8   :  { %v580_v58 = vpop.permute.xlu1 %579   ;;  %v571_v59 = vpop.permute.xlu0 %570   ;;  %101 = vst.msk [vmem:[#allocation0 + $0x380] ss:$8 sm:$0xf] %vm3_vm0, %v4326_v56   ;;  %103 = vst.msk [vmem:[#allocation0 + $0x380] ss:$8 sm:$0xf0] %vm3_vm0, %v4326_v56  }
  0xa9   :  { %583 = vst.msk [vmem:[#allocation0 + $0x6c1] ss:$8 sm:$0xf] %vm3_vm0, %v580_v58   ;;  %585 = vst.msk [vmem:[#allocation0 + $0x6c1] ss:$8 sm:$0xf0] %vm3_vm0, %v580_v58  }
  0xaa   :  { %574 = vst.msk [vmem:[#allocation0 + $0x681] ss:$8 sm:$0xf] %vm3_vm0, %v571_v59   ;;  %576 = vst.msk [vmem:[#allocation0 + $0x681] ss:$8 sm:$0xf0] %vm3_vm0, %v571_v59   ;;  %1100 = vrot.lane.b32.xlu1 %v5215_v36, %s4888_s12  ;;  %1091 = vrot.lane.b32.xlu0 %v5220_v37, %s4888_s12 }
  0xab   :  { %v4354_v56 = vld [vmem:[%s7093_s0 + $0x150] sm:$0xff]  }
  0xac   :  { %v598_v60 = vpop.permute.xlu1 %597   ;;  %v589_v61 = vpop.permute.xlu0 %588   ;;  %297 = vst.msk [vmem:[#allocation0 + $0xa80] ss:$8 sm:$0xf] %vm3_vm0, %v4354_v56   ;;  %299 = vst.msk [vmem:[#allocation0 + $0xa80] ss:$8 sm:$0xf0] %vm3_vm0, %v4354_v56  }
  0xad   :  { %601 = vst.msk [vmem:[#allocation0 + $0x741] ss:$8 sm:$0xf] %vm3_vm0, %v598_v60   ;;  %603 = vst.msk [vmem:[#allocation0 + $0x741] ss:$8 sm:$0xf0] %vm3_vm0, %v598_v60  }
  0xae   :  { %592 = vst.msk [vmem:[#allocation0 + $0x701] ss:$8 sm:$0xf] %vm3_vm0, %v589_v61   ;;  %594 = vst.msk [vmem:[#allocation0 + $0x701] ss:$8 sm:$0xf0] %vm3_vm0, %v589_v61   ;;  %1118 = vrot.lane.b32.xlu1 %v5229_v38, %s4888_s12  ;;  %1109 = vrot.lane.b32.xlu0 %v5234_v39, %s4888_s12 }
  0xaf   :  { %v4333_v61 = vld [vmem:[%s7093_s0 + $0xa8] sm:$0xff]  }
  0xb0   :  { %v616_v62 = vpop.permute.xlu1 %615   ;;  %v607_v63 = vpop.permute.xlu0 %606   ;;  %150 = vst.msk [vmem:[#allocation0 + $0x540] ss:$8 sm:$0xf] %vm3_vm0, %v4333_v61   ;;  %152 = vst.msk [vmem:[#allocation0 + $0x540] ss:$8 sm:$0xf0] %vm3_vm0, %v4333_v61  }
  0xb1   :  { %619 = vst.msk [vmem:[#allocation0 + $0x7c1] ss:$8 sm:$0xf] %vm3_vm0, %v616_v62   ;;  %621 = vst.msk [vmem:[#allocation0 + $0x7c1] ss:$8 sm:$0xf0] %vm3_vm0, %v616_v62  }
  0xb2   :  { %610 = vst.msk [vmem:[#allocation0 + $0x781] ss:$8 sm:$0xf] %vm3_vm0, %v607_v63   ;;  %612 = vst.msk [vmem:[#allocation0 + $0x781] ss:$8 sm:$0xf0] %vm3_vm0, %v607_v63   ;;  %1136 = vrot.lane.b32.xlu1 %v5243_v40, %s4888_s12  ;;  %1127 = vrot.lane.b32.xlu0 %v5248_v41, %s4888_s12 }
  0xb3   :  { %v4332_v62 = vld [vmem:[%s7093_s0 + $0xa0] sm:$0xff]  }
  0xb4   :  { %v634_v48 = vpop.permute.xlu1 %633   ;;  %v625_v49 = vpop.permute.xlu0 %624   ;;  %143 = vst.msk [vmem:[#allocation0 + $0x500] ss:$8 sm:$0xf] %vm3_vm0, %v4332_v62   ;;  %145 = vst.msk [vmem:[#allocation0 + $0x500] ss:$8 sm:$0xf0] %vm3_vm0, %v4332_v62  }
  0xb5   :  { %637 = vst.msk [vmem:[#allocation0 + $0x841] ss:$8 sm:$0xf] %vm3_vm0, %v634_v48   ;;  %639 = vst.msk [vmem:[#allocation0 + $0x841] ss:$8 sm:$0xf0] %vm3_vm0, %v634_v48  }
  0xb6   :  { %628 = vst.msk [vmem:[#allocation0 + $0x801] ss:$8 sm:$0xf] %vm3_vm0, %v625_v49   ;;  %630 = vst.msk [vmem:[#allocation0 + $0x801] ss:$8 sm:$0xf0] %vm3_vm0, %v625_v49   ;;  %1154 = vrot.lane.b32.xlu1 %v5257_v42, %s4888_s12  ;;  %1145 = vrot.lane.b32.xlu0 %v5262_v43, %s4888_s12 }
  0xb8   :  { %v652_v50 = vpop.permute.xlu1 %651   ;;  %v643_v51 = vpop.permute.xlu0 %642  }
  0xb9   :  { %655 = vst.msk [vmem:[#allocation0 + $0x8c1] ss:$8 sm:$0xf] %vm3_vm0, %v652_v50   ;;  %657 = vst.msk [vmem:[#allocation0 + $0x8c1] ss:$8 sm:$0xf0] %vm3_vm0, %v652_v50  }
  0xba   :  { %646 = vst.msk [vmem:[#allocation0 + $0x881] ss:$8 sm:$0xf] %vm3_vm0, %v643_v51   ;;  %648 = vst.msk [vmem:[#allocation0 + $0x881] ss:$8 sm:$0xf0] %vm3_vm0, %v643_v51   ;;  %1172 = vrot.lane.b32.xlu1 %v5271_v44, %s4888_s12  ;;  %1163 = vrot.lane.b32.xlu0 %v5276_v45, %s4888_s12 }
  0xbb   :  { %v4339_v51 = vld [vmem:[%s7093_s0 + $0xd8] sm:$0xff]  }
  0xbc   :  { %v670_v52 = vpop.permute.xlu1 %669   ;;  %v661_v53 = vpop.permute.xlu0 %660   ;;  %192 = vst.msk [vmem:[#allocation0 + $0x6c0] ss:$8 sm:$0xf] %vm3_vm0, %v4339_v51   ;;  %194 = vst.msk [vmem:[#allocation0 + $0x6c0] ss:$8 sm:$0xf0] %vm3_vm0, %v4339_v51  }
  0xbd   :  { %673 = vst.msk [vmem:[#allocation0 + $0x941] ss:$8 sm:$0xf] %vm3_vm0, %v670_v52   ;;  %675 = vst.msk [vmem:[#allocation0 + $0x941] ss:$8 sm:$0xf0] %vm3_vm0, %v670_v52  }
  0xbe   :  { %664 = vst.msk [vmem:[#allocation0 + $0x901] ss:$8 sm:$0xf] %vm3_vm0, %v661_v53   ;;  %666 = vst.msk [vmem:[#allocation0 + $0x901] ss:$8 sm:$0xf0] %vm3_vm0, %v661_v53   ;;  %1190 = vrot.lane.b32.xlu1 %v5285_v46, %s4888_s12  ;;  %1181 = vrot.lane.b32.xlu0 %v5290_v47, %s4888_s12 }
  0xbf   :  { %v4338_v52 = vld [vmem:[%s7093_s0 + $0xd0] sm:$0xff]  }
  0xc0   :  { %v688_v54 = vpop.permute.xlu1 %687   ;;  %v679_v55 = vpop.permute.xlu0 %678   ;;  %185 = vst.msk [vmem:[#allocation0 + $0x680] ss:$8 sm:$0xf] %vm3_vm0, %v4338_v52   ;;  %187 = vst.msk [vmem:[#allocation0 + $0x680] ss:$8 sm:$0xf0] %vm3_vm0, %v4338_v52  }
  0xc1   :  { %691 = vst.msk [vmem:[#allocation0 + $0x9c1] ss:$8 sm:$0xf] %vm3_vm0, %v688_v54   ;;  %693 = vst.msk [vmem:[#allocation0 + $0x9c1] ss:$8 sm:$0xf0] %vm3_vm0, %v688_v54  }
  0xc2   :  { %682 = vst.msk [vmem:[#allocation0 + $0x981] ss:$8 sm:$0xf] %vm3_vm0, %v679_v55   ;;  %684 = vst.msk [vmem:[#allocation0 + $0x981] ss:$8 sm:$0xf0] %vm3_vm0, %v679_v55   ;;  %1207 = vrot.lane.b32.xlu1 %v4922_v3, %s4889_s19  ;;  %1198 = vrot.lane.b32.xlu0 %v4908_v1, %s4889_s19 }
  0xc4   :  { %v706_v1 = vpop.permute.xlu1 %705   ;;  %v697_v3 = vpop.permute.xlu0 %696  }
  0xc5   :  { %709 = vst.msk [vmem:[#allocation0 + $0xa41] ss:$8 sm:$0xf] %vm3_vm0, %v706_v1   ;;  %711 = vst.msk [vmem:[#allocation0 + $0xa41] ss:$8 sm:$0xf0] %vm3_vm0, %v706_v1  }
  0xc6   :  { %700 = vst.msk [vmem:[#allocation0 + $0xa01] ss:$8 sm:$0xf] %vm3_vm0, %v697_v3   ;;  %702 = vst.msk [vmem:[#allocation0 + $0xa01] ss:$8 sm:$0xf0] %vm3_vm0, %v697_v3   ;;  %1225 = vrot.lane.b32.xlu1 %v4913_v2, %s4889_s19  ;;  %1216 = vrot.lane.b32.xlu0 %v4903_v0, %s4889_s19 }
  0xc7   :  { %v4345_v3 = vld [vmem:[%s7093_s0 + $0x108] sm:$0xff]  }
  0xc8   :  { %v724_v0 = vpop.permute.xlu1 %723   ;;  %v715_v2 = vpop.permute.xlu0 %714   ;;  %234 = vst.msk [vmem:[#allocation0 + $0x840] ss:$8 sm:$0xf] %vm3_vm0, %v4345_v3   ;;  %236 = vst.msk [vmem:[#allocation0 + $0x840] ss:$8 sm:$0xf0] %vm3_vm0, %v4345_v3  }
  0xc9   :  { %727 = vst.msk [vmem:[#allocation0 + $0xac1] ss:$8 sm:$0xf] %vm3_vm0, %v724_v0   ;;  %729 = vst.msk [vmem:[#allocation0 + $0xac1] ss:$8 sm:$0xf0] %vm3_vm0, %v724_v0  }
  0xca   :  { %718 = vst.msk [vmem:[#allocation0 + $0xa81] ss:$8 sm:$0xf] %vm3_vm0, %v715_v2   ;;  %720 = vst.msk [vmem:[#allocation0 + $0xa81] ss:$8 sm:$0xf0] %vm3_vm0, %v715_v2   ;;  %1243 = vrot.lane.b32.xlu1 %v4927_v4, %s4889_s19  ;;  %1234 = vrot.lane.b32.xlu0 %v4944_v5, %s4889_s19 }
  0xcb   :  { %v4344_v0 = vld [vmem:[%s7093_s0 + $0x100] sm:$0xff]  }
  0xcc   :  { %v742_v4 = vpop.permute.xlu1 %741   ;;  %v733_v5 = vpop.permute.xlu0 %732   ;;  %227 = vst.msk [vmem:[#allocation0 + $0x800] ss:$8 sm:$0xf] %vm3_vm0, %v4344_v0   ;;  %229 = vst.msk [vmem:[#allocation0 + $0x800] ss:$8 sm:$0xf0] %vm3_vm0, %v4344_v0  }
  0xcd   :  { %745 = vst.msk [vmem:[#allocation0 + $0xb41] ss:$8 sm:$0xf] %vm3_vm0, %v742_v4   ;;  %747 = vst.msk [vmem:[#allocation0 + $0xb41] ss:$8 sm:$0xf0] %vm3_vm0, %v742_v4  }
  0xce   :  { %736 = vst.msk [vmem:[#allocation0 + $0xb01] ss:$8 sm:$0xf] %vm3_vm0, %v733_v5   ;;  %738 = vst.msk [vmem:[#allocation0 + $0xb01] ss:$8 sm:$0xf0] %vm3_vm0, %v733_v5   ;;  %1261 = vrot.lane.b32.xlu1 %v4949_v6, %s4889_s19  ;;  %1252 = vrot.lane.b32.xlu0 %v4954_v7, %s4889_s19 }
  0xd0   :  { %v760_v6 = vpop.permute.xlu1 %759   ;;  %v751_v7 = vpop.permute.xlu0 %750  }
  0xd1   :  { %763 = vst.msk [vmem:[#allocation0 + $0xbc1] ss:$8 sm:$0xf] %vm3_vm0, %v760_v6   ;;  %765 = vst.msk [vmem:[#allocation0 + $0xbc1] ss:$8 sm:$0xf0] %vm3_vm0, %v760_v6  }
  0xd2   :  { %754 = vst.msk [vmem:[#allocation0 + $0xb81] ss:$8 sm:$0xf] %vm3_vm0, %v751_v7   ;;  %756 = vst.msk [vmem:[#allocation0 + $0xb81] ss:$8 sm:$0xf0] %vm3_vm0, %v751_v7   ;;  %1279 = vrot.lane.b32.xlu1 %v4967_v8, %s4889_s19  ;;  %1270 = vrot.lane.b32.xlu0 %v4972_v9, %s4889_s19 }
  0xd3   :  { %v4351_v7 = vld [vmem:[%s7093_s0 + $0x138] sm:$0xff]  }
  0xd4   :  { %v777_v8 = vpop.permute.xlu1 %776   ;;  %v768_v9 = vpop.permute.xlu0 %767   ;;  %276 = vst.msk [vmem:[#allocation0 + $0x9c0] ss:$8 sm:$0xf] %vm3_vm0, %v4351_v7   ;;  %278 = vst.msk [vmem:[#allocation0 + $0x9c0] ss:$8 sm:$0xf0] %vm3_vm0, %v4351_v7  }
  0xd5   :  { %780 = vst.msk [vmem:[#allocation0 + $0x42] ss:$8 sm:$0xf] %vm3_vm0, %v777_v8   ;;  %782 = vst.msk [vmem:[#allocation0 + $0x42] ss:$8 sm:$0xf0] %vm3_vm0, %v777_v8  }
  0xd6   :  { %771 = vst.msk [vmem:[#allocation0 + $0x2] ss:$8 sm:$0xf] %vm3_vm0, %v768_v9   ;;  %773 = vst.msk [vmem:[#allocation0 + $0x2] ss:$8 sm:$0xf0] %vm3_vm0, %v768_v9   ;;  %1297 = vrot.lane.b32.xlu1 %v4977_v10, %s4889_s19  ;;  %1288 = vrot.lane.b32.xlu0 %v4994_v11, %s4889_s19 }
  0xd7   :  { %v4350_v8 = vld [vmem:[%s7093_s0 + $0x130] sm:$0xff]   ;;  %v4353_v9 = vld [vmem:[%s7093_s0 + $0x148] sm:$0xff]  }
  0xd8   :  { %v795_v10 = vpop.permute.xlu1 %794   ;;  %v786_v11 = vpop.permute.xlu0 %785   ;;  %269 = vst.msk [vmem:[#allocation0 + $0x980] ss:$8 sm:$0xf] %vm3_vm0, %v4350_v8   ;;  %271 = vst.msk [vmem:[#allocation0 + $0x980] ss:$8 sm:$0xf0] %vm3_vm0, %v4350_v8  }
  0xd9   :  { %798 = vst.msk [vmem:[#allocation0 + $0xc2] ss:$8 sm:$0xf] %vm3_vm0, %v795_v10   ;;  %800 = vst.msk [vmem:[#allocation0 + $0xc2] ss:$8 sm:$0xf0] %vm3_vm0, %v795_v10  }
  0xda   :  { %789 = vst.msk [vmem:[#allocation0 + $0x82] ss:$8 sm:$0xf] %vm3_vm0, %v786_v11   ;;  %791 = vst.msk [vmem:[#allocation0 + $0x82] ss:$8 sm:$0xf0] %vm3_vm0, %v786_v11   ;;  %1315 = vrot.lane.b32.xlu1 %v4999_v12, %s4889_s19  ;;  %1306 = vrot.lane.b32.xlu0 %v5004_v13, %s4889_s19 }
  0xdb   :  { %v4352_v10 = vld [vmem:[%s7093_s0 + $0x140] sm:$0xff]   ;;  %290 = vst.msk [vmem:[#allocation0 + $0xa40] ss:$8 sm:$0xf] %vm3_vm0, %v4353_v9  }
  0xdc   :  { %v813_v12 = vpop.permute.xlu1 %812   ;;  %v804_v13 = vpop.permute.xlu0 %803   ;;  %292 = vst.msk [vmem:[#allocation0 + $0xa40] ss:$8 sm:$0xf0] %vm3_vm0, %v4353_v9   ;;  %283 = vst.msk [vmem:[#allocation0 + $0xa00] ss:$8 sm:$0xf] %vm3_vm0, %v4352_v10  }
  0xdd   :  { %816 = vst.msk [vmem:[#allocation0 + $0x142] ss:$8 sm:$0xf] %vm3_vm0, %v813_v12   ;;  %818 = vst.msk [vmem:[#allocation0 + $0x142] ss:$8 sm:$0xf0] %vm3_vm0, %v813_v12  }
  0xde   :  { %807 = vst.msk [vmem:[#allocation0 + $0x102] ss:$8 sm:$0xf] %vm3_vm0, %v804_v13   ;;  %809 = vst.msk [vmem:[#allocation0 + $0x102] ss:$8 sm:$0xf0] %vm3_vm0, %v804_v13   ;;  %1333 = vrot.lane.b32.xlu1 %v5025_v14, %s4889_s19  ;;  %1324 = vrot.lane.b32.xlu0 %v5066_v15, %s4889_s19 }
  0xdf   :  { %285 = vst.msk [vmem:[#allocation0 + $0xa00] ss:$8 sm:$0xf0] %vm3_vm0, %v4352_v10   ;;  %v4355_v13 = vld [vmem:[%s7093_s0 + $0x158] sm:$0xff]  }
  0xe0   :  { %v831_v14 = vpop.permute.xlu1 %830   ;;  %v822_v15 = vpop.permute.xlu0 %821   ;;  %304 = vst.msk [vmem:[#allocation0 + $0xac0] ss:$8 sm:$0xf] %vm3_vm0, %v4355_v13   ;;  %306 = vst.msk [vmem:[#allocation0 + $0xac0] ss:$8 sm:$0xf0] %vm3_vm0, %v4355_v13  }
  0xe1   :  { %834 = vst.msk [vmem:[#allocation0 + $0x1c2] ss:$8 sm:$0xf] %vm3_vm0, %v831_v14   ;;  %836 = vst.msk [vmem:[#allocation0 + $0x1c2] ss:$8 sm:$0xf0] %vm3_vm0, %v831_v14  }
  0xe2   :  { %825 = vst.msk [vmem:[#allocation0 + $0x182] ss:$8 sm:$0xf] %vm3_vm0, %v822_v15   ;;  %827 = vst.msk [vmem:[#allocation0 + $0x182] ss:$8 sm:$0xf0] %vm3_vm0, %v822_v15   ;;  %1351 = vrot.lane.b32.xlu1 %v5075_v16, %s4889_s19  ;;  %1342 = vrot.lane.b32.xlu0 %v5080_v17, %s4889_s19 }
  0xe3   :  { %v4329_v16 = vld [vmem:[%s7093_s0 + $0x88] sm:$0xff]   ;;  %v4328_v17 = vld [vmem:[%s7093_s0 + $0x80] sm:$0xff]  }
  0xe4   :  { %122 = vst.msk [vmem:[#allocation0 + $0x440] ss:$8 sm:$0xf] %vm3_vm0, %v4329_v16   ;;  %124 = vst.msk [vmem:[#allocation0 + $0x440] ss:$8 sm:$0xf0] %vm3_vm0, %v4329_v16   ;;  %v849_v57 = vpop.permute.xlu1 %848   ;;  %v840_v58 = vpop.permute.xlu0 %839  }
  0xe5   :  { %115 = vst.msk [vmem:[#allocation0 + $0x400] ss:$8 sm:$0xf] %vm3_vm0, %v4328_v17   ;;  %117 = vst.msk [vmem:[#allocation0 + $0x400] ss:$8 sm:$0xf0] %vm3_vm0, %v4328_v17  }
  0xe6   :  { %852 = vst.msk [vmem:[#allocation0 + $0x242] ss:$8 sm:$0xf] %vm3_vm0, %v849_v57   ;;  %854 = vst.msk [vmem:[#allocation0 + $0x242] ss:$8 sm:$0xf0] %vm3_vm0, %v849_v57   ;;  %1369 = vrot.lane.b32.xlu1 %v5089_v18, %s4889_s19  ;;  %1360 = vrot.lane.b32.xlu0 %v5094_v19, %s4889_s19 }
  0xe7   :  { %843 = vst.msk [vmem:[#allocation0 + $0x202] ss:$8 sm:$0xf] %vm3_vm0, %v840_v58   ;;  %845 = vst.msk [vmem:[#allocation0 + $0x202] ss:$8 sm:$0xf0] %vm3_vm0, %v840_v58  }
  0xe8   :  { %v4331_v18 = vld [vmem:[%s7093_s0 + $0x98] sm:$0xff]   ;;  %v4330_v19 = vld [vmem:[%s7093_s0 + $0x90] sm:$0xff]   ;;  %v867_v59 = vpop.permute.xlu1 %866   ;;  %v858_v60 = vpop.permute.xlu0 %857   ;;  %v4357_v57 = vld [vmem:[%s7093_s0 + $0x168] sm:$0xff]  }
  0xe9   :  { %136 = vst.msk [vmem:[#allocation0 + $0x4c0] ss:$8 sm:$0xf] %vm3_vm0, %v4331_v18   ;;  %138 = vst.msk [vmem:[#allocation0 + $0x4c0] ss:$8 sm:$0xf0] %vm3_vm0, %v4331_v18  }
  0xea   :  { %129 = vst.msk [vmem:[#allocation0 + $0x480] ss:$8 sm:$0xf] %vm3_vm0, %v4330_v19   ;;  %131 = vst.msk [vmem:[#allocation0 + $0x480] ss:$8 sm:$0xf0] %vm3_vm0, %v4330_v19   ;;  %1387 = vrot.lane.b32.xlu1 %v5103_v20, %s4889_s19  ;;  %1378 = vrot.lane.b32.xlu0 %v5108_v21, %s4889_s19 }
  0xeb   :  { %870 = vst.msk [vmem:[#allocation0 + $0x2c2] ss:$8 sm:$0xf] %vm3_vm0, %v867_v59   ;;  %872 = vst.msk [vmem:[#allocation0 + $0x2c2] ss:$8 sm:$0xf0] %vm3_vm0, %v867_v59  }
  0xec   :  { %861 = vst.msk [vmem:[#allocation0 + $0x282] ss:$8 sm:$0xf] %vm3_vm0, %v858_v60   ;;  %863 = vst.msk [vmem:[#allocation0 + $0x282] ss:$8 sm:$0xf0] %vm3_vm0, %v858_v60   ;;  %v885_v20 = vpop.permute.xlu1 %884   ;;  %v876_v21 = vpop.permute.xlu0 %875  }
  0xed   :  { %888 = vst.msk [vmem:[#allocation0 + $0x342] ss:$8 sm:$0xf] %vm3_vm0, %v885_v20   ;;  %890 = vst.msk [vmem:[#allocation0 + $0x342] ss:$8 sm:$0xf0] %vm3_vm0, %v885_v20  }
  0xee   :  { %879 = vst.msk [vmem:[#allocation0 + $0x302] ss:$8 sm:$0xf] %vm3_vm0, %v876_v21   ;;  %881 = vst.msk [vmem:[#allocation0 + $0x302] ss:$8 sm:$0xf0] %vm3_vm0, %v876_v21   ;;  %1405 = vrot.lane.b32.xlu1 %v5117_v22, %s4889_s19  ;;  %1396 = vrot.lane.b32.xlu0 %v5122_v23, %s4889_s19 }
  0xef   :  { %v4356_v58 = vld [vmem:[%s7093_s0 + $0x160] sm:$0xff]   ;;  %318 = vst.msk [vmem:[#allocation0 + $0xb40] ss:$8 sm:$0xf] %vm3_vm0, %v4357_v57   ;;  %v4359_v59 = vld [vmem:[%s7093_s0 + $0x178] sm:$0xff]   ;;  %v4358_v60 = vld [vmem:[%s7093_s0 + $0x170] sm:$0xff]  }
  0xf0   :  { %v903_v22 = vpop.permute.xlu1 %902   ;;  %v894_v23 = vpop.permute.xlu0 %893   ;;  %320 = vst.msk [vmem:[#allocation0 + $0xb40] ss:$8 sm:$0xf0] %vm3_vm0, %v4357_v57   ;;  %311 = vst.msk [vmem:[#allocation0 + $0xb00] ss:$8 sm:$0xf] %vm3_vm0, %v4356_v58  }
  0xf1   :  { %906 = vst.msk [vmem:[#allocation0 + $0x3c2] ss:$8 sm:$0xf] %vm3_vm0, %v903_v22   ;;  %908 = vst.msk [vmem:[#allocation0 + $0x3c2] ss:$8 sm:$0xf0] %vm3_vm0, %v903_v22  }
  0xf2   :  { %897 = vst.msk [vmem:[#allocation0 + $0x382] ss:$8 sm:$0xf] %vm3_vm0, %v894_v23   ;;  %899 = vst.msk [vmem:[#allocation0 + $0x382] ss:$8 sm:$0xf0] %vm3_vm0, %v894_v23   ;;  %1423 = vrot.lane.b32.xlu1 %v5131_v24, %s4889_s19  ;;  %1414 = vrot.lane.b32.xlu0 %v5136_v25, %s4889_s19 }
  0xf3   :  { %v4335_v24 = vld [vmem:[%s7093_s0 + $0xb8] sm:$0xff]   ;;  %v4334_v25 = vld [vmem:[%s7093_s0 + $0xb0] sm:$0xff]   ;;  %313 = vst.msk [vmem:[#allocation0 + $0xb00] ss:$8 sm:$0xf0] %vm3_vm0, %v4356_v58  }
  0xf4   :  { %164 = vst.msk [vmem:[#allocation0 + $0x5c0] ss:$8 sm:$0xf] %vm3_vm0, %v4335_v24   ;;  %166 = vst.msk [vmem:[#allocation0 + $0x5c0] ss:$8 sm:$0xf0] %vm3_vm0, %v4335_v24   ;;  %v921_v63 = vpop.permute.xlu1 %920   ;;  %v912_v48 = vpop.permute.xlu0 %911  }
  0xf5   :  { %157 = vst.msk [vmem:[#allocation0 + $0x580] ss:$8 sm:$0xf] %vm3_vm0, %v4334_v25   ;;  %159 = vst.msk [vmem:[#allocation0 + $0x580] ss:$8 sm:$0xf0] %vm3_vm0, %v4334_v25  }
  0xf6   :  { %924 = vst.msk [vmem:[#allocation0 + $0x442] ss:$8 sm:$0xf] %vm3_vm0, %v921_v63   ;;  %926 = vst.msk [vmem:[#allocation0 + $0x442] ss:$8 sm:$0xf0] %vm3_vm0, %v921_v63   ;;  %1441 = vrot.lane.b32.xlu1 %v5145_v26, %s4889_s19  ;;  %1432 = vrot.lane.b32.xlu0 %v5150_v27, %s4889_s19 }
  0xf7   :  { %915 = vst.msk [vmem:[#allocation0 + $0x402] ss:$8 sm:$0xf] %vm3_vm0, %v912_v48   ;;  %917 = vst.msk [vmem:[#allocation0 + $0x402] ss:$8 sm:$0xf0] %vm3_vm0, %v912_v48  }
  0xf8   :  { %v4337_v26 = vld [vmem:[%s7093_s0 + $0xc8] sm:$0xff]   ;;  %v4336_v27 = vld [vmem:[%s7093_s0 + $0xc0] sm:$0xff]   ;;  %v939_v49 = vpop.permute.xlu1 %938   ;;  %v930_v50 = vpop.permute.xlu0 %929   ;;  %332 = vst.msk [vmem:[#allocation0 + $0xbc0] ss:$8 sm:$0xf] %vm3_vm0, %v4359_v59  }
  0xf9   :  { %178 = vst.msk [vmem:[#allocation0 + $0x640] ss:$8 sm:$0xf] %vm3_vm0, %v4337_v26   ;;  %180 = vst.msk [vmem:[#allocation0 + $0x640] ss:$8 sm:$0xf0] %vm3_vm0, %v4337_v26  }
  0xfa   :  { %171 = vst.msk [vmem:[#allocation0 + $0x600] ss:$8 sm:$0xf] %vm3_vm0, %v4336_v27   ;;  %173 = vst.msk [vmem:[#allocation0 + $0x600] ss:$8 sm:$0xf0] %vm3_vm0, %v4336_v27   ;;  %1459 = vrot.lane.b32.xlu1 %v5159_v28, %s4889_s19  ;;  %1450 = vrot.lane.b32.xlu0 %v5164_v29, %s4889_s19 }
  0xfb   :  { %942 = vst.msk [vmem:[#allocation0 + $0x4c2] ss:$8 sm:$0xf] %vm3_vm0, %v939_v49   ;;  %944 = vst.msk [vmem:[#allocation0 + $0x4c2] ss:$8 sm:$0xf0] %vm3_vm0, %v939_v49  }
  0xfc   :  { %933 = vst.msk [vmem:[#allocation0 + $0x482] ss:$8 sm:$0xf] %vm3_vm0, %v930_v50   ;;  %935 = vst.msk [vmem:[#allocation0 + $0x482] ss:$8 sm:$0xf0] %vm3_vm0, %v930_v50   ;;  %v957_v28 = vpop.permute.xlu1 %956   ;;  %v948_v29 = vpop.permute.xlu0 %947  }
  0xfd   :  { %960 = vst.msk [vmem:[#allocation0 + $0x542] ss:$8 sm:$0xf] %vm3_vm0, %v957_v28   ;;  %962 = vst.msk [vmem:[#allocation0 + $0x542] ss:$8 sm:$0xf0] %vm3_vm0, %v957_v28  }
  0xfe   :  { %951 = vst.msk [vmem:[#allocation0 + $0x502] ss:$8 sm:$0xf] %vm3_vm0, %v948_v29   ;;  %953 = vst.msk [vmem:[#allocation0 + $0x502] ss:$8 sm:$0xf0] %vm3_vm0, %v948_v29   ;;  %1477 = vrot.lane.b32.xlu1 %v5173_v30, %s4889_s19  ;;  %1468 = vrot.lane.b32.xlu0 %v5178_v31, %s4889_s19 }
  0xff   :  { %334 = vst.msk [vmem:[#allocation0 + $0xbc0] ss:$8 sm:$0xf0] %vm3_vm0, %v4359_v59   ;;  %325 = vst.msk [vmem:[#allocation0 + $0xb80] ss:$8 sm:$0xf] %vm3_vm0, %v4358_v60  }
 0x100   :  { %v975_v30 = vpop.permute.xlu1 %974   ;;  %v966_v31 = vpop.permute.xlu0 %965   ;;  %327 = vst.msk [vmem:[#allocation0 + $0xb80] ss:$8 sm:$0xf0] %vm3_vm0, %v4358_v60  }
 0x101   :  { %978 = vst.msk [vmem:[#allocation0 + $0x5c2] ss:$8 sm:$0xf] %vm3_vm0, %v975_v30   ;;  %980 = vst.msk [vmem:[#allocation0 + $0x5c2] ss:$8 sm:$0xf0] %vm3_vm0, %v975_v30  }
 0x102   :  { %969 = vst.msk [vmem:[#allocation0 + $0x582] ss:$8 sm:$0xf] %vm3_vm0, %v966_v31   ;;  %971 = vst.msk [vmem:[#allocation0 + $0x582] ss:$8 sm:$0xf0] %vm3_vm0, %v966_v31   ;;  %1495 = vrot.lane.b32.xlu1 %v5187_v32, %s4889_s19  ;;  %1486 = vrot.lane.b32.xlu0 %v5192_v33, %s4889_s19 }
 0x103   :  { %v4341_v32 = vld [vmem:[%s7093_s0 + $0xe8] sm:$0xff]   ;;  %v4340_v33 = vld [vmem:[%s7093_s0 + $0xe0] sm:$0xff]  }
 0x104   :  { %206 = vst.msk [vmem:[#allocation0 + $0x740] ss:$8 sm:$0xf] %vm3_vm0, %v4341_v32   ;;  %208 = vst.msk [vmem:[#allocation0 + $0x740] ss:$8 sm:$0xf0] %vm3_vm0, %v4341_v32   ;;  %v993_v53 = vpop.permute.xlu1 %992   ;;  %v984_v54 = vpop.permute.xlu0 %983  }
 0x105   :  { %199 = vst.msk [vmem:[#allocation0 + $0x700] ss:$8 sm:$0xf] %vm3_vm0, %v4340_v33   ;;  %201 = vst.msk [vmem:[#allocation0 + $0x700] ss:$8 sm:$0xf0] %vm3_vm0, %v4340_v33  }
 0x106   :  { %996 = vst.msk [vmem:[#allocation0 + $0x642] ss:$8 sm:$0xf] %vm3_vm0, %v993_v53   ;;  %998 = vst.msk [vmem:[#allocation0 + $0x642] ss:$8 sm:$0xf0] %vm3_vm0, %v993_v53   ;;  %1513 = vrot.lane.b32.xlu1 %v5201_v34, %s4889_s19  ;;  %1504 = vrot.lane.b32.xlu0 %v5206_v35, %s4889_s19 }
 0x107   :  { %987 = vst.msk [vmem:[#allocation0 + $0x602] ss:$8 sm:$0xf] %vm3_vm0, %v984_v54   ;;  %989 = vst.msk [vmem:[#allocation0 + $0x602] ss:$8 sm:$0xf0] %vm3_vm0, %v984_v54  }
 0x108   :  { %v4343_v34 = vld [vmem:[%s7093_s0 + $0xf8] sm:$0xff]   ;;  %v4342_v35 = vld [vmem:[%s7093_s0 + $0xf0] sm:$0xff]   ;;  %v1011_v55 = vpop.permute.xlu1 %1010   ;;  %v1002_v1 = vpop.permute.xlu0 %1001  }
 0x109   :  { %220 = vst.msk [vmem:[#allocation0 + $0x7c0] ss:$8 sm:$0xf] %vm3_vm0, %v4343_v34   ;;  %222 = vst.msk [vmem:[#allocation0 + $0x7c0] ss:$8 sm:$0xf0] %vm3_vm0, %v4343_v34  }
 0x10a   :  { %213 = vst.msk [vmem:[#allocation0 + $0x780] ss:$8 sm:$0xf] %vm3_vm0, %v4342_v35   ;;  %215 = vst.msk [vmem:[#allocation0 + $0x780] ss:$8 sm:$0xf0] %vm3_vm0, %v4342_v35   ;;  %1531 = vrot.lane.b32.xlu1 %v5215_v36, %s4889_s19  ;;  %1522 = vrot.lane.b32.xlu0 %v5220_v37, %s4889_s19 }
 0x10b   :  { %1014 = vst.msk [vmem:[#allocation0 + $0x6c2] ss:$8 sm:$0xf] %vm3_vm0, %v1011_v55   ;;  %1016 = vst.msk [vmem:[#allocation0 + $0x6c2] ss:$8 sm:$0xf0] %vm3_vm0, %v1011_v55  }
 0x10c   :  { %1005 = vst.msk [vmem:[#allocation0 + $0x682] ss:$8 sm:$0xf] %vm3_vm0, %v1002_v1   ;;  %1007 = vst.msk [vmem:[#allocation0 + $0x682] ss:$8 sm:$0xf0] %vm3_vm0, %v1002_v1   ;;  %v1029_v36 = vpop.permute.xlu1 %1028   ;;  %v1020_v37 = vpop.permute.xlu0 %1019  }
 0x10d   :  { %1032 = vst.msk [vmem:[#allocation0 + $0x742] ss:$8 sm:$0xf] %vm3_vm0, %v1029_v36   ;;  %1034 = vst.msk [vmem:[#allocation0 + $0x742] ss:$8 sm:$0xf0] %vm3_vm0, %v1029_v36  }
 0x10e   :  { %1023 = vst.msk [vmem:[#allocation0 + $0x702] ss:$8 sm:$0xf] %vm3_vm0, %v1020_v37   ;;  %1025 = vst.msk [vmem:[#allocation0 + $0x702] ss:$8 sm:$0xf0] %vm3_vm0, %v1020_v37   ;;  %1549 = vrot.lane.b32.xlu1 %v5229_v38, %s4889_s19  ;;  %1540 = vrot.lane.b32.xlu0 %v5234_v39, %s4889_s19 }
 0x110   :  { %v1047_v38 = vpop.permute.xlu1 %1046   ;;  %v1038_v39 = vpop.permute.xlu0 %1037  }
 0x111   :  { %1050 = vst.msk [vmem:[#allocation0 + $0x7c2] ss:$8 sm:$0xf] %vm3_vm0, %v1047_v38   ;;  %1052 = vst.msk [vmem:[#allocation0 + $0x7c2] ss:$8 sm:$0xf0] %vm3_vm0, %v1047_v38  }
 0x112   :  { %1041 = vst.msk [vmem:[#allocation0 + $0x782] ss:$8 sm:$0xf] %vm3_vm0, %v1038_v39   ;;  %1043 = vst.msk [vmem:[#allocation0 + $0x782] ss:$8 sm:$0xf0] %vm3_vm0, %v1038_v39   ;;  %1567 = vrot.lane.b32.xlu1 %v5243_v40, %s4889_s19  ;;  %1558 = vrot.lane.b32.xlu0 %v5248_v41, %s4889_s19 }
 0x113   :  { %v4347_v40 = vld [vmem:[%s7093_s0 + $0x118] sm:$0xff]   ;;  %v4346_v41 = vld [vmem:[%s7093_s0 + $0x110] sm:$0xff]  }
 0x114   :  { %248 = vst.msk [vmem:[#allocation0 + $0x8c0] ss:$8 sm:$0xf] %vm3_vm0, %v4347_v40   ;;  %250 = vst.msk [vmem:[#allocation0 + $0x8c0] ss:$8 sm:$0xf0] %vm3_vm0, %v4347_v40   ;;  %v1065_v2 = vpop.permute.xlu1 %1064   ;;  %v1056_v4 = vpop.permute.xlu0 %1055  }
 0x115   :  { %241 = vst.msk [vmem:[#allocation0 + $0x880] ss:$8 sm:$0xf] %vm3_vm0, %v4346_v41   ;;  %243 = vst.msk [vmem:[#allocation0 + $0x880] ss:$8 sm:$0xf0] %vm3_vm0, %v4346_v41  }
 0x116   :  { %1068 = vst.msk [vmem:[#allocation0 + $0x842] ss:$8 sm:$0xf] %vm3_vm0, %v1065_v2   ;;  %1070 = vst.msk [vmem:[#allocation0 + $0x842] ss:$8 sm:$0xf0] %vm3_vm0, %v1065_v2   ;;  %1585 = vrot.lane.b32.xlu1 %v5257_v42, %s4889_s19  ;;  %1576 = vrot.lane.b32.xlu0 %v5262_v43, %s4889_s19 }
 0x117   :  { %1059 = vst.msk [vmem:[#allocation0 + $0x802] ss:$8 sm:$0xf] %vm3_vm0, %v1056_v4   ;;  %1061 = vst.msk [vmem:[#allocation0 + $0x802] ss:$8 sm:$0xf0] %vm3_vm0, %v1056_v4  }
 0x118   :  { %v4349_v42 = vld [vmem:[%s7093_s0 + $0x128] sm:$0xff]   ;;  %v4348_v43 = vld [vmem:[%s7093_s0 + $0x120] sm:$0xff]   ;;  %v1083_v5 = vpop.permute.xlu1 %1082   ;;  %v1074_v6 = vpop.permute.xlu0 %1073  }
 0x119   :  { %262 = vst.msk [vmem:[#allocation0 + $0x940] ss:$8 sm:$0xf] %vm3_vm0, %v4349_v42   ;;  %264 = vst.msk [vmem:[#allocation0 + $0x940] ss:$8 sm:$0xf0] %vm3_vm0, %v4349_v42  }
 0x11a   :  { %255 = vst.msk [vmem:[#allocation0 + $0x900] ss:$8 sm:$0xf] %vm3_vm0, %v4348_v43   ;;  %257 = vst.msk [vmem:[#allocation0 + $0x900] ss:$8 sm:$0xf0] %vm3_vm0, %v4348_v43   ;;  %1603 = vrot.lane.b32.xlu1 %v5271_v44, %s4889_s19  ;;  %1594 = vrot.lane.b32.xlu0 %v5276_v45, %s4889_s19 }
 0x11b   :  { %1086 = vst.msk [vmem:[#allocation0 + $0x8c2] ss:$8 sm:$0xf] %vm3_vm0, %v1083_v5   ;;  %1088 = vst.msk [vmem:[#allocation0 + $0x8c2] ss:$8 sm:$0xf0] %vm3_vm0, %v1083_v5  }
 0x11c   :  { %1077 = vst.msk [vmem:[#allocation0 + $0x882] ss:$8 sm:$0xf] %vm3_vm0, %v1074_v6   ;;  %1079 = vst.msk [vmem:[#allocation0 + $0x882] ss:$8 sm:$0xf0] %vm3_vm0, %v1074_v6   ;;  %v1101_v44 = vpop.permute.xlu1 %1100   ;;  %v1092_v45 = vpop.permute.xlu0 %1091  }
 0x11d   :  { %1104 = vst.msk [vmem:[#allocation0 + $0x942] ss:$8 sm:$0xf] %vm3_vm0, %v1101_v44   ;;  %1106 = vst.msk [vmem:[#allocation0 + $0x942] ss:$8 sm:$0xf0] %vm3_vm0, %v1101_v44  }
 0x11e   :  { %1095 = vst.msk [vmem:[#allocation0 + $0x902] ss:$8 sm:$0xf] %vm3_vm0, %v1092_v45   ;;  %1097 = vst.msk [vmem:[#allocation0 + $0x902] ss:$8 sm:$0xf0] %vm3_vm0, %v1092_v45   ;;  %1621 = vrot.lane.b32.xlu1 %v5285_v46, %s4889_s19  ;;  %1612 = vrot.lane.b32.xlu0 %v5290_v47, %s4889_s19 }
 0x120   :  { %v1119_v46 = vpop.permute.xlu1 %1118   ;;  %v1110_v47 = vpop.permute.xlu0 %1109  }
 0x121   :  { %1122 = vst.msk [vmem:[#allocation0 + $0x9c2] ss:$8 sm:$0xf] %vm3_vm0, %v1119_v46   ;;  %1124 = vst.msk [vmem:[#allocation0 + $0x9c2] ss:$8 sm:$0xf0] %vm3_vm0, %v1119_v46  }
 0x122   :  { %1113 = vst.msk [vmem:[#allocation0 + $0x982] ss:$8 sm:$0xf] %vm3_vm0, %v1110_v47   ;;  %1115 = vst.msk [vmem:[#allocation0 + $0x982] ss:$8 sm:$0xf0] %vm3_vm0, %v1110_v47  }
 0x124   :  { %v1137_v11 = vpop.permute.xlu1 %1136   ;;  %v1128_v12 = vpop.permute.xlu0 %1127  }
 0x125   :  { %1140 = vst.msk [vmem:[#allocation0 + $0xa42] ss:$8 sm:$0xf] %vm3_vm0, %v1137_v11   ;;  %1142 = vst.msk [vmem:[#allocation0 + $0xa42] ss:$8 sm:$0xf0] %vm3_vm0, %v1137_v11  }
 0x126   :  { %1131 = vst.msk [vmem:[#allocation0 + $0xa02] ss:$8 sm:$0xf] %vm3_vm0, %v1128_v12   ;;  %1133 = vst.msk [vmem:[#allocation0 + $0xa02] ss:$8 sm:$0xf0] %vm3_vm0, %v1128_v12  }
 0x128   :  { %v1155_v14 = vpop.permute.xlu1 %1154   ;;  %v1146_v15 = vpop.permute.xlu0 %1145  }
 0x129   :  { %1158 = vst.msk [vmem:[#allocation0 + $0xac2] ss:$8 sm:$0xf] %vm3_vm0, %v1155_v14   ;;  %1160 = vst.msk [vmem:[#allocation0 + $0xac2] ss:$8 sm:$0xf0] %vm3_vm0, %v1155_v14  }
 0x12a   :  { %1149 = vst.msk [vmem:[#allocation0 + $0xa82] ss:$8 sm:$0xf] %vm3_vm0, %v1146_v15   ;;  %1151 = vst.msk [vmem:[#allocation0 + $0xa82] ss:$8 sm:$0xf0] %vm3_vm0, %v1146_v15  }
 0x12c   :  { %v1173_v16 = vpop.permute.xlu1 %1172   ;;  %v1164_v17 = vpop.permute.xlu0 %1163  }
 0x12d   :  { %1176 = vst.msk [vmem:[#allocation0 + $0xb42] ss:$8 sm:$0xf] %vm3_vm0, %v1173_v16   ;;  %1178 = vst.msk [vmem:[#allocation0 + $0xb42] ss:$8 sm:$0xf0] %vm3_vm0, %v1173_v16  }
 0x12e   :  { %1167 = vst.msk [vmem:[#allocation0 + $0xb02] ss:$8 sm:$0xf] %vm3_vm0, %v1164_v17   ;;  %1169 = vst.msk [vmem:[#allocation0 + $0xb02] ss:$8 sm:$0xf0] %vm3_vm0, %v1164_v17  }
 0x130   :  { %v1191_v18 = vpop.permute.xlu1 %1190   ;;  %v1182_v19 = vpop.permute.xlu0 %1181  }
 0x131   :  { %1194 = vst.msk [vmem:[#allocation0 + $0xbc2] ss:$8 sm:$0xf] %vm3_vm0, %v1191_v18   ;;  %1196 = vst.msk [vmem:[#allocation0 + $0xbc2] ss:$8 sm:$0xf0] %vm3_vm0, %v1191_v18  }
 0x132   :  { %1185 = vst.msk [vmem:[#allocation0 + $0xb82] ss:$8 sm:$0xf] %vm3_vm0, %v1182_v19   ;;  %1187 = vst.msk [vmem:[#allocation0 + $0xb82] ss:$8 sm:$0xf0] %vm3_vm0, %v1182_v19  }
 0x134   :  { %v1208_v20 = vpop.permute.xlu1 %1207   ;;  %v1199_v21 = vpop.permute.xlu0 %1198  }
 0x135   :  { %1211 = vst.msk [vmem:[#allocation0 + $0x43] ss:$8 sm:$0xf] %vm3_vm0, %v1208_v20   ;;  %1213 = vst.msk [vmem:[#allocation0 + $0x43] ss:$8 sm:$0xf0] %vm3_vm0, %v1208_v20  }
 0x136   :  { %1202 = vst.msk [vmem:[#allocation0 + $0x3] ss:$8 sm:$0xf] %vm3_vm0, %v1199_v21   ;;  %1204 = vst.msk [vmem:[#allocation0 + $0x3] ss:$8 sm:$0xf0] %vm3_vm0, %v1199_v21  }
 0x138   :  { %v1226_v61 = vpop.permute.xlu1 %1225   ;;  %v1217_v62 = vpop.permute.xlu0 %1216  }
 0x139   :  { %1229 = vst.msk [vmem:[#allocation0 + $0xc3] ss:$8 sm:$0xf] %vm3_vm0, %v1226_v61   ;;  %1231 = vst.msk [vmem:[#allocation0 + $0xc3] ss:$8 sm:$0xf0] %vm3_vm0, %v1226_v61  }
 0x13a   :  { %1220 = vst.msk [vmem:[#allocation0 + $0x83] ss:$8 sm:$0xf] %vm3_vm0, %v1217_v62   ;;  %1222 = vst.msk [vmem:[#allocation0 + $0x83] ss:$8 sm:$0xf0] %vm3_vm0, %v1217_v62  }
 0x13c   :  { %v1676_v22 = vld [vmem:[#allocation0 + $0x40] sm:$0xf]  ;;  %v1682_v23 = vld [vmem:[#allocation0 + $0x48] sm:$0xf]  ;;  %v1688_v24 = vld [vmem:[#allocation0 + $0x50] sm:$0xf]  ;;  %v1244_v25 = vpop.permute.xlu1 %1243   ;;  %v1235_v63 = vpop.permute.xlu0 %1234  }
 0x13d   :  { %v1694_v48 = vld [vmem:[#allocation0 + $0x58] sm:$0xf]  ;;  %v1700_v26 = vld [vmem:[#allocation0 + $0x60] sm:$0xf]  ;;  %v1706_v27 = vld [vmem:[#allocation0 + $0x68] sm:$0xf] }
 0x13e   :  { %4508 = vst [vmem:[%s7094_s1 + $0x20] sm:$0xf] %v1676_v22  ;;  %4509 = vst [vmem:[%s7094_s1 + $0x24] sm:$0xf] %v1682_v23  ;;  %v1712_v49 = vld [vmem:[#allocation0 + $0x70] sm:$0xf] }
 0x13f   :  { %4510 = vst [vmem:[%s7094_s1 + $0x28] sm:$0xf] %v1688_v24  ;;  %1247 = vst.msk [vmem:[#allocation0 + $0x143] ss:$8 sm:$0xf] %vm3_vm0, %v1244_v25  }
 0x140   :  { %1249 = vst.msk [vmem:[#allocation0 + $0x143] ss:$8 sm:$0xf0] %vm3_vm0, %v1244_v25   ;;  %1238 = vst.msk [vmem:[#allocation0 + $0x103] ss:$8 sm:$0xf] %vm3_vm0, %v1235_v63   ;;  %v1262_v33 = vpop.permute.xlu1 %1261   ;;  %v1253_v53 = vpop.permute.xlu0 %1252  }
 0x141   :  { %1240 = vst.msk [vmem:[#allocation0 + $0x103] ss:$8 sm:$0xf0] %vm3_vm0, %v1235_v63   ;;  %v1718_v50 = vld [vmem:[#allocation0 + $0x78] sm:$0xf] }
 0x142   :  { %v1631_v28 = vld [vmem:[#allocation0] sm:$0xf]  ;;  %4511 = vst [vmem:[%s7094_s1 + $0x2c] sm:$0xf] %v1694_v48  ;;  %4512 = vst [vmem:[%s7094_s1 + $0x30] sm:$0xf] %v1700_v26 }
 0x143   :  { %4513 = vst [vmem:[%s7094_s1 + $0x34] sm:$0xf] %v1706_v27  ;;  %v1635_v29 = vld [vmem:[#allocation0 + $0x8] sm:$0xf]  ;;  %v1640_v51 = vld [vmem:[#allocation0 + $0x10] sm:$0xf] }
 0x144   :  { %v1646_v52 = vld [vmem:[#allocation0 + $0x18] sm:$0xf]  ;;  %4514 = vst [vmem:[%s7094_s1 + $0x38] sm:$0xf] %v1712_v49  ;;  %4515 = vst [vmem:[%s7094_s1 + $0x3c] sm:$0xf] %v1718_v50  ;;  %v1280_v41 = vpop.permute.xlu1 %1279   ;;  %v1271_v2 = vpop.permute.xlu0 %1270  }
 0x145   :  { %1633 = vst [vmem:[%s7094_s1] sm:$0xf] %v1631_v28  ;;  %v1652_v30 = vld [vmem:[#allocation0 + $0x20] sm:$0xf]  ;;  %v1658_v31 = vld [vmem:[#allocation0 + $0x28] sm:$0xf] }
 0x146   :  { %v1664_v32 = vld [vmem:[#allocation0 + $0x30] sm:$0xf]  ;;  %4501 = vst [vmem:[%s7094_s1 + $0x4] sm:$0xf] %v1635_v29  ;;  %4502 = vst [vmem:[%s7094_s1 + $0x8] sm:$0xf] %v1640_v51 }
 0x147   :  { %4503 = vst [vmem:[%s7094_s1 + $0xc] sm:$0xf] %v1646_v52  ;;  %v1670_v54 = vld [vmem:[#allocation0 + $0x38] sm:$0xf]  ;;  %4504 = vst [vmem:[%s7094_s1 + $0x10] sm:$0xf] %v1652_v30 }
 0x148   :  { %4505 = vst [vmem:[%s7094_s1 + $0x14] sm:$0xf] %v1658_v31  ;;  %4506 = vst [vmem:[%s7094_s1 + $0x18] sm:$0xf] %v1664_v32  ;;  %v1772_v34 = vld [vmem:[#allocation0 + $0xc0] sm:$0xf]  ;;  %v1298_v10 = vpop.permute.xlu1 %1297   ;;  %v1289_v11 = vpop.permute.xlu0 %1288  }
 0x149   :  { %v1778_v35 = vld [vmem:[#allocation0 + $0xc8] sm:$0xf]  ;;  %1265 = vst.msk [vmem:[#allocation0 + $0x1c3] ss:$8 sm:$0xf] %vm3_vm0, %v1262_v33  }
 0x14a   :  { %1267 = vst.msk [vmem:[#allocation0 + $0x1c3] ss:$8 sm:$0xf0] %vm3_vm0, %v1262_v33   ;;  %1256 = vst.msk [vmem:[#allocation0 + $0x183] ss:$8 sm:$0xf] %vm3_vm0, %v1253_v53  }
 0x14b   :  { %1258 = vst.msk [vmem:[#allocation0 + $0x183] ss:$8 sm:$0xf0] %vm3_vm0, %v1253_v53   ;;  %4507 = vst [vmem:[%s7094_s1 + $0x1c] sm:$0xf] %v1670_v54 }
 0x14c   :  { %v1784_v55 = vld [vmem:[#allocation0 + $0xd0] sm:$0xf]  ;;  %v1790_v1 = vld [vmem:[#allocation0 + $0xd8] sm:$0xf]  ;;  %v1796_v36 = vld [vmem:[#allocation0 + $0xe0] sm:$0xf]  ;;  %v1316_v60 = vpop.permute.xlu1 %1315   ;;  %v1307_v20 = vpop.permute.xlu0 %1306  }
 0x14d   :  { %4524 = vst [vmem:[%s7094_s1 + $0x60] sm:$0xf] %v1772_v34  ;;  %4525 = vst [vmem:[%s7094_s1 + $0x64] sm:$0xf] %v1778_v35  ;;  %v1802_v37 = vld [vmem:[#allocation0 + $0xe8] sm:$0xf] }
 0x14e   :  { %v1808_v3 = vld [vmem:[#allocation0 + $0xf0] sm:$0xf]  ;;  %v1814_v0 = vld [vmem:[#allocation0 + $0xf8] sm:$0xf]  ;;  %4526 = vst [vmem:[%s7094_s1 + $0x68] sm:$0xf] %v1784_v55 }
 0x14f   :  { %4527 = vst [vmem:[%s7094_s1 + $0x6c] sm:$0xf] %v1790_v1  ;;  %4528 = vst [vmem:[%s7094_s1 + $0x70] sm:$0xf] %v1796_v36  ;;  %v1724_v38 = vld [vmem:[#allocation0 + $0x80] sm:$0xf] }
 0x150   :  { %v1730_v39 = vld [vmem:[#allocation0 + $0x88] sm:$0xf]  ;;  %v1736_v40 = vld [vmem:[#allocation0 + $0x90] sm:$0xf]  ;;  %4529 = vst [vmem:[%s7094_s1 + $0x74] sm:$0xf] %v1802_v37  ;;  %v1334_v50 = vpop.permute.xlu1 %1333   ;;  %v1325_v28 = vpop.permute.xlu0 %1324  }
 0x151   :  { %4530 = vst [vmem:[%s7094_s1 + $0x78] sm:$0xf] %v1808_v3  ;;  %4531 = vst [vmem:[%s7094_s1 + $0x7c] sm:$0xf] %v1814_v0  ;;  %v1742_v4 = vld [vmem:[#allocation0 + $0x98] sm:$0xf] }
 0x152   :  { %v1748_v42 = vld [vmem:[#allocation0 + $0xa0] sm:$0xf]  ;;  %v1754_v43 = vld [vmem:[#allocation0 + $0xa8] sm:$0xf]  ;;  %4516 = vst [vmem:[%s7094_s1 + $0x40] sm:$0xf] %v1724_v38 }
 0x153   :  { %4517 = vst [vmem:[%s7094_s1 + $0x44] sm:$0xf] %v1730_v39  ;;  %4518 = vst [vmem:[%s7094_s1 + $0x48] sm:$0xf] %v1736_v40  ;;  %v1760_v5 = vld [vmem:[#allocation0 + $0xb0] sm:$0xf] }
 0x154   :  { %1283 = vst.msk [vmem:[#allocation0 + $0x243] ss:$8 sm:$0xf] %vm3_vm0, %v1280_v41   ;;  %1285 = vst.msk [vmem:[#allocation0 + $0x243] ss:$8 sm:$0xf0] %vm3_vm0, %v1280_v41   ;;  %v1352_v1 = vpop.permute.xlu1 %1351   ;;  %v1343_v36 = vpop.permute.xlu0 %1342  }
 0x155   :  { %1274 = vst.msk [vmem:[#allocation0 + $0x203] ss:$8 sm:$0xf] %vm3_vm0, %v1271_v2   ;;  %1276 = vst.msk [vmem:[#allocation0 + $0x203] ss:$8 sm:$0xf0] %vm3_vm0, %v1271_v2  }
 0x156   :  { %v1766_v6 = vld [vmem:[#allocation0 + $0xb8] sm:$0xf]  ;;  %4519 = vst [vmem:[%s7094_s1 + $0x4c] sm:$0xf] %v1742_v4  ;;  %4520 = vst [vmem:[%s7094_s1 + $0x50] sm:$0xf] %v1748_v42 }
 0x157   :  { %4521 = vst [vmem:[%s7094_s1 + $0x54] sm:$0xf] %v1754_v43  ;;  %v1868_v44 = vld [vmem:[#allocation0 + $0x140] sm:$0xf]  ;;  %4522 = vst [vmem:[%s7094_s1 + $0x58] sm:$0xf] %v1760_v5 }
 0x158   :  { %4523 = vst [vmem:[%s7094_s1 + $0x5c] sm:$0xf] %v1766_v6  ;;  %v1874_v45 = vld [vmem:[#allocation0 + $0x148] sm:$0xf]  ;;  %v1880_v7 = vld [vmem:[#allocation0 + $0x150] sm:$0xf]  ;;  %v1370_v6 = vpop.permute.xlu1 %1369  }
 0x159   :  { %v1886_v8 = vld [vmem:[#allocation0 + $0x158] sm:$0xf]  ;;  %4540 = vst [vmem:[%s7094_s1 + $0xa0] sm:$0xf] %v1868_v44  ;;  %v1892_v46 = vld [vmem:[#allocation0 + $0x160] sm:$0xf]  ;;  %v1361_v44 = vpop.permute.xlu0 %1360  }
 0x15a   :  { %v1898_v47 = vld [vmem:[#allocation0 + $0x168] sm:$0xf]  ;;  %v1904_v9 = vld [vmem:[#allocation0 + $0x170] sm:$0xf]  ;;  %4541 = vst [vmem:[%s7094_s1 + $0xa4] sm:$0xf] %v1874_v45 }
 0x15b   :  { %4542 = vst [vmem:[%s7094_s1 + $0xa8] sm:$0xf] %v1880_v7  ;;  %4543 = vst [vmem:[%s7094_s1 + $0xac] sm:$0xf] %v1886_v8  ;;  %v1910_v12 = vld [vmem:[#allocation0 + $0x178] sm:$0xf] }
 0x15c   :  { %v1820_v13 = vld [vmem:[#allocation0 + $0x100] sm:$0xf]  ;;  %v1826_v56 = vld [vmem:[#allocation0 + $0x108] sm:$0xf]  ;;  %4544 = vst [vmem:[%s7094_s1 + $0xb0] sm:$0xf] %v1892_v46 }
 0x15d   :  { %4545 = vst [vmem:[%s7094_s1 + $0xb4] sm:$0xf] %v1898_v47  ;;  %4546 = vst [vmem:[%s7094_s1 + $0xb8] sm:$0xf] %v1904_v9  ;;  %v1832_v14 = vld [vmem:[#allocation0 + $0x110] sm:$0xf] }
 0x15e   :  { %1301 = vst.msk [vmem:[#allocation0 + $0x2c3] ss:$8 sm:$0xf] %vm3_vm0, %v1298_v10   ;;  %1303 = vst.msk [vmem:[#allocation0 + $0x2c3] ss:$8 sm:$0xf0] %vm3_vm0, %v1298_v10  }
 0x15f   :  { %1292 = vst.msk [vmem:[#allocation0 + $0x283] ss:$8 sm:$0xf] %vm3_vm0, %v1289_v11   ;;  %1294 = vst.msk [vmem:[#allocation0 + $0x283] ss:$8 sm:$0xf0] %vm3_vm0, %v1289_v11  }
 0x160   :  { %v1838_v15 = vld [vmem:[#allocation0 + $0x118] sm:$0xf]  ;;  %v1844_v16 = vld [vmem:[#allocation0 + $0x120] sm:$0xf]  ;;  %4547 = vst [vmem:[%s7094_s1 + $0xbc] sm:$0xf] %v1910_v12 }
 0x161   :  { %4532 = vst [vmem:[%s7094_s1 + $0x80] sm:$0xf] %v1820_v13  ;;  %4533 = vst [vmem:[%s7094_s1 + $0x84] sm:$0xf] %v1826_v56  ;;  %v1850_v17 = vld [vmem:[#allocation0 + $0x128] sm:$0xf] }
 0x162   :  { %v1856_v57 = vld [vmem:[#allocation0 + $0x130] sm:$0xf]  ;;  %v1862_v58 = vld [vmem:[#allocation0 + $0x138] sm:$0xf]  ;;  %4534 = vst [vmem:[%s7094_s1 + $0x88] sm:$0xf] %v1832_v14 }
 0x163   :  { %4535 = vst [vmem:[%s7094_s1 + $0x8c] sm:$0xf] %v1838_v15  ;;  %4536 = vst [vmem:[%s7094_s1 + $0x90] sm:$0xf] %v1844_v16  ;;  %v1964_v18 = vld [vmem:[#allocation0 + $0x1c0] sm:$0xf]  ;;  %v1388_v15 = vpop.permute.xlu1 %1387   ;;  %v1379_v16 = vpop.permute.xlu0 %1378  }
 0x164   :  { %4537 = vst [vmem:[%s7094_s1 + $0x94] sm:$0xf] %v1850_v17  ;;  %4538 = vst [vmem:[%s7094_s1 + $0x98] sm:$0xf] %v1856_v57  ;;  %v1970_v19 = vld [vmem:[#allocation0 + $0x1c8] sm:$0xf] }
 0x165   :  { %4539 = vst [vmem:[%s7094_s1 + $0x9c] sm:$0xf] %v1862_v58  ;;  %v1976_v59 = vld [vmem:[#allocation0 + $0x1d0] sm:$0xf]  ;;  %v1982_v21 = vld [vmem:[#allocation0 + $0x1d8] sm:$0xf] }
 0x166   :  { %v1988_v61 = vld [vmem:[#allocation0 + $0x1e0] sm:$0xf]  ;;  %v1994_v62 = vld [vmem:[#allocation0 + $0x1e8] sm:$0xf]  ;;  %4556 = vst [vmem:[%s7094_s1 + $0xe0] sm:$0xf] %v1964_v18 }
 0x167   :  { %4557 = vst [vmem:[%s7094_s1 + $0xe4] sm:$0xf] %v1970_v19  ;;  %4558 = vst [vmem:[%s7094_s1 + $0xe8] sm:$0xf] %v1976_v59  ;;  %v2000_v22 = vld [vmem:[#allocation0 + $0x1f0] sm:$0xf] }
 0x168   :  { %1319 = vst.msk [vmem:[#allocation0 + $0x343] ss:$8 sm:$0xf] %vm3_vm0, %v1316_v60   ;;  %1321 = vst.msk [vmem:[#allocation0 + $0x343] ss:$8 sm:$0xf0] %vm3_vm0, %v1316_v60  }
 0x169   :  { %1310 = vst.msk [vmem:[#allocation0 + $0x303] ss:$8 sm:$0xf] %vm3_vm0, %v1307_v20   ;;  %1312 = vst.msk [vmem:[#allocation0 + $0x303] ss:$8 sm:$0xf0] %vm3_vm0, %v1307_v20  }
 0x16a   :  { %v2006_v23 = vld [vmem:[#allocation0 + $0x1f8] sm:$0xf]  ;;  %v1916_v24 = vld [vmem:[#allocation0 + $0x180] sm:$0xf]  ;;  %4559 = vst [vmem:[%s7094_s1 + $0xec] sm:$0xf] %v1982_v21 }
 0x16b   :  { %4560 = vst [vmem:[%s7094_s1 + $0xf0] sm:$0xf] %v1988_v61  ;;  %4561 = vst [vmem:[%s7094_s1 + $0xf4] sm:$0xf] %v1994_v62  ;;  %v1922_v25 = vld [vmem:[#allocation0 + $0x188] sm:$0xf] }
 0x16c   :  { %v1928_v63 = vld [vmem:[#allocation0 + $0x190] sm:$0xf]  ;;  %v1934_v48 = vld [vmem:[#allocation0 + $0x198] sm:$0xf]  ;;  %4562 = vst [vmem:[%s7094_s1 + $0xf8] sm:$0xf] %v2000_v22 }
 0x16d   :  { %4563 = vst [vmem:[%s7094_s1 + $0xfc] sm:$0xf] %v2006_v23  ;;  %4548 = vst [vmem:[%s7094_s1 + $0xc0] sm:$0xf] %v1916_v24  ;;  %v1940_v26 = vld [vmem:[#allocation0 + $0x1a0] sm:$0xf]  ;;  %v1406_v23 = vpop.permute.xlu1 %1405   ;;  %v1397_v24 = vpop.permute.xlu0 %1396  }
 0x16e   :  { %v1946_v27 = vld [vmem:[#allocation0 + $0x1a8] sm:$0xf]  ;;  %v1952_v49 = vld [vmem:[#allocation0 + $0x1b0] sm:$0xf]  ;;  %4549 = vst [vmem:[%s7094_s1 + $0xc4] sm:$0xf] %v1922_v25 }
 0x16f   :  { %4550 = vst [vmem:[%s7094_s1 + $0xc8] sm:$0xf] %v1928_v63  ;;  %4551 = vst [vmem:[%s7094_s1 + $0xcc] sm:$0xf] %v1934_v48  ;;  %v1958_v29 = vld [vmem:[#allocation0 + $0x1b8] sm:$0xf] }
 0x170   :  { %4552 = vst [vmem:[%s7094_s1 + $0xd0] sm:$0xf] %v1940_v26  ;;  %4553 = vst [vmem:[%s7094_s1 + $0xd4] sm:$0xf] %v1946_v27  ;;  %v2060_v51 = vld [vmem:[#allocation0 + $0x240] sm:$0xf] }
 0x171   :  { %4554 = vst [vmem:[%s7094_s1 + $0xd8] sm:$0xf] %v1952_v49  ;;  %v2066_v52 = vld [vmem:[#allocation0 + $0x248] sm:$0xf]  ;;  %4555 = vst [vmem:[%s7094_s1 + $0xdc] sm:$0xf] %v1958_v29 }
 0x172   :  { %1337 = vst.msk [vmem:[#allocation0 + $0x3c3] ss:$8 sm:$0xf] %vm3_vm0, %v1334_v50   ;;  %1339 = vst.msk [vmem:[#allocation0 + $0x3c3] ss:$8 sm:$0xf0] %vm3_vm0, %v1334_v50  }
 0x173   :  { %1328 = vst.msk [vmem:[#allocation0 + $0x383] ss:$8 sm:$0xf] %vm3_vm0, %v1325_v28   ;;  %1330 = vst.msk [vmem:[#allocation0 + $0x383] ss:$8 sm:$0xf0] %vm3_vm0, %v1325_v28  }
 0x174   :  { %v2072_v30 = vld [vmem:[#allocation0 + $0x250] sm:$0xf]  ;;  %v2078_v31 = vld [vmem:[#allocation0 + $0x258] sm:$0xf]  ;;  %v2084_v32 = vld [vmem:[#allocation0 + $0x260] sm:$0xf] }
 0x175   :  { %4572 = vst [vmem:[%s7094_s1 + $0x120] sm:$0xf] %v2060_v51  ;;  %4573 = vst [vmem:[%s7094_s1 + $0x124] sm:$0xf] %v2066_v52  ;;  %v2090_v33 = vld [vmem:[#allocation0 + $0x268] sm:$0xf] }
 0x176   :  { %v2096_v53 = vld [vmem:[#allocation0 + $0x270] sm:$0xf]  ;;  %v2102_v54 = vld [vmem:[#allocation0 + $0x278] sm:$0xf]  ;;  %4574 = vst [vmem:[%s7094_s1 + $0x128] sm:$0xf] %v2072_v30 }
 0x177   :  { %4575 = vst [vmem:[%s7094_s1 + $0x12c] sm:$0xf] %v2078_v31  ;;  %4576 = vst [vmem:[%s7094_s1 + $0x130] sm:$0xf] %v2084_v32  ;;  %v2012_v34 = vld [vmem:[#allocation0 + $0x200] sm:$0xf]  ;;  %v1424_v31 = vpop.permute.xlu1 %1423   ;;  %v1415_v32 = vpop.permute.xlu0 %1414  }
 0x178   :  { %v2018_v35 = vld [vmem:[#allocation0 + $0x208] sm:$0xf]  ;;  %v2024_v55 = vld [vmem:[#allocation0 + $0x210] sm:$0xf]  ;;  %4577 = vst [vmem:[%s7094_s1 + $0x134] sm:$0xf] %v2090_v33 }
 0x179   :  { %4578 = vst [vmem:[%s7094_s1 + $0x138] sm:$0xf] %v2096_v53  ;;  %4579 = vst [vmem:[%s7094_s1 + $0x13c] sm:$0xf] %v2102_v54  ;;  %v2030_v37 = vld [vmem:[#allocation0 + $0x218] sm:$0xf] }
 0x17a   :  { %v2036_v3 = vld [vmem:[#allocation0 + $0x220] sm:$0xf]  ;;  %v2042_v0 = vld [vmem:[#allocation0 + $0x228] sm:$0xf]  ;;  %4564 = vst [vmem:[%s7094_s1 + $0x100] sm:$0xf] %v2012_v34 }
 0x17b   :  { %4565 = vst [vmem:[%s7094_s1 + $0x104] sm:$0xf] %v2018_v35  ;;  %4566 = vst [vmem:[%s7094_s1 + $0x108] sm:$0xf] %v2024_v55  ;;  %v2048_v38 = vld [vmem:[#allocation0 + $0x230] sm:$0xf] }
 0x17c   :  { %1355 = vst.msk [vmem:[#allocation0 + $0x443] ss:$8 sm:$0xf] %vm3_vm0, %v1352_v1   ;;  %1357 = vst.msk [vmem:[#allocation0 + $0x443] ss:$8 sm:$0xf0] %vm3_vm0, %v1352_v1  }
 0x17d   :  { %1346 = vst.msk [vmem:[#allocation0 + $0x403] ss:$8 sm:$0xf] %vm3_vm0, %v1343_v36   ;;  %1348 = vst.msk [vmem:[#allocation0 + $0x403] ss:$8 sm:$0xf0] %vm3_vm0, %v1343_v36  }
 0x17e   :  { %v2054_v39 = vld [vmem:[#allocation0 + $0x238] sm:$0xf]  ;;  %4567 = vst [vmem:[%s7094_s1 + $0x10c] sm:$0xf] %v2030_v37  ;;  %4568 = vst [vmem:[%s7094_s1 + $0x110] sm:$0xf] %v2036_v3 }
 0x17f   :  { %4569 = vst [vmem:[%s7094_s1 + $0x114] sm:$0xf] %v2042_v0  ;;  %v2156_v40 = vld [vmem:[#allocation0 + $0x2c0] sm:$0xf]  ;;  %4570 = vst [vmem:[%s7094_s1 + $0x118] sm:$0xf] %v2048_v38 }
 0x180   :  { %4571 = vst [vmem:[%s7094_s1 + $0x11c] sm:$0xf] %v2054_v39  ;;  %v2162_v41 = vld [vmem:[#allocation0 + $0x2c8] sm:$0xf]  ;;  %v2168_v2 = vld [vmem:[#allocation0 + $0x2d0] sm:$0xf]  ;;  %v1442_v39 = vpop.permute.xlu1 %1441  }
 0x181   :  { %v2174_v4 = vld [vmem:[#allocation0 + $0x2d8] sm:$0xf]  ;;  %4588 = vst [vmem:[%s7094_s1 + $0x160] sm:$0xf] %v2156_v40  ;;  %v2180_v42 = vld [vmem:[#allocation0 + $0x2e0] sm:$0xf]  ;;  %v1433_v40 = vpop.permute.xlu0 %1432  }
 0x182   :  { %v2186_v43 = vld [vmem:[#allocation0 + $0x2e8] sm:$0xf]  ;;  %v2192_v5 = vld [vmem:[#allocation0 + $0x2f0] sm:$0xf]  ;;  %4589 = vst [vmem:[%s7094_s1 + $0x164] sm:$0xf] %v2162_v41 }
 0x183   :  { %4590 = vst [vmem:[%s7094_s1 + $0x168] sm:$0xf] %v2168_v2  ;;  %4591 = vst [vmem:[%s7094_s1 + $0x16c] sm:$0xf] %v2174_v4  ;;  %v2198_v45 = vld [vmem:[#allocation0 + $0x2f8] sm:$0xf] }
 0x184   :  { %v2108_v7 = vld [vmem:[#allocation0 + $0x280] sm:$0xf]  ;;  %v2114_v8 = vld [vmem:[#allocation0 + $0x288] sm:$0xf]  ;;  %4592 = vst [vmem:[%s7094_s1 + $0x170] sm:$0xf] %v2180_v42 }
 0x185   :  { %4593 = vst [vmem:[%s7094_s1 + $0x174] sm:$0xf] %v2186_v43  ;;  %4594 = vst [vmem:[%s7094_s1 + $0x178] sm:$0xf] %v2192_v5  ;;  %v2120_v46 = vld [vmem:[#allocation0 + $0x290] sm:$0xf] }
 0x186   :  { %1373 = vst.msk [vmem:[#allocation0 + $0x4c3] ss:$8 sm:$0xf] %vm3_vm0, %v1370_v6   ;;  %1375 = vst.msk [vmem:[#allocation0 + $0x4c3] ss:$8 sm:$0xf0] %vm3_vm0, %v1370_v6  }
 0x187   :  { %1364 = vst.msk [vmem:[#allocation0 + $0x483] ss:$8 sm:$0xf] %vm3_vm0, %v1361_v44   ;;  %1366 = vst.msk [vmem:[#allocation0 + $0x483] ss:$8 sm:$0xf0] %vm3_vm0, %v1361_v44  }
 0x188   :  { %v2126_v47 = vld [vmem:[#allocation0 + $0x298] sm:$0xf]  ;;  %v2132_v9 = vld [vmem:[#allocation0 + $0x2a0] sm:$0xf]  ;;  %4595 = vst [vmem:[%s7094_s1 + $0x17c] sm:$0xf] %v2198_v45 }
 0x189   :  { %4580 = vst [vmem:[%s7094_s1 + $0x140] sm:$0xf] %v2108_v7  ;;  %4581 = vst [vmem:[%s7094_s1 + $0x144] sm:$0xf] %v2114_v8  ;;  %v2138_v10 = vld [vmem:[#allocation0 + $0x2a8] sm:$0xf] }
 0x18a   :  { %v2144_v11 = vld [vmem:[#allocation0 + $0x2b0] sm:$0xf]  ;;  %v2150_v12 = vld [vmem:[#allocation0 + $0x2b8] sm:$0xf]  ;;  %4582 = vst [vmem:[%s7094_s1 + $0x148] sm:$0xf] %v2120_v46 }
 0x18b   :  { %4583 = vst [vmem:[%s7094_s1 + $0x14c] sm:$0xf] %v2126_v47  ;;  %4584 = vst [vmem:[%s7094_s1 + $0x150] sm:$0xf] %v2132_v9  ;;  %v2252_v13 = vld [vmem:[#allocation0 + $0x340] sm:$0xf]  ;;  %v1460_v47 = vpop.permute.xlu1 %1459   ;;  %v1451_v9 = vpop.permute.xlu0 %1450  }
 0x18c   :  { %4585 = vst [vmem:[%s7094_s1 + $0x154] sm:$0xf] %v2138_v10  ;;  %4586 = vst [vmem:[%s7094_s1 + $0x158] sm:$0xf] %v2144_v11  ;;  %v2258_v56 = vld [vmem:[#allocation0 + $0x348] sm:$0xf] }
 0x18d   :  { %4587 = vst [vmem:[%s7094_s1 + $0x15c] sm:$0xf] %v2150_v12  ;;  %v2264_v14 = vld [vmem:[#allocation0 + $0x350] sm:$0xf]  ;;  %v2270_v17 = vld [vmem:[#allocation0 + $0x358] sm:$0xf] }
 0x18e   :  { %v2276_v57 = vld [vmem:[#allocation0 + $0x360] sm:$0xf]  ;;  %v2282_v58 = vld [vmem:[#allocation0 + $0x368] sm:$0xf]  ;;  %4604 = vst [vmem:[%s7094_s1 + $0x1a0] sm:$0xf] %v2252_v13 }
 0x18f   :  { %4605 = vst [vmem:[%s7094_s1 + $0x1a4] sm:$0xf] %v2258_v56  ;;  %4606 = vst [vmem:[%s7094_s1 + $0x1a8] sm:$0xf] %v2264_v14  ;;  %v2288_v18 = vld [vmem:[#allocation0 + $0x370] sm:$0xf] }
 0x190   :  { %1391 = vst.msk [vmem:[#allocation0 + $0x543] ss:$8 sm:$0xf] %vm3_vm0, %v1388_v15   ;;  %1393 = vst.msk [vmem:[#allocation0 + $0x543] ss:$8 sm:$0xf0] %vm3_vm0, %v1388_v15  }
 0x191   :  { %1382 = vst.msk [vmem:[#allocation0 + $0x503] ss:$8 sm:$0xf] %vm3_vm0, %v1379_v16   ;;  %1384 = vst.msk [vmem:[#allocation0 + $0x503] ss:$8 sm:$0xf0] %vm3_vm0, %v1379_v16  }
 0x192   :  { %v2294_v19 = vld [vmem:[#allocation0 + $0x378] sm:$0xf]  ;;  %v2204_v59 = vld [vmem:[#allocation0 + $0x300] sm:$0xf]  ;;  %4607 = vst [vmem:[%s7094_s1 + $0x1ac] sm:$0xf] %v2270_v17 }
 0x193   :  { %4608 = vst [vmem:[%s7094_s1 + $0x1b0] sm:$0xf] %v2276_v57  ;;  %4609 = vst [vmem:[%s7094_s1 + $0x1b4] sm:$0xf] %v2282_v58  ;;  %v2210_v60 = vld [vmem:[#allocation0 + $0x308] sm:$0xf] }
 0x194   :  { %v2216_v20 = vld [vmem:[#allocation0 + $0x310] sm:$0xf]  ;;  %v2222_v21 = vld [vmem:[#allocation0 + $0x318] sm:$0xf]  ;;  %4610 = vst [vmem:[%s7094_s1 + $0x1b8] sm:$0xf] %v2288_v18 }
 0x195   :  { %4611 = vst [vmem:[%s7094_s1 + $0x1bc] sm:$0xf] %v2294_v19  ;;  %4596 = vst [vmem:[%s7094_s1 + $0x180] sm:$0xf] %v2204_v59  ;;  %v2228_v61 = vld [vmem:[#allocation0 + $0x320] sm:$0xf]  ;;  %v1478_v19 = vpop.permute.xlu1 %1477   ;;  %v1469_v59 = vpop.permute.xlu0 %1468  }
 0x196   :  { %v2234_v62 = vld [vmem:[#allocation0 + $0x328] sm:$0xf]  ;;  %v2240_v22 = vld [vmem:[#allocation0 + $0x330] sm:$0xf]  ;;  %4597 = vst [vmem:[%s7094_s1 + $0x184] sm:$0xf] %v2210_v60 }
 0x197   :  { %4598 = vst [vmem:[%s7094_s1 + $0x188] sm:$0xf] %v2216_v20  ;;  %4599 = vst [vmem:[%s7094_s1 + $0x18c] sm:$0xf] %v2222_v21  ;;  %v2246_v25 = vld [vmem:[#allocation0 + $0x338] sm:$0xf] }
 0x198   :  { %v2348_v63 = vld [vmem:[#allocation0 + $0x3c0] sm:$0xf]  ;;  %v2354_v48 = vld [vmem:[#allocation0 + $0x3c8] sm:$0xf]  ;;  %4600 = vst [vmem:[%s7094_s1 + $0x190] sm:$0xf] %v2228_v61 }
 0x199   :  { %4601 = vst [vmem:[%s7094_s1 + $0x194] sm:$0xf] %v2234_v62  ;;  %4602 = vst [vmem:[%s7094_s1 + $0x198] sm:$0xf] %v2240_v22  ;;  %v2360_v26 = vld [vmem:[#allocation0 + $0x3d0] sm:$0xf] }
 0x19a   :  { %1409 = vst.msk [vmem:[#allocation0 + $0x5c3] ss:$8 sm:$0xf] %vm3_vm0, %v1406_v23   ;;  %1411 = vst.msk [vmem:[#allocation0 + $0x5c3] ss:$8 sm:$0xf0] %vm3_vm0, %v1406_v23  }
 0x19b   :  { %1400 = vst.msk [vmem:[#allocation0 + $0x583] ss:$8 sm:$0xf] %vm3_vm0, %v1397_v24   ;;  %1402 = vst.msk [vmem:[#allocation0 + $0x583] ss:$8 sm:$0xf0] %vm3_vm0, %v1397_v24  }
 0x19c   :  { %4620 = vst [vmem:[%s7094_s1 + $0x1e0] sm:$0xf] %v2348_v63  ;;  %4621 = vst [vmem:[%s7094_s1 + $0x1e4] sm:$0xf] %v2354_v48  ;;  %v2366_v27 = vld [vmem:[#allocation0 + $0x3d8] sm:$0xf] }
 0x19d   :  { %4603 = vst [vmem:[%s7094_s1 + $0x19c] sm:$0xf] %v2246_v25  ;;  %v2372_v49 = vld [vmem:[#allocation0 + $0x3e0] sm:$0xf]  ;;  %4622 = vst [vmem:[%s7094_s1 + $0x1e8] sm:$0xf] %v2360_v26 }
 0x19e   :  { %4623 = vst [vmem:[%s7094_s1 + $0x1ec] sm:$0xf] %v2366_v27  ;;  %v2378_v50 = vld [vmem:[#allocation0 + $0x3e8] sm:$0xf]  ;;  %v2384_v28 = vld [vmem:[#allocation0 + $0x3f0] sm:$0xf]  ;;  %v1496_v27 = vpop.permute.xlu1 %1495  }
 0x19f   :  { %v2390_v29 = vld [vmem:[#allocation0 + $0x3f8] sm:$0xf]  ;;  %4624 = vst [vmem:[%s7094_s1 + $0x1f0] sm:$0xf] %v2372_v49  ;;  %v2300_v51 = vld [vmem:[#allocation0 + $0x380] sm:$0xf]  ;;  %v1487_v49 = vpop.permute.xlu0 %1486  }
 0x1a0   :  { %v2306_v52 = vld [vmem:[#allocation0 + $0x388] sm:$0xf]  ;;  %v2312_v30 = vld [vmem:[#allocation0 + $0x390] sm:$0xf]  ;;  %4625 = vst [vmem:[%s7094_s1 + $0x1f4] sm:$0xf] %v2378_v50 }
 0x1a1   :  { %4626 = vst [vmem:[%s7094_s1 + $0x1f8] sm:$0xf] %v2384_v28  ;;  %4627 = vst [vmem:[%s7094_s1 + $0x1fc] sm:$0xf] %v2390_v29  ;;  %v2318_v33 = vld [vmem:[#allocation0 + $0x398] sm:$0xf] }
 0x1a2   :  { %4612 = vst [vmem:[%s7094_s1 + $0x1c0] sm:$0xf] %v2300_v51  ;;  %4613 = vst [vmem:[%s7094_s1 + $0x1c4] sm:$0xf] %v2306_v52  ;;  %v2324_v53 = vld [vmem:[#allocation0 + $0x3a0] sm:$0xf] }
 0x1a3   :  { %4614 = vst [vmem:[%s7094_s1 + $0x1c8] sm:$0xf] %v2312_v30  ;;  %v2330_v54 = vld [vmem:[#allocation0 + $0x3a8] sm:$0xf]  ;;  %4615 = vst [vmem:[%s7094_s1 + $0x1cc] sm:$0xf] %v2318_v33 }
 0x1a4   :  { %1427 = vst.msk [vmem:[#allocation0 + $0x643] ss:$8 sm:$0xf] %vm3_vm0, %v1424_v31   ;;  %1429 = vst.msk [vmem:[#allocation0 + $0x643] ss:$8 sm:$0xf0] %vm3_vm0, %v1424_v31  }
 0x1a5   :  { %1418 = vst.msk [vmem:[#allocation0 + $0x603] ss:$8 sm:$0xf] %vm3_vm0, %v1415_v32   ;;  %1420 = vst.msk [vmem:[#allocation0 + $0x603] ss:$8 sm:$0xf0] %vm3_vm0, %v1415_v32  }
 0x1a6   :  { %4616 = vst [vmem:[%s7094_s1 + $0x1d0] sm:$0xf] %v2324_v53  ;;  %4617 = vst [vmem:[%s7094_s1 + $0x1d4] sm:$0xf] %v2330_v54  ;;  %v2336_v34 = vld [vmem:[#allocation0 + $0x3b0] sm:$0xf] }
 0x1a7   :  { %v2342_v35 = vld [vmem:[#allocation0 + $0x3b8] sm:$0xf]  ;;  %v2444_v55 = vld [vmem:[#allocation0 + $0x440] sm:$0xf]  ;;  %4618 = vst [vmem:[%s7094_s1 + $0x1d8] sm:$0xf] %v2336_v34 }
 0x1a8   :  { %4619 = vst [vmem:[%s7094_s1 + $0x1dc] sm:$0xf] %v2342_v35  ;;  %4636 = vst [vmem:[%s7094_s1 + $0x220] sm:$0xf] %v2444_v55  ;;  %v2450_v1 = vld [vmem:[#allocation0 + $0x448] sm:$0xf]  ;;  %v1514_v35 = vpop.permute.xlu1 %1513   ;;  %v1505_v55 = vpop.permute.xlu0 %1504  }
 0x1a9   :  { %v2456_v36 = vld [vmem:[#allocation0 + $0x450] sm:$0xf]  ;;  %v2462_v37 = vld [vmem:[#allocation0 + $0x458] sm:$0xf]  ;;  %4637 = vst [vmem:[%s7094_s1 + $0x224] sm:$0xf] %v2450_v1 }
 0x1aa   :  { %4638 = vst [vmem:[%s7094_s1 + $0x228] sm:$0xf] %v2456_v36  ;;  %4639 = vst [vmem:[%s7094_s1 + $0x22c] sm:$0xf] %v2462_v37  ;;  %v2468_v3 = vld [vmem:[#allocation0 + $0x460] sm:$0xf] }
 0x1ab   :  { %v2474_v0 = vld [vmem:[#allocation0 + $0x468] sm:$0xf]  ;;  %v2480_v38 = vld [vmem:[#allocation0 + $0x470] sm:$0xf]  ;;  %4640 = vst [vmem:[%s7094_s1 + $0x230] sm:$0xf] %v2468_v3 }
 0x1ac   :  { %4641 = vst [vmem:[%s7094_s1 + $0x234] sm:$0xf] %v2474_v0  ;;  %4642 = vst [vmem:[%s7094_s1 + $0x238] sm:$0xf] %v2480_v38  ;;  %v2486_v41 = vld [vmem:[#allocation0 + $0x478] sm:$0xf] }
 0x1ad   :  { %v2396_v2 = vld [vmem:[#allocation0 + $0x400] sm:$0xf]  ;;  %v2402_v4 = vld [vmem:[#allocation0 + $0x408] sm:$0xf]  ;;  %4643 = vst [vmem:[%s7094_s1 + $0x23c] sm:$0xf] %v2486_v41 }
 0x1ae   :  { %1445 = vst.msk [vmem:[#allocation0 + $0x6c3] ss:$8 sm:$0xf] %vm3_vm0, %v1442_v39   ;;  %1447 = vst.msk [vmem:[#allocation0 + $0x6c3] ss:$8 sm:$0xf0] %vm3_vm0, %v1442_v39  }
 0x1af   :  { %1436 = vst.msk [vmem:[#allocation0 + $0x683] ss:$8 sm:$0xf] %vm3_vm0, %v1433_v40   ;;  %1438 = vst.msk [vmem:[#allocation0 + $0x683] ss:$8 sm:$0xf0] %vm3_vm0, %v1433_v40  }
 0x1b0   :  { %4628 = vst [vmem:[%s7094_s1 + $0x200] sm:$0xf] %v2396_v2  ;;  %4629 = vst [vmem:[%s7094_s1 + $0x204] sm:$0xf] %v2402_v4  ;;  %v2408_v42 = vld [vmem:[#allocation0 + $0x410] sm:$0xf] }
 0x1b1   :  { %v2414_v43 = vld [vmem:[#allocation0 + $0x418] sm:$0xf]  ;;  %v2420_v5 = vld [vmem:[#allocation0 + $0x420] sm:$0xf]  ;;  %4630 = vst [vmem:[%s7094_s1 + $0x208] sm:$0xf] %v2408_v42 }
 0x1b2   :  { %4631 = vst [vmem:[%s7094_s1 + $0x20c] sm:$0xf] %v2414_v43  ;;  %4632 = vst [vmem:[%s7094_s1 + $0x210] sm:$0xf] %v2420_v5  ;;  %v2426_v6 = vld [vmem:[#allocation0 + $0x428] sm:$0xf]  ;;  %v1532_v43 = vpop.permute.xlu1 %1531   ;;  %v1523_v5 = vpop.permute.xlu0 %1522  }
 0x1b3   :  { %v2432_v44 = vld [vmem:[#allocation0 + $0x430] sm:$0xf]  ;;  %v2438_v45 = vld [vmem:[#allocation0 + $0x438] sm:$0xf]  ;;  %4633 = vst [vmem:[%s7094_s1 + $0x214] sm:$0xf] %v2426_v6 }
 0x1b4   :  { %4634 = vst [vmem:[%s7094_s1 + $0x218] sm:$0xf] %v2432_v44  ;;  %4635 = vst [vmem:[%s7094_s1 + $0x21c] sm:$0xf] %v2438_v45  ;;  %v2540_v7 = vld [vmem:[#allocation0 + $0x4c0] sm:$0xf] }
 0x1b5   :  { %v2546_v8 = vld [vmem:[#allocation0 + $0x4c8] sm:$0xf]  ;;  %v2552_v46 = vld [vmem:[#allocation0 + $0x4d0] sm:$0xf]  ;;  %4652 = vst [vmem:[%s7094_s1 + $0x260] sm:$0xf] %v2540_v7 }
 0x1b6   :  { %4653 = vst [vmem:[%s7094_s1 + $0x264] sm:$0xf] %v2546_v8  ;;  %4654 = vst [vmem:[%s7094_s1 + $0x268] sm:$0xf] %v2552_v46  ;;  %v2558_v10 = vld [vmem:[#allocation0 + $0x4d8] sm:$0xf] }
 0x1b7   :  { %v2564_v11 = vld [vmem:[#allocation0 + $0x4e0] sm:$0xf]  ;;  %v2570_v12 = vld [vmem:[#allocation0 + $0x4e8] sm:$0xf]  ;;  %4655 = vst [vmem:[%s7094_s1 + $0x26c] sm:$0xf] %v2558_v10 }
 0x1b8   :  { %1463 = vst.msk [vmem:[#allocation0 + $0x743] ss:$8 sm:$0xf] %vm3_vm0, %v1460_v47   ;;  %1465 = vst.msk [vmem:[#allocation0 + $0x743] ss:$8 sm:$0xf0] %vm3_vm0, %v1460_v47  }
 0x1b9   :  { %1454 = vst.msk [vmem:[#allocation0 + $0x703] ss:$8 sm:$0xf] %vm3_vm0, %v1451_v9   ;;  %1456 = vst.msk [vmem:[#allocation0 + $0x703] ss:$8 sm:$0xf0] %vm3_vm0, %v1451_v9  }
 0x1ba   :  { %4656 = vst [vmem:[%s7094_s1 + $0x270] sm:$0xf] %v2564_v11  ;;  %4657 = vst [vmem:[%s7094_s1 + $0x274] sm:$0xf] %v2570_v12  ;;  %v2576_v13 = vld [vmem:[#allocation0 + $0x4f0] sm:$0xf] }
 0x1bb   :  { %v2582_v56 = vld [vmem:[#allocation0 + $0x4f8] sm:$0xf]  ;;  %v2492_v14 = vld [vmem:[#allocation0 + $0x480] sm:$0xf]  ;;  %4658 = vst [vmem:[%s7094_s1 + $0x278] sm:$0xf] %v2576_v13 }
 0x1bc   :  { %4659 = vst [vmem:[%s7094_s1 + $0x27c] sm:$0xf] %v2582_v56  ;;  %4644 = vst [vmem:[%s7094_s1 + $0x240] sm:$0xf] %v2492_v14  ;;  %v2498_v15 = vld [vmem:[#allocation0 + $0x488] sm:$0xf]  ;;  %v1550_v56 = vpop.permute.xlu1 %1549   ;;  %v1541_v14 = vpop.permute.xlu0 %1540  }
 0x1bd   :  { %v2504_v16 = vld [vmem:[#allocation0 + $0x490] sm:$0xf]  ;;  %v2510_v17 = vld [vmem:[#allocation0 + $0x498] sm:$0xf]  ;;  %4645 = vst [vmem:[%s7094_s1 + $0x244] sm:$0xf] %v2498_v15 }
 0x1be   :  { %4646 = vst [vmem:[%s7094_s1 + $0x248] sm:$0xf] %v2504_v16  ;;  %4647 = vst [vmem:[%s7094_s1 + $0x24c] sm:$0xf] %v2510_v17  ;;  %v2516_v57 = vld [vmem:[#allocation0 + $0x4a0] sm:$0xf] }
 0x1bf   :  { %v2522_v58 = vld [vmem:[#allocation0 + $0x4a8] sm:$0xf]  ;;  %v2528_v18 = vld [vmem:[#allocation0 + $0x4b0] sm:$0xf]  ;;  %4648 = vst [vmem:[%s7094_s1 + $0x250] sm:$0xf] %v2516_v57 }
 0x1c0   :  { %4649 = vst [vmem:[%s7094_s1 + $0x254] sm:$0xf] %v2522_v58  ;;  %4650 = vst [vmem:[%s7094_s1 + $0x258] sm:$0xf] %v2528_v18  ;;  %v2534_v60 = vld [vmem:[#allocation0 + $0x4b8] sm:$0xf] }
 0x1c1   :  { %v2636_v20 = vld [vmem:[#allocation0 + $0x540] sm:$0xf]  ;;  %v2642_v21 = vld [vmem:[#allocation0 + $0x548] sm:$0xf]  ;;  %4651 = vst [vmem:[%s7094_s1 + $0x25c] sm:$0xf] %v2534_v60 }
 0x1c2   :  { %1481 = vst.msk [vmem:[#allocation0 + $0x7c3] ss:$8 sm:$0xf] %vm3_vm0, %v1478_v19   ;;  %1483 = vst.msk [vmem:[#allocation0 + $0x7c3] ss:$8 sm:$0xf0] %vm3_vm0, %v1478_v19  }
 0x1c3   :  { %1472 = vst.msk [vmem:[#allocation0 + $0x783] ss:$8 sm:$0xf] %vm3_vm0, %v1469_v59   ;;  %1474 = vst.msk [vmem:[#allocation0 + $0x783] ss:$8 sm:$0xf0] %vm3_vm0, %v1469_v59  }
 0x1c4   :  { %4668 = vst [vmem:[%s7094_s1 + $0x2a0] sm:$0xf] %v2636_v20  ;;  %4669 = vst [vmem:[%s7094_s1 + $0x2a4] sm:$0xf] %v2642_v21  ;;  %v2648_v61 = vld [vmem:[#allocation0 + $0x550] sm:$0xf] }
 0x1c5   :  { %v2654_v62 = vld [vmem:[#allocation0 + $0x558] sm:$0xf]  ;;  %v2660_v22 = vld [vmem:[#allocation0 + $0x560] sm:$0xf]  ;;  %4670 = vst [vmem:[%s7094_s1 + $0x2a8] sm:$0xf] %v2648_v61 }
 0x1c6   :  { %4671 = vst [vmem:[%s7094_s1 + $0x2ac] sm:$0xf] %v2654_v62  ;;  %4672 = vst [vmem:[%s7094_s1 + $0x2b0] sm:$0xf] %v2660_v22  ;;  %v2666_v23 = vld [vmem:[#allocation0 + $0x568] sm:$0xf]  ;;  %v1568_v62 = vpop.permute.xlu1 %1567   ;;  %v1559_v22 = vpop.permute.xlu0 %1558  }
 0x1c7   :  { %v2672_v24 = vld [vmem:[#allocation0 + $0x570] sm:$0xf]  ;;  %v2678_v25 = vld [vmem:[#allocation0 + $0x578] sm:$0xf]  ;;  %4673 = vst [vmem:[%s7094_s1 + $0x2b4] sm:$0xf] %v2666_v23 }
 0x1c8   :  { %4674 = vst [vmem:[%s7094_s1 + $0x2b8] sm:$0xf] %v2672_v24  ;;  %4675 = vst [vmem:[%s7094_s1 + $0x2bc] sm:$0xf] %v2678_v25  ;;  %v2588_v63 = vld [vmem:[#allocation0 + $0x500] sm:$0xf] }
 0x1c9   :  { %v2594_v48 = vld [vmem:[#allocation0 + $0x508] sm:$0xf]  ;;  %v2600_v26 = vld [vmem:[#allocation0 + $0x510] sm:$0xf]  ;;  %4660 = vst [vmem:[%s7094_s1 + $0x280] sm:$0xf] %v2588_v63 }
 0x1ca   :  { %4661 = vst [vmem:[%s7094_s1 + $0x284] sm:$0xf] %v2594_v48  ;;  %4662 = vst [vmem:[%s7094_s1 + $0x288] sm:$0xf] %v2600_v26  ;;  %v2606_v50 = vld [vmem:[#allocation0 + $0x518] sm:$0xf] }
 0x1cb   :  { %v2612_v28 = vld [vmem:[#allocation0 + $0x520] sm:$0xf]  ;;  %v2618_v29 = vld [vmem:[#allocation0 + $0x528] sm:$0xf]  ;;  %4663 = vst [vmem:[%s7094_s1 + $0x28c] sm:$0xf] %v2606_v50 }
 0x1cc   :  { %1499 = vst.msk [vmem:[#allocation0 + $0x843] ss:$8 sm:$0xf] %vm3_vm0, %v1496_v27   ;;  %1501 = vst.msk [vmem:[#allocation0 + $0x843] ss:$8 sm:$0xf0] %vm3_vm0, %v1496_v27  }
 0x1cd   :  { %1490 = vst.msk [vmem:[#allocation0 + $0x803] ss:$8 sm:$0xf] %vm3_vm0, %v1487_v49   ;;  %1492 = vst.msk [vmem:[#allocation0 + $0x803] ss:$8 sm:$0xf0] %vm3_vm0, %v1487_v49  }
 0x1ce   :  { %4664 = vst [vmem:[%s7094_s1 + $0x290] sm:$0xf] %v2612_v28  ;;  %4665 = vst [vmem:[%s7094_s1 + $0x294] sm:$0xf] %v2618_v29  ;;  %v2624_v51 = vld [vmem:[#allocation0 + $0x530] sm:$0xf] }
 0x1cf   :  { %v2630_v52 = vld [vmem:[#allocation0 + $0x538] sm:$0xf]  ;;  %v2732_v30 = vld [vmem:[#allocation0 + $0x5c0] sm:$0xf]  ;;  %4666 = vst [vmem:[%s7094_s1 + $0x298] sm:$0xf] %v2624_v51 }
 0x1d0   :  { %4667 = vst [vmem:[%s7094_s1 + $0x29c] sm:$0xf] %v2630_v52  ;;  %4684 = vst [vmem:[%s7094_s1 + $0x2e0] sm:$0xf] %v2732_v30  ;;  %v2738_v31 = vld [vmem:[#allocation0 + $0x5c8] sm:$0xf]  ;;  %v1586_v52 = vpop.permute.xlu1 %1585   ;;  %v1577_v30 = vpop.permute.xlu0 %1576  }
 0x1d1   :  { %v2744_v32 = vld [vmem:[#allocation0 + $0x5d0] sm:$0xf]  ;;  %v2750_v33 = vld [vmem:[#allocation0 + $0x5d8] sm:$0xf]  ;;  %4685 = vst [vmem:[%s7094_s1 + $0x2e4] sm:$0xf] %v2738_v31 }
 0x1d2   :  { %4686 = vst [vmem:[%s7094_s1 + $0x2e8] sm:$0xf] %v2744_v32  ;;  %4687 = vst [vmem:[%s7094_s1 + $0x2ec] sm:$0xf] %v2750_v33  ;;  %v2756_v53 = vld [vmem:[#allocation0 + $0x5e0] sm:$0xf] }
 0x1d3   :  { %v2762_v54 = vld [vmem:[#allocation0 + $0x5e8] sm:$0xf]  ;;  %v2768_v34 = vld [vmem:[#allocation0 + $0x5f0] sm:$0xf]  ;;  %4688 = vst [vmem:[%s7094_s1 + $0x2f0] sm:$0xf] %v2756_v53 }
 0x1d4   :  { %4689 = vst [vmem:[%s7094_s1 + $0x2f4] sm:$0xf] %v2762_v54  ;;  %4690 = vst [vmem:[%s7094_s1 + $0x2f8] sm:$0xf] %v2768_v34  ;;  %v2774_v1 = vld [vmem:[#allocation0 + $0x5f8] sm:$0xf] }
 0x1d5   :  { %v2684_v36 = vld [vmem:[#allocation0 + $0x580] sm:$0xf]  ;;  %v2690_v37 = vld [vmem:[#allocation0 + $0x588] sm:$0xf]  ;;  %4691 = vst [vmem:[%s7094_s1 + $0x2fc] sm:$0xf] %v2774_v1 }
 0x1d6   :  { %1517 = vst.msk [vmem:[#allocation0 + $0x8c3] ss:$8 sm:$0xf] %vm3_vm0, %v1514_v35   ;;  %1519 = vst.msk [vmem:[#allocation0 + $0x8c3] ss:$8 sm:$0xf0] %vm3_vm0, %v1514_v35  }
 0x1d7   :  { %1508 = vst.msk [vmem:[#allocation0 + $0x883] ss:$8 sm:$0xf] %vm3_vm0, %v1505_v55   ;;  %1510 = vst.msk [vmem:[#allocation0 + $0x883] ss:$8 sm:$0xf0] %vm3_vm0, %v1505_v55  }
 0x1d8   :  { %4676 = vst [vmem:[%s7094_s1 + $0x2c0] sm:$0xf] %v2684_v36  ;;  %4677 = vst [vmem:[%s7094_s1 + $0x2c4] sm:$0xf] %v2690_v37  ;;  %v2696_v3 = vld [vmem:[#allocation0 + $0x590] sm:$0xf] }
 0x1d9   :  { %v2702_v0 = vld [vmem:[#allocation0 + $0x598] sm:$0xf]  ;;  %v2708_v38 = vld [vmem:[#allocation0 + $0x5a0] sm:$0xf]  ;;  %4678 = vst [vmem:[%s7094_s1 + $0x2c8] sm:$0xf] %v2696_v3 }
 0x1da   :  { %4679 = vst [vmem:[%s7094_s1 + $0x2cc] sm:$0xf] %v2702_v0  ;;  %4680 = vst [vmem:[%s7094_s1 + $0x2d0] sm:$0xf] %v2708_v38  ;;  %v2714_v39 = vld [vmem:[#allocation0 + $0x5a8] sm:$0xf]  ;;  %v1604_v0 = vpop.permute.xlu1 %1603   ;;  %v1595_v38 = vpop.permute.xlu0 %1594  }
 0x1db   :  { %v2720_v40 = vld [vmem:[#allocation0 + $0x5b0] sm:$0xf]  ;;  %v2726_v41 = vld [vmem:[#allocation0 + $0x5b8] sm:$0xf]  ;;  %4681 = vst [vmem:[%s7094_s1 + $0x2d4] sm:$0xf] %v2714_v39 }
 0x1dc   :  { %4682 = vst [vmem:[%s7094_s1 + $0x2d8] sm:$0xf] %v2720_v40  ;;  %4683 = vst [vmem:[%s7094_s1 + $0x2dc] sm:$0xf] %v2726_v41  ;;  %v2828_v2 = vld [vmem:[#allocation0 + $0x640] sm:$0xf] }
 0x1dd   :  { %v2834_v4 = vld [vmem:[#allocation0 + $0x648] sm:$0xf]  ;;  %v2840_v42 = vld [vmem:[#allocation0 + $0x650] sm:$0xf]  ;;  %4700 = vst [vmem:[%s7094_s1 + $0x320] sm:$0xf] %v2828_v2 }
 0x1de   :  { %4701 = vst [vmem:[%s7094_s1 + $0x324] sm:$0xf] %v2834_v4  ;;  %4702 = vst [vmem:[%s7094_s1 + $0x328] sm:$0xf] %v2840_v42  ;;  %v2846_v6 = vld [vmem:[#allocation0 + $0x658] sm:$0xf] }
 0x1df   :  { %v2852_v44 = vld [vmem:[#allocation0 + $0x660] sm:$0xf]  ;;  %v2858_v45 = vld [vmem:[#allocation0 + $0x668] sm:$0xf]  ;;  %4703 = vst [vmem:[%s7094_s1 + $0x32c] sm:$0xf] %v2846_v6 }
 0x1e0   :  { %1535 = vst.msk [vmem:[#allocation0 + $0x943] ss:$8 sm:$0xf] %vm3_vm0, %v1532_v43   ;;  %1537 = vst.msk [vmem:[#allocation0 + $0x943] ss:$8 sm:$0xf0] %vm3_vm0, %v1532_v43  }
 0x1e1   :  { %1526 = vst.msk [vmem:[#allocation0 + $0x903] ss:$8 sm:$0xf] %vm3_vm0, %v1523_v5   ;;  %1528 = vst.msk [vmem:[#allocation0 + $0x903] ss:$8 sm:$0xf0] %vm3_vm0, %v1523_v5  }
 0x1e2   :  { %4704 = vst [vmem:[%s7094_s1 + $0x330] sm:$0xf] %v2852_v44  ;;  %4705 = vst [vmem:[%s7094_s1 + $0x334] sm:$0xf] %v2858_v45  ;;  %v2864_v7 = vld [vmem:[#allocation0 + $0x670] sm:$0xf] }
 0x1e3   :  { %v2870_v8 = vld [vmem:[#allocation0 + $0x678] sm:$0xf]  ;;  %v2780_v46 = vld [vmem:[#allocation0 + $0x600] sm:$0xf]  ;;  %4706 = vst [vmem:[%s7094_s1 + $0x338] sm:$0xf] %v2864_v7 }
 0x1e4   :  { %4707 = vst [vmem:[%s7094_s1 + $0x33c] sm:$0xf] %v2870_v8  ;;  %4692 = vst [vmem:[%s7094_s1 + $0x300] sm:$0xf] %v2780_v46  ;;  %v2786_v47 = vld [vmem:[#allocation0 + $0x608] sm:$0xf]  ;;  %v1622_v8 = vpop.permute.xlu1 %1621   ;;  %v1613_v46 = vpop.permute.xlu0 %1612  }
 0x1e5   :  { %v2792_v9 = vld [vmem:[#allocation0 + $0x610] sm:$0xf]  ;;  %v2798_v10 = vld [vmem:[#allocation0 + $0x618] sm:$0xf]  ;;  %4693 = vst [vmem:[%s7094_s1 + $0x304] sm:$0xf] %v2786_v47 }
 0x1e6   :  { %4694 = vst [vmem:[%s7094_s1 + $0x308] sm:$0xf] %v2792_v9  ;;  %4695 = vst [vmem:[%s7094_s1 + $0x30c] sm:$0xf] %v2798_v10  ;;  %v2804_v11 = vld [vmem:[#allocation0 + $0x620] sm:$0xf] }
 0x1e7   :  { %v2810_v12 = vld [vmem:[#allocation0 + $0x628] sm:$0xf]  ;;  %v2816_v13 = vld [vmem:[#allocation0 + $0x630] sm:$0xf]  ;;  %4696 = vst [vmem:[%s7094_s1 + $0x310] sm:$0xf] %v2804_v11 }
 0x1e8   :  { %4697 = vst [vmem:[%s7094_s1 + $0x314] sm:$0xf] %v2810_v12  ;;  %4698 = vst [vmem:[%s7094_s1 + $0x318] sm:$0xf] %v2816_v13  ;;  %v2822_v15 = vld [vmem:[#allocation0 + $0x638] sm:$0xf] }
 0x1e9   :  { %v2924_v16 = vld [vmem:[#allocation0 + $0x6c0] sm:$0xf]  ;;  %v2930_v17 = vld [vmem:[#allocation0 + $0x6c8] sm:$0xf]  ;;  %4699 = vst [vmem:[%s7094_s1 + $0x31c] sm:$0xf] %v2822_v15 }
 0x1ea   :  { %1553 = vst.msk [vmem:[#allocation0 + $0x9c3] ss:$8 sm:$0xf] %vm3_vm0, %v1550_v56   ;;  %1555 = vst.msk [vmem:[#allocation0 + $0x9c3] ss:$8 sm:$0xf0] %vm3_vm0, %v1550_v56  }
 0x1eb   :  { %1544 = vst.msk [vmem:[#allocation0 + $0x983] ss:$8 sm:$0xf] %vm3_vm0, %v1541_v14   ;;  %1546 = vst.msk [vmem:[#allocation0 + $0x983] ss:$8 sm:$0xf0] %vm3_vm0, %v1541_v14  }
 0x1ec   :  { %4716 = vst [vmem:[%s7094_s1 + $0x360] sm:$0xf] %v2924_v16  ;;  %4717 = vst [vmem:[%s7094_s1 + $0x364] sm:$0xf] %v2930_v17  ;;  %v2936_v57 = vld [vmem:[#allocation0 + $0x6d0] sm:$0xf] }
 0x1ed   :  { %v2942_v58 = vld [vmem:[#allocation0 + $0x6d8] sm:$0xf]  ;;  %v2948_v18 = vld [vmem:[#allocation0 + $0x6e0] sm:$0xf]  ;;  %4718 = vst [vmem:[%s7094_s1 + $0x368] sm:$0xf] %v2936_v57 }
 0x1ee   :  { %4719 = vst [vmem:[%s7094_s1 + $0x36c] sm:$0xf] %v2942_v58  ;;  %4720 = vst [vmem:[%s7094_s1 + $0x370] sm:$0xf] %v2948_v18  ;;  %v2954_v19 = vld [vmem:[#allocation0 + $0x6e8] sm:$0xf] }
 0x1ef   :  { %v2960_v59 = vld [vmem:[#allocation0 + $0x6f0] sm:$0xf]  ;;  %v2966_v60 = vld [vmem:[#allocation0 + $0x6f8] sm:$0xf]  ;;  %4721 = vst [vmem:[%s7094_s1 + $0x374] sm:$0xf] %v2954_v19 }
 0x1f0   :  { %4722 = vst [vmem:[%s7094_s1 + $0x378] sm:$0xf] %v2960_v59  ;;  %4723 = vst [vmem:[%s7094_s1 + $0x37c] sm:$0xf] %v2966_v60  ;;  %v2876_v20 = vld [vmem:[#allocation0 + $0x680] sm:$0xf] }
 0x1f1   :  { %v2882_v21 = vld [vmem:[#allocation0 + $0x688] sm:$0xf]  ;;  %v2888_v61 = vld [vmem:[#allocation0 + $0x690] sm:$0xf]  ;;  %4708 = vst [vmem:[%s7094_s1 + $0x340] sm:$0xf] %v2876_v20 }
 0x1f2   :  { %4709 = vst [vmem:[%s7094_s1 + $0x344] sm:$0xf] %v2882_v21  ;;  %4710 = vst [vmem:[%s7094_s1 + $0x348] sm:$0xf] %v2888_v61  ;;  %v2894_v23 = vld [vmem:[#allocation0 + $0x698] sm:$0xf] }
 0x1f3   :  { %v2900_v24 = vld [vmem:[#allocation0 + $0x6a0] sm:$0xf]  ;;  %v2906_v25 = vld [vmem:[#allocation0 + $0x6a8] sm:$0xf]  ;;  %4711 = vst [vmem:[%s7094_s1 + $0x34c] sm:$0xf] %v2894_v23 }
 0x1f4   :  { %1571 = vst.msk [vmem:[#allocation0 + $0xa43] ss:$8 sm:$0xf] %vm3_vm0, %v1568_v62   ;;  %1573 = vst.msk [vmem:[#allocation0 + $0xa43] ss:$8 sm:$0xf0] %vm3_vm0, %v1568_v62  }
 0x1f5   :  { %1562 = vst.msk [vmem:[#allocation0 + $0xa03] ss:$8 sm:$0xf] %vm3_vm0, %v1559_v22   ;;  %1564 = vst.msk [vmem:[#allocation0 + $0xa03] ss:$8 sm:$0xf0] %vm3_vm0, %v1559_v22  }
 0x1f6   :  { %4712 = vst [vmem:[%s7094_s1 + $0x350] sm:$0xf] %v2900_v24  ;;  %4713 = vst [vmem:[%s7094_s1 + $0x354] sm:$0xf] %v2906_v25  ;;  %v2912_v63 = vld [vmem:[#allocation0 + $0x6b0] sm:$0xf] }
 0x1f7   :  { %v2918_v48 = vld [vmem:[#allocation0 + $0x6b8] sm:$0xf]  ;;  %v3020_v26 = vld [vmem:[#allocation0 + $0x740] sm:$0xf]  ;;  %4714 = vst [vmem:[%s7094_s1 + $0x358] sm:$0xf] %v2912_v63 }
 0x1f8   :  { %4715 = vst [vmem:[%s7094_s1 + $0x35c] sm:$0xf] %v2918_v48  ;;  %4732 = vst [vmem:[%s7094_s1 + $0x3a0] sm:$0xf] %v3020_v26  ;;  %v3026_v27 = vld [vmem:[#allocation0 + $0x748] sm:$0xf] }
 0x1f9   :  { %v3032_v49 = vld [vmem:[#allocation0 + $0x750] sm:$0xf]  ;;  %v3038_v50 = vld [vmem:[#allocation0 + $0x758] sm:$0xf]  ;;  %4733 = vst [vmem:[%s7094_s1 + $0x3a4] sm:$0xf] %v3026_v27 }
 0x1fa   :  { %4734 = vst [vmem:[%s7094_s1 + $0x3a8] sm:$0xf] %v3032_v49  ;;  %4735 = vst [vmem:[%s7094_s1 + $0x3ac] sm:$0xf] %v3038_v50  ;;  %v3044_v28 = vld [vmem:[#allocation0 + $0x760] sm:$0xf] }
 0x1fb   :  { %v3050_v29 = vld [vmem:[#allocation0 + $0x768] sm:$0xf]  ;;  %v3056_v51 = vld [vmem:[#allocation0 + $0x770] sm:$0xf]  ;;  %4736 = vst [vmem:[%s7094_s1 + $0x3b0] sm:$0xf] %v3044_v28 }
 0x1fc   :  { %4737 = vst [vmem:[%s7094_s1 + $0x3b4] sm:$0xf] %v3050_v29  ;;  %4738 = vst [vmem:[%s7094_s1 + $0x3b8] sm:$0xf] %v3056_v51  ;;  %v3062_v31 = vld [vmem:[#allocation0 + $0x778] sm:$0xf] }
 0x1fd   :  { %v2972_v32 = vld [vmem:[#allocation0 + $0x700] sm:$0xf]  ;;  %v2978_v33 = vld [vmem:[#allocation0 + $0x708] sm:$0xf]  ;;  %4739 = vst [vmem:[%s7094_s1 + $0x3bc] sm:$0xf] %v3062_v31 }
 0x1fe   :  { %1589 = vst.msk [vmem:[#allocation0 + $0xac3] ss:$8 sm:$0xf] %vm3_vm0, %v1586_v52   ;;  %1591 = vst.msk [vmem:[#allocation0 + $0xac3] ss:$8 sm:$0xf0] %vm3_vm0, %v1586_v52  }
 0x1ff   :  { %1580 = vst.msk [vmem:[#allocation0 + $0xa83] ss:$8 sm:$0xf] %vm3_vm0, %v1577_v30   ;;  %1582 = vst.msk [vmem:[#allocation0 + $0xa83] ss:$8 sm:$0xf0] %vm3_vm0, %v1577_v30  }
 0x200   :  { %4724 = vst [vmem:[%s7094_s1 + $0x380] sm:$0xf] %v2972_v32  ;;  %4725 = vst [vmem:[%s7094_s1 + $0x384] sm:$0xf] %v2978_v33  ;;  %v2984_v53 = vld [vmem:[#allocation0 + $0x710] sm:$0xf] }
 0x201   :  { %v2990_v54 = vld [vmem:[#allocation0 + $0x718] sm:$0xf]  ;;  %v2996_v34 = vld [vmem:[#allocation0 + $0x720] sm:$0xf]  ;;  %4726 = vst [vmem:[%s7094_s1 + $0x388] sm:$0xf] %v2984_v53 }
 0x202   :  { %4727 = vst [vmem:[%s7094_s1 + $0x38c] sm:$0xf] %v2990_v54  ;;  %4728 = vst [vmem:[%s7094_s1 + $0x390] sm:$0xf] %v2996_v34  ;;  %v3002_v35 = vld [vmem:[#allocation0 + $0x728] sm:$0xf] }
 0x203   :  { %v3008_v55 = vld [vmem:[#allocation0 + $0x730] sm:$0xf]  ;;  %v3014_v1 = vld [vmem:[#allocation0 + $0x738] sm:$0xf]  ;;  %4729 = vst [vmem:[%s7094_s1 + $0x394] sm:$0xf] %v3002_v35 }
 0x204   :  { %4730 = vst [vmem:[%s7094_s1 + $0x398] sm:$0xf] %v3008_v55  ;;  %4731 = vst [vmem:[%s7094_s1 + $0x39c] sm:$0xf] %v3014_v1  ;;  %v3116_v36 = vld [vmem:[#allocation0 + $0x7c0] sm:$0xf] }
 0x205   :  { %v3122_v37 = vld [vmem:[#allocation0 + $0x7c8] sm:$0xf]  ;;  %v3128_v3 = vld [vmem:[#allocation0 + $0x7d0] sm:$0xf]  ;;  %4748 = vst [vmem:[%s7094_s1 + $0x3e0] sm:$0xf] %v3116_v36 }
 0x206   :  { %4749 = vst [vmem:[%s7094_s1 + $0x3e4] sm:$0xf] %v3122_v37  ;;  %4750 = vst [vmem:[%s7094_s1 + $0x3e8] sm:$0xf] %v3128_v3  ;;  %v3134_v39 = vld [vmem:[#allocation0 + $0x7d8] sm:$0xf] }
 0x207   :  { %v3140_v40 = vld [vmem:[#allocation0 + $0x7e0] sm:$0xf]  ;;  %v3146_v41 = vld [vmem:[#allocation0 + $0x7e8] sm:$0xf]  ;;  %4751 = vst [vmem:[%s7094_s1 + $0x3ec] sm:$0xf] %v3134_v39 }
 0x208   :  { %1607 = vst.msk [vmem:[#allocation0 + $0xb43] ss:$8 sm:$0xf] %vm3_vm0, %v1604_v0   ;;  %1609 = vst.msk [vmem:[#allocation0 + $0xb43] ss:$8 sm:$0xf0] %vm3_vm0, %v1604_v0  }
 0x209   :  { %1598 = vst.msk [vmem:[#allocation0 + $0xb03] ss:$8 sm:$0xf] %vm3_vm0, %v1595_v38   ;;  %1600 = vst.msk [vmem:[#allocation0 + $0xb03] ss:$8 sm:$0xf0] %vm3_vm0, %v1595_v38  }
 0x20a   :  { %4752 = vst [vmem:[%s7094_s1 + $0x3f0] sm:$0xf] %v3140_v40  ;;  %4753 = vst [vmem:[%s7094_s1 + $0x3f4] sm:$0xf] %v3146_v41  ;;  %v3152_v2 = vld [vmem:[#allocation0 + $0x7f0] sm:$0xf] }
 0x20b   :  { %v3158_v4 = vld [vmem:[#allocation0 + $0x7f8] sm:$0xf]  ;;  %v3068_v42 = vld [vmem:[#allocation0 + $0x780] sm:$0xf]  ;;  %4754 = vst [vmem:[%s7094_s1 + $0x3f8] sm:$0xf] %v3152_v2 }
 0x20c   :  { %4755 = vst [vmem:[%s7094_s1 + $0x3fc] sm:$0xf] %v3158_v4  ;;  %4740 = vst [vmem:[%s7094_s1 + $0x3c0] sm:$0xf] %v3068_v42  ;;  %v3074_v43 = vld [vmem:[#allocation0 + $0x788] sm:$0xf] }
 0x20d   :  { %v3080_v5 = vld [vmem:[#allocation0 + $0x790] sm:$0xf]  ;;  %v3086_v6 = vld [vmem:[#allocation0 + $0x798] sm:$0xf]  ;;  %4741 = vst [vmem:[%s7094_s1 + $0x3c4] sm:$0xf] %v3074_v43 }
 0x20e   :  { %4742 = vst [vmem:[%s7094_s1 + $0x3c8] sm:$0xf] %v3080_v5  ;;  %4743 = vst [vmem:[%s7094_s1 + $0x3cc] sm:$0xf] %v3086_v6  ;;  %v3092_v44 = vld [vmem:[#allocation0 + $0x7a0] sm:$0xf] }
 0x20f   :  { %v3098_v45 = vld [vmem:[#allocation0 + $0x7a8] sm:$0xf]  ;;  %v3104_v7 = vld [vmem:[#allocation0 + $0x7b0] sm:$0xf]  ;;  %4744 = vst [vmem:[%s7094_s1 + $0x3d0] sm:$0xf] %v3092_v44 }
 0x210   :  { %4745 = vst [vmem:[%s7094_s1 + $0x3d4] sm:$0xf] %v3098_v45  ;;  %4746 = vst [vmem:[%s7094_s1 + $0x3d8] sm:$0xf] %v3104_v7  ;;  %v3110_v47 = vld [vmem:[#allocation0 + $0x7b8] sm:$0xf] }
 0x211   :  { %v3212_v9 = vld [vmem:[#allocation0 + $0x840] sm:$0xf]  ;;  %v3218_v10 = vld [vmem:[#allocation0 + $0x848] sm:$0xf]  ;;  %4747 = vst [vmem:[%s7094_s1 + $0x3dc] sm:$0xf] %v3110_v47 }
 0x212   :  { %1625 = vst.msk [vmem:[#allocation0 + $0xbc3] ss:$8 sm:$0xf] %vm3_vm0, %v1622_v8   ;;  %1627 = vst.msk [vmem:[#allocation0 + $0xbc3] ss:$8 sm:$0xf0] %vm3_vm0, %v1622_v8  }
 0x213   :  { %1616 = vst.msk [vmem:[#allocation0 + $0xb83] ss:$8 sm:$0xf] %vm3_vm0, %v1613_v46   ;;  %1618 = vst.msk [vmem:[#allocation0 + $0xb83] ss:$8 sm:$0xf0] %vm3_vm0, %v1613_v46  }
 0x214   :  { %4764 = vst [vmem:[%s7094_s1 + $0x420] sm:$0xf] %v3212_v9  ;;  %4765 = vst [vmem:[%s7094_s1 + $0x424] sm:$0xf] %v3218_v10  ;;  %v3224_v11 = vld [vmem:[#allocation0 + $0x850] sm:$0xf] }
 0x215   :  { %v3230_v12 = vld [vmem:[#allocation0 + $0x858] sm:$0xf]  ;;  %v3236_v13 = vld [vmem:[#allocation0 + $0x860] sm:$0xf]  ;;  %4766 = vst [vmem:[%s7094_s1 + $0x428] sm:$0xf] %v3224_v11 }
 0x216   :  { %4767 = vst [vmem:[%s7094_s1 + $0x42c] sm:$0xf] %v3230_v12  ;;  %4768 = vst [vmem:[%s7094_s1 + $0x430] sm:$0xf] %v3236_v13  ;;  %v3242_v56 = vld [vmem:[#allocation0 + $0x868] sm:$0xf] }
 0x217   :  { %v3248_v14 = vld [vmem:[#allocation0 + $0x870] sm:$0xf]  ;;  %v3254_v15 = vld [vmem:[#allocation0 + $0x878] sm:$0xf]  ;;  %4769 = vst [vmem:[%s7094_s1 + $0x434] sm:$0xf] %v3242_v56 }
 0x218   :  { %4770 = vst [vmem:[%s7094_s1 + $0x438] sm:$0xf] %v3248_v14  ;;  %4771 = vst [vmem:[%s7094_s1 + $0x43c] sm:$0xf] %v3254_v15  ;;  %v3164_v16 = vld [vmem:[#allocation0 + $0x800] sm:$0xf] }
 0x219   :  { %v3170_v17 = vld [vmem:[#allocation0 + $0x808] sm:$0xf]  ;;  %v3176_v57 = vld [vmem:[#allocation0 + $0x810] sm:$0xf]  ;;  %4756 = vst [vmem:[%s7094_s1 + $0x400] sm:$0xf] %v3164_v16 }
 0x21a   :  { %4757 = vst [vmem:[%s7094_s1 + $0x404] sm:$0xf] %v3170_v17  ;;  %4758 = vst [vmem:[%s7094_s1 + $0x408] sm:$0xf] %v3176_v57  ;;  %v3182_v58 = vld [vmem:[#allocation0 + $0x818] sm:$0xf] }
 0x21b   :  { %v3188_v18 = vld [vmem:[#allocation0 + $0x820] sm:$0xf]  ;;  %v3194_v19 = vld [vmem:[#allocation0 + $0x828] sm:$0xf]  ;;  %4759 = vst [vmem:[%s7094_s1 + $0x40c] sm:$0xf] %v3182_v58 }
 0x21c   :  { %4760 = vst [vmem:[%s7094_s1 + $0x410] sm:$0xf] %v3188_v18  ;;  %4761 = vst [vmem:[%s7094_s1 + $0x414] sm:$0xf] %v3194_v19  ;;  %v3200_v59 = vld [vmem:[#allocation0 + $0x830] sm:$0xf] }
 0x21d   :  { %v3206_v60 = vld [vmem:[#allocation0 + $0x838] sm:$0xf]  ;;  %v3308_v20 = vld [vmem:[#allocation0 + $0x8c0] sm:$0xf]  ;;  %4762 = vst [vmem:[%s7094_s1 + $0x418] sm:$0xf] %v3200_v59 }
 0x21e   :  { %4763 = vst [vmem:[%s7094_s1 + $0x41c] sm:$0xf] %v3206_v60  ;;  %4780 = vst [vmem:[%s7094_s1 + $0x460] sm:$0xf] %v3308_v20  ;;  %v3314_v21 = vld [vmem:[#allocation0 + $0x8c8] sm:$0xf] }
 0x21f   :  { %v3320_v61 = vld [vmem:[#allocation0 + $0x8d0] sm:$0xf]  ;;  %v3326_v62 = vld [vmem:[#allocation0 + $0x8d8] sm:$0xf]  ;;  %4781 = vst [vmem:[%s7094_s1 + $0x464] sm:$0xf] %v3314_v21 }
 0x220   :  { %4782 = vst [vmem:[%s7094_s1 + $0x468] sm:$0xf] %v3320_v61  ;;  %4783 = vst [vmem:[%s7094_s1 + $0x46c] sm:$0xf] %v3326_v62  ;;  %v3332_v22 = vld [vmem:[#allocation0 + $0x8e0] sm:$0xf] }
 0x221   :  { %v3338_v23 = vld [vmem:[#allocation0 + $0x8e8] sm:$0xf]  ;;  %v3344_v24 = vld [vmem:[#allocation0 + $0x8f0] sm:$0xf]  ;;  %4784 = vst [vmem:[%s7094_s1 + $0x470] sm:$0xf] %v3332_v22 }
 0x222   :  { %4785 = vst [vmem:[%s7094_s1 + $0x474] sm:$0xf] %v3338_v23  ;;  %4786 = vst [vmem:[%s7094_s1 + $0x478] sm:$0xf] %v3344_v24  ;;  %v3350_v25 = vld [vmem:[#allocation0 + $0x8f8] sm:$0xf] }
 0x223   :  { %v3260_v63 = vld [vmem:[#allocation0 + $0x880] sm:$0xf]  ;;  %v3266_v48 = vld [vmem:[#allocation0 + $0x888] sm:$0xf]  ;;  %4787 = vst [vmem:[%s7094_s1 + $0x47c] sm:$0xf] %v3350_v25 }
 0x224   :  { %4772 = vst [vmem:[%s7094_s1 + $0x440] sm:$0xf] %v3260_v63  ;;  %4773 = vst [vmem:[%s7094_s1 + $0x444] sm:$0xf] %v3266_v48  ;;  %v3272_v26 = vld [vmem:[#allocation0 + $0x890] sm:$0xf] }
 0x225   :  { %v3278_v27 = vld [vmem:[#allocation0 + $0x898] sm:$0xf]  ;;  %v3284_v49 = vld [vmem:[#allocation0 + $0x8a0] sm:$0xf]  ;;  %4774 = vst [vmem:[%s7094_s1 + $0x448] sm:$0xf] %v3272_v26 }
 0x226   :  { %4775 = vst [vmem:[%s7094_s1 + $0x44c] sm:$0xf] %v3278_v27  ;;  %4776 = vst [vmem:[%s7094_s1 + $0x450] sm:$0xf] %v3284_v49  ;;  %v3290_v50 = vld [vmem:[#allocation0 + $0x8a8] sm:$0xf] }
 0x227   :  { %v3296_v28 = vld [vmem:[#allocation0 + $0x8b0] sm:$0xf]  ;;  %v3302_v29 = vld [vmem:[#allocation0 + $0x8b8] sm:$0xf]  ;;  %4777 = vst [vmem:[%s7094_s1 + $0x454] sm:$0xf] %v3290_v50 }
 0x228   :  { %4778 = vst [vmem:[%s7094_s1 + $0x458] sm:$0xf] %v3296_v28  ;;  %4779 = vst [vmem:[%s7094_s1 + $0x45c] sm:$0xf] %v3302_v29  ;;  %v3404_v51 = vld [vmem:[#allocation0 + $0x940] sm:$0xf] }
 0x229   :  { %v3410_v52 = vld [vmem:[#allocation0 + $0x948] sm:$0xf]  ;;  %v3416_v30 = vld [vmem:[#allocation0 + $0x950] sm:$0xf]  ;;  %4796 = vst [vmem:[%s7094_s1 + $0x4a0] sm:$0xf] %v3404_v51 }
 0x22a   :  { %4797 = vst [vmem:[%s7094_s1 + $0x4a4] sm:$0xf] %v3410_v52  ;;  %4798 = vst [vmem:[%s7094_s1 + $0x4a8] sm:$0xf] %v3416_v30  ;;  %v3422_v31 = vld [vmem:[#allocation0 + $0x958] sm:$0xf] }
 0x22b   :  { %v3428_v32 = vld [vmem:[#allocation0 + $0x960] sm:$0xf]  ;;  %v3434_v33 = vld [vmem:[#allocation0 + $0x968] sm:$0xf]  ;;  %4799 = vst [vmem:[%s7094_s1 + $0x4ac] sm:$0xf] %v3422_v31 }
 0x22c   :  { %4800 = vst [vmem:[%s7094_s1 + $0x4b0] sm:$0xf] %v3428_v32  ;;  %4801 = vst [vmem:[%s7094_s1 + $0x4b4] sm:$0xf] %v3434_v33  ;;  %v3440_v53 = vld [vmem:[#allocation0 + $0x970] sm:$0xf] }
 0x22d   :  { %v3446_v54 = vld [vmem:[#allocation0 + $0x978] sm:$0xf]  ;;  %v3356_v34 = vld [vmem:[#allocation0 + $0x900] sm:$0xf]  ;;  %4802 = vst [vmem:[%s7094_s1 + $0x4b8] sm:$0xf] %v3440_v53 }
 0x22e   :  { %4803 = vst [vmem:[%s7094_s1 + $0x4bc] sm:$0xf] %v3446_v54  ;;  %4788 = vst [vmem:[%s7094_s1 + $0x480] sm:$0xf] %v3356_v34  ;;  %v3362_v35 = vld [vmem:[#allocation0 + $0x908] sm:$0xf] }
 0x22f   :  { %v3368_v55 = vld [vmem:[#allocation0 + $0x910] sm:$0xf]  ;;  %v3374_v1 = vld [vmem:[#allocation0 + $0x918] sm:$0xf]  ;;  %4789 = vst [vmem:[%s7094_s1 + $0x484] sm:$0xf] %v3362_v35 }
 0x230   :  { %4790 = vst [vmem:[%s7094_s1 + $0x488] sm:$0xf] %v3368_v55  ;;  %4791 = vst [vmem:[%s7094_s1 + $0x48c] sm:$0xf] %v3374_v1  ;;  %v3380_v36 = vld [vmem:[#allocation0 + $0x920] sm:$0xf] }
 0x231   :  { %v3386_v37 = vld [vmem:[#allocation0 + $0x928] sm:$0xf]  ;;  %v3392_v3 = vld [vmem:[#allocation0 + $0x930] sm:$0xf]  ;;  %4792 = vst [vmem:[%s7094_s1 + $0x490] sm:$0xf] %v3380_v36 }
 0x232   :  { %4793 = vst [vmem:[%s7094_s1 + $0x494] sm:$0xf] %v3386_v37  ;;  %4794 = vst [vmem:[%s7094_s1 + $0x498] sm:$0xf] %v3392_v3  ;;  %v3398_v0 = vld [vmem:[#allocation0 + $0x938] sm:$0xf] }
 0x233   :  { %v3500_v38 = vld [vmem:[#allocation0 + $0x9c0] sm:$0xf]  ;;  %v3506_v39 = vld [vmem:[#allocation0 + $0x9c8] sm:$0xf]  ;;  %4795 = vst [vmem:[%s7094_s1 + $0x49c] sm:$0xf] %v3398_v0 }
 0x234   :  { %4812 = vst [vmem:[%s7094_s1 + $0x4e0] sm:$0xf] %v3500_v38  ;;  %4813 = vst [vmem:[%s7094_s1 + $0x4e4] sm:$0xf] %v3506_v39  ;;  %v3512_v40 = vld [vmem:[#allocation0 + $0x9d0] sm:$0xf] }
 0x235   :  { %v3518_v41 = vld [vmem:[#allocation0 + $0x9d8] sm:$0xf]  ;;  %v3524_v2 = vld [vmem:[#allocation0 + $0x9e0] sm:$0xf]  ;;  %4814 = vst [vmem:[%s7094_s1 + $0x4e8] sm:$0xf] %v3512_v40 }
 0x236   :  { %4815 = vst [vmem:[%s7094_s1 + $0x4ec] sm:$0xf] %v3518_v41  ;;  %4816 = vst [vmem:[%s7094_s1 + $0x4f0] sm:$0xf] %v3524_v2  ;;  %v3530_v4 = vld [vmem:[#allocation0 + $0x9e8] sm:$0xf] }
 0x237   :  { %v3536_v42 = vld [vmem:[#allocation0 + $0x9f0] sm:$0xf]  ;;  %v3542_v43 = vld [vmem:[#allocation0 + $0x9f8] sm:$0xf]  ;;  %4817 = vst [vmem:[%s7094_s1 + $0x4f4] sm:$0xf] %v3530_v4 }
 0x238   :  { %4818 = vst [vmem:[%s7094_s1 + $0x4f8] sm:$0xf] %v3536_v42  ;;  %4819 = vst [vmem:[%s7094_s1 + $0x4fc] sm:$0xf] %v3542_v43  ;;  %v3452_v5 = vld [vmem:[#allocation0 + $0x980] sm:$0xf] }
 0x239   :  { %v3458_v6 = vld [vmem:[#allocation0 + $0x988] sm:$0xf]  ;;  %v3464_v44 = vld [vmem:[#allocation0 + $0x990] sm:$0xf]  ;;  %4804 = vst [vmem:[%s7094_s1 + $0x4c0] sm:$0xf] %v3452_v5 }
 0x23a   :  { %4805 = vst [vmem:[%s7094_s1 + $0x4c4] sm:$0xf] %v3458_v6  ;;  %4806 = vst [vmem:[%s7094_s1 + $0x4c8] sm:$0xf] %v3464_v44  ;;  %v3470_v45 = vld [vmem:[#allocation0 + $0x998] sm:$0xf] }
 0x23b   :  { %v3476_v7 = vld [vmem:[#allocation0 + $0x9a0] sm:$0xf]  ;;  %v3482_v8 = vld [vmem:[#allocation0 + $0x9a8] sm:$0xf]  ;;  %4807 = vst [vmem:[%s7094_s1 + $0x4cc] sm:$0xf] %v3470_v45 }
 0x23c   :  { %4808 = vst [vmem:[%s7094_s1 + $0x4d0] sm:$0xf] %v3476_v7  ;;  %4809 = vst [vmem:[%s7094_s1 + $0x4d4] sm:$0xf] %v3482_v8  ;;  %v3488_v46 = vld [vmem:[#allocation0 + $0x9b0] sm:$0xf] }
 0x23d   :  { %v3494_v47 = vld [vmem:[#allocation0 + $0x9b8] sm:$0xf]  ;;  %v3596_v9 = vld [vmem:[#allocation0 + $0xa40] sm:$0xf]  ;;  %4810 = vst [vmem:[%s7094_s1 + $0x4d8] sm:$0xf] %v3488_v46 }
 0x23e   :  { %4811 = vst [vmem:[%s7094_s1 + $0x4dc] sm:$0xf] %v3494_v47  ;;  %4828 = vst [vmem:[%s7094_s1 + $0x520] sm:$0xf] %v3596_v9  ;;  %v3602_v10 = vld [vmem:[#allocation0 + $0xa48] sm:$0xf] }
 0x23f   :  { %v3608_v11 = vld [vmem:[#allocation0 + $0xa50] sm:$0xf]  ;;  %v3614_v12 = vld [vmem:[#allocation0 + $0xa58] sm:$0xf]  ;;  %4829 = vst [vmem:[%s7094_s1 + $0x524] sm:$0xf] %v3602_v10 }
 0x240   :  { %4830 = vst [vmem:[%s7094_s1 + $0x528] sm:$0xf] %v3608_v11  ;;  %4831 = vst [vmem:[%s7094_s1 + $0x52c] sm:$0xf] %v3614_v12  ;;  %v3620_v13 = vld [vmem:[#allocation0 + $0xa60] sm:$0xf] }
 0x241   :  { %v3626_v56 = vld [vmem:[#allocation0 + $0xa68] sm:$0xf]  ;;  %v3632_v14 = vld [vmem:[#allocation0 + $0xa70] sm:$0xf]  ;;  %4832 = vst [vmem:[%s7094_s1 + $0x530] sm:$0xf] %v3620_v13 }
 0x242   :  { %4833 = vst [vmem:[%s7094_s1 + $0x534] sm:$0xf] %v3626_v56  ;;  %4834 = vst [vmem:[%s7094_s1 + $0x538] sm:$0xf] %v3632_v14  ;;  %v3638_v15 = vld [vmem:[#allocation0 + $0xa78] sm:$0xf] }
 0x243   :  { %v3548_v16 = vld [vmem:[#allocation0 + $0xa00] sm:$0xf]  ;;  %v3554_v17 = vld [vmem:[#allocation0 + $0xa08] sm:$0xf]  ;;  %4835 = vst [vmem:[%s7094_s1 + $0x53c] sm:$0xf] %v3638_v15 }
 0x244   :  { %4820 = vst [vmem:[%s7094_s1 + $0x500] sm:$0xf] %v3548_v16  ;;  %4821 = vst [vmem:[%s7094_s1 + $0x504] sm:$0xf] %v3554_v17  ;;  %v3560_v57 = vld [vmem:[#allocation0 + $0xa10] sm:$0xf] }
 0x245   :  { %v3566_v58 = vld [vmem:[#allocation0 + $0xa18] sm:$0xf]  ;;  %v3572_v18 = vld [vmem:[#allocation0 + $0xa20] sm:$0xf]  ;;  %4822 = vst [vmem:[%s7094_s1 + $0x508] sm:$0xf] %v3560_v57 }
 0x246   :  { %4823 = vst [vmem:[%s7094_s1 + $0x50c] sm:$0xf] %v3566_v58  ;;  %4824 = vst [vmem:[%s7094_s1 + $0x510] sm:$0xf] %v3572_v18  ;;  %v3578_v19 = vld [vmem:[#allocation0 + $0xa28] sm:$0xf] }
 0x247   :  { %v3584_v59 = vld [vmem:[#allocation0 + $0xa30] sm:$0xf]  ;;  %v3590_v60 = vld [vmem:[#allocation0 + $0xa38] sm:$0xf]  ;;  %4825 = vst [vmem:[%s7094_s1 + $0x514] sm:$0xf] %v3578_v19 }
 0x248   :  { %4826 = vst [vmem:[%s7094_s1 + $0x518] sm:$0xf] %v3584_v59  ;;  %4827 = vst [vmem:[%s7094_s1 + $0x51c] sm:$0xf] %v3590_v60  ;;  %v3692_v20 = vld [vmem:[#allocation0 + $0xac0] sm:$0xf] }
 0x249   :  { %v3698_v21 = vld [vmem:[#allocation0 + $0xac8] sm:$0xf]  ;;  %v3704_v61 = vld [vmem:[#allocation0 + $0xad0] sm:$0xf]  ;;  %4844 = vst [vmem:[%s7094_s1 + $0x560] sm:$0xf] %v3692_v20 }
 0x24a   :  { %4845 = vst [vmem:[%s7094_s1 + $0x564] sm:$0xf] %v3698_v21  ;;  %4846 = vst [vmem:[%s7094_s1 + $0x568] sm:$0xf] %v3704_v61  ;;  %v3710_v62 = vld [vmem:[#allocation0 + $0xad8] sm:$0xf] }
 0x24b   :  { %v3716_v22 = vld [vmem:[#allocation0 + $0xae0] sm:$0xf]  ;;  %v3722_v23 = vld [vmem:[#allocation0 + $0xae8] sm:$0xf]  ;;  %4847 = vst [vmem:[%s7094_s1 + $0x56c] sm:$0xf] %v3710_v62 }
 0x24c   :  { %4848 = vst [vmem:[%s7094_s1 + $0x570] sm:$0xf] %v3716_v22  ;;  %4849 = vst [vmem:[%s7094_s1 + $0x574] sm:$0xf] %v3722_v23  ;;  %v3728_v24 = vld [vmem:[#allocation0 + $0xaf0] sm:$0xf] }
 0x24d   :  { %v3734_v25 = vld [vmem:[#allocation0 + $0xaf8] sm:$0xf]  ;;  %v3644_v63 = vld [vmem:[#allocation0 + $0xa80] sm:$0xf]  ;;  %4850 = vst [vmem:[%s7094_s1 + $0x578] sm:$0xf] %v3728_v24 }
 0x24e   :  { %4851 = vst [vmem:[%s7094_s1 + $0x57c] sm:$0xf] %v3734_v25  ;;  %4836 = vst [vmem:[%s7094_s1 + $0x540] sm:$0xf] %v3644_v63  ;;  %v3650_v48 = vld [vmem:[#allocation0 + $0xa88] sm:$0xf] }
 0x24f   :  { %v3656_v26 = vld [vmem:[#allocation0 + $0xa90] sm:$0xf]  ;;  %v3662_v27 = vld [vmem:[#allocation0 + $0xa98] sm:$0xf]  ;;  %4837 = vst [vmem:[%s7094_s1 + $0x544] sm:$0xf] %v3650_v48 }
 0x250   :  { %4838 = vst [vmem:[%s7094_s1 + $0x548] sm:$0xf] %v3656_v26  ;;  %4839 = vst [vmem:[%s7094_s1 + $0x54c] sm:$0xf] %v3662_v27  ;;  %v3668_v49 = vld [vmem:[#allocation0 + $0xaa0] sm:$0xf] }
 0x251   :  { %v3674_v50 = vld [vmem:[#allocation0 + $0xaa8] sm:$0xf]  ;;  %v3680_v28 = vld [vmem:[#allocation0 + $0xab0] sm:$0xf]  ;;  %4840 = vst [vmem:[%s7094_s1 + $0x550] sm:$0xf] %v3668_v49 }
 0x252   :  { %4841 = vst [vmem:[%s7094_s1 + $0x554] sm:$0xf] %v3674_v50  ;;  %4842 = vst [vmem:[%s7094_s1 + $0x558] sm:$0xf] %v3680_v28  ;;  %v3686_v29 = vld [vmem:[#allocation0 + $0xab8] sm:$0xf] }
 0x253   :  { %v3788_v51 = vld [vmem:[#allocation0 + $0xb40] sm:$0xf]  ;;  %v3794_v52 = vld [vmem:[#allocation0 + $0xb48] sm:$0xf]  ;;  %4843 = vst [vmem:[%s7094_s1 + $0x55c] sm:$0xf] %v3686_v29 }
 0x254   :  { %4860 = vst [vmem:[%s7094_s1 + $0x5a0] sm:$0xf] %v3788_v51  ;;  %4861 = vst [vmem:[%s7094_s1 + $0x5a4] sm:$0xf] %v3794_v52  ;;  %v3800_v30 = vld [vmem:[#allocation0 + $0xb50] sm:$0xf] }
 0x255   :  { %v3806_v31 = vld [vmem:[#allocation0 + $0xb58] sm:$0xf]  ;;  %v3812_v32 = vld [vmem:[#allocation0 + $0xb60] sm:$0xf]  ;;  %4862 = vst [vmem:[%s7094_s1 + $0x5a8] sm:$0xf] %v3800_v30 }
 0x256   :  { %4863 = vst [vmem:[%s7094_s1 + $0x5ac] sm:$0xf] %v3806_v31  ;;  %4864 = vst [vmem:[%s7094_s1 + $0x5b0] sm:$0xf] %v3812_v32  ;;  %v3818_v33 = vld [vmem:[#allocation0 + $0xb68] sm:$0xf] }
 0x257   :  { %v3824_v53 = vld [vmem:[#allocation0 + $0xb70] sm:$0xf]  ;;  %v3830_v54 = vld [vmem:[#allocation0 + $0xb78] sm:$0xf]  ;;  %4865 = vst [vmem:[%s7094_s1 + $0x5b4] sm:$0xf] %v3818_v33 }
 0x258   :  { %4866 = vst [vmem:[%s7094_s1 + $0x5b8] sm:$0xf] %v3824_v53  ;;  %4867 = vst [vmem:[%s7094_s1 + $0x5bc] sm:$0xf] %v3830_v54  ;;  %v3740_v34 = vld [vmem:[#allocation0 + $0xb00] sm:$0xf] }
 0x259   :  { %v3746_v35 = vld [vmem:[#allocation0 + $0xb08] sm:$0xf]  ;;  %v3752_v55 = vld [vmem:[#allocation0 + $0xb10] sm:$0xf]  ;;  %4852 = vst [vmem:[%s7094_s1 + $0x580] sm:$0xf] %v3740_v34 }
 0x25a   :  { %4853 = vst [vmem:[%s7094_s1 + $0x584] sm:$0xf] %v3746_v35  ;;  %4854 = vst [vmem:[%s7094_s1 + $0x588] sm:$0xf] %v3752_v55  ;;  %v3758_v1 = vld [vmem:[#allocation0 + $0xb18] sm:$0xf] }
 0x25b   :  { %v3764_v36 = vld [vmem:[#allocation0 + $0xb20] sm:$0xf]  ;;  %v3770_v37 = vld [vmem:[#allocation0 + $0xb28] sm:$0xf]  ;;  %4855 = vst [vmem:[%s7094_s1 + $0x58c] sm:$0xf] %v3758_v1 }
 0x25c   :  { %4856 = vst [vmem:[%s7094_s1 + $0x590] sm:$0xf] %v3764_v36  ;;  %4857 = vst [vmem:[%s7094_s1 + $0x594] sm:$0xf] %v3770_v37  ;;  %v3776_v3 = vld [vmem:[#allocation0 + $0xb30] sm:$0xf] }
 0x25d   :  { %v3782_v0 = vld [vmem:[#allocation0 + $0xb38] sm:$0xf]  ;;  %v3884_v38 = vld [vmem:[#allocation0 + $0xbc0] sm:$0xf]  ;;  %4858 = vst [vmem:[%s7094_s1 + $0x598] sm:$0xf] %v3776_v3 }
 0x25e   :  { %4859 = vst [vmem:[%s7094_s1 + $0x59c] sm:$0xf] %v3782_v0  ;;  %4876 = vst [vmem:[%s7094_s1 + $0x5e0] sm:$0xf] %v3884_v38  ;;  %v3890_v39 = vld [vmem:[#allocation0 + $0xbc8] sm:$0xf] }
 0x25f   :  { %v3896_v40 = vld [vmem:[#allocation0 + $0xbd0] sm:$0xf]  ;;  %v3902_v41 = vld [vmem:[#allocation0 + $0xbd8] sm:$0xf]  ;;  %4877 = vst [vmem:[%s7094_s1 + $0x5e4] sm:$0xf] %v3890_v39 }
 0x260   :  { %4878 = vst [vmem:[%s7094_s1 + $0x5e8] sm:$0xf] %v3896_v40  ;;  %4879 = vst [vmem:[%s7094_s1 + $0x5ec] sm:$0xf] %v3902_v41  ;;  %v3908_v2 = vld [vmem:[#allocation0 + $0xbe0] sm:$0xf] }
 0x261   :  { %v3914_v4 = vld [vmem:[#allocation0 + $0xbe8] sm:$0xf]  ;;  %v3920_v42 = vld [vmem:[#allocation0 + $0xbf0] sm:$0xf]  ;;  %4880 = vst [vmem:[%s7094_s1 + $0x5f0] sm:$0xf] %v3908_v2 }
 0x262   :  { %4881 = vst [vmem:[%s7094_s1 + $0x5f4] sm:$0xf] %v3914_v4  ;;  %4882 = vst [vmem:[%s7094_s1 + $0x5f8] sm:$0xf] %v3920_v42  ;;  %v3926_v43 = vld [vmem:[#allocation0 + $0xbf8] sm:$0xf] }
 0x263   :  { %v3836_v5 = vld [vmem:[#allocation0 + $0xb80] sm:$0xf]  ;;  %v3842_v6 = vld [vmem:[#allocation0 + $0xb88] sm:$0xf]  ;;  %4883 = vst [vmem:[%s7094_s1 + $0x5fc] sm:$0xf] %v3926_v43 }
 0x264   :  { %4868 = vst [vmem:[%s7094_s1 + $0x5c0] sm:$0xf] %v3836_v5  ;;  %4869 = vst [vmem:[%s7094_s1 + $0x5c4] sm:$0xf] %v3842_v6  ;;  %v3848_v44 = vld [vmem:[#allocation0 + $0xb90] sm:$0xf] }
 0x265   :  { %v3854_v45 = vld [vmem:[#allocation0 + $0xb98] sm:$0xf]  ;;  %v3860_v7 = vld [vmem:[#allocation0 + $0xba0] sm:$0xf]  ;;  %4870 = vst [vmem:[%s7094_s1 + $0x5c8] sm:$0xf] %v3848_v44 }
 0x266   :  { %4871 = vst [vmem:[%s7094_s1 + $0x5cc] sm:$0xf] %v3854_v45  ;;  %4872 = vst [vmem:[%s7094_s1 + $0x5d0] sm:$0xf] %v3860_v7  ;;  %v3866_v8 = vld [vmem:[#allocation0 + $0xba8] sm:$0xf] }
 0x267   :  { %v3872_v46 = vld [vmem:[#allocation0 + $0xbb0] sm:$0xf]  ;;  %v3878_v47 = vld [vmem:[#allocation0 + $0xbb8] sm:$0xf]  ;;  %4873 = vst [vmem:[%s7094_s1 + $0x5d4] sm:$0xf] %v3866_v8 }
 0x268   :  { %4874 = vst [vmem:[%s7094_s1 + $0x5d8] sm:$0xf] %v3872_v46  ;;  %4875 = vst [vmem:[%s7094_s1 + $0x5dc] sm:$0xf] %v3878_v47 }

// kernel: yowo_forward.1
= control target key start
LH: loop header
LB: loop body
LE: loop exit
PB: predicated region body
PF: predicated region fallthrough
CT: control target
= control target key end

     0   :  { %s2432_s18 = smov 0   ;;  %s2434_s19 = smov 0   ;;  %s2764_s0 = inlined_call_operand.vmem [shape: f32[3,128,8], index: 0, kind: input, shape index: {}]   ;;  %s2765_s1 = inlined_call_operand.vmem [shape: f32[3,8,320], index: 1, kind: input, shape index: {}]   ;;  %s2766_s2 = inlined_call_operand.vmem [shape: bf16[3,448,64], index: 2, kind: input, shape index: {}]   ;;  %s2767_s3 = inlined_call_operand.vmem [shape: f32[3,64,128], index: 3, kind: input, shape index: {}]   ;;  %s2768_s4 = inlined_call_operand.vmem [shape: f32[3,4,128], index: 4, kind: input, shape index: {}]   ;;  %s2769_s5 = inlined_call_operand.vmem [shape: f32[3,128,128], index: 5, kind: output, shape index: {}]  }
   0x1   :  { %s2436_s20 = smov 0  }
   0x2 LB: > { %s27_s21 = sadd.s32 1, %s2395_s19  ;;  %p1910_p0 = scmp.ge.s32.totalorder %s2399_s20, 1  ;;  %s2399_s20 = sphi %s2436_s20, %s15_s20   ;;  %s2395_s19 = sphi %s2434_s19, %s2771_s19   ;;  %s2391_s18 = sphi %s2432_s18, %s2770_s18  }
   0x3   : > { %p29_p1 = scmp.ge.s32.totalorder %s27_s21, 3  ;;  %p247_p2 = scmp.lt.s32.totalorder %s2399_s20, 4 }
   0x5   : > { %s2773_s21 = smov (%p29_p1, %s27_s21), 0  ;;  %p248_p3 = pnand %p1910_p0, %p247_p2 }
   0x6   : > { %p303_p4 = scmp.lt.s32.totalorder (!%p248_p3), %s2391_s18, 2  ;;  %v853_v0 = vlaneseq (!%p248_p3)  ;;  %v2401_v1 = vmov (!%p248_p3), 0.0   ;;  %vm426_vm0 = vcmask (!%p248_p3), 64512   ;;  %vm977_vm1 = vcmask (!%p248_p3), 523264  }
   0x7   : > { %251 = sbr.rel (%p248_p3) target bundleno = 1185 (0x4a1), region = 40  ;;  %539 = vmatprep.mubr.f32.mxu0 (!%p248_p3), %v2401_v1  ;;  %611 = vmatprep.mubr.f32.mxu1 (!%p248_p3), %v2401_v1 }
   0x8   : > { %v2454_v2 = vshrl.u32 (!%p248_p3), %v853_v0, 7 }
   0xa   : > { %v1222_v3 = vsub.s32 (!%p248_p3), 1, %v2454_v2  ;;  %v1395_v4 = vsub.s32 (!%p248_p3), 2, %v2454_v2  ;;  %v1560_v5 = vsub.s32 (!%p248_p3), 3, %v2454_v2 }
   0xe   : > { %s2775_s18 = smov (!%p303_p4, %s2391_s18), 2 }
   0xf   : > { %s2022_s22 = sshll.u32 %s2775_s18, 7  ;;  %s2322_s23 = smul.u32 24, %s2775_s18 }
  0x10   : > { %s2463_s26 = scalar_lea.vmem %s2764_s0, %s2022_s22  ;;  %s2323_s27 = smul.u32 224, %s2775_s18 }
  0x11   : > { %s316_s30 = scalar_lea.vmem %s2765_s1, %s2322_s23  ;;  %s1917_s6 = sshll.u32 %s2775_s18, 2  ;;  %v342_v8 = vld [vmem:[%s2463_s26] sm:$0xff]  ;;  %v343_v15 = vld [vmem:[%s2463_s26 + $0x8] sm:$0xff]  ;;  %v344_v18 = vld [vmem:[%s2463_s26 + $0x10] sm:$0xff] }
  0x12   : > { %s330_s9 = scalar_lea.vmem %s2768_s4, %s1917_s6  ;;  %v359_v6 = vld [vmem:[%s316_s30 + $0x8] sm:$0xff]  ;;  %v358_v7 = vld [vmem:[%s316_s30] sm:$0xff]  ;;  %v360_v14 = vld [vmem:[%s316_s30 + $0x10] sm:$0xff]  ;;  %s2494_s12 = scalar_lea.vmem %s2766_s2, %s2323_s27 }
  0x13   : > { %v2477_v9 = vld [vmem:[%s330_s9] sm:$0xf]  ;;  %475 = vmatprep.subr.mxu0 %v359_v6  ;;  %2320 = vmatprep.subr.mxu1 %v359_v6  ;;  %v2503_v16 = vld [vmem:[%s2463_s26 + $0x68] sm:$0xff]  ;;  %v2513_v19 = vld [vmem:[%s2463_s26 + $0x70] sm:$0xff]  ;;  %s2023_s13 = sshll.u32 %s2775_s18, 6  ;;  %s2721_s24 = scalar_lea.vmem %s2769_s5, %s2022_s22 }
  0x14   : > { %v2480_v10 = vld [vmem:[%s2463_s26 + $0x60] sm:$0xff]  ;;  %v2483_v11 = vrot.slane %v2477_v9, %v1222_v3  ;;  %v2486_v12 = vrot.slane %v2477_v9, %v1395_v4  ;;  %v2489_v13 = vrot.slane %v2477_v9, %v1560_v5  ;;  %476 = vmatpush1.msra.mxu0 %v358_v7  ;;  %2321 = vmatpush1.msra.mxu1 %v358_v7  ;;  %v345_v20 = vld [vmem:[%s2463_s26 + $0x18] sm:$0xff]  ;;  %v347_v25 = vld [vmem:[%s2463_s26 + $0x28] sm:$0xff]  ;;  %s2650_s16 = scalar_lea.vmem %s2767_s3, %s2023_s13 }
  0x15   : > { %1920 = vmatmul.mubr.msk.f32.vlgmr.msra.gmra.mrb[0].mxu0 %vm426_vm0, %v342_v8  ;;  %1932 = vmatmul.mubr.msk.f32.vlgmr.msra.gmra.mrb[0].mxu1 %vm426_vm0, %v2480_v10  ;;  %v2349_v17 = vld [vmem:[%s2494_s12 + $0x40] sm:$0xff]   ;;  %v2522_v21 = vld [vmem:[%s2463_s26 + $0x78] sm:$0xff]  ;;  %v2351_v26 = vld [vmem:[%s2494_s12 + $0x48] sm:$0xff]  }
  0x16   : > { %545 = vmatprep.mubr.f32.mxu0 %v2401_v1  ;;  %617 = vmatprep.mubr.f32.mxu1 %v2401_v1  ;;  %v346_v22 = vld [vmem:[%s2463_s26 + $0x20] sm:$0xff]  ;;  %v2352_v27 = vld [vmem:[%s2494_s12 + $0x8] sm:$0xff]   ;;  %v2353_v28 = vld [vmem:[%s2494_s12 + $0x50] sm:$0xff]  }
  0x17   : > { %2166 = vmatprep.subr.mxu1 %v360_v14  ;;  %v2359_v23 = vld [vmem:[%s2494_s12 + $0x80] sm:$0xff]   ;;  %v348_v29 = vld [vmem:[%s2463_s26 + $0x30] sm:$0xff]  ;;  %v2355_v31 = vld [vmem:[%s2494_s12 + $0x58] sm:$0xff]  }
  0x18   : > { %2167 = vmatpush3.msra.mxu1 %v360_v14  ;;  %v2350_v24 = vld [vmem:[%s2494_s12] sm:$0xff]   ;;  %2192 = vmatprep.subr.bf16.mxu0 %v2359_v23  ;;  %v2354_v30 = vld [vmem:[%s2494_s12 + $0x10] sm:$0xff]   ;;  %v349_v32 = vld [vmem:[%s2463_s26 + $0x38] sm:$0xff] }
  0x19   : > { %1921 = vmatmul.mubr.msk.f32.gmra.mrb[2].mxu0 %vm426_vm0, %v343_v15  ;;  %1933 = vmatmul.mubr.msk.f32.gmra.mrb[2].mxu1 %vm426_vm0, %v2503_v16  ;;  %v2356_v33 = vld [vmem:[%s2494_s12 + $0x18] sm:$0xff]   ;;  %v2357_v34 = vld [vmem:[%s2494_s12 + $0x60] sm:$0xff]   ;;  %v351_v36 = vld [vmem:[%s2463_s26 + $0x48] sm:$0xff] }
  0x1a   : > { %551 = vmatprep.mubr.f32.mxu0 %v2401_v1  ;;  %623 = vmatprep.mubr.f32.mxu1 %v2401_v1  ;;  %v350_v35 = vld [vmem:[%s2463_s26 + $0x40] sm:$0xff]  ;;  %v352_v38 = vld [vmem:[%s2463_s26 + $0x50] sm:$0xff]  ;;  %v2360_v39 = vld [vmem:[%s2494_s12 + $0x68] sm:$0xff]  }
  0x1b   : > { %2042 = vmatprep.subr.bf16.mxu1 %v2349_v17  ;;  %2193 = vmatpush3.bf16.msra.mxu0 %v2359_v23  ;;  %v2358_v37 = vld [vmem:[%s2494_s12 + $0x20] sm:$0xff]   ;;  %v353_v40 = vld [vmem:[%s2463_s26 + $0x58] sm:$0xff]  ;;  %v2361_v41 = vld [vmem:[%s2494_s12 + $0x28] sm:$0xff]  }
  0x1c   : > { %v2362_v42 = vld [vmem:[%s2494_s12 + $0x70] sm:$0xff]   ;;  %v2364_v44 = vld [vmem:[%s2494_s12 + $0x78] sm:$0xff]   ;;  %v2366_v46 = vld [vmem:[%s2494_s12 + $0x88] sm:$0xff]  }
  0x1d   : > { %1922 = vmatmul.mubr.msk.f32.gmra.mrb[4].mxu0 %vm426_vm0, %v344_v18  ;;  %1934 = vmatmul.mubr.msk.f32.gmra.mrb[4].mxu1 %vm426_vm0, %v2513_v19  ;;  %v2363_v43 = vld [vmem:[%s2494_s12 + $0x30] sm:$0xff]   ;;  %v2365_v45 = vld [vmem:[%s2494_s12 + $0x38] sm:$0xff]  }
  0x1e   : > { %557 = vmatprep.mubr.f32.mxu0 %v2401_v1  ;;  %629 = vmatprep.mubr.f32.mxu1 %v2401_v1  ;;  %v2367_v47 = vld [vmem:[%s2494_s12 + $0x90] sm:$0xff]   ;;  %v2368_v48 = vld [vmem:[%s2494_s12 + $0x98] sm:$0xff]  }
  0x1f   : > { %2194 = vmatprep.subr.bf16.mxu0 %v2366_v46 }
  0x20   : > { %2195 = vmatpush3.bf16.msra.mxu0 %v2366_v46 }
  0x21   : > { %1923 = vmatmul.mubr.msk.f32.gmra.mrb[6].mxu0 %vm426_vm0, %v345_v20  ;;  %1935 = vmatmul.mubr.msk.f32.gmra.mrb[6].mxu1 %vm426_vm0, %v2522_v21 }
  0x22   : > { %563 = vmatprep.mubr.f32.mxu0 %v2401_v1  ;;  %2168 = vmatprep.mubr.msk.f32.mxu1 %vm426_vm0, %v342_v8 }
  0x23   : > { %2196 = vmatprep.subr.bf16.mxu0 %v2367_v47 }
  0x24   : > { %2197 = vmatpush3.bf16.msra.mxu0 %v2367_v47 }
  0x25   : > { %1924 = vmatmul.mubr.msk.f32.gmra.mrb[8].mxu0 %vm426_vm0, %v346_v22  ;;  %2169 = vmatmul.mubr.msk.f32.vlgmr.msra.gmra.mrb[8].mxu1 %vm426_vm0, %v343_v15 }
  0x26   : > { %569 = vmatprep.mubr.f32.mxu0 %v2401_v1  ;;  %2171 = vmatprep.mubr.msk.f32.mxu1 %vm426_vm0, %v344_v18 }
  0x27   : > { %2043 = vmatpush3.bf16.msra.mxu1 %v2350_v24  ;;  %2198 = vmatprep.subr.bf16.mxu0 %v2368_v48 }
  0x28   : > { %2044 = vmatprep.subr.bf16.mxu1 %v2351_v26  ;;  %2199 = vmatpush3.bf16.msra.mxu0 %v2368_v48 }
  0x29   : > { %1925 = vmatmul.mubr.msk.f32.gmra.mrb[10].mxu0 %vm426_vm0, %v347_v25  ;;  %2172 = vmatmul.mubr.msk.f32.gmra.mrb[10].mxu1 %vm426_vm0, %v345_v20 }
  0x2a   : > { %575 = vmatprep.mubr.f32.mxu0 %v2401_v1  ;;  %2174 = vmatprep.mubr.msk.f32.mxu1 %vm426_vm0, %v346_v22 }
  0x2b   : > { %2045 = vmatpush3.bf16.msra.mxu1 %v2352_v27 }
  0x2c   : > { %2046 = vmatprep.subr.bf16.mxu1 %v2353_v28 }
  0x2d   : > { %1926 = vmatmul.mubr.msk.f32.gmra.mrb[12].mxu0 %vm426_vm0, %v348_v29  ;;  %2175 = vmatmul.mubr.msk.f32.gmra.mrb[12].mxu1 %vm426_vm0, %v347_v25 }
  0x2e   : > { %581 = vmatprep.mubr.f32.mxu0 %v2401_v1  ;;  %2177 = vmatprep.mubr.msk.f32.mxu1 %vm426_vm0, %v348_v29 }
  0x2f   : > { %2047 = vmatpush3.bf16.msra.mxu1 %v2354_v30 }
  0x30   : > { %2048 = vmatprep.subr.bf16.mxu1 %v2355_v31 }
  0x31   : > { %1927 = vmatmul.mubr.msk.f32.gmra.mrb[14].mxu0 %vm426_vm0, %v349_v32  ;;  %2178 = vmatmul.mubr.msk.f32.gmra.mrb[14].mxu1 %vm426_vm0, %v349_v32 }
  0x32   : > { %587 = vmatprep.mubr.f32.mxu0 %v2401_v1  ;;  %2180 = vmatprep.mubr.msk.f32.mxu1 %vm426_vm0, %v350_v35 }
  0x33   : > { %2049 = vmatpush3.bf16.msra.mxu1 %v2356_v33 }
  0x34   : > { %2050 = vmatprep.subr.bf16.mxu1 %v2357_v34 }
  0x35   : > { %1928 = vmatmul.mubr.msk.f32.gmra.mrb[16].mxu0 %vm426_vm0, %v350_v35  ;;  %2181 = vmatmul.mubr.msk.f32.gmra.mrb[16].mxu1 %vm426_vm0, %v351_v36 }
  0x36   : > { %593 = vmatprep.mubr.f32.mxu0 %v2401_v1  ;;  %2183 = vmatprep.mubr.msk.f32.mxu1 %vm426_vm0, %v352_v38 }
  0x37   : > { %2051 = vmatpush3.bf16.msra.mxu1 %v2358_v37 }
  0x38   : > { %2052 = vmatprep.subr.bf16.mxu1 %v2360_v39 }
  0x39   : > { %1929 = vmatmul.mubr.msk.f32.gmra.mrb[18].mxu0 %vm426_vm0, %v351_v36  ;;  %2184 = vmatmul.mubr.msk.f32.gmra.mrb[18].mxu1 %vm426_vm0, %v353_v40 }
  0x3a   : > { %599 = vmatprep.mubr.f32.mxu0 %v2401_v1  ;;  %2186 = vmatprep.mubr.msk.f32.mxu1 %vm426_vm0, %v2480_v10 }
  0x3b   : > { %2053 = vmatpush3.bf16.msra.mxu1 %v2361_v41 }
  0x3c   : > { %2054 = vmatprep.subr.bf16.mxu1 %v2362_v42 }
  0x3d   : > { %1930 = vmatmul.mubr.msk.f32.gmra.mrb[20].mxu0 %vm426_vm0, %v352_v38  ;;  %2187 = vmatmul.mubr.msk.f32.gmra.mrb[20].mxu1 %vm426_vm0, %v2503_v16 }
  0x3e   : > { %605 = vmatprep.mubr.f32.mxu0 %v2401_v1  ;;  %2189 = vmatprep.mubr.msk.f32.mxu1 %vm426_vm0, %v2513_v19 }
  0x3f   : > { %2055 = vmatpush3.bf16.msra.mxu1 %v2363_v43 }
  0x40   : > { %2056 = vmatprep.subr.bf16.mxu1 %v2364_v44 }
  0x41   : > { %1931 = vmatmul.mubr.msk.f32.gmra.mrb[22].mxu0 %vm426_vm0, %v353_v40  ;;  %2190 = vmatmul.mubr.msk.f32.gmra.mrb[22].mxu1 %vm426_vm0, %v2522_v21 }
  0x43   : > { %2057 = vmatpush3.bf16.msra.mxu1 %v2365_v45 }
  0xe8   : > { %v541_v49 = vpop.f32.mrb[0].mxu0  ;;  %v613_v51 = vpop.f32.mrb[0].mxu1 }
  0xe9   : > { %v543_v50 = vpop.f32.mrb[1].mxu0  ;;  %v615_v52 = vpop.f32.mrb[1].mxu1  ;;  %v817_v54 = vmax.f32 %v613_v51, 0.0  ;;  %v781_v55 = vmax.f32 %v541_v49, 0.0 }
  0xea   : > { %v818_v58 = vmax.f32 %v615_v52, 0.0  ;;  %v782_v60 = vmax.f32 %v543_v50, 0.0 }
  0xec   : > { %v547_v53 = vpop.f32.mrb[2].mxu0  ;;  %v619_v59 = vpop.f32.mrb[2].mxu1 }
  0xed   : > { %v784_v56 = vmax.f32 %v547_v53, 0.0  ;;  %v549_v57 = vpop.f32.mrb[3].mxu0  ;;  %v820_v62 = vmax.f32 %v619_v59, 0.0  ;;  %v621_v63 = vpop.f32.mrb[3].mxu1 }
  0xee   : > { %v785_v61 = vmax.f32 %v549_v57, 0.0  ;;  %v821_v1 = vmax.f32 %v621_v63, 0.0 }
  0xef   : > { %v829_v0 = vpack.c.bf16 %v784_v56, %v781_v55  ;;  %v2590_v5 = vpack.c.bf16 %v820_v62, %v817_v54 }
  0xf0   : > { %v830_v3 = vpack.c.bf16 %v785_v61, %v782_v60  ;;  %v553_v4 = vpop.f32.mrb[4].mxu0  ;;  %v2592_v7 = vpack.c.bf16 %v821_v1, %v818_v58  ;;  %v625_v8 = vpop.f32.mrb[4].mxu1 }
  0xf1   : > { %v555_v6 = vpop.f32.mrb[5].mxu0  ;;  %v627_v10 = vpop.f32.mrb[5].mxu1  ;;  %v823_v15 = vmax.f32 %v625_v8, 0.0  ;;  %v787_v16 = vmax.f32 %v553_v4, 0.0 }
  0xf2   : > { %1034 = vmatprep.mubr.bf16.mxu1 %v830_v3  ;;  %v824_v19 = vmax.f32 %v627_v10, 0.0  ;;  %v788_v21 = vmax.f32 %v555_v6, 0.0 }
  0xf3   : > { %1035 = vmatmul.mubr.bf16.vlgmr.msra.gmra.mrb[24].mxu1 %v829_v0 }
  0xf4   : > { %v559_v14 = vpop.f32.mrb[6].mxu0  ;;  %v631_v20 = vpop.f32.mrb[6].mxu1 }
  0xf5   : > { %v790_v17 = vmax.f32 %v559_v14, 0.0  ;;  %v561_v18 = vpop.f32.mrb[7].mxu0  ;;  %v826_v23 = vmax.f32 %v631_v20, 0.0  ;;  %v633_v24 = vpop.f32.mrb[7].mxu1 }
  0xf6   : > { %v791_v22 = vmax.f32 %v561_v18, 0.0  ;;  %v827_v26 = vmax.f32 %v633_v24, 0.0 }
  0xf7   : > { %v832_v25 = vpack.c.bf16 %v790_v17, %v787_v16  ;;  %v2594_v29 = vpack.c.bf16 %v826_v23, %v823_v15 }
  0xf8   : > { %v833_v27 = vpack.c.bf16 %v791_v22, %v788_v21  ;;  %v565_v28 = vpop.f32.mrb[8].mxu0  ;;  %v2596_v31 = vpack.c.bf16 %v827_v26, %v824_v19  ;;  %v2170_v32 = vpop.f32.mrb[8].mxu1 }
  0xf9   : > { %v567_v30 = vpop.f32.mrb[9].mxu0  ;;  %v786_v33 = vmax.f32 %v2170_v32, 0.0  ;;  %v702_v34 = vpop.f32.mrb[9].mxu1  ;;  %v793_v37 = vmax.f32 %v565_v28, 0.0 }
  0xfa   : > { %1042 = vmatprep.mubr.bf16.mxu1 %v833_v27  ;;  %v783_v35 = vmax.f32 %v702_v34, 0.0  ;;  %v794_v42 = vmax.f32 %v567_v30, 0.0 }
  0xfb   : > { %1043 = vmatmul.mubr.bf16.gmra.mrb[28].mxu1 %v832_v25 }
  0xfc   : > { %v571_v36 = vpop.f32.mrb[10].mxu0  ;;  %v831_v38 = vpack.c.bf16 %v786_v33, %v783_v35  ;;  %v2173_v40 = vpop.f32.mrb[10].mxu1 }
  0xfd   : > { %v796_v39 = vmax.f32 %v571_v36, 0.0  ;;  %v573_v41 = vpop.f32.mrb[11].mxu0  ;;  %v792_v43 = vmax.f32 %v2173_v40, 0.0  ;;  %v712_v45 = vpop.f32.mrb[11].mxu1 }
  0xfe   : > { %v797_v44 = vmax.f32 %v573_v41, 0.0  ;;  %v789_v47 = vmax.f32 %v712_v45, 0.0  ;;  %2200 = vmatprep.mubr.msk.bf16.mxu0 %vm977_vm1, %v831_v38 }
  0xff   : > { %v835_v46 = vpack.c.bf16 %v796_v39, %v793_v37 }
 0x100   : > { %v836_v48 = vpack.c.bf16 %v797_v44, %v794_v42  ;;  %v577_v49 = vpop.f32.mrb[12].mxu0  ;;  %v834_v50 = vpack.c.bf16 %v792_v43, %v789_v47  ;;  %v2176_v52 = vpop.f32.mrb[12].mxu1 }
 0x101   : > { %v579_v51 = vpop.f32.mrb[13].mxu0  ;;  %v798_v53 = vmax.f32 %v2176_v52, 0.0  ;;  %v722_v54 = vpop.f32.mrb[13].mxu1  ;;  %v799_v57 = vmax.f32 %v577_v49, 0.0 }
 0x102   : > { %1050 = vmatprep.mubr.bf16.mxu1 %v836_v48  ;;  %2201 = vmatmul.mubr.msk.bf16.vlgmr.msra.gmra.mrb[24].mxu0 %vm977_vm1, %v834_v50  ;;  %v795_v55 = vmax.f32 %v722_v54, 0.0  ;;  %v800_v62 = vmax.f32 %v579_v51, 0.0 }
 0x103   : > { %1051 = vmatmul.mubr.bf16.gmra.mrb[32].mxu1 %v835_v46 }
 0x104   : > { %v583_v56 = vpop.f32.mrb[14].mxu0  ;;  %v837_v58 = vpack.c.bf16 %v798_v53, %v795_v55  ;;  %v2179_v60 = vpop.f32.mrb[14].mxu1  ;;  %v2369_v55 = vld [vmem:[%s2494_s12 + $0xa0] sm:$0xff]  }
 0x105   : > { %v802_v59 = vmax.f32 %v583_v56, 0.0  ;;  %v585_v61 = vpop.f32.mrb[15].mxu0  ;;  %v804_v63 = vmax.f32 %v2179_v60, 0.0  ;;  %v732_v1 = vpop.f32.mrb[15].mxu1  ;;  %2216 = vmatprep.subr.bf16.mxu0 %v2369_v55  ;;  %v2370_v56 = vld [vmem:[%s2494_s12 + $0xa8] sm:$0xff]  }
 0x106   : > { %v803_v0 = vmax.f32 %v585_v61, 0.0  ;;  %v801_v4 = vmax.f32 %v732_v1, 0.0  ;;  %2204 = vmatprep.mubr.msk.bf16.mxu0 %vm977_vm1, %v837_v58  ;;  %2217 = vmatpush3.bf16.msra.mxu0 %v2369_v55  ;;  %v2372_v58 = vld [vmem:[%s2494_s12 + $0xb8] sm:$0xff]  }
 0x107   : > { %v838_v3 = vpack.c.bf16 %v802_v59, %v799_v57  ;;  %2218 = vmatprep.subr.bf16.mxu0 %v2370_v56  ;;  %v2371_v57 = vld [vmem:[%s2494_s12 + $0xb0] sm:$0xff]  }
 0x108   : > { %v839_v6 = vpack.c.bf16 %v803_v0, %v800_v62  ;;  %v589_v8 = vpop.f32.mrb[16].mxu0  ;;  %v840_v10 = vpack.c.bf16 %v804_v63, %v801_v4  ;;  %v2182_v15 = vpop.f32.mrb[16].mxu1  ;;  %v855_v0 = vsub.s32 0, %v2454_v2 }
 0x109   : > { %v591_v14 = vpop.f32.mrb[17].mxu0  ;;  %v810_v16 = vmax.f32 %v2182_v15, 0.0  ;;  %v742_v17 = vpop.f32.mrb[17].mxu1  ;;  %v805_v20 = vmax.f32 %v589_v8, 0.0 }
 0x10a   : > { %1058 = vmatprep.mubr.bf16.mxu1 %v839_v6  ;;  %2205 = vmatmul.mubr.msk.bf16.gmra.mrb[28].mxu0 %vm977_vm1, %v840_v10  ;;  %v807_v18 = vmax.f32 %v742_v17, 0.0  ;;  %v806_v25 = vmax.f32 %v591_v14, 0.0  ;;  %v2619_v10 = vrot.slane %v2477_v9, %v855_v0 }
 0x10b   : > { %1059 = vmatmul.mubr.bf16.gmra.mrb[36].mxu1 %v838_v3  ;;  %2219 = vmatpush3.bf16.msra.mxu0 %v2370_v56 }
 0x10c   : > { %v595_v19 = vpop.f32.mrb[18].mxu0  ;;  %v843_v23 = vpack.c.bf16 %v810_v16, %v807_v18  ;;  %v2185_v24 = vpop.f32.mrb[18].mxu1  ;;  %2220 = vmatprep.subr.bf16.mxu0 %v2371_v57 }
 0x10d   : > { %v808_v21 = vmax.f32 %v595_v19, 0.0  ;;  %v597_v22 = vpop.f32.mrb[19].mxu0  ;;  %v816_v27 = vmax.f32 %v2185_v24, 0.0  ;;  %v752_v28 = vpop.f32.mrb[19].mxu1 }
 0x10e   : > { %v809_v26 = vmax.f32 %v597_v22, 0.0  ;;  %v813_v32 = vmax.f32 %v752_v28, 0.0  ;;  %2208 = vmatprep.mubr.msk.bf16.mxu0 %vm977_vm1, %v843_v23 }
 0x10f   : > { %v841_v30 = vpack.c.bf16 %v808_v21, %v805_v20  ;;  %2221 = vmatpush3.bf16.msra.mxu0 %v2371_v57 }
 0x110   : > { %v842_v33 = vpack.c.bf16 %v809_v26, %v806_v25  ;;  %v601_v34 = vpop.f32.mrb[20].mxu0  ;;  %v846_v36 = vpack.c.bf16 %v816_v27, %v813_v32  ;;  %v2188_v37 = vpop.f32.mrb[20].mxu1  ;;  %2222 = vmatprep.subr.bf16.mxu0 %v2372_v58 }
 0x111   : > { %v603_v35 = vpop.f32.mrb[21].mxu0  ;;  %v822_v38 = vmax.f32 %v2188_v37, 0.0  ;;  %v762_v39 = vpop.f32.mrb[21].mxu1  ;;  %v811_v42 = vmax.f32 %v601_v34, 0.0 }
 0x112   : > { %1066 = vmatprep.mubr.bf16.mxu1 %v842_v33  ;;  %2209 = vmatmul.mubr.msk.bf16.gmra.mrb[32].mxu0 %vm977_vm1, %v846_v36  ;;  %v819_v40 = vmax.f32 %v762_v39, 0.0  ;;  %v812_v47 = vmax.f32 %v603_v35, 0.0 }
 0x113   : > { %1067 = vmatmul.mubr.bf16.gmra.mrb[40].mxu1 %v841_v30  ;;  %2223 = vmatpush3.bf16.msra.mxu0 %v2372_v58 }
 0x114   : > { %v607_v41 = vpop.f32.mrb[22].mxu0  ;;  %v849_v45 = vpack.c.bf16 %v822_v38, %v819_v40  ;;  %v2191_v46 = vpop.f32.mrb[22].mxu1 }
 0x115   : > { %v814_v43 = vmax.f32 %v607_v41, 0.0  ;;  %v609_v44 = vpop.f32.mrb[23].mxu0  ;;  %v828_v49 = vmax.f32 %v2191_v46, 0.0  ;;  %v772_v50 = vpop.f32.mrb[23].mxu1 }
 0x116   : > { %v815_v48 = vmax.f32 %v609_v44, 0.0  ;;  %v825_v52 = vmax.f32 %v772_v50, 0.0  ;;  %2212 = vmatprep.mubr.msk.bf16.mxu0 %vm977_vm1, %v849_v45 }
 0x117   : > { %v844_v51 = vpack.c.bf16 %v814_v43, %v811_v42 }
 0x118   : > { %v845_v53 = vpack.c.bf16 %v815_v48, %v812_v47  ;;  %v852_v54 = vpack.c.bf16 %v828_v49, %v825_v52 }
 0x11a   : > { %1074 = vmatprep.mubr.bf16.mxu1 %v845_v53  ;;  %2213 = vmatmul.mubr.msk.bf16.gmra.mrb[36].mxu0 %vm977_vm1, %v852_v54 }
 0x11b   : > { %1075 = vmatmul.mubr.bf16.gmra.mrb[44].mxu1 %v844_v51 }
 0x11c   : > { %1082 = vmatprep.mubr.bf16.mxu1 %v2592_v7  ;;  %v2373_v7 = vld [vmem:[%s2494_s12 + $0xc0] sm:$0xff]  }
 0x11d   : > { %2240 = vmatprep.subr.bf16.mxu1 %v2373_v7 }
 0x11e   : > { %2241 = vmatpush3.bf16.msra.mxu1 %v2373_v7 }
 0x123   : > { %1083 = vmatmul.mubr.bf16.gmra.mrb[48].mxu1 %v2590_v5  ;;  %v2374_v5 = vld [vmem:[%s2494_s12 + $0xc8] sm:$0xff]  }
 0x124   : > { %1090 = vmatprep.mubr.bf16.mxu1 %v2596_v31  ;;  %2242 = vmatprep.subr.bf16.mxu1 %v2374_v5  ;;  %v2375_v31 = vld [vmem:[%s2494_s12 + $0xd0] sm:$0xff]  }
 0x125   : > { %2243 = vmatpush3.bf16.msra.mxu1 %v2374_v5 }
 0x126   : > { %2244 = vmatprep.subr.bf16.mxu1 %v2375_v31 }
 0x129   : > { %2245 = vmatpush3.bf16.msra.mxu1 %v2375_v31 }
 0x12b   : > { %1091 = vmatmul.mubr.bf16.gmra.mrb[52].mxu1 %v2594_v29 }
 0x1c6   : > { %v2058_v29 = vpop.f32.mrb[24].mxu1 }
 0x1c7   : > { %v2059_v59 = vpop.f32.mrb[25].mxu1 }
 0x1c8   : > { %v2060_v60 = vadd.f32 %v2059_v59, %v2058_v29  ;;  %v2061_v61 = vpop.f32.mrb[26].mxu1 }
 0x1c9   : > { %v2062_v62 = vpop.f32.mrb[27].mxu1 }
 0x1ca   : > { %v2063_v63 = vadd.f32 %v2062_v62, %v2061_v61  ;;  %v1037_v18 = vadd.f32 %v2060_v60, %v2619_v10 }
 0x1cc   : > { %v1040_v26 = vadd.f32 %v2063_v63, %v2619_v10 }
 0x1ce   : > { %v2064_v1 = vpop.f32.mrb[28].mxu1 }
 0x1cf   : > { %v2065_v3 = vpop.f32.mrb[29].mxu1 }
 0x1d0   : > { %v2066_v4 = vadd.f32 %v2065_v3, %v2064_v1  ;;  %v2067_v6 = vpop.f32.mrb[30].mxu1 }
 0x1d1   : > { %v2068_v8 = vpop.f32.mrb[31].mxu1 }
 0x1d2   : > { %v2069_v14 = vadd.f32 %v2068_v8, %v2067_v6  ;;  %v1045_v15 = vadd.f32 %v2066_v4, %v2619_v10 }
 0x1d4   : > { %v1048_v2 = vadd.f32 %v2069_v14, %v2619_v10 }
 0x1d5   : > { %v2202_v16 = vpop.f32.mrb[24].mxu0 }
 0x1d6   : > { %v2070_v17 = vpop.f32.mrb[32].mxu1  ;;  %v1142_v19 = vadd.f32 %v2202_v16, %v1045_v15  ;;  %v1133_v20 = vpop.f32.mrb[25].mxu0 }
 0x1d7   : > { %v2071_v21 = vpop.f32.mrb[33].mxu1  ;;  %v1134_v22 = vadd.f32 %v1133_v20, %v1037_v18  ;;  %v2203_v24 = vpop.f32.mrb[26].mxu0 }
 0x1d8   : > { %v2072_v23 = vadd.f32 %v2071_v21, %v2070_v17  ;;  %v2073_v25 = vpop.f32.mrb[34].mxu1  ;;  %v1145_v9 = vadd.f32 %v2203_v24, %v1048_v2  ;;  %v1136_v27 = vpop.f32.mrb[27].mxu0  ;;  %v1198_v33 = vmax.f32 %v1142_v19, 0.0 }
 0x1d9   : > { %v2074_v28 = vpop.f32.mrb[35].mxu1  ;;  %v1137_v30 = vadd.f32 %v1136_v27, %v1040_v26  ;;  %v1196_v35 = vmax.f32 %v1134_v22, 0.0 }
 0x1da   : > { %v2075_v32 = vadd.f32 %v2074_v28, %v2073_v25  ;;  %v1199_v34 = vmax.f32 %v1145_v9, 0.0  ;;  %v1053_v41 = vadd.f32 %v2072_v23, %v2619_v10 }
 0x1db   : > { %v1197_v36 = vmax.f32 %v1137_v30, 0.0 }
 0x1dc   : > { %v1213_v37 = vpack.c.bf16 %v1199_v34, %v1198_v33  ;;  %v1056_v48 = vadd.f32 %v2075_v32, %v2619_v10 }
 0x1dd   : > { %v1212_v38 = vpack.c.bf16 %v1197_v36, %v1196_v35  ;;  %v2206_v39 = vpop.f32.mrb[28].mxu0 }
 0x1de   : > { %v2076_v40 = vpop.f32.mrb[36].mxu1  ;;  %v1149_v42 = vpop.f32.mrb[29].mxu0 }
 0x1df   : > { %v2077_v43 = vpop.f32.mrb[37].mxu1  ;;  %v1150_v44 = vadd.f32 %v1149_v42, %v1053_v41  ;;  %v2207_v46 = vpop.f32.mrb[30].mxu0  ;;  %2224 = vmatprep.mubr.msk.bf16.mxu0 %vm977_vm1, %v1212_v38 }
 0x1e0   : > { %v2078_v45 = vadd.f32 %v2077_v43, %v2076_v40  ;;  %v2079_v47 = vpop.f32.mrb[38].mxu1  ;;  %v1152_v49 = vpop.f32.mrb[31].mxu0  ;;  %2225 = vmatmul.mubr.msk.bf16.vlgmr.msra.gmra.mrb[40].mxu0 %vm977_vm1, %v1213_v37 }
 0x1e1   : > { %v2080_v50 = vpop.f32.mrb[39].mxu1  ;;  %v1153_v52 = vadd.f32 %v1152_v49, %v1056_v48  ;;  %v1200_v54 = vmax.f32 %v1150_v44, 0.0 }
 0x1e2   : > { %v1061_v51 = vadd.f32 %v2078_v45, %v2619_v10  ;;  %v2081_v53 = vadd.f32 %v2080_v50, %v2079_v47 }
 0x1e3   : > { %v1201_v56 = vmax.f32 %v1153_v52, 0.0 }
 0x1e4   : > { %v1158_v55 = vadd.f32 %v2206_v39, %v1061_v51  ;;  %v1064_v57 = vadd.f32 %v2081_v53, %v2619_v10 }
 0x1e5   : > { %v1214_v58 = vpack.c.bf16 %v1201_v56, %v1200_v54  ;;  %v2210_v31 = vpop.f32.mrb[32].mxu0 }
 0x1e6   : > { %v1161_v7 = vadd.f32 %v2207_v46, %v1064_v57  ;;  %v2082_v5 = vpop.f32.mrb[40].mxu1  ;;  %v1165_v59 = vpop.f32.mrb[33].mxu0  ;;  %v1202_v60 = vmax.f32 %v1158_v55, 0.0 }
 0x1e7   : > { %v2083_v29 = vpop.f32.mrb[41].mxu1  ;;  %2228 = vmatprep.mubr.msk.bf16.mxu0 %vm977_vm1, %v1214_v58  ;;  %v2211_v0 = vpop.f32.mrb[34].mxu0 }
 0x1e8   : > { %v1203_v61 = vmax.f32 %v1161_v7, 0.0  ;;  %v2084_v62 = vadd.f32 %v2083_v29, %v2082_v5  ;;  %v2085_v63 = vpop.f32.mrb[42].mxu1  ;;  %v1168_v3 = vpop.f32.mrb[35].mxu0 }
 0x1e9   : > { %v2086_v1 = vpop.f32.mrb[43].mxu1 }
 0x1ea   : > { %v1215_v4 = vpack.c.bf16 %v1203_v61, %v1202_v60  ;;  %v2087_v6 = vadd.f32 %v2086_v1, %v2085_v63  ;;  %v1069_v8 = vadd.f32 %v2084_v62, %v2619_v10  ;;  %v418_v60 = vld [vmem:[%s2650_s16 + $0x8] sm:$0xff]  ;;  %v419_v61 = vld [vmem:[%s2650_s16 + $0x10] sm:$0xff]  ;;  %v420_v63 = vld [vmem:[%s2650_s16 + $0x18] sm:$0xff] }
 0x1ec   : > { %v1166_v14 = vadd.f32 %v1165_v59, %v1069_v8  ;;  %2229 = vmatmul.mubr.msk.bf16.gmra.mrb[44].mxu0 %vm977_vm1, %v1215_v4  ;;  %v1072_v15 = vadd.f32 %v2087_v6, %v2619_v10  ;;  %v2376_v59 = vld [vmem:[%s2494_s12 + $0xd8] sm:$0xff]  }
 0x1ed   : > { %v2214_v18 = vpop.f32.mrb[36].mxu0  ;;  %2246 = vmatprep.subr.bf16.mxu1 %v2376_v59 }
 0x1ee   : > { %v1169_v16 = vadd.f32 %v1168_v3, %v1072_v15  ;;  %v2088_v17 = vpop.f32.mrb[44].mxu1  ;;  %v1181_v20 = vpop.f32.mrb[37].mxu0  ;;  %v1204_v21 = vmax.f32 %v1166_v14, 0.0  ;;  %2247 = vmatpush3.bf16.msra.mxu1 %v2376_v59 }
 0x1ef   : > { %v2089_v19 = vpop.f32.mrb[45].mxu1  ;;  %v2215_v24 = vpop.f32.mrb[38].mxu0 }
 0x1f0   : > { %v1205_v2 = vmax.f32 %v1169_v16, 0.0  ;;  %v2090_v22 = vadd.f32 %v2089_v19, %v2088_v17  ;;  %v2091_v23 = vpop.f32.mrb[46].mxu1  ;;  %v1184_v26 = vpop.f32.mrb[39].mxu0 }
 0x1f1   : > { %v2092_v25 = vpop.f32.mrb[47].mxu1 }
 0x1f2   : > { %v1216_v9 = vpack.c.bf16 %v1205_v2, %v1204_v21  ;;  %v1077_v27 = vadd.f32 %v2090_v22, %v2619_v10  ;;  %v2093_v28 = vadd.f32 %v2092_v25, %v2091_v23 }
 0x1f4   : > { %v1174_v30 = vadd.f32 %v2210_v31, %v1077_v27  ;;  %v1080_v32 = vadd.f32 %v2093_v28, %v2619_v10  ;;  %2232 = vmatprep.mubr.msk.bf16.mxu0 %vm977_vm1, %v1216_v9 }
 0x1f6   : > { %v1177_v33 = vadd.f32 %v2211_v0, %v1080_v32  ;;  %v2094_v34 = vpop.f32.mrb[48].mxu1  ;;  %v1206_v36 = vmax.f32 %v1174_v30, 0.0  ;;  %v2308_v0 = vpack.c.bf16 %v420_v63, %v419_v61  ;;  %v422_v61 = vld [vmem:[%s2650_s16 + $0x28] sm:$0xff]  ;;  %v423_v63 = vld [vmem:[%s2650_s16 + $0x30] sm:$0xff] }
 0x1f7   : > { %v2095_v35 = vpop.f32.mrb[49].mxu1 }
 0x1f8   : > { %v1207_v37 = vmax.f32 %v1177_v33, 0.0  ;;  %v2096_v38 = vadd.f32 %v2095_v35, %v2094_v34  ;;  %v2097_v39 = vpop.f32.mrb[50].mxu1 }
 0x1f9   : > { %v2098_v40 = vpop.f32.mrb[51].mxu1 }
 0x1fa   : > { %v1217_v41 = vpack.c.bf16 %v1207_v37, %v1206_v36  ;;  %v2099_v42 = vadd.f32 %v2098_v40, %v2097_v39  ;;  %v1085_v43 = vadd.f32 %v2096_v38, %v2619_v10 }
 0x1fc   : > { %v1182_v44 = vadd.f32 %v1181_v20, %v1085_v43  ;;  %2233 = vmatmul.mubr.msk.bf16.gmra.mrb[48].mxu0 %vm977_vm1, %v1217_v41  ;;  %v1088_v45 = vadd.f32 %v2099_v42, %v2619_v10 }
 0x1fe   : > { %v1185_v46 = vadd.f32 %v1184_v26, %v1088_v45  ;;  %v2100_v47 = vpop.f32.mrb[52].mxu1  ;;  %v1208_v49 = vmax.f32 %v1182_v44, 0.0 }
 0x1ff   : > { %v2101_v48 = vpop.f32.mrb[53].mxu1 }
 0x200   : > { %v1209_v50 = vmax.f32 %v1185_v46, 0.0  ;;  %v2102_v51 = vadd.f32 %v2101_v48, %v2100_v47  ;;  %v2103_v52 = vpop.f32.mrb[54].mxu1 }
 0x201   : > { %v2104_v53 = vpop.f32.mrb[55].mxu1 }
 0x202   : > { %v1218_v54 = vpack.c.bf16 %v1209_v50, %v1208_v49  ;;  %v1093_v55 = vadd.f32 %v2102_v51, %v2619_v10  ;;  %v2105_v56 = vadd.f32 %v2104_v53, %v2103_v52 }
 0x204   : > { %v1190_v57 = vadd.f32 %v2214_v18, %v1093_v55  ;;  %v1096_v58 = vadd.f32 %v2105_v56, %v2619_v10  ;;  %2236 = vmatprep.mubr.msk.bf16.mxu0 %vm977_vm1, %v1218_v54  ;;  %v417_v10 = vld [vmem:[%s2650_s16] sm:$0xff] }
 0x205   : > { %v2304_v62 = vpack.c.bf16 %v418_v60, %v417_v10  ;;  %v421_v60 = vld [vmem:[%s2650_s16 + $0x20] sm:$0xff] }
 0x206   : > { %v1193_v7 = vadd.f32 %v2215_v24, %v1096_v58  ;;  %v1210_v5 = vmax.f32 %v1190_v57, 0.0 }
 0x207   : > { %2305 = vmatprep.subr.bf16.mxu0 %v2304_v62 }
 0x208   : > { %v1211_v31 = vmax.f32 %v1193_v7, 0.0  ;;  %2307 = vmatpush3.bf16.msra.mxu0 %v2304_v62  ;;  %v2312_v62 = vpack.c.bf16 %v422_v61, %v421_v60 }
 0x209   : > { %2309 = vmatprep.subr.bf16.mxu0 %v2308_v0 }
 0x20a   : > { %v1219_v29 = vpack.c.bf16 %v1211_v31, %v1210_v5 }
 0x20c   : > { %2237 = vmatmul.mubr.msk.bf16.gmra.mrb[52].mxu0 %vm977_vm1, %v1219_v29 }
 0x20d   : > { %2311 = vmatpush3.bf16.msra.mxu0 %v2308_v0  ;;  %v424_v0 = vld [vmem:[%s2650_s16 + $0x38] sm:$0xff] }
 0x20e   : > { %2313 = vmatprep.subr.bf16.mxu0 %v2312_v62 }
 0x211   : > { %2315 = vmatpush3.bf16.msra.mxu0 %v2312_v62 }
 0x2b3   : > { %v2226_v1 = vpop.f32.mrb[40].mxu0 }
 0x2b4   : > { %v1315_v3 = vadd.f32 %v2226_v1, %v2483_v11  ;;  %v1306_v4 = vpop.f32.mrb[41].mxu0  ;;  %v2316_v1 = vpack.c.bf16 %v424_v0, %v423_v63 }
 0x2b5   : > { %v1307_v6 = vadd.f32 %v1306_v4, %v2483_v11  ;;  %v2227_v8 = vpop.f32.mrb[42].mxu0 }
 0x2b6   : > { %v1318_v14 = vadd.f32 %v2227_v8, %v2483_v11  ;;  %v1309_v15 = vpop.f32.mrb[43].mxu0  ;;  %v1371_v17 = vmax.f32 %v1315_v3, 0.0  ;;  %2317 = vmatprep.subr.bf16.mxu0 %v2316_v1 }
 0x2b7   : > { %v1310_v16 = vadd.f32 %v1309_v15, %v2483_v11  ;;  %v1369_v19 = vmax.f32 %v1307_v6, 0.0  ;;  %2319 = vmatpush3.bf16.msra.mxu0 %v2316_v1 }
 0x2b8   : > { %v1372_v18 = vmax.f32 %v1318_v14, 0.0 }
 0x2b9   : > { %v1370_v20 = vmax.f32 %v1310_v16, 0.0 }
 0x2ba   : > { %v1386_v21 = vpack.c.bf16 %v1372_v18, %v1371_v17 }
 0x2bb   : > { %v1385_v2 = vpack.c.bf16 %v1370_v20, %v1369_v19 }
 0x2bd   : > { %2248 = vmatprep.mubr.msk.bf16.mxu1 %vm977_vm1, %v1385_v2 }
 0x2be   : > { %2249 = vmatmul.mubr.msk.bf16.vlgmr.msra.gmra.mrb[56].mxu1 %vm977_vm1, %v1386_v21 }
 0x2bf   : > { %v2230_v22 = vpop.f32.mrb[44].mxu0 }
 0x2c0   : > { %v1331_v23 = vadd.f32 %v2230_v22, %v2483_v11  ;;  %v1322_v24 = vpop.f32.mrb[45].mxu0 }
 0x2c1   : > { %v1323_v25 = vadd.f32 %v1322_v24, %v2483_v11  ;;  %v2231_v26 = vpop.f32.mrb[46].mxu0 }
 0x2c2   : > { %v1334_v9 = vadd.f32 %v2231_v26, %v2483_v11  ;;  %v1325_v27 = vpop.f32.mrb[47].mxu0  ;;  %v1375_v30 = vmax.f32 %v1331_v23, 0.0 }
 0x2c3   : > { %v1326_v28 = vadd.f32 %v1325_v27, %v2483_v11  ;;  %v1373_v33 = vmax.f32 %v1323_v25, 0.0 }
 0x2c4   : > { %v1376_v32 = vmax.f32 %v1334_v9, 0.0 }
 0x2c5   : > { %v1374_v34 = vmax.f32 %v1326_v28, 0.0 }
 0x2c6   : > { %v1388_v35 = vpack.c.bf16 %v1376_v32, %v1375_v30 }
 0x2c7   : > { %v1387_v36 = vpack.c.bf16 %v1374_v34, %v1373_v33 }
 0x2c9   : > { %2252 = vmatprep.mubr.msk.bf16.mxu1 %vm977_vm1, %v1387_v36 }
 0x2ca   : > { %2253 = vmatmul.mubr.msk.bf16.gmra.mrb[60].mxu1 %vm977_vm1, %v1388_v35 }
 0x2cf   : > { %v2234_v37 = vpop.f32.mrb[48].mxu0 }
 0x2d0   : > { %v1347_v38 = vadd.f32 %v2234_v37, %v2483_v11  ;;  %v1338_v39 = vpop.f32.mrb[49].mxu0 }
 0x2d1   : > { %v1339_v40 = vadd.f32 %v1338_v39, %v2483_v11  ;;  %v2235_v41 = vpop.f32.mrb[50].mxu0 }
 0x2d2   : > { %v1350_v42 = vadd.f32 %v2235_v41, %v2483_v11  ;;  %v1341_v43 = vpop.f32.mrb[51].mxu0  ;;  %v1379_v45 = vmax.f32 %v1347_v38, 0.0 }
 0x2d3   : > { %v1342_v44 = vadd.f32 %v1341_v43, %v2483_v11  ;;  %v1377_v47 = vmax.f32 %v1339_v40, 0.0 }
 0x2d4   : > { %v1380_v46 = vmax.f32 %v1350_v42, 0.0 }
 0x2d5   : > { %v1378_v48 = vmax.f32 %v1342_v44, 0.0 }
 0x2d6   : > { %v1390_v49 = vpack.c.bf16 %v1380_v46, %v1379_v45 }
 0x2d7   : > { %v1389_v50 = vpack.c.bf16 %v1378_v48, %v1377_v47 }
 0x2d9   : > { %2256 = vmatprep.mubr.msk.bf16.mxu1 %vm977_vm1, %v1389_v50 }
 0x2da   : > { %2257 = vmatmul.mubr.msk.bf16.gmra.mrb[64].mxu1 %vm977_vm1, %v1390_v49 }
 0x2df   : > { %v2238_v51 = vpop.f32.mrb[52].mxu0 }
 0x2e0   : > { %v1363_v52 = vadd.f32 %v2238_v51, %v2483_v11  ;;  %v1354_v53 = vpop.f32.mrb[53].mxu0 }
 0x2e1   : > { %v1355_v54 = vadd.f32 %v1354_v53, %v2483_v11  ;;  %v2239_v55 = vpop.f32.mrb[54].mxu0 }
 0x2e2   : > { %v1366_v56 = vadd.f32 %v2239_v55, %v2483_v11  ;;  %v1357_v57 = vpop.f32.mrb[55].mxu0  ;;  %v1383_v7 = vmax.f32 %v1363_v52, 0.0 }
 0x2e3   : > { %v1358_v58 = vadd.f32 %v1357_v57, %v2483_v11  ;;  %v1381_v31 = vmax.f32 %v1355_v54, 0.0 }
 0x2e4   : > { %v1384_v5 = vmax.f32 %v1366_v56, 0.0 }
 0x2e5   : > { %v1382_v29 = vmax.f32 %v1358_v58, 0.0 }
 0x2e6   : > { %v1392_v59 = vpack.c.bf16 %v1384_v5, %v1383_v7 }
 0x2e7   : > { %v1391_v10 = vpack.c.bf16 %v1382_v29, %v1381_v31 }
 0x2e9   : > { %2260 = vmatprep.mubr.msk.bf16.mxu1 %vm977_vm1, %v1391_v10 }
 0x2ea   : > { %2261 = vmatmul.mubr.msk.bf16.gmra.mrb[68].mxu1 %vm977_vm1, %v1392_v59 }
 0x391   : > { %v2250_v11 = vpop.f32.mrb[56].mxu1 }
 0x392   : > { %v1488_v3 = vadd.f32 %v2250_v11, %v2486_v12  ;;  %v1479_v4 = vpop.f32.mrb[57].mxu1 }
 0x393   : > { %v1480_v6 = vadd.f32 %v1479_v4, %v2486_v12  ;;  %v2251_v8 = vpop.f32.mrb[58].mxu1 }
 0x394   : > { %v1491_v14 = vadd.f32 %v2251_v8, %v2486_v12  ;;  %v1482_v15 = vpop.f32.mrb[59].mxu1  ;;  %v1544_v19 = vmax.f32 %v1488_v3, 0.0 }
 0x395   : > { %v1542_v16 = vmax.f32 %v1480_v6, 0.0  ;;  %v1483_v17 = vadd.f32 %v1482_v15, %v2486_v12 }
 0x396   : > { %v1545_v20 = vmax.f32 %v1491_v14, 0.0 }
 0x397   : > { %v1543_v18 = vmax.f32 %v1483_v17, 0.0  ;;  %2280 = vmatprep.mubr.msk.f32.mxu0 %vm977_vm1, %v1542_v16 }
 0x399   : > { %2281 = vmatmul.mubr.msk.f32.vlgmr.msra.gmra.mrb[56].mxu0 %vm977_vm1, %v1543_v18 }
 0x39a   : > { %2283 = vmatprep.mubr.msk.f32.mxu0 %vm977_vm1, %v1544_v19 }
 0x39d   : > { %v2254_v21 = vpop.f32.mrb[60].mxu1  ;;  %2284 = vmatmul.mubr.msk.f32.gmra.mrb[58].mxu0 %vm977_vm1, %v1545_v20 }
 0x39e   : > { %v1504_v2 = vadd.f32 %v2254_v21, %v2486_v12  ;;  %v1495_v22 = vpop.f32.mrb[61].mxu1 }
 0x39f   : > { %v1496_v23 = vadd.f32 %v1495_v22, %v2486_v12  ;;  %v2255_v24 = vpop.f32.mrb[62].mxu1 }
 0x3a0   : > { %v1507_v25 = vadd.f32 %v2255_v24, %v2486_v12  ;;  %v1498_v26 = vpop.f32.mrb[63].mxu1  ;;  %v1548_v30 = vmax.f32 %v1504_v2, 0.0 }
 0x3a1   : > { %v1546_v9 = vmax.f32 %v1496_v23, 0.0  ;;  %v1499_v27 = vadd.f32 %v1498_v26, %v2486_v12 }
 0x3a2   : > { %v1549_v32 = vmax.f32 %v1507_v25, 0.0 }
 0x3a3   : > { %v1547_v28 = vmax.f32 %v1499_v27, 0.0  ;;  %2286 = vmatprep.mubr.msk.f32.mxu0 %vm977_vm1, %v1546_v9 }
 0x3a5   : > { %2287 = vmatmul.mubr.msk.f32.gmra.mrb[60].mxu0 %vm977_vm1, %v1547_v28 }
 0x3a6   : > { %2289 = vmatprep.mubr.msk.f32.mxu0 %vm977_vm1, %v1548_v30 }
 0x3a9   : > { %2290 = vmatmul.mubr.msk.f32.gmra.mrb[62].mxu0 %vm977_vm1, %v1549_v32 }
 0x3ad   : > { %v2258_v33 = vpop.f32.mrb[64].mxu1 }
 0x3ae   : > { %v1520_v34 = vadd.f32 %v2258_v33, %v2486_v12  ;;  %v1511_v35 = vpop.f32.mrb[65].mxu1 }
 0x3af   : > { %v1512_v36 = vadd.f32 %v1511_v35, %v2486_v12  ;;  %v2259_v37 = vpop.f32.mrb[66].mxu1 }
 0x3b0   : > { %v1523_v38 = vadd.f32 %v2259_v37, %v2486_v12  ;;  %v1514_v39 = vpop.f32.mrb[67].mxu1  ;;  %v1552_v43 = vmax.f32 %v1520_v34, 0.0 }
 0x3b1   : > { %v1550_v40 = vmax.f32 %v1512_v36, 0.0  ;;  %v1515_v41 = vadd.f32 %v1514_v39, %v2486_v12 }
 0x3b2   : > { %v1553_v44 = vmax.f32 %v1523_v38, 0.0 }
 0x3b3   : > { %v1551_v42 = vmax.f32 %v1515_v41, 0.0  ;;  %2292 = vmatprep.mubr.msk.f32.mxu0 %vm977_vm1, %v1550_v40 }
 0x3b5   : > { %2293 = vmatmul.mubr.msk.f32.gmra.mrb[64].mxu0 %vm977_vm1, %v1551_v42 }
 0x3b6   : > { %2295 = vmatprep.mubr.msk.f32.mxu0 %vm977_vm1, %v1552_v43 }
 0x3b9   : > { %2296 = vmatmul.mubr.msk.f32.gmra.mrb[66].mxu0 %vm977_vm1, %v1553_v44 }
 0x3bd   : > { %v2262_v45 = vpop.f32.mrb[68].mxu1 }
 0x3be   : > { %v1536_v46 = vadd.f32 %v2262_v45, %v2486_v12  ;;  %v1527_v47 = vpop.f32.mrb[69].mxu1 }
 0x3bf   : > { %v1528_v48 = vadd.f32 %v1527_v47, %v2486_v12  ;;  %v2263_v49 = vpop.f32.mrb[70].mxu1 }
 0x3c0   : > { %v1539_v50 = vadd.f32 %v2263_v49, %v2486_v12  ;;  %v1530_v51 = vpop.f32.mrb[71].mxu1  ;;  %v1556_v55 = vmax.f32 %v1536_v46, 0.0 }
 0x3c1   : > { %v1554_v52 = vmax.f32 %v1528_v48, 0.0  ;;  %v1531_v53 = vadd.f32 %v1530_v51, %v2486_v12 }
 0x3c2   : > { %v1557_v56 = vmax.f32 %v1539_v50, 0.0 }
 0x3c3   : > { %v1555_v54 = vmax.f32 %v1531_v53, 0.0  ;;  %2298 = vmatprep.mubr.msk.f32.mxu0 %vm977_vm1, %v1554_v52 }
 0x3c5   : > { %2299 = vmatmul.mubr.msk.f32.gmra.mrb[68].mxu0 %vm977_vm1, %v1555_v54 }
 0x3c6   : > { %2301 = vmatprep.mubr.msk.f32.mxu0 %vm977_vm1, %v1556_v55 }
 0x3c9   : > { %2302 = vmatmul.mubr.msk.f32.gmra.mrb[70].mxu0 %vm977_vm1, %v1557_v56 }
 0x46c   : > { %v2282_v12 = vpop.f32.mrb[56].mxu0 }
 0x46d   : > { %v1682_v57 = vadd.f32 %v2282_v12, %v2489_v13  ;;  %v1676_v58 = vpop.f32.mrb[57].mxu0 }
 0x46e   : > { %v1677_v7 = vadd.f32 %v1676_v58, %v2489_v13 }
 0x46f   : > { %1756 = vst [vmem:[%s2721_s24 + $0x8] sm:$0xff] %v1682_v57 }
 0x470   : > { %1755 = vst [vmem:[%s2721_s24] sm:$0xff] %v1677_v7  ;;  %v2285_v5 = vpop.f32.mrb[58].mxu0 }
 0x471   : > { %v1692_v31 = vadd.f32 %v2285_v5, %v2489_v13  ;;  %v1686_v29 = vpop.f32.mrb[59].mxu0 }
 0x472   : > { %v1687_v59 = vadd.f32 %v1686_v29, %v2489_v13 }
 0x473   : > { %1758 = vst [vmem:[%s2721_s24 + $0x18] sm:$0xff] %v1692_v31 }
 0x474   : > { %1757 = vst [vmem:[%s2721_s24 + $0x10] sm:$0xff] %v1687_v59 }
 0x478   : > { %v2288_v10 = vpop.f32.mrb[60].mxu0 }
 0x479   : > { %v1702_v60 = vadd.f32 %v2288_v10, %v2489_v13  ;;  %v1696_v61 = vpop.f32.mrb[61].mxu0 }
 0x47a   : > { %v1697_v62 = vadd.f32 %v1696_v61, %v2489_v13 }
 0x47b   : > { %1760 = vst [vmem:[%s2721_s24 + $0x28] sm:$0xff] %v1702_v60 }
 0x47c   : > { %1759 = vst [vmem:[%s2721_s24 + $0x20] sm:$0xff] %v1697_v62  ;;  %v2291_v63 = vpop.f32.mrb[62].mxu0 }
 0x47d   : > { %v1712_v0 = vadd.f32 %v2291_v63, %v2489_v13  ;;  %v1706_v1 = vpop.f32.mrb[63].mxu0 }
 0x47e   : > { %v1707_v11 = vadd.f32 %v1706_v1, %v2489_v13 }
 0x47f   : > { %1762 = vst [vmem:[%s2721_s24 + $0x38] sm:$0xff] %v1712_v0 }
 0x480   : > { %1761 = vst [vmem:[%s2721_s24 + $0x30] sm:$0xff] %v1707_v11 }
 0x488   : > { %v2294_v3 = vpop.f32.mrb[64].mxu0 }
 0x489   : > { %v1722_v4 = vadd.f32 %v2294_v3, %v2489_v13  ;;  %v1716_v6 = vpop.f32.mrb[65].mxu0 }
 0x48a   : > { %v1717_v8 = vadd.f32 %v1716_v6, %v2489_v13 }
 0x48b   : > { %1764 = vst [vmem:[%s2721_s24 + $0x48] sm:$0xff] %v1722_v4 }
 0x48c   : > { %1763 = vst [vmem:[%s2721_s24 + $0x40] sm:$0xff] %v1717_v8  ;;  %v2297_v14 = vpop.f32.mrb[66].mxu0 }
 0x48d   : > { %v1732_v15 = vadd.f32 %v2297_v14, %v2489_v13  ;;  %v1726_v16 = vpop.f32.mrb[67].mxu0 }
 0x48e   : > { %v1727_v17 = vadd.f32 %v1726_v16, %v2489_v13 }
 0x48f   : > { %1766 = vst [vmem:[%s2721_s24 + $0x58] sm:$0xff] %v1732_v15 }
 0x490   : > { %1765 = vst [vmem:[%s2721_s24 + $0x50] sm:$0xff] %v1727_v17 }
 0x498   : > { %v2300_v18 = vpop.f32.mrb[68].mxu0 }
 0x499   : > { %v1742_v19 = vadd.f32 %v2300_v18, %v2489_v13  ;;  %v1736_v20 = vpop.f32.mrb[69].mxu0 }
 0x49a   : > { %v1737_v21 = vadd.f32 %v1736_v20, %v2489_v13 }
 0x49b   : > { %1768 = vst [vmem:[%s2721_s24 + $0x68] sm:$0xff] %v1742_v19 }
 0x49c   : > { %1767 = vst [vmem:[%s2721_s24 + $0x60] sm:$0xff] %v1737_v21  ;;  %v2303_v2 = vpop.f32.mrb[70].mxu0 }
 0x49d   : > { %v1752_v22 = vadd.f32 %v2303_v2, %v2489_v13  ;;  %v1746_v23 = vpop.f32.mrb[71].mxu0 }
 0x49e   : > { %v1747_v24 = vadd.f32 %v1746_v23, %v2489_v13 }
 0x49f   : > { %1770 = vst [vmem:[%s2721_s24 + $0x78] sm:$0xff] %v1752_v22 }
 0x4a0   : > { %1769 = vst [vmem:[%s2721_s24 + $0x70] sm:$0xff] %v1747_v24 }
 0x4a1 PF: > { %s15_s20 = sadd.s32 1, %s2399_s20   ;;  %s2770_s18 = smov %s2395_s19 }
 0x4a2   : > { %p12_p5 = scmp.ge.s32.totalorder %s15_s20, 5   ;;  %s2771_s19 = smov %s2773_s21 }
 0x4a4   :  { %14 = sbr.rel (!%p12_p5) target bundleno = 2 (0x2), region = 82 }

</bundles_post_ra>
